<compile_context>
chip_gen: v5e
topology: v5e:2x2
jax: 0.10.0
libtpu: 0.0.40
codegen_flags: <defaults>
</compile_context>

<pallas_src>
from functools import partial

import jax
import jax.numpy as jnp
from jax.experimental import pallas as pl
from jax.experimental.pallas import tpu as pltpu

EPS = 1e-5
F_PAD = 128                    # every channel/feature axis zero-padded to one lane tile
MATMUL_DTYPE = jnp.bfloat16    # jnp.float32 => exact fp32 parity with PyTorch

_COMPILER_PARAMS = pltpu.CompilerParams(
    dimension_semantics=("arbitrary",),
    vmem_limit_bytes=32 * 1024 * 1024,   # well within every generation's VMEM
)


# ----------------------------------------------------------------------------
# Pallas kernels
# ----------------------------------------------------------------------------
def _conv_bn_pool(p_ref, w, gamma, beta):
    """Shared conv-as-matmul + train-mode BN + folded affine+max epilogue.

    p_ref: (4, P, Kp) im2col slabs, one per 2x2 pool-window position; together
           the 4 slabs cover all N*OH*OW conv outputs (OH, OW even).
    Returns the pooled, BN-affine'd, ReLU'd activations (P, 128) in f32.
    Conv bias is intentionally absent (cancelled by the BN mean subtraction).
    """
    zs = [jnp.dot(p_ref[t], w, preferred_element_type=jnp.float32) for t in range(4)]
    inv_n = 1.0 / (4.0 * zs[0].shape[0])                 # stats over all conv outputs
    mu = sum(jnp.sum(z, axis=0, keepdims=True) for z in zs) * inv_n
    var = sum(jnp.sum((z - mu) * (z - mu), axis=0, keepdims=True) for z in zs) * inv_n
    scale = gamma * jax.lax.rsqrt(var + EPS)
    shift = beta - mu * scale
    m = zs[0] * scale + shift                            # fold affine into running max
    for t in range(1, 4):
        m = jnp.maximum(m, zs[t] * scale + shift)
    return jnp.maximum(m, 0.0)                           # relu∘maxpool == maxpool∘relu


def _bn1d_relu(z, gamma, beta):
    """Train-mode BatchNorm1d (biased var) + ReLU, all f32."""
    mu = jnp.mean(z, axis=0, keepdims=True)
    var = jnp.mean((z - mu) * (z - mu), axis=0, keepdims=True)
    scale = gamma * jax.lax.rsqrt(var + EPS)
    return jnp.maximum(z * scale + (beta - mu * scale), 0.0)


def conv1_kernel(p_ref, w_ref, g_ref, b_ref, o_ref):
    """conv1 + BN + ReLU + 2x2 max-pool.  o_ref: (N*14*14, 128), lane-dense."""
    o_ref[...] = _conv_bn_pool(p_ref, w_ref[...], g_ref[...], b_ref[...]).astype(o_ref.dtype)


def conv2_fc_stack_kernel(p_ref, w2_ref, g2_ref, b2_ref,
                          wf1_ref, g3_ref, b3_ref,
                          wf2_ref, g4_ref, b4_ref,
                          wf3_ref, bf3_ref,
                          o_ref, pooled_ref):
    """conv2+BN+ReLU+pool fused with the whole FC head (h1/h2 never leave VMEM).

    p_ref rows are position-major: row = (ph*5+pw)*N + n, so fc1 is a sum of 25
    per-position (N,128)@(128,128) matmuls against wf1_ref: (25, 128, 128).
    pooled_ref: VMEM scratch (25*N, 128) f32 holding the pooled conv2 output.
    """
    n = o_ref.shape[0]                                   # batch size

    pooled_ref[...] = _conv_bn_pool(p_ref, w2_ref[...], g2_ref[...], b2_ref[...])

    # fc1 (bias cancelled by BN): accumulate 25 per-position matmuls in f32.
    z1 = jnp.zeros((n, F_PAD), jnp.float32)
    for p in range(25):
        chunk = pooled_ref[pl.ds(p * n, n), :].astype(MATMUL_DTYPE)
        z1 = z1 + jnp.dot(chunk, wf1_ref[p], preferred_element_type=jnp.float32)
    h1 = _bn1d_relu(z1, g3_ref[...], b3_ref[...])

    z2 = jnp.dot(h1.astype(MATMUL_DTYPE), wf2_ref[...], preferred_element_type=jnp.float32)
    h2 = _bn1d_relu(z2, g4_ref[...], b4_ref[...])

    o_ref[...] = jnp.dot(h2.astype(MATMUL_DTYPE), wf3_ref[...],
                         preferred_element_type=jnp.float32) + bf3_ref[...]


# ----------------------------------------------------------------------------
# Pallas wrappers
# ----------------------------------------------------------------------------
def _full_spec(shape):
    return pl.BlockSpec(shape, lambda i: (0,) * len(shape))


def conv1_block(slabs, w, g, b):
    _, P, Kp = slabs.shape
    return pl.pallas_call(
        conv1_kernel,
        out_shape=jax.ShapeDtypeStruct((P, F_PAD), MATMUL_DTYPE),
        grid=(1,),
        in_specs=[_full_spec((4, P, Kp)), _full_spec((Kp, F_PAD)),
                  _full_spec((1, F_PAD)), _full_spec((1, F_PAD))],
        out_specs=_full_spec((P, F_PAD)),
        compiler_params=_COMPILER_PARAMS,
    )(slabs, w, g, b)


def conv2_fc_block(slabs, prep, n_batch):
    _, P2, Kp = slabs.shape
    return pl.pallas_call(
        conv2_fc_stack_kernel,
        out_shape=jax.ShapeDtypeStruct((n_batch, F_PAD), jnp.float32),
        grid=(1,),
        in_specs=[_full_spec((4, P2, Kp)), _full_spec((Kp, F_PAD)),
                  _full_spec((1, F_PAD)), _full_spec((1, F_PAD)),
                  _full_spec((25, F_PAD, F_PAD)),
                  _full_spec((1, F_PAD)), _full_spec((1, F_PAD)),
                  _full_spec((F_PAD, F_PAD)),
                  _full_spec((1, F_PAD)), _full_spec((1, F_PAD)),
                  _full_spec((F_PAD, F_PAD)), _full_spec((1, F_PAD))],
        out_specs=_full_spec((n_batch, F_PAD)),
        scratch_shapes=[pltpu.VMEM((P2, F_PAD), jnp.float32)],
        compiler_params=_COMPILER_PARAMS,
    )(slabs, prep["w2"], prep["g2"], prep["b2"],
      prep["wf1"], prep["g3"], prep["b3"],
      prep["wf2"], prep["g4"], prep["b4"],
      prep["wf3"], prep["bf3"])


# ----------------------------------------------------------------------------
# Activation glue: NHWC im2col grouped into 2x2 pool-window slabs, K padded to 128x
# ----------------------------------------------------------------------------
def _im2col_pool_slabs(x_nhwc, kh, kw, *, pos_major):
    """(N,H,W,C) -> (4, N*PH*PW, K_pad).  Patch column order = (c, i, j), matching
    PyTorch weight.reshape(Cout, -1).  Slab t=(a,b) holds conv outputs at
    (2*ph+a, 2*pw+b).  Rows: batch-major n*PH*PW+ph*PW+pw, or position-major
    (ph*PW+pw)*N+n (used by the fused fc1)."""
    N, H, W, C = x_nhwc.shape
    OH, OW = H - kh + 1, W - kw + 1
    PH, PW = OH // 2, OW // 2
    K = C * kh * kw
    k_pad = ((K + 127) // 128) * 128
    taps = [x_nhwc[:, i:i + OH, j:j + OW, :] for i in range(kh) for j in range(kw)]
    p = jnp.stack(taps, axis=-1).reshape(N, OH, OW, K)      # col = c*kh*kw + i*kw + j
    slabs = []
    for a in range(2):
        for b in range(2):
            s = p[:, a::2, b::2, :]                          # (N, PH, PW, K)
            if pos_major:
                s = s.transpose(1, 2, 0, 3)                  # (PH, PW, N, K)
            slabs.append(s.reshape(-1, K))
    slabs = jnp.stack(slabs, axis=0)                         # (4, N*PH*PW, K)
    return jnp.pad(slabs, ((0, 0), (0, 0), (0, k_pad - K))).astype(MATMUL_DTYPE)


# ----------------------------------------------------------------------------
# One-time parameter preparation (hoisted out of the per-call forward).
# ----------------------------------------------------------------------------
def prepare_params(params):
    """Reshape / transpose / zero-pad every weight once, outside the forward."""
    mdt = MATMUL_DTYPE

    def vec(v):  # (F,) -> (1, 128) f32, zero-padded (pad lanes stay exact zeros)
        return jnp.pad(v.astype(jnp.float32), (0, F_PAD - v.shape[0]))[None, :]

    w1 = jnp.pad(params["conv1_w"].reshape(6, 75).T, ((0, 128 - 75), (0, F_PAD - 6)))
    w2 = jnp.pad(params["conv2_w"].reshape(16, 150).T, ((0, 256 - 150), (0, F_PAD - 16)))

    # fc1 weight grouped by spatial position p = h*5+w: wf1[p, c, o] = fc1_w[o, c*25+p]
    wf1 = params["fc1_w"].reshape(120, 16, 5, 5).transpose(2, 3, 1, 0).reshape(25, 16, 120)
    wf1 = jnp.pad(wf1, ((0, 0), (0, F_PAD - 16), (0, F_PAD - 120)))

    wf2 = jnp.pad(params["fc2_w"].T, ((0, F_PAD - 120), (0, F_PAD - 84)))
    nc = params["fc3_w"].shape[0]
    wf3 = jnp.pad(params["fc3_w"].T, ((0, F_PAD - 84), (0, F_PAD - nc)))

    return {
        "w1": w1.astype(mdt), "g1": vec(params["bn1_g"]), "b1": vec(params["bn1_b"]),
        "w2": w2.astype(mdt), "g2": vec(params["bn2_g"]), "b2": vec(params["bn2_b"]),
        "wf1": wf1.astype(mdt), "g3": vec(params["bn3_g"]), "b3": vec(params["bn3_b"]),
        "wf2": wf2.astype(mdt), "g4": vec(params["bn4_g"]), "b4": vec(params["bn4_b"]),
        "wf3": wf3.astype(mdt), "bf3": vec(params["fc3_b"]),
    }


# ----------------------------------------------------------------------------
# Full forward pass (2 pallas_call launches)
# ----------------------------------------------------------------------------
@partial(jax.jit, static_argnames=("num_classes",))
def lenet5_bn_forward(x_nchw, prep, num_classes=10):
    N = x_nchw.shape[0]
    x = jnp.transpose(x_nchw, (0, 2, 3, 1)).astype(MATMUL_DTYPE)     # NHWC once, tiny

    # conv1 + BN + ReLU + maxpool2x2 -> (N*14*14, 128), rows (n, ph, pw)
    y1 = conv1_block(_im2col_pool_slabs(x, 5, 5, pos_major=False),
                     prep["w1"], prep["g1"], prep["b1"])
    y1 = y1.reshape(N, 14, 14, F_PAD)[..., :6]      # keep real channels for conv2 im2col

    # conv2 + BN + ReLU + maxpool2x2 + fc1+BN+ReLU + fc2+BN+ReLU + fc3, one kernel
    out = conv2_fc_block(_im2col_pool_slabs(y1, 5, 5, pos_major=True), prep, N)
    return out[:, :num_classes]                      # drop zero-padded logit lanes


# ----------------------------------------------------------------------------
# Deterministic synthetic parameters (shapes from LeNet5_bn.__init__).
# conv1_b / conv2_b / fc1_b / fc2_b kept for interface parity but unused: a bias
# added before train-mode BatchNorm is cancelled exactly by the batch mean.
# ----------------------------------------------------------------------------
def init_params(key, num_classes=10):
    ks = jax.random.split(key, 16)
    n = lambda k, shp, s: (s * jax.random.normal(k, shp)).astype(jnp.float32)
    return {
        "conv1_w": n(ks[0], (6, 3, 5, 5), 0.1),   "conv1_b": n(ks[1], (6,), 0.1),
        "bn1_g":   1.0 + n(ks[2], (6,), 0.05),    "bn1_b":   n(ks[3], (6,), 0.05),
        "conv2_w": n(ks[4], (16, 6, 5, 5), 0.1),  "conv2_b": n(ks[5], (16,), 0.1),
        "bn2_g":   1.0 + n(ks[6], (16,), 0.05),   "bn2_b":   n(ks[7], (16,), 0.05),
        "fc1_w":   n(ks[8], (120, 400), 0.05),    "fc1_b":   n(ks[9], (120,), 0.05),
        "bn3_g":   1.0 + n(ks[10], (120,), 0.05), "bn3_b":   n(ks[11], (120,), 0.05),
        "fc2_w":   n(ks[12], (84, 120), 0.05),    "fc2_b":   n(ks[13], (84,), 0.05),
        "bn4_g":   1.0 + n(ks[14], (84,), 0.05),  "bn4_b":   n(ks[15], (84,), 0.05),
        "fc3_w":   n(jax.random.fold_in(key, 100), (num_classes, 84), 0.05),
        "fc3_b":   n(jax.random.fold_in(key, 101), (num_classes,), 0.05),
    }


if __name__ == "__main__":
    key = jax.random.PRNGKey(0)
    k_x, k_p = jax.random.split(key)
    # CIFAR-10 geometry is forced by the module (16*5*5 flatten => 3x32x32 input).
    x = jax.random.normal(k_x, (2, 3, 32, 32), dtype=jnp.float32)
    params = init_params(k_p, num_classes=10)

    prep = prepare_params(params)                      # one-time weight preprocessing
    out = jax.block_until_ready(lenet5_bn_forward(x, prep, num_classes=10))

    assert out.shape == (2, 10) and out.dtype == jnp.float32
    assert bool(jnp.all(jnp.isfinite(out)))
    print("KERNEL_OK")
</pallas_src>

<mosaic_0001>
module attributes {stable_mosaic.version = 11 : i64} {
  func.func @conv1_kernel(%arg0: i32, %arg1: memref<4x392x128xbf16, #tpu.memory_space<vmem>>, %arg2: memref<128x128xbf16, #tpu.memory_space<vmem>>, %arg3: memref<1x128xf32, #tpu.memory_space<vmem>>, %arg4: memref<1x128xf32, #tpu.memory_space<vmem>>, %arg5: memref<392x128xbf16, #tpu.memory_space<vmem>>) attributes {dimension_semantics = [#tpu.dimension_semantics<arbitrary>], iteration_bounds = array<i64: 1>, scalar_prefetch = 0 : i64, scratch_operands = 0 : i64, tpu.core_type = #tpu.core_type<tc>, window_params = [{pipeline_mode = #tpu.pipeline_mode<synchronous>, transform_indices = @transform_0, window_bounds = array<i64: 4, 392, 128>}, {pipeline_mode = #tpu.pipeline_mode<synchronous>, transform_indices = @transform_1, window_bounds = array<i64: 128, 128>}, {pipeline_mode = #tpu.pipeline_mode<synchronous>, transform_indices = @transform_2, window_bounds = array<i64: 1, 128>}, {pipeline_mode = #tpu.pipeline_mode<synchronous>, transform_indices = @transform_3, window_bounds = array<i64: 1, 128>}, {pipeline_mode = #tpu.pipeline_mode<synchronous>, transform_indices = @transform_4, window_bounds = array<i64: 392, 128>}]} {
    %c0 = arith.constant 0 : index
    %c0_0 = arith.constant 0 : index
    %0 = vector.load %arg2[%c0, %c0_0] : memref<128x128xbf16, #tpu.memory_space<vmem>>, vector<128x128xbf16>
    %c0_1 = arith.constant 0 : index
    %c0_2 = arith.constant 0 : index
    %1 = vector.load %arg3[%c0_1, %c0_2] : memref<1x128xf32, #tpu.memory_space<vmem>>, vector<1x128xf32>
    %c0_3 = arith.constant 0 : index
    %c0_4 = arith.constant 0 : index
    %2 = vector.load %arg4[%c0_3, %c0_4] : memref<1x128xf32, #tpu.memory_space<vmem>>, vector<1x128xf32>
    %c0_5 = arith.constant 0 : index
    %c0_6 = arith.constant 0 : index
    %c0_7 = arith.constant 0 : index
    %3 = vector.load %arg1[%c0_5, %c0_6, %c0_7] : memref<4x392x128xbf16, #tpu.memory_space<vmem>>, vector<1x392x128xbf16>
    %4 = vector.shape_cast %3 : vector<1x392x128xbf16> to vector<392x128xbf16>
    %cst = arith.constant dense<0.000000e+00> : vector<392x128xf32>
    %5 = tpu.matmul %4, %0, %cst {dimension_numbers = #tpu.dot_dimension_numbers<[1], [0], [0], [1], [0, 0, 1, 1], [], []>} : vector<392x128xbf16>, vector<128x128xbf16>, vector<392x128xf32> -> vector<392x128xf32>
    %c1 = arith.constant 1 : index
    %c0_8 = arith.constant 0 : index
    %c0_9 = arith.constant 0 : index
    %6 = vector.load %arg1[%c1, %c0_8, %c0_9] : memref<4x392x128xbf16, #tpu.memory_space<vmem>>, vector<1x392x128xbf16>
    %7 = vector.shape_cast %6 : vector<1x392x128xbf16> to vector<392x128xbf16>
    %cst_10 = arith.constant dense<0.000000e+00> : vector<392x128xf32>
    %8 = tpu.matmul %7, %0, %cst_10 {dimension_numbers = #tpu.dot_dimension_numbers<[1], [0], [0], [1], [0, 0, 1, 1], [], []>} : vector<392x128xbf16>, vector<128x128xbf16>, vector<392x128xf32> -> vector<392x128xf32>
    %c2 = arith.constant 2 : index
    %c0_11 = arith.constant 0 : index
    %c0_12 = arith.constant 0 : index
    %9 = vector.load %arg1[%c2, %c0_11, %c0_12] : memref<4x392x128xbf16, #tpu.memory_space<vmem>>, vector<1x392x128xbf16>
    %10 = vector.shape_cast %9 : vector<1x392x128xbf16> to vector<392x128xbf16>
    %cst_13 = arith.constant dense<0.000000e+00> : vector<392x128xf32>
    %11 = tpu.matmul %10, %0, %cst_13 {dimension_numbers = #tpu.dot_dimension_numbers<[1], [0], [0], [1], [0, 0, 1, 1], [], []>} : vector<392x128xbf16>, vector<128x128xbf16>, vector<392x128xf32> -> vector<392x128xf32>
    %c3 = arith.constant 3 : index
    %c0_14 = arith.constant 0 : index
    %c0_15 = arith.constant 0 : index
    %12 = vector.load %arg1[%c3, %c0_14, %c0_15] : memref<4x392x128xbf16, #tpu.memory_space<vmem>>, vector<1x392x128xbf16>
    %13 = vector.shape_cast %12 : vector<1x392x128xbf16> to vector<392x128xbf16>
    %cst_16 = arith.constant dense<0.000000e+00> : vector<392x128xf32>
    %14 = tpu.matmul %13, %0, %cst_16 {dimension_numbers = #tpu.dot_dimension_numbers<[1], [0], [0], [1], [0, 0, 1, 1], [], []>} : vector<392x128xbf16>, vector<128x128xbf16>, vector<392x128xf32> -> vector<392x128xf32>
    %cst_17 = arith.constant dense<0.000000e+00> : vector<128xf32>
    %15 = vector.multi_reduction <add>, %5, %cst_17 [0] : vector<392x128xf32> to vector<128xf32>
    %16 = vector.shape_cast %15 : vector<128xf32> to vector<1x128xf32>
    %cst_18 = arith.constant 0.000000e+00 : f32
    %17 = vector.broadcast %cst_18 : f32 to vector<1x128xf32>
    %18 = arith.addf %17, %16 : vector<1x128xf32>
    %cst_19 = arith.constant dense<0.000000e+00> : vector<128xf32>
    %19 = vector.multi_reduction <add>, %8, %cst_19 [0] : vector<392x128xf32> to vector<128xf32>
    %20 = vector.shape_cast %19 : vector<128xf32> to vector<1x128xf32>
    %21 = arith.addf %18, %20 : vector<1x128xf32>
    %cst_20 = arith.constant dense<0.000000e+00> : vector<128xf32>
    %22 = vector.multi_reduction <add>, %11, %cst_20 [0] : vector<392x128xf32> to vector<128xf32>
    %23 = vector.shape_cast %22 : vector<128xf32> to vector<1x128xf32>
    %24 = arith.addf %21, %23 : vector<1x128xf32>
    %cst_21 = arith.constant dense<0.000000e+00> : vector<128xf32>
    %25 = vector.multi_reduction <add>, %14, %cst_21 [0] : vector<392x128xf32> to vector<128xf32>
    %26 = vector.shape_cast %25 : vector<128xf32> to vector<1x128xf32>
    %27 = arith.addf %24, %26 : vector<1x128xf32>
    %cst_22 = arith.constant 6.37755089E-4 : f32
    %28 = vector.broadcast %cst_22 : f32 to vector<1x128xf32>
    %29 = arith.mulf %27, %28 : vector<1x128xf32>
    %30 = vector.broadcast %29 : vector<1x128xf32> to vector<392x128xf32>
    %31 = arith.subf %5, %30 : vector<392x128xf32>
    %32 = vector.broadcast %29 : vector<1x128xf32> to vector<392x128xf32>
    %33 = arith.subf %5, %32 : vector<392x128xf32>
    %34 = arith.mulf %31, %33 : vector<392x128xf32>
    %cst_23 = arith.constant dense<0.000000e+00> : vector<128xf32>
    %35 = vector.multi_reduction <add>, %34, %cst_23 [0] : vector<392x128xf32> to vector<128xf32>
    %36 = vector.shape_cast %35 : vector<128xf32> to vector<1x128xf32>
    %cst_24 = arith.constant 0.000000e+00 : f32
    %37 = vector.broadcast %cst_24 : f32 to vector<1x128xf32>
    %38 = arith.addf %37, %36 : vector<1x128xf32>
    %39 = vector.broadcast %29 : vector<1x128xf32> to vector<392x128xf32>
    %40 = arith.subf %8, %39 : vector<392x128xf32>
    %41 = vector.broadcast %29 : vector<1x128xf32> to vector<392x128xf32>
    %42 = arith.subf %8, %41 : vector<392x128xf32>
    %43 = arith.mulf %40, %42 : vector<392x128xf32>
    %cst_25 = arith.constant dense<0.000000e+00> : vector<128xf32>
    %44 = vector.multi_reduction <add>, %43, %cst_25 [0] : vector<392x128xf32> to vector<128xf32>
    %45 = vector.shape_cast %44 : vector<128xf32> to vector<1x128xf32>
    %46 = arith.addf %38, %45 : vector<1x128xf32>
    %47 = vector.broadcast %29 : vector<1x128xf32> to vector<392x128xf32>
    %48 = arith.subf %11, %47 : vector<392x128xf32>
    %49 = vector.broadcast %29 : vector<1x128xf32> to vector<392x128xf32>
    %50 = arith.subf %11, %49 : vector<392x128xf32>
    %51 = arith.mulf %48, %50 : vector<392x128xf32>
    %cst_26 = arith.constant dense<0.000000e+00> : vector<128xf32>
    %52 = vector.multi_reduction <add>, %51, %cst_26 [0] : vector<392x128xf32> to vector<128xf32>
    %53 = vector.shape_cast %52 : vector<128xf32> to vector<1x128xf32>
    %54 = arith.addf %46, %53 : vector<1x128xf32>
    %55 = vector.broadcast %29 : vector<1x128xf32> to vector<392x128xf32>
    %56 = arith.subf %14, %55 : vector<392x128xf32>
    %57 = vector.broadcast %29 : vector<1x128xf32> to vector<392x128xf32>
    %58 = arith.subf %14, %57 : vector<392x128xf32>
    %59 = arith.mulf %56, %58 : vector<392x128xf32>
    %cst_27 = arith.constant dense<0.000000e+00> : vector<128xf32>
    %60 = vector.multi_reduction <add>, %59, %cst_27 [0] : vector<392x128xf32> to vector<128xf32>
    %61 = vector.shape_cast %60 : vector<128xf32> to vector<1x128xf32>
    %62 = arith.addf %54, %61 : vector<1x128xf32>
    %cst_28 = arith.constant 6.37755089E-4 : f32
    %63 = vector.broadcast %cst_28 : f32 to vector<1x128xf32>
    %64 = arith.mulf %62, %63 : vector<1x128xf32>
    %cst_29 = arith.constant 9.99999974E-6 : f32
    %65 = vector.broadcast %cst_29 : f32 to vector<1x128xf32>
    %66 = arith.addf %64, %65 : vector<1x128xf32>
    %67 = math.rsqrt %66 : vector<1x128xf32>
    %68 = arith.mulf %1, %67 : vector<1x128xf32>
    %69 = arith.mulf %29, %68 : vector<1x128xf32>
    %70 = arith.subf %2, %69 : vector<1x128xf32>
    %71 = vector.broadcast %68 : vector<1x128xf32> to vector<392x128xf32>
    %72 = arith.mulf %5, %71 : vector<392x128xf32>
    %73 = vector.broadcast %70 : vector<1x128xf32> to vector<392x128xf32>
    %74 = arith.addf %72, %73 : vector<392x128xf32>
    %75 = vector.broadcast %68 : vector<1x128xf32> to vector<392x128xf32>
    %76 = arith.mulf %8, %75 : vector<392x128xf32>
    %77 = vector.broadcast %70 : vector<1x128xf32> to vector<392x128xf32>
    %78 = arith.addf %76, %77 : vector<392x128xf32>
    %79 = arith.maximumf %74, %78 : vector<392x128xf32>
    %80 = vector.broadcast %68 : vector<1x128xf32> to vector<392x128xf32>
    %81 = arith.mulf %11, %80 : vector<392x128xf32>
    %82 = vector.broadcast %70 : vector<1x128xf32> to vector<392x128xf32>
    %83 = arith.addf %81, %82 : vector<392x128xf32>
    %84 = arith.maximumf %79, %83 : vector<392x128xf32>
    %85 = vector.broadcast %68 : vector<1x128xf32> to vector<392x128xf32>
    %86 = arith.mulf %14, %85 : vector<392x128xf32>
    %87 = vector.broadcast %70 : vector<1x128xf32> to vector<392x128xf32>
    %88 = arith.addf %86, %87 : vector<392x128xf32>
    %89 = arith.maximumf %84, %88 : vector<392x128xf32>
    %cst_30 = arith.constant 0.000000e+00 : f32
    %90 = vector.broadcast %cst_30 : f32 to vector<392x128xf32>
    %91 = arith.maximumf %89, %90 : vector<392x128xf32>
    %92 = arith.truncf %91 : vector<392x128xf32> to vector<392x128xbf16>
    %c0_31 = arith.constant 0 : index
    %c0_32 = arith.constant 0 : index
    %93 = vector.load %arg5[%c0_31, %c0_32] : memref<392x128xbf16, #tpu.memory_space<vmem>>, vector<392x128xbf16>
    tpu.vector_store %arg5[%c0_31, %c0_32], %92 {strides = array<i32>} : memref<392x128xbf16, #tpu.memory_space<vmem>>, vector<392x128xbf16>,
    return
  }
  func.func @transform_0(%arg0: i32) -> (i32, i32, i32) {
    %c0_i32 = arith.constant 0 : i32
    %c0_i32_0 = arith.constant 0 : i32
    %c0_i32_1 = arith.constant 0 : i32
    %c0_i32_2 = arith.constant 0 : i32
    return %c0_i32, %c0_i32_0, %c0_i32_1 : i32, i32, i32
  }
  func.func @transform_1(%arg0: i32) -> (i32, i32) {
    %c0_i32 = arith.constant 0 : i32
    %c0_i32_0 = arith.constant 0 : i32
    %c0_i32_1 = arith.constant 0 : i32
    return %c0_i32, %c0_i32_0 : i32, i32
  }
  func.func @transform_2(%arg0: i32) -> (i32, i32) {
    %c0_i32 = arith.constant 0 : i32
    %c0_i32_0 = arith.constant 0 : i32
    %c0_i32_1 = arith.constant 0 : i32
    return %c0_i32, %c0_i32_0 : i32, i32
  }
  func.func @transform_3(%arg0: i32) -> (i32, i32) {
    %c0_i32 = arith.constant 0 : i32
    %c0_i32_0 = arith.constant 0 : i32
    %c0_i32_1 = arith.constant 0 : i32
    return %c0_i32, %c0_i32_0 : i32, i32
  }
  func.func @transform_4(%arg0: i32) -> (i32, i32) {
    %c0_i32 = arith.constant 0 : i32
    %c0_i32_0 = arith.constant 0 : i32
    %c0_i32_1 = arith.constant 0 : i32
    return %c0_i32, %c0_i32_0 : i32, i32
  }
}

module attributes {stable_mosaic.version = 11 : i64} {
  func.func @conv2_fc_stack_kernel(%arg0: i32, %arg1: memref<4x50x256xbf16, #tpu.memory_space<vmem>>, %arg2: memref<256x128xbf16, #tpu.memory_space<vmem>>, %arg3: memref<1x128xf32, #tpu.memory_space<vmem>>, %arg4: memref<1x128xf32, #tpu.memory_space<vmem>>, %arg5: memref<25x128x128xbf16, #tpu.memory_space<vmem>>, %arg6: memref<1x128xf32, #tpu.memory_space<vmem>>, %arg7: memref<1x128xf32, #tpu.memory_space<vmem>>, %arg8: memref<128x128xbf16, #tpu.memory_space<vmem>>, %arg9: memref<1x128xf32, #tpu.memory_space<vmem>>, %arg10: memref<1x128xf32, #tpu.memory_space<vmem>>, %arg11: memref<128x128xbf16, #tpu.memory_space<vmem>>, %arg12: memref<1x128xf32, #tpu.memory_space<vmem>>, %arg13: memref<2x128xf32, #tpu.memory_space<vmem>>, %arg14: memref<50x128xf32, #tpu.memory_space<vmem>>) attributes {dimension_semantics = [#tpu.dimension_semantics<arbitrary>], iteration_bounds = array<i64: 1>, scalar_prefetch = 0 : i64, scratch_operands = 1 : i64, tpu.core_type = #tpu.core_type<tc>, window_params = [{pipeline_mode = #tpu.pipeline_mode<synchronous>, transform_indices = @transform_0, window_bounds = array<i64: 4, 50, 256>}, {pipeline_mode = #tpu.pipeline_mode<synchronous>, transform_indices = @transform_1, window_bounds = array<i64: 256, 128>}, {pipeline_mode = #tpu.pipeline_mode<synchronous>, transform_indices = @transform_2, window_bounds = array<i64: 1, 128>}, {pipeline_mode = #tpu.pipeline_mode<synchronous>, transform_indices = @transform_3, window_bounds = array<i64: 1, 128>}, {pipeline_mode = #tpu.pipeline_mode<synchronous>, transform_indices = @transform_4, window_bounds = array<i64: 25, 128, 128>}, {pipeline_mode = #tpu.pipeline_mode<synchronous>, transform_indices = @transform_5, window_bounds = array<i64: 1, 128>}, {pipeline_mode = #tpu.pipeline_mode<synchronous>, transform_indices = @transform_6, window_bounds = array<i64: 1, 128>}, {pipeline_mode = #tpu.pipeline_mode<synchronous>, transform_indices = @transform_7, window_bounds = array<i64: 128, 128>}, {pipeline_mode = #tpu.pipeline_mode<synchronous>, transform_indices = @transform_8, window_bounds = array<i64: 1, 128>}, {pipeline_mode = #tpu.pipeline_mode<synchronous>, transform_indices = @transform_9, window_bounds = array<i64: 1, 128>}, {pipeline_mode = #tpu.pipeline_mode<synchronous>, transform_indices = @transform_10, window_bounds = array<i64: 128, 128>}, {pipeline_mode = #tpu.pipeline_mode<synchronous>, transform_indices = @transform_11, window_bounds = array<i64: 1, 128>}, {pipeline_mode = #tpu.pipeline_mode<synchronous>, transform_indices = @transform_12, window_bounds = array<i64: 2, 128>}]} {
    %c0 = arith.constant 0 : index
    %c0_0 = arith.constant 0 : index
    %0 = vector.load %arg2[%c0, %c0_0] : memref<256x128xbf16, #tpu.memory_space<vmem>>, vector<256x128xbf16>
    %c0_1 = arith.constant 0 : index
    %c0_2 = arith.constant 0 : index
    %1 = vector.load %arg3[%c0_1, %c0_2] : memref<1x128xf32, #tpu.memory_space<vmem>>, vector<1x128xf32>
    %c0_3 = arith.constant 0 : index
    %c0_4 = arith.constant 0 : index
    %2 = vector.load %arg4[%c0_3, %c0_4] : memref<1x128xf32, #tpu.memory_space<vmem>>, vector<1x128xf32>
    %c0_5 = arith.constant 0 : index
    %c0_6 = arith.constant 0 : index
    %c0_7 = arith.constant 0 : index
    %3 = vector.load %arg1[%c0_5, %c0_6, %c0_7] : memref<4x50x256xbf16, #tpu.memory_space<vmem>>, vector<1x50x256xbf16>
    %4 = vector.shape_cast %3 : vector<1x50x256xbf16> to vector<50x256xbf16>
    %cst = arith.constant dense<0.000000e+00> : vector<50x128xf32>
    %5 = tpu.matmul %4, %0, %cst {dimension_numbers = #tpu.dot_dimension_numbers<[1], [0], [0], [1], [0, 0, 1, 1], [], []>} : vector<50x256xbf16>, vector<256x128xbf16>, vector<50x128xf32> -> vector<50x128xf32>
    %c1 = arith.constant 1 : index
    %c0_8 = arith.constant 0 : index
    %c0_9 = arith.constant 0 : index
    %6 = vector.load %arg1[%c1, %c0_8, %c0_9] : memref<4x50x256xbf16, #tpu.memory_space<vmem>>, vector<1x50x256xbf16>
    %7 = vector.shape_cast %6 : vector<1x50x256xbf16> to vector<50x256xbf16>
    %cst_10 = arith.constant dense<0.000000e+00> : vector<50x128xf32>
    %8 = tpu.matmul %7, %0, %cst_10 {dimension_numbers = #tpu.dot_dimension_numbers<[1], [0], [0], [1], [0, 0, 1, 1], [], []>} : vector<50x256xbf16>, vector<256x128xbf16>, vector<50x128xf32> -> vector<50x128xf32>
    %c2 = arith.constant 2 : index
    %c0_11 = arith.constant 0 : index
    %c0_12 = arith.constant 0 : index
    %9 = vector.load %arg1[%c2, %c0_11, %c0_12] : memref<4x50x256xbf16, #tpu.memory_space<vmem>>, vector<1x50x256xbf16>
    %10 = vector.shape_cast %9 : vector<1x50x256xbf16> to vector<50x256xbf16>
    %cst_13 = arith.constant dense<0.000000e+00> : vector<50x128xf32>
    %11 = tpu.matmul %10, %0, %cst_13 {dimension_numbers = #tpu.dot_dimension_numbers<[1], [0], [0], [1], [0, 0, 1, 1], [], []>} : vector<50x256xbf16>, vector<256x128xbf16>, vector<50x128xf32> -> vector<50x128xf32>
    %c3 = arith.constant 3 : index
    %c0_14 = arith.constant 0 : index
    %c0_15 = arith.constant 0 : index
    %12 = vector.load %arg1[%c3, %c0_14, %c0_15] : memref<4x50x256xbf16, #tpu.memory_space<vmem>>, vector<1x50x256xbf16>
    %13 = vector.shape_cast %12 : vector<1x50x256xbf16> to vector<50x256xbf16>
    %cst_16 = arith.constant dense<0.000000e+00> : vector<50x128xf32>
    %14 = tpu.matmul %13, %0, %cst_16 {dimension_numbers = #tpu.dot_dimension_numbers<[1], [0], [0], [1], [0, 0, 1, 1], [], []>} : vector<50x256xbf16>, vector<256x128xbf16>, vector<50x128xf32> -> vector<50x128xf32>
    %cst_17 = arith.constant dense<0.000000e+00> : vector<128xf32>
    %15 = vector.multi_reduction <add>, %5, %cst_17 [0] : vector<50x128xf32> to vector<128xf32>
    %16 = vector.shape_cast %15 : vector<128xf32> to vector<1x128xf32>
    %cst_18 = arith.constant 0.000000e+00 : f32
    %17 = vector.broadcast %cst_18 : f32 to vector<1x128xf32>
    %18 = arith.addf %17, %16 : vector<1x128xf32>
    %cst_19 = arith.constant dense<0.000000e+00> : vector<128xf32>
    %19 = vector.multi_reduction <add>, %8, %cst_19 [0] : vector<50x128xf32> to vector<128xf32>
    %20 = vector.shape_cast %19 : vector<128xf32> to vector<1x128xf32>
    %21 = arith.addf %18, %20 : vector<1x128xf32>
    %cst_20 = arith.constant dense<0.000000e+00> : vector<128xf32>
    %22 = vector.multi_reduction <add>, %11, %cst_20 [0] : vector<50x128xf32> to vector<128xf32>
    %23 = vector.shape_cast %22 : vector<128xf32> to vector<1x128xf32>
    %24 = arith.addf %21, %23 : vector<1x128xf32>
    %cst_21 = arith.constant dense<0.000000e+00> : vector<128xf32>
    %25 = vector.multi_reduction <add>, %14, %cst_21 [0] : vector<50x128xf32> to vector<128xf32>
    %26 = vector.shape_cast %25 : vector<128xf32> to vector<1x128xf32>
    %27 = arith.addf %24, %26 : vector<1x128xf32>
    %cst_22 = arith.constant 5.000000e-03 : f32
    %28 = vector.broadcast %cst_22 : f32 to vector<1x128xf32>
    %29 = arith.mulf %27, %28 : vector<1x128xf32>
    %30 = vector.broadcast %29 : vector<1x128xf32> to vector<50x128xf32>
    %31 = arith.subf %5, %30 : vector<50x128xf32>
    %32 = vector.broadcast %29 : vector<1x128xf32> to vector<50x128xf32>
    %33 = arith.subf %5, %32 : vector<50x128xf32>
    %34 = arith.mulf %31, %33 : vector<50x128xf32>
    %cst_23 = arith.constant dense<0.000000e+00> : vector<128xf32>
    %35 = vector.multi_reduction <add>, %34, %cst_23 [0] : vector<50x128xf32> to vector<128xf32>
    %36 = vector.shape_cast %35 : vector<128xf32> to vector<1x128xf32>
    %cst_24 = arith.constant 0.000000e+00 : f32
    %37 = vector.broadcast %cst_24 : f32 to vector<1x128xf32>
    %38 = arith.addf %37, %36 : vector<1x128xf32>
    %39 = vector.broadcast %29 : vector<1x128xf32> to vector<50x128xf32>
    %40 = arith.subf %8, %39 : vector<50x128xf32>
    %41 = vector.broadcast %29 : vector<1x128xf32> to vector<50x128xf32>
    %42 = arith.subf %8, %41 : vector<50x128xf32>
    %43 = arith.mulf %40, %42 : vector<50x128xf32>
    %cst_25 = arith.constant dense<0.000000e+00> : vector<128xf32>
    %44 = vector.multi_reduction <add>, %43, %cst_25 [0] : vector<50x128xf32> to vector<128xf32>
    %45 = vector.shape_cast %44 : vector<128xf32> to vector<1x128xf32>
    %46 = arith.addf %38, %45 : vector<1x128xf32>
    %47 = vector.broadcast %29 : vector<1x128xf32> to vector<50x128xf32>
    %48 = arith.subf %11, %47 : vector<50x128xf32>
    %49 = vector.broadcast %29 : vector<1x128xf32> to vector<50x128xf32>
    %50 = arith.subf %11, %49 : vector<50x128xf32>
    %51 = arith.mulf %48, %50 : vector<50x128xf32>
    %cst_26 = arith.constant dense<0.000000e+00> : vector<128xf32>
    %52 = vector.multi_reduction <add>, %51, %cst_26 [0] : vector<50x128xf32> to vector<128xf32>
    %53 = vector.shape_cast %52 : vector<128xf32> to vector<1x128xf32>
    %54 = arith.addf %46, %53 : vector<1x128xf32>
    %55 = vector.broadcast %29 : vector<1x128xf32> to vector<50x128xf32>
    %56 = arith.subf %14, %55 : vector<50x128xf32>
    %57 = vector.broadcast %29 : vector<1x128xf32> to vector<50x128xf32>
    %58 = arith.subf %14, %57 : vector<50x128xf32>
    %59 = arith.mulf %56, %58 : vector<50x128xf32>
    %cst_27 = arith.constant dense<0.000000e+00> : vector<128xf32>
    %60 = vector.multi_reduction <add>, %59, %cst_27 [0] : vector<50x128xf32> to vector<128xf32>
    %61 = vector.shape_cast %60 : vector<128xf32> to vector<1x128xf32>
    %62 = arith.addf %54, %61 : vector<1x128xf32>
    %cst_28 = arith.constant 5.000000e-03 : f32
    %63 = vector.broadcast %cst_28 : f32 to vector<1x128xf32>
    %64 = arith.mulf %62, %63 : vector<1x128xf32>
    %cst_29 = arith.constant 9.99999974E-6 : f32
    %65 = vector.broadcast %cst_29 : f32 to vector<1x128xf32>
    %66 = arith.addf %64, %65 : vector<1x128xf32>
    %67 = math.rsqrt %66 : vector<1x128xf32>
    %68 = arith.mulf %1, %67 : vector<1x128xf32>
    %69 = arith.mulf %29, %68 : vector<1x128xf32>
    %70 = arith.subf %2, %69 : vector<1x128xf32>
    %71 = vector.broadcast %68 : vector<1x128xf32> to vector<50x128xf32>
    %72 = arith.mulf %5, %71 : vector<50x128xf32>
    %73 = vector.broadcast %70 : vector<1x128xf32> to vector<50x128xf32>
    %74 = arith.addf %72, %73 : vector<50x128xf32>
    %75 = vector.broadcast %68 : vector<1x128xf32> to vector<50x128xf32>
    %76 = arith.mulf %8, %75 : vector<50x128xf32>
    %77 = vector.broadcast %70 : vector<1x128xf32> to vector<50x128xf32>
    %78 = arith.addf %76, %77 : vector<50x128xf32>
    %79 = arith.maximumf %74, %78 : vector<50x128xf32>
    %80 = vector.broadcast %68 : vector<1x128xf32> to vector<50x128xf32>
    %81 = arith.mulf %11, %80 : vector<50x128xf32>
    %82 = vector.broadcast %70 : vector<1x128xf32> to vector<50x128xf32>
    %83 = arith.addf %81, %82 : vector<50x128xf32>
    %84 = arith.maximumf %79, %83 : vector<50x128xf32>
    %85 = vector.broadcast %68 : vector<1x128xf32> to vector<50x128xf32>
    %86 = arith.mulf %14, %85 : vector<50x128xf32>
    %87 = vector.broadcast %70 : vector<1x128xf32> to vector<50x128xf32>
    %88 = arith.addf %86, %87 : vector<50x128xf32>
    %89 = arith.maximumf %84, %88 : vector<50x128xf32>
    %cst_30 = arith.constant 0.000000e+00 : f32
    %90 = vector.broadcast %cst_30 : f32 to vector<50x128xf32>
    %91 = arith.maximumf %89, %90 : vector<50x128xf32>
    %c0_31 = arith.constant 0 : index
    %c0_32 = arith.constant 0 : index
    %92 = vector.load %arg14[%c0_31, %c0_32] : memref<50x128xf32, #tpu.memory_space<vmem>>, vector<50x128xf32>
    tpu.vector_store %arg14[%c0_31, %c0_32], %91 {strides = array<i32>} : memref<50x128xf32, #tpu.memory_space<vmem>>, vector<50x128xf32>,
    %cst_33 = arith.constant 0.000000e+00 : f32
    %93 = vector.broadcast %cst_33 : f32 to vector<2x128xf32>
    %c0_34 = arith.constant 0 : index
    %c0_35 = arith.constant 0 : index
    %94 = vector.load %arg14[%c0_34, %c0_35] : memref<50x128xf32, #tpu.memory_space<vmem>>, vector<2x128xf32>
    %95 = arith.truncf %94 : vector<2x128xf32> to vector<2x128xbf16>
    %c0_36 = arith.constant 0 : index
    %c0_37 = arith.constant 0 : index
    %c0_38 = arith.constant 0 : index
    %96 = vector.load %arg5[%c0_36, %c0_37, %c0_38] : memref<25x128x128xbf16, #tpu.memory_space<vmem>>, vector<1x128x128xbf16>
    %97 = vector.shape_cast %96 : vector<1x128x128xbf16> to vector<128x128xbf16>
    %cst_39 = arith.constant dense<0.000000e+00> : vector<2x128xf32>
    %98 = tpu.matmul %95, %97, %cst_39 {dimension_numbers = #tpu.dot_dimension_numbers<[1], [0], [0], [1], [0, 0, 1, 1], [], []>} : vector<2x128xbf16>, vector<128x128xbf16>, vector<2x128xf32> -> vector<2x128xf32>
    %99 = arith.addf %93, %98 : vector<2x128xf32>
    %c2_40 = arith.constant 2 : index
    %c0_41 = arith.constant 0 : index
    %100 = vector.load %arg14[%c2_40, %c0_41] : memref<50x128xf32, #tpu.memory_space<vmem>>, vector<2x128xf32>
    %101 = arith.truncf %100 : vector<2x128xf32> to vector<2x128xbf16>
    %c1_42 = arith.constant 1 : index
    %c0_43 = arith.constant 0 : index
    %c0_44 = arith.constant 0 : index
    %102 = vector.load %arg5[%c1_42, %c0_43, %c0_44] : memref<25x128x128xbf16, #tpu.memory_space<vmem>>, vector<1x128x128xbf16>
    %103 = vector.shape_cast %102 : vector<1x128x128xbf16> to vector<128x128xbf16>
    %cst_45 = arith.constant dense<0.000000e+00> : vector<2x128xf32>
    %104 = tpu.matmul %101, %103, %cst_45 {dimension_numbers = #tpu.dot_dimension_numbers<[1], [0], [0], [1], [0, 0, 1, 1], [], []>} : vector<2x128xbf16>, vector<128x128xbf16>, vector<2x128xf32> -> vector<2x128xf32>
    %105 = arith.addf %99, %104 : vector<2x128xf32>
    %c4 = arith.constant 4 : index
    %c0_46 = arith.constant 0 : index
    %106 = vector.load %arg14[%c4, %c0_46] : memref<50x128xf32, #tpu.memory_space<vmem>>, vector<2x128xf32>
    %107 = arith.truncf %106 : vector<2x128xf32> to vector<2x128xbf16>
    %c2_47 = arith.constant 2 : index
    %c0_48 = arith.constant 0 : index
    %c0_49 = arith.constant 0 : index
    %108 = vector.load %arg5[%c2_47, %c0_48, %c0_49] : memref<25x128x128xbf16, #tpu.memory_space<vmem>>, vector<1x128x128xbf16>
    %109 = vector.shape_cast %108 : vector<1x128x128xbf16> to vector<128x128xbf16>
    %cst_50 = arith.constant dense<0.000000e+00> : vector<2x128xf32>
    %110 = tpu.matmul %107, %109, %cst_50 {dimension_numbers = #tpu.dot_dimension_numbers<[1], [0], [0], [1], [0, 0, 1, 1], [], []>} : vector<2x128xbf16>, vector<128x128xbf16>, vector<2x128xf32> -> vector<2x128xf32>
    %111 = arith.addf %105, %110 : vector<2x128xf32>
    %c6 = arith.constant 6 : index
    %c0_51 = arith.constant 0 : index
    %112 = vector.load %arg14[%c6, %c0_51] : memref<50x128xf32, #tpu.memory_space<vmem>>, vector<2x128xf32>
    %113 = arith.truncf %112 : vector<2x128xf32> to vector<2x128xbf16>
    %c3_52 = arith.constant 3 : index
    %c0_53 = arith.constant 0 : index
    %c0_54 = arith.constant 0 : index
    %114 = vector.load %arg5[%c3_52, %c0_53, %c0_54] : memref<25x128x128xbf16, #tpu.memory_space<vmem>>, vector<1x128x128xbf16>
    %115 = vector.shape_cast %114 : vector<1x128x128xbf16> to vector<128x128xbf16>
    %cst_55 = arith.constant dense<0.000000e+00> : vector<2x128xf32>
    %116 = tpu.matmul %113, %115, %cst_55 {dimension_numbers = #tpu.dot_dimension_numbers<[1], [0], [0], [1], [0, 0, 1, 1], [], []>} : vector<2x128xbf16>, vector<128x128xbf16>, vector<2x128xf32> -> vector<2x128xf32>
    %117 = arith.addf %111, %116 : vector<2x128xf32>
    %c8 = arith.constant 8 : index
    %c0_56 = arith.constant 0 : index
    %118 = vector.load %arg14[%c8, %c0_56] : memref<50x128xf32, #tpu.memory_space<vmem>>, vector<2x128xf32>
    %119 = arith.truncf %118 : vector<2x128xf32> to vector<2x128xbf16>
    %c4_57 = arith.constant 4 : index
    %c0_58 = arith.constant 0 : index
    %c0_59 = arith.constant 0 : index
    %120 = vector.load %arg5[%c4_57, %c0_58, %c0_59] : memref<25x128x128xbf16, #tpu.memory_space<vmem>>, vector<1x128x128xbf16>
    %121 = vector.shape_cast %120 : vector<1x128x128xbf16> to vector<128x128xbf16>
    %cst_60 = arith.constant dense<0.000000e+00> : vector<2x128xf32>
    %122 = tpu.matmul %119, %121, %cst_60 {dimension_numbers = #tpu.dot_dimension_numbers<[1], [0], [0], [1], [0, 0, 1, 1], [], []>} : vector<2x128xbf16>, vector<128x128xbf16>, vector<2x128xf32> -> vector<2x128xf32>
    %123 = arith.addf %117, %122 : vector<2x128xf32>
    %c10 = arith.constant 10 : index
    %c0_61 = arith.constant 0 : index
    %124 = vector.load %arg14[%c10, %c0_61] : memref<50x128xf32, #tpu.memory_space<vmem>>, vector<2x128xf32>
    %125 = arith.truncf %124 : vector<2x128xf32> to vector<2x128xbf16>
    %c5 = arith.constant 5 : index
    %c0_62 = arith.constant 0 : index
    %c0_63 = arith.constant 0 : index
    %126 = vector.load %arg5[%c5, %c0_62, %c0_63] : memref<25x128x128xbf16, #tpu.memory_space<vmem>>, vector<1x128x128xbf16>
    %127 = vector.shape_cast %126 : vector<1x128x128xbf16> to vector<128x128xbf16>
    %cst_64 = arith.constant dense<0.000000e+00> : vector<2x128xf32>
    %128 = tpu.matmul %125, %127, %cst_64 {dimension_numbers = #tpu.dot_dimension_numbers<[1], [0], [0], [1], [0, 0, 1, 1], [], []>} : vector<2x128xbf16>, vector<128x128xbf16>, vector<2x128xf32> -> vector<2x128xf32>
    %129 = arith.addf %123, %128 : vector<2x128xf32>
    %c12 = arith.constant 12 : index
    %c0_65 = arith.constant 0 : index
    %130 = vector.load %arg14[%c12, %c0_65] : memref<50x128xf32, #tpu.memory_space<vmem>>, vector<2x128xf32>
    %131 = arith.truncf %130 : vector<2x128xf32> to vector<2x128xbf16>
    %c6_66 = arith.constant 6 : index
    %c0_67 = arith.constant 0 : index
    %c0_68 = arith.constant 0 : index
    %132 = vector.load %arg5[%c6_66, %c0_67, %c0_68] : memref<25x128x128xbf16, #tpu.memory_space<vmem>>, vector<1x128x128xbf16>
    %133 = vector.shape_cast %132 : vector<1x128x128xbf16> to vector<128x128xbf16>
    %cst_69 = arith.constant dense<0.000000e+00> : vector<2x128xf32>
    %134 = tpu.matmul %131, %133, %cst_69 {dimension_numbers = #tpu.dot_dimension_numbers<[1], [0], [0], [1], [0, 0, 1, 1], [], []>} : vector<2x128xbf16>, vector<128x128xbf16>, vector<2x128xf32> -> vector<2x128xf32>
    %135 = arith.addf %129, %134 : vector<2x128xf32>
    %c14 = arith.constant 14 : index
    %c0_70 = arith.constant 0 : index
    %136 = vector.load %arg14[%c14, %c0_70] : memref<50x128xf32, #tpu.memory_space<vmem>>, vector<2x128xf32>
    %137 = arith.truncf %136 : vector<2x128xf32> to vector<2x128xbf16>
    %c7 = arith.constant 7 : index
    %c0_71 = arith.constant 0 : index
    %c0_72 = arith.constant 0 : index
    %138 = vector.load %arg5[%c7, %c0_71, %c0_72] : memref<25x128x128xbf16, #tpu.memory_space<vmem>>, vector<1x128x128xbf16>
    %139 = vector.shape_cast %138 : vector<1x128x128xbf16> to vector<128x128xbf16>
    %cst_73 = arith.constant dense<0.000000e+00> : vector<2x128xf32>
    %140 = tpu.matmul %137, %139, %cst_73 {dimension_numbers = #tpu.dot_dimension_numbers<[1], [0], [0], [1], [0, 0, 1, 1], [], []>} : vector<2x128xbf16>, vector<128x128xbf16>, vector<2x128xf32> -> vector<2x128xf32>
    %141 = arith.addf %135, %140 : vector<2x128xf32>
    %c16 = arith.constant 16 : index
    %c0_74 = arith.constant 0 : index
    %142 = vector.load %arg14[%c16, %c0_74] : memref<50x128xf32, #tpu.memory_space<vmem>>, vector<2x128xf32>
    %143 = arith.truncf %142 : vector<2x128xf32> to vector<2x128xbf16>
    %c8_75 = arith.constant 8 : index
    %c0_76 = arith.constant 0 : index
    %c0_77 = arith.constant 0 : index
    %144 = vector.load %arg5[%c8_75, %c0_76, %c0_77] : memref<25x128x128xbf16, #tpu.memory_space<vmem>>, vector<1x128x128xbf16>
    %145 = vector.shape_cast %144 : vector<1x128x128xbf16> to vector<128x128xbf16>
    %cst_78 = arith.constant dense<0.000000e+00> : vector<2x128xf32>
    %146 = tpu.matmul %143, %145, %cst_78 {dimension_numbers = #tpu.dot_dimension_numbers<[1], [0], [0], [1], [0, 0, 1, 1], [], []>} : vector<2x128xbf16>, vector<128x128xbf16>, vector<2x128xf32> -> vector<2x128xf32>
    %147 = arith.addf %141, %146 : vector<2x128xf32>
    %c18 = arith.constant 18 : index
    %c0_79 = arith.constant 0 : index
    %148 = vector.load %arg14[%c18, %c0_79] : memref<50x128xf32, #tpu.memory_space<vmem>>, vector<2x128xf32>
    %149 = arith.truncf %148 : vector<2x128xf32> to vector<2x128xbf16>
    %c9 = arith.constant 9 : index
    %c0_80 = arith.constant 0 : index
    %c0_81 = arith.constant 0 : index
    %150 = vector.load %arg5[%c9, %c0_80, %c0_81] : memref<25x128x128xbf16, #tpu.memory_space<vmem>>, vector<1x128x128xbf16>
    %151 = vector.shape_cast %150 : vector<1x128x128xbf16> to vector<128x128xbf16>
    %cst_82 = arith.constant dense<0.000000e+00> : vector<2x128xf32>
    %152 = tpu.matmul %149, %151, %cst_82 {dimension_numbers = #tpu.dot_dimension_numbers<[1], [0], [0], [1], [0, 0, 1, 1], [], []>} : vector<2x128xbf16>, vector<128x128xbf16>, vector<2x128xf32> -> vector<2x128xf32>
    %153 = arith.addf %147, %152 : vector<2x128xf32>
    %c20 = arith.constant 20 : index
    %c0_83 = arith.constant 0 : index
    %154 = vector.load %arg14[%c20, %c0_83] : memref<50x128xf32, #tpu.memory_space<vmem>>, vector<2x128xf32>
    %155 = arith.truncf %154 : vector<2x128xf32> to vector<2x128xbf16>
    %c10_84 = arith.constant 10 : index
    %c0_85 = arith.constant 0 : index
    %c0_86 = arith.constant 0 : index
    %156 = vector.load %arg5[%c10_84, %c0_85, %c0_86] : memref<25x128x128xbf16, #tpu.memory_space<vmem>>, vector<1x128x128xbf16>
    %157 = vector.shape_cast %156 : vector<1x128x128xbf16> to vector<128x128xbf16>
    %cst_87 = arith.constant dense<0.000000e+00> : vector<2x128xf32>
    %158 = tpu.matmul %155, %157, %cst_87 {dimension_numbers = #tpu.dot_dimension_numbers<[1], [0], [0], [1], [0, 0, 1, 1], [], []>} : vector<2x128xbf16>, vector<128x128xbf16>, vector<2x128xf32> -> vector<2x128xf32>
    %159 = arith.addf %153, %158 : vector<2x128xf32>
    %c22 = arith.constant 22 : index
    %c0_88 = arith.constant 0 : index
    %160 = vector.load %arg14[%c22, %c0_88] : memref<50x128xf32, #tpu.memory_space<vmem>>, vector<2x128xf32>
    %161 = arith.truncf %160 : vector<2x128xf32> to vector<2x128xbf16>
    %c11 = arith.constant 11 : index
    %c0_89 = arith.constant 0 : index
    %c0_90 = arith.constant 0 : index
    %162 = vector.load %arg5[%c11, %c0_89, %c0_90] : memref<25x128x128xbf16, #tpu.memory_space<vmem>>, vector<1x128x128xbf16>
    %163 = vector.shape_cast %162 : vector<1x128x128xbf16> to vector<128x128xbf16>
    %cst_91 = arith.constant dense<0.000000e+00> : vector<2x128xf32>
    %164 = tpu.matmul %161, %163, %cst_91 {dimension_numbers = #tpu.dot_dimension_numbers<[1], [0], [0], [1], [0, 0, 1, 1], [], []>} : vector<2x128xbf16>, vector<128x128xbf16>, vector<2x128xf32> -> vector<2x128xf32>
    %165 = arith.addf %159, %164 : vector<2x128xf32>
    %c24 = arith.constant 24 : index
    %c0_92 = arith.constant 0 : index
    %166 = vector.load %arg14[%c24, %c0_92] : memref<50x128xf32, #tpu.memory_space<vmem>>, vector<2x128xf32>
    %167 = arith.truncf %166 : vector<2x128xf32> to vector<2x128xbf16>
    %c12_93 = arith.constant 12 : index
    %c0_94 = arith.constant 0 : index
    %c0_95 = arith.constant 0 : index
    %168 = vector.load %arg5[%c12_93, %c0_94, %c0_95] : memref<25x128x128xbf16, #tpu.memory_space<vmem>>, vector<1x128x128xbf16>
    %169 = vector.shape_cast %168 : vector<1x128x128xbf16> to vector<128x128xbf16>
    %cst_96 = arith.constant dense<0.000000e+00> : vector<2x128xf32>
    %170 = tpu.matmul %167, %169, %cst_96 {dimension_numbers = #tpu.dot_dimension_numbers<[1], [0], [0], [1], [0, 0, 1, 1], [], []>} : vector<2x128xbf16>, vector<128x128xbf16>, vector<2x128xf32> -> vector<2x128xf32>
    %171 = arith.addf %165, %170 : vector<2x128xf32>
    %c26 = arith.constant 26 : index
    %c0_97 = arith.constant 0 : index
    %172 = vector.load %arg14[%c26, %c0_97] : memref<50x128xf32, #tpu.memory_space<vmem>>, vector<2x128xf32>
    %173 = arith.truncf %172 : vector<2x128xf32> to vector<2x128xbf16>
    %c13 = arith.constant 13 : index
    %c0_98 = arith.constant 0 : index
    %c0_99 = arith.constant 0 : index
    %174 = vector.load %arg5[%c13, %c0_98, %c0_99] : memref<25x128x128xbf16, #tpu.memory_space<vmem>>, vector<1x128x128xbf16>
    %175 = vector.shape_cast %174 : vector<1x128x128xbf16> to vector<128x128xbf16>
    %cst_100 = arith.constant dense<0.000000e+00> : vector<2x128xf32>
    %176 = tpu.matmul %173, %175, %cst_100 {dimension_numbers = #tpu.dot_dimension_numbers<[1], [0], [0], [1], [0, 0, 1, 1], [], []>} : vector<2x128xbf16>, vector<128x128xbf16>, vector<2x128xf32> -> vector<2x128xf32>
    %177 = arith.addf %171, %176 : vector<2x128xf32>
    %c28 = arith.constant 28 : index
    %c0_101 = arith.constant 0 : index
    %178 = vector.load %arg14[%c28, %c0_101] : memref<50x128xf32, #tpu.memory_space<vmem>>, vector<2x128xf32>
    %179 = arith.truncf %178 : vector<2x128xf32> to vector<2x128xbf16>
    %c14_102 = arith.constant 14 : index
    %c0_103 = arith.constant 0 : index
    %c0_104 = arith.constant 0 : index
    %180 = vector.load %arg5[%c14_102, %c0_103, %c0_104] : memref<25x128x128xbf16, #tpu.memory_space<vmem>>, vector<1x128x128xbf16>
    %181 = vector.shape_cast %180 : vector<1x128x128xbf16> to vector<128x128xbf16>
    %cst_105 = arith.constant dense<0.000000e+00> : vector<2x128xf32>
    %182 = tpu.matmul %179, %181, %cst_105 {dimension_numbers = #tpu.dot_dimension_numbers<[1], [0], [0], [1], [0, 0, 1, 1], [], []>} : vector<2x128xbf16>, vector<128x128xbf16>, vector<2x128xf32> -> vector<2x128xf32>
    %183 = arith.addf %177, %182 : vector<2x128xf32>
    %c30 = arith.constant 30 : index
    %c0_106 = arith.constant 0 : index
    %184 = vector.load %arg14[%c30, %c0_106] : memref<50x128xf32, #tpu.memory_space<vmem>>, vector<2x128xf32>
    %185 = arith.truncf %184 : vector<2x128xf32> to vector<2x128xbf16>
    %c15 = arith.constant 15 : index
    %c0_107 = arith.constant 0 : index
    %c0_108 = arith.constant 0 : index
    %186 = vector.load %arg5[%c15, %c0_107, %c0_108] : memref<25x128x128xbf16, #tpu.memory_space<vmem>>, vector<1x128x128xbf16>
    %187 = vector.shape_cast %186 : vector<1x128x128xbf16> to vector<128x128xbf16>
    %cst_109 = arith.constant dense<0.000000e+00> : vector<2x128xf32>
    %188 = tpu.matmul %185, %187, %cst_109 {dimension_numbers = #tpu.dot_dimension_numbers<[1], [0], [0], [1], [0, 0, 1, 1], [], []>} : vector<2x128xbf16>, vector<128x128xbf16>, vector<2x128xf32> -> vector<2x128xf32>
    %189 = arith.addf %183, %188 : vector<2x128xf32>
    %c32 = arith.constant 32 : index
    %c0_110 = arith.constant 0 : index
    %190 = vector.load %arg14[%c32, %c0_110] : memref<50x128xf32, #tpu.memory_space<vmem>>, vector<2x128xf32>
    %191 = arith.truncf %190 : vector<2x128xf32> to vector<2x128xbf16>
    %c16_111 = arith.constant 16 : index
    %c0_112 = arith.constant 0 : index
    %c0_113 = arith.constant 0 : index
    %192 = vector.load %arg5[%c16_111, %c0_112, %c0_113] : memref<25x128x128xbf16, #tpu.memory_space<vmem>>, vector<1x128x128xbf16>
    %193 = vector.shape_cast %192 : vector<1x128x128xbf16> to vector<128x128xbf16>
    %cst_114 = arith.constant dense<0.000000e+00> : vector<2x128xf32>
    %194 = tpu.matmul %191, %193, %cst_114 {dimension_numbers = #tpu.dot_dimension_numbers<[1], [0], [0], [1], [0, 0, 1, 1], [], []>} : vector<2x128xbf16>, vector<128x128xbf16>, vector<2x128xf32> -> vector<2x128xf32>
    %195 = arith.addf %189, %194 : vector<2x128xf32>
    %c34 = arith.constant 34 : index
    %c0_115 = arith.constant 0 : index
    %196 = vector.load %arg14[%c34, %c0_115] : memref<50x128xf32, #tpu.memory_space<vmem>>, vector<2x128xf32>
    %197 = arith.truncf %196 : vector<2x128xf32> to vector<2x128xbf16>
    %c17 = arith.constant 17 : index
    %c0_116 = arith.constant 0 : index
    %c0_117 = arith.constant 0 : index
    %198 = vector.load %arg5[%c17, %c0_116, %c0_117] : memref<25x128x128xbf16, #tpu.memory_space<vmem>>, vector<1x128x128xbf16>
    %199 = vector.shape_cast %198 : vector<1x128x128xbf16> to vector<128x128xbf16>
    %cst_118 = arith.constant dense<0.000000e+00> : vector<2x128xf32>
    %200 = tpu.matmul %197, %199, %cst_118 {dimension_numbers = #tpu.dot_dimension_numbers<[1], [0], [0], [1], [0, 0, 1, 1], [], []>} : vector<2x128xbf16>, vector<128x128xbf16>, vector<2x128xf32> -> vector<2x128xf32>
    %201 = arith.addf %195, %200 : vector<2x128xf32>
    %c36 = arith.constant 36 : index
    %c0_119 = arith.constant 0 : index
    %202 = vector.load %arg14[%c36, %c0_119] : memref<50x128xf32, #tpu.memory_space<vmem>>, vector<2x128xf32>
    %203 = arith.truncf %202 : vector<2x128xf32> to vector<2x128xbf16>
    %c18_120 = arith.constant 18 : index
    %c0_121 = arith.constant 0 : index
    %c0_122 = arith.constant 0 : index
    %204 = vector.load %arg5[%c18_120, %c0_121, %c0_122] : memref<25x128x128xbf16, #tpu.memory_space<vmem>>, vector<1x128x128xbf16>
    %205 = vector.shape_cast %204 : vector<1x128x128xbf16> to vector<128x128xbf16>
    %cst_123 = arith.constant dense<0.000000e+00> : vector<2x128xf32>
    %206 = tpu.matmul %203, %205, %cst_123 {dimension_numbers = #tpu.dot_dimension_numbers<[1], [0], [0], [1], [0, 0, 1, 1], [], []>} : vector<2x128xbf16>, vector<128x128xbf16>, vector<2x128xf32> -> vector<2x128xf32>
    %207 = arith.addf %201, %206 : vector<2x128xf32>
    %c38 = arith.constant 38 : index
    %c0_124 = arith.constant 0 : index
    %208 = vector.load %arg14[%c38, %c0_124] : memref<50x128xf32, #tpu.memory_space<vmem>>, vector<2x128xf32>
    %209 = arith.truncf %208 : vector<2x128xf32> to vector<2x128xbf16>
    %c19 = arith.constant 19 : index
    %c0_125 = arith.constant 0 : index
    %c0_126 = arith.constant 0 : index
    %210 = vector.load %arg5[%c19, %c0_125, %c0_126] : memref<25x128x128xbf16, #tpu.memory_space<vmem>>, vector<1x128x128xbf16>
    %211 = vector.shape_cast %210 : vector<1x128x128xbf16> to vector<128x128xbf16>
    %cst_127 = arith.constant dense<0.000000e+00> : vector<2x128xf32>
    %212 = tpu.matmul %209, %211, %cst_127 {dimension_numbers = #tpu.dot_dimension_numbers<[1], [0], [0], [1], [0, 0, 1, 1], [], []>} : vector<2x128xbf16>, vector<128x128xbf16>, vector<2x128xf32> -> vector<2x128xf32>
    %213 = arith.addf %207, %212 : vector<2x128xf32>
    %c40 = arith.constant 40 : index
    %c0_128 = arith.constant 0 : index
    %214 = vector.load %arg14[%c40, %c0_128] : memref<50x128xf32, #tpu.memory_space<vmem>>, vector<2x128xf32>
    %215 = arith.truncf %214 : vector<2x128xf32> to vector<2x128xbf16>
    %c20_129 = arith.constant 20 : index
    %c0_130 = arith.constant 0 : index
    %c0_131 = arith.constant 0 : index
    %216 = vector.load %arg5[%c20_129, %c0_130, %c0_131] : memref<25x128x128xbf16, #tpu.memory_space<vmem>>, vector<1x128x128xbf16>
    %217 = vector.shape_cast %216 : vector<1x128x128xbf16> to vector<128x128xbf16>
    %cst_132 = arith.constant dense<0.000000e+00> : vector<2x128xf32>
    %218 = tpu.matmul %215, %217, %cst_132 {dimension_numbers = #tpu.dot_dimension_numbers<[1], [0], [0], [1], [0, 0, 1, 1], [], []>} : vector<2x128xbf16>, vector<128x128xbf16>, vector<2x128xf32> -> vector<2x128xf32>
    %219 = arith.addf %213, %218 : vector<2x128xf32>
    %c42 = arith.constant 42 : index
    %c0_133 = arith.constant 0 : index
    %220 = vector.load %arg14[%c42, %c0_133] : memref<50x128xf32, #tpu.memory_space<vmem>>, vector<2x128xf32>
    %221 = arith.truncf %220 : vector<2x128xf32> to vector<2x128xbf16>
    %c21 = arith.constant 21 : index
    %c0_134 = arith.constant 0 : index
    %c0_135 = arith.constant 0 : index
    %222 = vector.load %arg5[%c21, %c0_134, %c0_135] : memref<25x128x128xbf16, #tpu.memory_space<vmem>>, vector<1x128x128xbf16>
    %223 = vector.shape_cast %222 : vector<1x128x128xbf16> to vector<128x128xbf16>
    %cst_136 = arith.constant dense<0.000000e+00> : vector<2x128xf32>
    %224 = tpu.matmul %221, %223, %cst_136 {dimension_numbers = #tpu.dot_dimension_numbers<[1], [0], [0], [1], [0, 0, 1, 1], [], []>} : vector<2x128xbf16>, vector<128x128xbf16>, vector<2x128xf32> -> vector<2x128xf32>
    %225 = arith.addf %219, %224 : vector<2x128xf32>
    %c44 = arith.constant 44 : index
    %c0_137 = arith.constant 0 : index
    %226 = vector.load %arg14[%c44, %c0_137] : memref<50x128xf32, #tpu.memory_space<vmem>>, vector<2x128xf32>
    %227 = arith.truncf %226 : vector<2x128xf32> to vector<2x128xbf16>
    %c22_138 = arith.constant 22 : index
    %c0_139 = arith.constant 0 : index
    %c0_140 = arith.constant 0 : index
    %228 = vector.load %arg5[%c22_138, %c0_139, %c0_140] : memref<25x128x128xbf16, #tpu.memory_space<vmem>>, vector<1x128x128xbf16>
    %229 = vector.shape_cast %228 : vector<1x128x128xbf16> to vector<128x128xbf16>
    %cst_141 = arith.constant dense<0.000000e+00> : vector<2x128xf32>
    %230 = tpu.matmul %227, %229, %cst_141 {dimension_numbers = #tpu.dot_dimension_numbers<[1], [0], [0], [1], [0, 0, 1, 1], [], []>} : vector<2x128xbf16>, vector<128x128xbf16>, vector<2x128xf32> -> vector<2x128xf32>
    %231 = arith.addf %225, %230 : vector<2x128xf32>
    %c46 = arith.constant 46 : index
    %c0_142 = arith.constant 0 : index
    %232 = vector.load %arg14[%c46, %c0_142] : memref<50x128xf32, #tpu.memory_space<vmem>>, vector<2x128xf32>
    %233 = arith.truncf %232 : vector<2x128xf32> to vector<2x128xbf16>
    %c23 = arith.constant 23 : index
    %c0_143 = arith.constant 0 : index
    %c0_144 = arith.constant 0 : index
    %234 = vector.load %arg5[%c23, %c0_143, %c0_144] : memref<25x128x128xbf16, #tpu.memory_space<vmem>>, vector<1x128x128xbf16>
    %235 = vector.shape_cast %234 : vector<1x128x128xbf16> to vector<128x128xbf16>
    %cst_145 = arith.constant dense<0.000000e+00> : vector<2x128xf32>
    %236 = tpu.matmul %233, %235, %cst_145 {dimension_numbers = #tpu.dot_dimension_numbers<[1], [0], [0], [1], [0, 0, 1, 1], [], []>} : vector<2x128xbf16>, vector<128x128xbf16>, vector<2x128xf32> -> vector<2x128xf32>
    %237 = arith.addf %231, %236 : vector<2x128xf32>
    %c48 = arith.constant 48 : index
    %c0_146 = arith.constant 0 : index
    %238 = vector.load %arg14[%c48, %c0_146] : memref<50x128xf32, #tpu.memory_space<vmem>>, vector<2x128xf32>
    %239 = arith.truncf %238 : vector<2x128xf32> to vector<2x128xbf16>
    %c24_147 = arith.constant 24 : index
    %c0_148 = arith.constant 0 : index
    %c0_149 = arith.constant 0 : index
    %240 = vector.load %arg5[%c24_147, %c0_148, %c0_149] : memref<25x128x128xbf16, #tpu.memory_space<vmem>>, vector<1x128x128xbf16>
    %241 = vector.shape_cast %240 : vector<1x128x128xbf16> to vector<128x128xbf16>
    %cst_150 = arith.constant dense<0.000000e+00> : vector<2x128xf32>
    %242 = tpu.matmul %239, %241, %cst_150 {dimension_numbers = #tpu.dot_dimension_numbers<[1], [0], [0], [1], [0, 0, 1, 1], [], []>} : vector<2x128xbf16>, vector<128x128xbf16>, vector<2x128xf32> -> vector<2x128xf32>
    %243 = arith.addf %237, %242 : vector<2x128xf32>
    %c0_151 = arith.constant 0 : index
    %c0_152 = arith.constant 0 : index
    %244 = vector.load %arg6[%c0_151, %c0_152] : memref<1x128xf32, #tpu.memory_space<vmem>>, vector<1x128xf32>
    %c0_153 = arith.constant 0 : index
    %c0_154 = arith.constant 0 : index
    %245 = vector.load %arg7[%c0_153, %c0_154] : memref<1x128xf32, #tpu.memory_space<vmem>>, vector<1x128xf32>
    %cst_155 = arith.constant dense<0.000000e+00> : vector<128xf32>
    %246 = vector.multi_reduction <add>, %243, %cst_155 [0] : vector<2x128xf32> to vector<128xf32>
    %247 = vector.shape_cast %246 : vector<128xf32> to vector<1x128xf32>
    %cst_156 = arith.constant 2.000000e+00 : f32
    %248 = vector.broadcast %cst_156 : f32 to vector<1x128xf32>
    %249 = arith.divf %247, %248 : vector<1x128xf32>
    %250 = vector.broadcast %249 : vector<1x128xf32> to vector<2x128xf32>
    %251 = arith.subf %243, %250 : vector<2x128xf32>
    %252 = vector.broadcast %249 : vector<1x128xf32> to vector<2x128xf32>
    %253 = arith.subf %243, %252 : vector<2x128xf32>
    %254 = arith.mulf %251, %253 : vector<2x128xf32>
    %cst_157 = arith.constant dense<0.000000e+00> : vector<128xf32>
    %255 = vector.multi_reduction <add>, %254, %cst_157 [0] : vector<2x128xf32> to vector<128xf32>
    %256 = vector.shape_cast %255 : vector<128xf32> to vector<1x128xf32>
    %cst_158 = arith.constant 2.000000e+00 : f32
    %257 = vector.broadcast %cst_158 : f32 to vector<1x128xf32>
    %258 = arith.divf %256, %257 : vector<1x128xf32>
    %cst_159 = arith.constant 9.99999974E-6 : f32
    %259 = vector.broadcast %cst_159 : f32 to vector<1x128xf32>
    %260 = arith.addf %258, %259 : vector<1x128xf32>
    %261 = math.rsqrt %260 : vector<1x128xf32>
    %262 = arith.mulf %244, %261 : vector<1x128xf32>
    %263 = vector.broadcast %262 : vector<1x128xf32> to vector<2x128xf32>
    %264 = arith.mulf %243, %263 : vector<2x128xf32>
    %265 = arith.mulf %249, %262 : vector<1x128xf32>
    %266 = arith.subf %245, %265 : vector<1x128xf32>
    %267 = vector.broadcast %266 : vector<1x128xf32> to vector<2x128xf32>
    %268 = arith.addf %264, %267 : vector<2x128xf32>
    %cst_160 = arith.constant 0.000000e+00 : f32
    %269 = vector.broadcast %cst_160 : f32 to vector<2x128xf32>
    %270 = arith.maximumf %268, %269 : vector<2x128xf32>
    %271 = arith.truncf %270 : vector<2x128xf32> to vector<2x128xbf16>
    %c0_161 = arith.constant 0 : index
    %c0_162 = arith.constant 0 : index
    %272 = vector.load %arg8[%c0_161, %c0_162] : memref<128x128xbf16, #tpu.memory_space<vmem>>, vector<128x128xbf16>
    %cst_163 = arith.constant dense<0.000000e+00> : vector<2x128xf32>
    %273 = tpu.matmul %271, %272, %cst_163 {dimension_numbers = #tpu.dot_dimension_numbers<[1], [0], [0], [1], [0, 0, 1, 1], [], []>} : vector<2x128xbf16>, vector<128x128xbf16>, vector<2x128xf32> -> vector<2x128xf32>
    %c0_164 = arith.constant 0 : index
    %c0_165 = arith.constant 0 : index
    %274 = vector.load %arg9[%c0_164, %c0_165] : memref<1x128xf32, #tpu.memory_space<vmem>>, vector<1x128xf32>
    %c0_166 = arith.constant 0 : index
    %c0_167 = arith.constant 0 : index
    %275 = vector.load %arg10[%c0_166, %c0_167] : memref<1x128xf32, #tpu.memory_space<vmem>>, vector<1x128xf32>
    %cst_168 = arith.constant dense<0.000000e+00> : vector<128xf32>
    %276 = vector.multi_reduction <add>, %273, %cst_168 [0] : vector<2x128xf32> to vector<128xf32>
    %277 = vector.shape_cast %276 : vector<128xf32> to vector<1x128xf32>
    %cst_169 = arith.constant 2.000000e+00 : f32
    %278 = vector.broadcast %cst_169 : f32 to vector<1x128xf32>
    %279 = arith.divf %277, %278 : vector<1x128xf32>
    %280 = vector.broadcast %279 : vector<1x128xf32> to vector<2x128xf32>
    %281 = arith.subf %273, %280 : vector<2x128xf32>
    %282 = vector.broadcast %279 : vector<1x128xf32> to vector<2x128xf32>
    %283 = arith.subf %273, %282 : vector<2x128xf32>
    %284 = arith.mulf %281, %283 : vector<2x128xf32>
    %cst_170 = arith.constant dense<0.000000e+00> : vector<128xf32>
    %285 = vector.multi_reduction <add>, %284, %cst_170 [0] : vector<2x128xf32> to vector<128xf32>
    %286 = vector.shape_cast %285 : vector<128xf32> to vector<1x128xf32>
    %cst_171 = arith.constant 2.000000e+00 : f32
    %287 = vector.broadcast %cst_171 : f32 to vector<1x128xf32>
    %288 = arith.divf %286, %287 : vector<1x128xf32>
    %cst_172 = arith.constant 9.99999974E-6 : f32
    %289 = vector.broadcast %cst_172 : f32 to vector<1x128xf32>
    %290 = arith.addf %288, %289 : vector<1x128xf32>
    %291 = math.rsqrt %290 : vector<1x128xf32>
    %292 = arith.mulf %274, %291 : vector<1x128xf32>
    %293 = vector.broadcast %292 : vector<1x128xf32> to vector<2x128xf32>
    %294 = arith.mulf %273, %293 : vector<2x128xf32>
    %295 = arith.mulf %279, %292 : vector<1x128xf32>
    %296 = arith.subf %275, %295 : vector<1x128xf32>
    %297 = vector.broadcast %296 : vector<1x128xf32> to vector<2x128xf32>
    %298 = arith.addf %294, %297 : vector<2x128xf32>
    %cst_173 = arith.constant 0.000000e+00 : f32
    %299 = vector.broadcast %cst_173 : f32 to vector<2x128xf32>
    %300 = arith.maximumf %298, %299 : vector<2x128xf32>
    %301 = arith.truncf %300 : vector<2x128xf32> to vector<2x128xbf16>
    %c0_174 = arith.constant 0 : index
    %c0_175 = arith.constant 0 : index
    %302 = vector.load %arg11[%c0_174, %c0_175] : memref<128x128xbf16, #tpu.memory_space<vmem>>, vector<128x128xbf16>
    %cst_176 = arith.constant dense<0.000000e+00> : vector<2x128xf32>
    %303 = tpu.matmul %301, %302, %cst_176 {dimension_numbers = #tpu.dot_dimension_numbers<[1], [0], [0], [1], [0, 0, 1, 1], [], []>} : vector<2x128xbf16>, vector<128x128xbf16>, vector<2x128xf32> -> vector<2x128xf32>
    %c0_177 = arith.constant 0 : index
    %c0_178 = arith.constant 0 : index
    %304 = vector.load %arg12[%c0_177, %c0_178] : memref<1x128xf32, #tpu.memory_space<vmem>>, vector<1x128xf32>
    %305 = vector.broadcast %304 : vector<1x128xf32> to vector<2x128xf32>
    %306 = arith.addf %303, %305 : vector<2x128xf32>
    %c0_179 = arith.constant 0 : index
    %c0_180 = arith.constant 0 : index
    %307 = vector.load %arg13[%c0_179, %c0_180] : memref<2x128xf32, #tpu.memory_space<vmem>>, vector<2x128xf32>
    tpu.vector_store %arg13[%c0_179, %c0_180], %306 {strides = array<i32>} : memref<2x128xf32, #tpu.memory_space<vmem>>, vector<2x128xf32>,
    return
  }
  func.func @transform_0(%arg0: i32) -> (i32, i32, i32) {
    %c0_i32 = arith.constant 0 : i32
    %c0_i32_0 = arith.constant 0 : i32
    %c0_i32_1 = arith.constant 0 : i32
    %c0_i32_2 = arith.constant 0 : i32
    return %c0_i32, %c0_i32_0, %c0_i32_1 : i32, i32, i32
  }
  func.func @transform_1(%arg0: i32) -> (i32, i32) {
    %c0_i32 = arith.constant 0 : i32
    %c0_i32_0 = arith.constant 0 : i32
    %c0_i32_1 = arith.constant 0 : i32
    return %c0_i32, %c0_i32_0 : i32, i32
  }
  func.func @transform_2(%arg0: i32) -> (i32, i32) {
    %c0_i32 = arith.constant 0 : i32
    %c0_i32_0 = arith.constant 0 : i32
    %c0_i32_1 = arith.constant 0 : i32
    return %c0_i32, %c0_i32_0 : i32, i32
  }
  func.func @transform_3(%arg0: i32) -> (i32, i32) {
    %c0_i32 = arith.constant 0 : i32
    %c0_i32_0 = arith.constant 0 : i32
    %c0_i32_1 = arith.constant 0 : i32
    return %c0_i32, %c0_i32_0 : i32, i32
  }
  func.func @transform_4(%arg0: i32) -> (i32, i32, i32) {
    %c0_i32 = arith.constant 0 : i32
    %c0_i32_0 = arith.constant 0 : i32
    %c0_i32_1 = arith.constant 0 : i32
    %c0_i32_2 = arith.constant 0 : i32
    return %c0_i32, %c0_i32_0, %c0_i32_1 : i32, i32, i32
  }
  func.func @transform_5(%arg0: i32) -> (i32, i32) {
    %c0_i32 = arith.constant 0 : i32
    %c0_i32_0 = arith.constant 0 : i32
    %c0_i32_1 = arith.constant 0 : i32
    return %c0_i32, %c0_i32_0 : i32, i32
  }
  func.func @transform_6(%arg0: i32) -> (i32, i32) {
    %c0_i32 = arith.constant 0 : i32
    %c0_i32_0 = arith.constant 0 : i32
    %c0_i32_1 = arith.constant 0 : i32
    return %c0_i32, %c0_i32_0 : i32, i32
  }
  func.func @transform_7(%arg0: i32) -> (i32, i32) {
    %c0_i32 = arith.constant 0 : i32
    %c0_i32_0 = arith.constant 0 : i32
    %c0_i32_1 = arith.constant 0 : i32
    return %c0_i32, %c0_i32_0 : i32, i32
  }
  func.func @transform_8(%arg0: i32) -> (i32, i32) {
    %c0_i32 = arith.constant 0 : i32
    %c0_i32_0 = arith.constant 0 : i32
    %c0_i32_1 = arith.constant 0 : i32
    return %c0_i32, %c0_i32_0 : i32, i32
  }
  func.func @transform_9(%arg0: i32) -> (i32, i32) {
    %c0_i32 = arith.constant 0 : i32
    %c0_i32_0 = arith.constant 0 : i32
    %c0_i32_1 = arith.constant 0 : i32
    return %c0_i32, %c0_i32_0 : i32, i32
  }
  func.func @transform_10(%arg0: i32) -> (i32, i32) {
    %c0_i32 = arith.constant 0 : i32
    %c0_i32_0 = arith.constant 0 : i32
    %c0_i32_1 = arith.constant 0 : i32
    return %c0_i32, %c0_i32_0 : i32, i32
  }
  func.func @transform_11(%arg0: i32) -> (i32, i32) {
    %c0_i32 = arith.constant 0 : i32
    %c0_i32_0 = arith.constant 0 : i32
    %c0_i32_1 = arith.constant 0 : i32
    return %c0_i32, %c0_i32_0 : i32, i32
  }
  func.func @transform_12(%arg0: i32) -> (i32, i32) {
    %c0_i32 = arith.constant 0 : i32
    %c0_i32_0 = arith.constant 0 : i32
    %c0_i32_1 = arith.constant 0 : i32
    return %c0_i32, %c0_i32_0 : i32, i32
  }
}

</mosaic_0001>

<bundles_post_ra>
// kernel: lenet5_bn_forward.2
= control target key start
LH: loop header
LB: loop body
LE: loop exit
PB: predicated region body
PF: predicated region fallthrough
CT: control target
= control target key end

     0   :  { %s6540_s1 = inlined_call_operand.vmem [shape: bf16[128,128], index: 1, kind: input, shape index: {}]   ;;  %s6541_s0 = inlined_call_operand.vmem [shape: bf16[4,392,128], index: 0, kind: input, shape index: {}]   ;;  %s6542_s2 = inlined_call_operand.vmem [shape: f32[1,128], index: 2, kind: input, shape index: {}]   ;;  %s6543_s3 = inlined_call_operand.vmem [shape: f32[1,128], index: 3, kind: input, shape index: {}]   ;;  %s6544_s4 = inlined_call_operand.vmem [shape: bf16[392,128], index: 4, kind: output, shape index: {}]  }
   0x1   :  { %v3520_v0 = vld [vmem:[%s6540_s1 + $0x38] sm:$0xff]  ;;  %v3519_v1 = vld [vmem:[%s6540_s1 + $0x30] sm:$0xff]  ;;  %v3518_v2 = vld [vmem:[%s6540_s1 + $0x28] sm:$0xff] }
   0x2   :  { %280 = vmatpush.bf16.msra.mxu0 %v3520_v0  ;;  %611 = vmatpush.bf16.msra.mxu1 %v3520_v0  ;;  %v3517_v3 = vld [vmem:[%s6540_s1 + $0x20] sm:$0xff]  ;;  %v3516_v4 = vld [vmem:[%s6540_s1 + $0x18] sm:$0xff]  ;;  %v3515_v5 = vld [vmem:[%s6540_s1 + $0x10] sm:$0xff] }
   0x3   :  { %942 = vmatpush.bf16.msra.mxu2 %v3520_v0  ;;  %1273 = vmatpush.bf16.msra.mxu3 %v3520_v0  ;;  %v3514_v6 = vld [vmem:[%s6540_s1 + $0x8] sm:$0xff]  ;;  %v3513_v7 = vld [vmem:[%s6540_s1] sm:$0xff]  ;;  %v3570_v14 = vld [vmem:[%s6541_s0 + $0x190] sm:$0xff] }
   0x4   :  { %v3521_v8 = vld [vmem:[%s6541_s0] sm:$0xff]  ;;  %v3569_v10 = vld [vmem:[%s6541_s0 + $0x188] sm:$0xff]  ;;  %v3594_v15 = vld [vmem:[%s6541_s0 + $0x254] sm:$0xff] }
   0x5   :  { %v3545_v9 = vld [vmem:[%s6541_s0 + $0xc4] sm:$0xff]  ;;  %v3593_v11 = vld [vmem:[%s6541_s0 + $0x24c] sm:$0xff]  ;;  %v3547_v17 = vld [vmem:[%s6541_s0 + $0xd4] sm:$0xff] }
   0x6   :  { %281 = vmatpush.bf16.msra.mxu0 %v3519_v1  ;;  %612 = vmatpush.bf16.msra.mxu1 %v3519_v1  ;;  %v3522_v12 = vld [vmem:[%s6541_s0 + $0x8] sm:$0xff]  ;;  %v3523_v16 = vld [vmem:[%s6541_s0 + $0x10] sm:$0xff]  ;;  %v3571_v18 = vld [vmem:[%s6541_s0 + $0x198] sm:$0xff] }
   0x7   :  { %943 = vmatpush.bf16.msra.mxu2 %v3519_v1  ;;  %1274 = vmatpush.bf16.msra.mxu3 %v3519_v1  ;;  %v3546_v13 = vld [vmem:[%s6541_s0 + $0xcc] sm:$0xff]  ;;  %v3595_v19 = vld [vmem:[%s6541_s0 + $0x25c] sm:$0xff]  ;;  %v3596_v23 = vld [vmem:[%s6541_s0 + $0x264] sm:$0xff] }
   0x8   :  { %v3524_v20 = vld [vmem:[%s6541_s0 + $0x18] sm:$0xff]  ;;  %v3572_v22 = vld [vmem:[%s6541_s0 + $0x1a0] sm:$0xff]  ;;  %v3573_v26 = vld [vmem:[%s6541_s0 + $0x1a8] sm:$0xff] }
   0x9   :  { %v3548_v21 = vld [vmem:[%s6541_s0 + $0xdc] sm:$0xff]  ;;  %v3549_v25 = vld [vmem:[%s6541_s0 + $0xe4] sm:$0xff]  ;;  %v3597_v27 = vld [vmem:[%s6541_s0 + $0x26c] sm:$0xff] }
   0xa   :  { %282 = vmatpush.bf16.msra.mxu0 %v3518_v2  ;;  %613 = vmatpush.bf16.msra.mxu1 %v3518_v2  ;;  %v3525_v24 = vld [vmem:[%s6541_s0 + $0x20] sm:$0xff]  ;;  %v3526_v28 = vld [vmem:[%s6541_s0 + $0x28] sm:$0xff]  ;;  %v3574_v30 = vld [vmem:[%s6541_s0 + $0x1b0] sm:$0xff] }
   0xb   :  { %944 = vmatpush.bf16.msra.mxu2 %v3518_v2  ;;  %1275 = vmatpush.bf16.msra.mxu3 %v3518_v2  ;;  %v3550_v29 = vld [vmem:[%s6541_s0 + $0xec] sm:$0xff]  ;;  %v3598_v31 = vld [vmem:[%s6541_s0 + $0x274] sm:$0xff]  ;;  %v3599_v35 = vld [vmem:[%s6541_s0 + $0x27c] sm:$0xff] }
   0xc   :  { %v3527_v32 = vld [vmem:[%s6541_s0 + $0x30] sm:$0xff]  ;;  %v3575_v34 = vld [vmem:[%s6541_s0 + $0x1b8] sm:$0xff]  ;;  %v3576_v38 = vld [vmem:[%s6541_s0 + $0x1c0] sm:$0xff] }
   0xd   :  { %v3551_v33 = vld [vmem:[%s6541_s0 + $0xf4] sm:$0xff]  ;;  %v3552_v37 = vld [vmem:[%s6541_s0 + $0xfc] sm:$0xff]  ;;  %v3600_v39 = vld [vmem:[%s6541_s0 + $0x284] sm:$0xff] }
   0xe   :  { %283 = vmatpush.bf16.msra.mxu0 %v3517_v3  ;;  %614 = vmatpush.bf16.msra.mxu1 %v3517_v3  ;;  %v3528_v36 = vld [vmem:[%s6541_s0 + $0x38] sm:$0xff]  ;;  %v3529_v40 = vld [vmem:[%s6541_s0 + $0x40] sm:$0xff]  ;;  %v3577_v44 = vld [vmem:[%s6541_s0 + $0x1c8] sm:$0xff] }
   0xf   :  { %945 = vmatpush.bf16.msra.mxu2 %v3517_v3  ;;  %1276 = vmatpush.bf16.msra.mxu3 %v3517_v3  ;;  %v3553_v41 = vld [vmem:[%s6541_s0 + $0x104] sm:$0xff]  ;;  %v3601_v45 = vld [vmem:[%s6541_s0 + $0x28c] sm:$0xff]  ;;  %v3602_v57 = vld [vmem:[%s6541_s0 + $0x294] sm:$0xff] }
  0x10   :  { %v3530_v52 = vld [vmem:[%s6541_s0 + $0x48] sm:$0xff]  ;;  %v3578_v56 = vld [vmem:[%s6541_s0 + $0x1d0] sm:$0xff] }
  0x11   :  { %v3554_v53 = vld [vmem:[%s6541_s0 + $0x10c] sm:$0xff]  ;;  %v3555_v1 = vld [vmem:[%s6541_s0 + $0x114] sm:$0xff] }
  0x12   :  { %284 = vmatpush.bf16.msra.mxu0 %v3516_v4  ;;  %615 = vmatpush.bf16.msra.mxu1 %v3516_v4  ;;  %v3531_v0 = vld [vmem:[%s6541_s0 + $0x50] sm:$0xff] }
  0x13   :  { %946 = vmatpush.bf16.msra.mxu2 %v3516_v4  ;;  %1277 = vmatpush.bf16.msra.mxu3 %v3516_v4  ;;  %v3579_v4 = vld [vmem:[%s6541_s0 + $0x1d8] sm:$0xff] }
  0x16   :  { %285 = vmatpush.bf16.msra.mxu0 %v3515_v5  ;;  %616 = vmatpush.bf16.msra.mxu1 %v3515_v5 }
  0x17   :  { %947 = vmatpush.bf16.msra.mxu2 %v3515_v5  ;;  %1278 = vmatpush.bf16.msra.mxu3 %v3515_v5  ;;  %v3603_v5 = vld [vmem:[%s6541_s0 + $0x29c] sm:$0xff] }
  0x1a   :  { %286 = vmatpush.bf16.msra.mxu0 %v3514_v6  ;;  %617 = vmatpush.bf16.msra.mxu1 %v3514_v6 }
  0x1b   :  { %948 = vmatpush.bf16.msra.mxu2 %v3514_v6  ;;  %1279 = vmatpush.bf16.msra.mxu3 %v3514_v6 }
  0x1e   :  { %287 = vmatpush.bf16.msra.mxu0 %v3513_v7  ;;  %618 = vmatpush.bf16.msra.mxu1 %v3513_v7 }
  0x1f   :  { %949 = vmatpush.bf16.msra.mxu2 %v3513_v7  ;;  %1280 = vmatpush.bf16.msra.mxu3 %v3513_v7 }
  0x21   :  { %288 = vmatmul.bf16.vlgmr.msra.gmra.mxu0 %v3521_v8  ;;  %619 = vmatmul.bf16.vlgmr.msra.gmra.mxu1 %v3545_v9 }
  0x22   :  { %950 = vmatmul.bf16.vlgmr.msra.gmra.mxu2 %v3569_v10  ;;  %1281 = vmatmul.bf16.vlgmr.msra.gmra.mxu3 %v3593_v11 }
  0x31   :  { %293 = vmatmul.bf16.gmra.mxu0 %v3522_v12  ;;  %624 = vmatmul.bf16.gmra.mxu1 %v3546_v13  ;;  %v3532_v12 = vld [vmem:[%s6541_s0 + $0x58] sm:$0xff] }
  0x32   :  { %955 = vmatmul.bf16.gmra.mxu2 %v3570_v14  ;;  %1286 = vmatmul.bf16.gmra.mxu3 %v3594_v15  ;;  %v3556_v13 = vld [vmem:[%s6541_s0 + $0x11c] sm:$0xff] }
  0x41   :  { %298 = vmatmul.bf16.gmra.mxu0 %v3523_v16  ;;  %629 = vmatmul.bf16.gmra.mxu1 %v3547_v17  ;;  %v3580_v16 = vld [vmem:[%s6541_s0 + $0x1e0] sm:$0xff] }
  0x42   :  { %960 = vmatmul.bf16.gmra.mxu2 %v3571_v18  ;;  %1291 = vmatmul.bf16.gmra.mxu3 %v3595_v19  ;;  %v3604_v17 = vld [vmem:[%s6541_s0 + $0x2a4] sm:$0xff] }
  0x51   :  { %303 = vmatmul.bf16.gmra.mxu0 %v3524_v20  ;;  %634 = vmatmul.bf16.gmra.mxu1 %v3548_v21 }
  0x52   :  { %965 = vmatmul.bf16.gmra.mxu2 %v3572_v22  ;;  %1296 = vmatmul.bf16.gmra.mxu3 %v3596_v23 }
  0x61   :  { %308 = vmatmul.bf16.gmra.mxu0 %v3525_v24  ;;  %639 = vmatmul.bf16.gmra.mxu1 %v3549_v25  ;;  %v3533_v24 = vld [vmem:[%s6541_s0 + $0x60] sm:$0xff] }
  0x62   :  { %970 = vmatmul.bf16.gmra.mxu2 %v3573_v26  ;;  %1301 = vmatmul.bf16.gmra.mxu3 %v3597_v27  ;;  %v3557_v25 = vld [vmem:[%s6541_s0 + $0x124] sm:$0xff] }
  0x71   :  { %313 = vmatmul.bf16.gmra.mxu0 %v3526_v28  ;;  %644 = vmatmul.bf16.gmra.mxu1 %v3550_v29  ;;  %v3581_v28 = vld [vmem:[%s6541_s0 + $0x1e8] sm:$0xff] }
  0x72   :  { %975 = vmatmul.bf16.gmra.mxu2 %v3574_v30  ;;  %1306 = vmatmul.bf16.gmra.mxu3 %v3598_v31  ;;  %v3605_v29 = vld [vmem:[%s6541_s0 + $0x2ac] sm:$0xff] }
  0x81   :  { %318 = vmatmul.bf16.gmra.mxu0 %v3527_v32  ;;  %649 = vmatmul.bf16.gmra.mxu1 %v3551_v33 }
  0x82   :  { %980 = vmatmul.bf16.gmra.mxu2 %v3575_v34  ;;  %1311 = vmatmul.bf16.gmra.mxu3 %v3599_v35 }
  0x91   :  { %323 = vmatmul.bf16.gmra.mxu0 %v3528_v36  ;;  %654 = vmatmul.bf16.gmra.mxu1 %v3552_v37  ;;  %v3534_v36 = vld [vmem:[%s6541_s0 + $0x68] sm:$0xff] }
  0x92   :  { %985 = vmatmul.bf16.gmra.mxu2 %v3576_v38  ;;  %1316 = vmatmul.bf16.gmra.mxu3 %v3600_v39  ;;  %v3558_v37 = vld [vmem:[%s6541_s0 + $0x12c] sm:$0xff] }
  0x9e   :  { %v3913_v42 = vpop.f32.mrf.mxu0  ;;  %v3915_v43 = vpop.f32.mrf.mxu1 }
  0x9f   :  { %6920 = vst [vmem:[#allocation2_spill] sm:$0xff] %v3913_v42 }
  0xa0   :  { %6921 = vst [vmem:[#allocation3_spill] sm:$0xff] %v3915_v43 }
  0xa1   :  { %328 = vmatmul.bf16.gmra.mxu0 %v3529_v40  ;;  %659 = vmatmul.bf16.gmra.mxu1 %v3553_v41  ;;  %v3582_v40 = vld [vmem:[%s6541_s0 + $0x1f0] sm:$0xff] }
  0xa2   :  { %990 = vmatmul.bf16.gmra.mxu2 %v3577_v44  ;;  %1321 = vmatmul.bf16.gmra.mxu3 %v3601_v45  ;;  %v3606_v41 = vld [vmem:[%s6541_s0 + $0x2b4] sm:$0xff] }
  0xa5   :  { %v3923_v46 = vpop.f32.mrf.mxu2  ;;  %v3925_v47 = vpop.f32.mrf.mxu3 }
  0xa6   :  { %6922 = vst [vmem:[#allocation4_spill] sm:$0xff] %v3923_v46  ;;  %v3927_v48 = vpop.f32.mrf.mxu0  ;;  %v3929_v49 = vpop.f32.mrf.mxu1 }
  0xa7   :  { %6923 = vst [vmem:[#allocation5_spill] sm:$0xff] %v3925_v47 }
  0xa8   :  { %6924 = vst [vmem:[#allocation6_spill] sm:$0xff] %v3927_v48 }
  0xa9   :  { %6925 = vst [vmem:[#allocation7_spill] sm:$0xff] %v3929_v49 }
  0xad   :  { %v3931_v50 = vpop.f32.mrf.mxu2  ;;  %v3933_v51 = vpop.f32.mrf.mxu3 }
  0xae   :  { %6926 = vst [vmem:[#allocation8_spill] sm:$0xff] %v3931_v50  ;;  %v3941_v54 = vpop.f32.mrf.mxu0  ;;  %v3943_v55 = vpop.f32.mrf.mxu1 }
  0xaf   :  { %6927 = vst [vmem:[#allocation9_spill] sm:$0xff] %v3933_v51 }
  0xb0   :  { %6928 = vst [vmem:[#allocation10_spill] sm:$0xff] %v3941_v54 }
  0xb1   :  { %6929 = vst [vmem:[#allocation11_spill] sm:$0xff] %v3943_v55  ;;  %333 = vmatmul.bf16.gmra.mxu0 %v3530_v52  ;;  %664 = vmatmul.bf16.gmra.mxu1 %v3554_v53 }
  0xb2   :  { %995 = vmatmul.bf16.gmra.mxu2 %v3578_v56  ;;  %1326 = vmatmul.bf16.gmra.mxu3 %v3602_v57 }
  0xb5   :  { %v3951_v58 = vpop.f32.mrf.mxu2  ;;  %v3953_v59 = vpop.f32.mrf.mxu3 }
  0xb6   :  { %6930 = vst [vmem:[#allocation12_spill] sm:$0xff] %v3951_v58  ;;  %v3955_v60 = vpop.f32.mrf.mxu0  ;;  %v3957_v61 = vpop.f32.mrf.mxu1 }
  0xb7   :  { %6931 = vst [vmem:[#allocation13_spill] sm:$0xff] %v3953_v59 }
  0xb8   :  { %6932 = vst [vmem:[#allocation14_spill] sm:$0xff] %v3955_v60 }
  0xb9   :  { %6933 = vst [vmem:[#allocation15_spill] sm:$0xff] %v3957_v61 }
  0xbd   :  { %v3959_v62 = vpop.f32.mrf.mxu2  ;;  %v3961_v63 = vpop.f32.mrf.mxu3 }
  0xbe   :  { %6934 = vst [vmem:[#allocation16_spill] sm:$0xff] %v3959_v62  ;;  %v3969_v2 = vpop.f32.mrf.mxu0  ;;  %v3971_v3 = vpop.f32.mrf.mxu1 }
  0xbf   :  { %6935 = vst [vmem:[#allocation17_spill] sm:$0xff] %v3961_v63 }
  0xc0   :  { %6936 = vst [vmem:[#allocation18_spill] sm:$0xff] %v3969_v2 }
  0xc1   :  { %6937 = vst [vmem:[#allocation19_spill] sm:$0xff] %v3971_v3  ;;  %338 = vmatmul.bf16.gmra.mxu0 %v3531_v0  ;;  %669 = vmatmul.bf16.gmra.mxu1 %v3555_v1  ;;  %v3535_v0 = vld [vmem:[%s6541_s0 + $0x70] sm:$0xff] }
  0xc2   :  { %1000 = vmatmul.bf16.gmra.mxu2 %v3579_v4  ;;  %1331 = vmatmul.bf16.gmra.mxu3 %v3603_v5  ;;  %v3559_v1 = vld [vmem:[%s6541_s0 + $0x134] sm:$0xff] }
  0xc5   :  { %v3979_v6 = vpop.f32.mrf.mxu2  ;;  %v3981_v7 = vpop.f32.mrf.mxu3 }
  0xc6   :  { %6938 = vst [vmem:[#allocation20_spill] sm:$0xff] %v3979_v6  ;;  %v3983_v8 = vpop.f32.mrf.mxu0  ;;  %v3985_v9 = vpop.f32.mrf.mxu1 }
  0xc7   :  { %6939 = vst [vmem:[#allocation21_spill] sm:$0xff] %v3981_v7 }
  0xc8   :  { %6940 = vst [vmem:[#allocation22_spill] sm:$0xff] %v3983_v8 }
  0xc9   :  { %6941 = vst [vmem:[#allocation23_spill] sm:$0xff] %v3985_v9 }
  0xcd   :  { %v3987_v10 = vpop.f32.mrf.mxu2  ;;  %v3989_v11 = vpop.f32.mrf.mxu3 }
  0xce   :  { %6942 = vst [vmem:[#allocation24_spill] sm:$0xff] %v3987_v10  ;;  %v3997_v14 = vpop.f32.mrf.mxu0  ;;  %v3999_v15 = vpop.f32.mrf.mxu1 }
  0xcf   :  { %6943 = vst [vmem:[#allocation25_spill] sm:$0xff] %v3989_v11 }
  0xd0   :  { %6944 = vst [vmem:[#allocation26_spill] sm:$0xff] %v3997_v14 }
  0xd1   :  { %6945 = vst [vmem:[#allocation27_spill] sm:$0xff] %v3999_v15  ;;  %343 = vmatmul.bf16.gmra.mxu0 %v3532_v12  ;;  %674 = vmatmul.bf16.gmra.mxu1 %v3556_v13  ;;  %v3583_v12 = vld [vmem:[%s6541_s0 + $0x1f8] sm:$0xff] }
  0xd2   :  { %1005 = vmatmul.bf16.gmra.mxu2 %v3580_v16  ;;  %1336 = vmatmul.bf16.gmra.mxu3 %v3604_v17  ;;  %v3607_v13 = vld [vmem:[%s6541_s0 + $0x2bc] sm:$0xff] }
  0xd5   :  { %v4007_v18 = vpop.f32.mrf.mxu2  ;;  %v4009_v19 = vpop.f32.mrf.mxu3 }
  0xd6   :  { %6946 = vst [vmem:[#allocation28_spill] sm:$0xff] %v4007_v18  ;;  %v4011_v20 = vpop.f32.mrf.mxu0  ;;  %v4013_v21 = vpop.f32.mrf.mxu1 }
  0xd7   :  { %6947 = vst [vmem:[#allocation29_spill] sm:$0xff] %v4009_v19 }
  0xd8   :  { %6948 = vst [vmem:[#allocation30_spill] sm:$0xff] %v4011_v20 }
  0xd9   :  { %6949 = vst [vmem:[#allocation31_spill] sm:$0xff] %v4013_v21 }
  0xdd   :  { %v4015_v22 = vpop.f32.mrf.mxu2  ;;  %v4017_v23 = vpop.f32.mrf.mxu3 }
  0xde   :  { %6950 = vst [vmem:[#allocation32_spill] sm:$0xff] %v4015_v22  ;;  %v4025_v26 = vpop.f32.mrf.mxu0  ;;  %v4027_v27 = vpop.f32.mrf.mxu1 }
  0xdf   :  { %6951 = vst [vmem:[#allocation33_spill] sm:$0xff] %v4017_v23 }
  0xe0   :  { %6952 = vst [vmem:[#allocation34_spill] sm:$0xff] %v4025_v26 }
  0xe1   :  { %6953 = vst [vmem:[#allocation35_spill] sm:$0xff] %v4027_v27  ;;  %348 = vmatmul.bf16.gmra.mxu0 %v3533_v24  ;;  %679 = vmatmul.bf16.gmra.mxu1 %v3557_v25 }
  0xe2   :  { %1010 = vmatmul.bf16.gmra.mxu2 %v3581_v28  ;;  %1341 = vmatmul.bf16.gmra.mxu3 %v3605_v29 }
  0xe5   :  { %v4035_v30 = vpop.f32.mrf.mxu2  ;;  %v4037_v31 = vpop.f32.mrf.mxu3 }
  0xe6   :  { %6954 = vst [vmem:[#allocation36_spill] sm:$0xff] %v4035_v30  ;;  %v4039_v32 = vpop.f32.mrf.mxu0  ;;  %v4041_v33 = vpop.f32.mrf.mxu1 }
  0xe7   :  { %6955 = vst [vmem:[#allocation37_spill] sm:$0xff] %v4037_v31 }
  0xe8   :  { %6956 = vst [vmem:[#allocation38_spill] sm:$0xff] %v4039_v32 }
  0xe9   :  { %6957 = vst [vmem:[#allocation39_spill] sm:$0xff] %v4041_v33 }
  0xed   :  { %v4043_v34 = vpop.f32.mrf.mxu2  ;;  %v4045_v35 = vpop.f32.mrf.mxu3 }
  0xee   :  { %6958 = vst [vmem:[#allocation40_spill] sm:$0xff] %v4043_v34  ;;  %v4053_v38 = vpop.f32.mrf.mxu0  ;;  %v4055_v39 = vpop.f32.mrf.mxu1 }
  0xef   :  { %6959 = vst [vmem:[#allocation41_spill] sm:$0xff] %v4045_v35 }
  0xf0   :  { %6960 = vst [vmem:[#allocation42_spill] sm:$0xff] %v4053_v38 }
  0xf1   :  { %6961 = vst [vmem:[#allocation43_spill] sm:$0xff] %v4055_v39  ;;  %353 = vmatmul.bf16.gmra.mxu0 %v3534_v36  ;;  %684 = vmatmul.bf16.gmra.mxu1 %v3558_v37  ;;  %v3536_v36 = vld [vmem:[%s6541_s0 + $0x78] sm:$0xff] }
  0xf2   :  { %1015 = vmatmul.bf16.gmra.mxu2 %v3582_v40  ;;  %1346 = vmatmul.bf16.gmra.mxu3 %v3606_v41  ;;  %v3560_v37 = vld [vmem:[%s6541_s0 + $0x13c] sm:$0xff] }
  0xf5   :  { %v4063_v44 = vpop.f32.mrf.mxu2  ;;  %v4065_v45 = vpop.f32.mrf.mxu3 }
  0xf6   :  { %6962 = vst [vmem:[#allocation44_spill] sm:$0xff] %v4063_v44  ;;  %v4067_v52 = vpop.f32.mrf.mxu0  ;;  %v4069_v53 = vpop.f32.mrf.mxu1 }
  0xf7   :  { %6963 = vst [vmem:[#allocation45_spill] sm:$0xff] %v4065_v45 }
  0xf8   :  { %6964 = vst [vmem:[#allocation46_spill] sm:$0xff] %v4067_v52 }
  0xf9   :  { %6965 = vst [vmem:[#allocation47_spill] sm:$0xff] %v4069_v53 }
  0xfd   :  { %v4071_v56 = vpop.f32.mrf.mxu2  ;;  %v4073_v57 = vpop.f32.mrf.mxu3 }
  0xfe   :  { %6966 = vst [vmem:[#allocation48_spill] sm:$0xff] %v4071_v56  ;;  %v4081_v4 = vpop.f32.mrf.mxu0  ;;  %v4083_v5 = vpop.f32.mrf.mxu1 }
  0xff   :  { %6967 = vst [vmem:[#allocation49_spill] sm:$0xff] %v4073_v57  ;;  %v3537_v57 = vld [vmem:[%s6541_s0 + $0x80] sm:$0xff] }
 0x100   :  { %6968 = vst [vmem:[#allocation50_spill] sm:$0xff] %v4081_v4 }
 0x101   :  { %6969 = vst [vmem:[#allocation51_spill] sm:$0xff] %v4083_v5  ;;  %358 = vmatmul.bf16.gmra.mxu0 %v3535_v0  ;;  %689 = vmatmul.bf16.gmra.mxu1 %v3559_v1  ;;  %v3584_v0 = vld [vmem:[%s6541_s0 + $0x200] sm:$0xff] }
 0x102   :  { %1020 = vmatmul.bf16.gmra.mxu2 %v3583_v12  ;;  %1351 = vmatmul.bf16.gmra.mxu3 %v3607_v13  ;;  %v3608_v1 = vld [vmem:[%s6541_s0 + $0x2c4] sm:$0xff] }
 0x105   :  { %v4091_v16 = vpop.f32.mrf.mxu2  ;;  %v4093_v17 = vpop.f32.mrf.mxu3 }
 0x106   :  { %6970 = vst [vmem:[#allocation52_spill] sm:$0xff] %v4091_v16  ;;  %v4095_v24 = vpop.f32.mrf.mxu0  ;;  %v4097_v25 = vpop.f32.mrf.mxu1 }
 0x107   :  { %6971 = vst [vmem:[#allocation53_spill] sm:$0xff] %v4093_v17 }
 0x108   :  { %6972 = vst [vmem:[#allocation54_spill] sm:$0xff] %v4095_v24 }
 0x109   :  { %6973 = vst [vmem:[#allocation55_spill] sm:$0xff] %v4097_v25 }
 0x10d   :  { %v4099_v28 = vpop.f32.mrf.mxu2  ;;  %v4101_v29 = vpop.f32.mrf.mxu3 }
 0x10e   :  { %6974 = vst [vmem:[#allocation56_spill] sm:$0xff] %v4099_v28  ;;  %v4109_v40 = vpop.f32.mrf.mxu0  ;;  %v4111_v41 = vpop.f32.mrf.mxu1 }
 0x10f   :  { %6975 = vst [vmem:[#allocation57_spill] sm:$0xff] %v4101_v29 }
 0x110   :  { %6976 = vst [vmem:[#allocation58_spill] sm:$0xff] %v4109_v40 }
 0x111   :  { %6977 = vst [vmem:[#allocation59_spill] sm:$0xff] %v4111_v41  ;;  %363 = vmatmul.bf16.gmra.mxu0 %v3536_v36  ;;  %694 = vmatmul.bf16.gmra.mxu1 %v3560_v37  ;;  %v3561_v36 = vld [vmem:[%s6541_s0 + $0x144] sm:$0xff] }
 0x112   :  { %1025 = vmatmul.bf16.gmra.mxu2 %v3584_v0  ;;  %1356 = vmatmul.bf16.gmra.mxu3 %v3608_v1  ;;  %v3585_v1 = vld [vmem:[%s6541_s0 + $0x208] sm:$0xff] }
 0x115   :  { %v4119_v12 = vpop.f32.mrf.mxu2  ;;  %v4121_v13 = vpop.f32.mrf.mxu3 }
 0x116   :  { %6978 = vst [vmem:[#allocation60_spill] sm:$0xff] %v4119_v12  ;;  %v4123_v29 = vpop.f32.mrf.mxu0  ;;  %v4125_v28 = vpop.f32.mrf.mxu1 }
 0x117   :  { %6979 = vst [vmem:[#allocation61_spill] sm:$0xff] %v4121_v13 }
 0x118   :  { %6980 = vst [vmem:[#allocation62_spill] sm:$0xff] %v4123_v29  ;;  %v3538_v29 = vld [vmem:[%s6541_s0 + $0x88] sm:$0xff] }
 0x119   :  { %6981 = vst [vmem:[#allocation63_spill] sm:$0xff] %v4125_v28 }
 0x11d   :  { %v4127_v17 = vpop.f32.mrf.mxu2  ;;  %v4129_v16 = vpop.f32.mrf.mxu3 }
 0x11e   :  { %6982 = vst [vmem:[#allocation64_spill] sm:$0xff] %v4127_v17  ;;  %v4137_v37 = vpop.f32.mrf.mxu0  ;;  %v4139_v0 = vpop.f32.mrf.mxu1 }
 0x11f   :  { %6983 = vst [vmem:[#allocation65_spill] sm:$0xff] %v4129_v16  ;;  %v3609_v16 = vld [vmem:[%s6541_s0 + $0x2cc] sm:$0xff] }
 0x120   :  { %6984 = vst [vmem:[#allocation66_spill] sm:$0xff] %v4137_v37 }
 0x121   :  { %6985 = vst [vmem:[#allocation67_spill] sm:$0xff] %v4139_v0  ;;  %368 = vmatmul.bf16.gmra.mxu0 %v3537_v57  ;;  %699 = vmatmul.bf16.gmra.mxu1 %v3561_v36  ;;  %v3562_v57 = vld [vmem:[%s6541_s0 + $0x14c] sm:$0xff] }
 0x122   :  { %1030 = vmatmul.bf16.gmra.mxu2 %v3585_v1  ;;  %1361 = vmatmul.bf16.gmra.mxu3 %v3609_v16  ;;  %v3586_v1 = vld [vmem:[%s6541_s0 + $0x210] sm:$0xff] }
 0x125   :  { %v4147_v17 = vpop.f32.mrf.mxu2  ;;  %v4149_v13 = vpop.f32.mrf.mxu3 }
 0x126   :  { %6986 = vst [vmem:[#allocation68_spill] sm:$0xff] %v4147_v17  ;;  %v4151_v12 = vpop.f32.mrf.mxu0  ;;  %v4153_v37 = vpop.f32.mrf.mxu1 }
 0x127   :  { %6987 = vst [vmem:[#allocation69_spill] sm:$0xff] %v4149_v13 }
 0x128   :  { %6988 = vst [vmem:[#allocation70_spill] sm:$0xff] %v4151_v12  ;;  %v3539_v12 = vld [vmem:[%s6541_s0 + $0x90] sm:$0xff] }
 0x129   :  { %6989 = vst [vmem:[#allocation71_spill] sm:$0xff] %v4153_v37 }
 0x12d   :  { %v4155_v0 = vpop.f32.mrf.mxu2  ;;  %v4157_v28 = vpop.f32.mrf.mxu3 }
 0x12e   :  { %6990 = vst [vmem:[#allocation72_spill] sm:$0xff] %v4155_v0  ;;  %v4165_v16 = vpop.f32.mrf.mxu0  ;;  %v4167_v36 = vpop.f32.mrf.mxu1 }
 0x12f   :  { %6991 = vst [vmem:[#allocation73_spill] sm:$0xff] %v4157_v28  ;;  %v3610_v28 = vld [vmem:[%s6541_s0 + $0x2d4] sm:$0xff] }
 0x130   :  { %6992 = vst [vmem:[#allocation74_spill] sm:$0xff] %v4165_v16 }
 0x131   :  { %6993 = vst [vmem:[#allocation75_spill] sm:$0xff] %v4167_v36  ;;  %373 = vmatmul.bf16.gmra.mxu0 %v3538_v29  ;;  %704 = vmatmul.bf16.gmra.mxu1 %v3562_v57 }
 0x132   :  { %1035 = vmatmul.bf16.gmra.mxu2 %v3586_v1  ;;  %1366 = vmatmul.bf16.gmra.mxu3 %v3610_v28  ;;  %v3563_v28 = vld [vmem:[%s6541_s0 + $0x154] sm:$0xff] }
 0x133   :  { %v3587_v1 = vld [vmem:[%s6541_s0 + $0x218] sm:$0xff] }
 0x135   :  { %v4175_v0 = vpop.f32.mrf.mxu2  ;;  %v4177_v13 = vpop.f32.mrf.mxu3 }
 0x136   :  { %6994 = vst [vmem:[#allocation76_spill] sm:$0xff] %v4175_v0  ;;  %v4179_v17 = vpop.f32.mrf.mxu0  ;;  %v4181_v16 = vpop.f32.mrf.mxu1 }
 0x137   :  { %6995 = vst [vmem:[#allocation77_spill] sm:$0xff] %v4177_v13 }
 0x138   :  { %6996 = vst [vmem:[#allocation78_spill] sm:$0xff] %v4179_v17  ;;  %v3540_v17 = vld [vmem:[%s6541_s0 + $0x98] sm:$0xff] }
 0x139   :  { %6997 = vst [vmem:[#allocation79_spill] sm:$0xff] %v4181_v16 }
 0x13d   :  { %v4183_v36 = vpop.f32.mrf.mxu2  ;;  %v4185_v37 = vpop.f32.mrf.mxu3 }
 0x13e   :  { %6998 = vst [vmem:[#allocation80_spill] sm:$0xff] %v4183_v36  ;;  %v4193_v29 = vpop.f32.mrf.mxu0  ;;  %v4195_v57 = vpop.f32.mrf.mxu1 }
 0x13f   :  { %6999 = vst [vmem:[#allocation81_spill] sm:$0xff] %v4185_v37  ;;  %v3611_v37 = vld [vmem:[%s6541_s0 + $0x2dc] sm:$0xff] }
 0x140   :  { %7000 = vst [vmem:[#allocation82_spill] sm:$0xff] %v4193_v29 }
 0x141   :  { %7001 = vst [vmem:[#allocation83_spill] sm:$0xff] %v4195_v57  ;;  %378 = vmatmul.bf16.gmra.mxu0 %v3539_v12  ;;  %709 = vmatmul.bf16.gmra.mxu1 %v3563_v28  ;;  %v3564_v12 = vld [vmem:[%s6541_s0 + $0x15c] sm:$0xff] }
 0x142   :  { %1040 = vmatmul.bf16.gmra.mxu2 %v3587_v1  ;;  %1371 = vmatmul.bf16.gmra.mxu3 %v3611_v37  ;;  %v3588_v1 = vld [vmem:[%s6541_s0 + $0x220] sm:$0xff] }
 0x145   :  { %v4203_v36 = vpop.f32.mrf.mxu2  ;;  %v4205_v13 = vpop.f32.mrf.mxu3 }
 0x146   :  { %7002 = vst [vmem:[#allocation84_spill] sm:$0xff] %v4203_v36  ;;  %v4207_v0 = vpop.f32.mrf.mxu0  ;;  %v4209_v29 = vpop.f32.mrf.mxu1 }
 0x147   :  { %7003 = vst [vmem:[#allocation85_spill] sm:$0xff] %v4205_v13 }
 0x148   :  { %7004 = vst [vmem:[#allocation86_spill] sm:$0xff] %v4207_v0  ;;  %v3541_v0 = vld [vmem:[%s6541_s0 + $0xa0] sm:$0xff] }
 0x149   :  { %7005 = vst [vmem:[#allocation87_spill] sm:$0xff] %v4209_v29 }
 0x14d   :  { %v4211_v57 = vpop.f32.mrf.mxu2  ;;  %v4213_v16 = vpop.f32.mrf.mxu3 }
 0x14e   :  { %7006 = vst [vmem:[#allocation88_spill] sm:$0xff] %v4211_v57  ;;  %v4221_v37 = vpop.f32.mrf.mxu0  ;;  %v4223_v28 = vpop.f32.mrf.mxu1 }
 0x14f   :  { %7007 = vst [vmem:[#allocation89_spill] sm:$0xff] %v4213_v16  ;;  %v3612_v16 = vld [vmem:[%s6541_s0 + $0x2e4] sm:$0xff] }
 0x150   :  { %7008 = vst [vmem:[#allocation90_spill] sm:$0xff] %v4221_v37 }
 0x151   :  { %7009 = vst [vmem:[#allocation91_spill] sm:$0xff] %v4223_v28  ;;  %383 = vmatmul.bf16.gmra.mxu0 %v3540_v17  ;;  %714 = vmatmul.bf16.gmra.mxu1 %v3564_v12  ;;  %v3565_v17 = vld [vmem:[%s6541_s0 + $0x164] sm:$0xff] }
 0x152   :  { %1045 = vmatmul.bf16.gmra.mxu2 %v3588_v1  ;;  %1376 = vmatmul.bf16.gmra.mxu3 %v3612_v16  ;;  %v3589_v1 = vld [vmem:[%s6541_s0 + $0x228] sm:$0xff] }
 0x155   :  { %v4231_v57 = vpop.f32.mrf.mxu2  ;;  %v4233_v13 = vpop.f32.mrf.mxu3 }
 0x156   :  { %7010 = vst [vmem:[#allocation92_spill] sm:$0xff] %v4231_v57  ;;  %v4235_v36 = vpop.f32.mrf.mxu0  ;;  %v4237_v37 = vpop.f32.mrf.mxu1 }
 0x157   :  { %7011 = vst [vmem:[#allocation93_spill] sm:$0xff] %v4233_v13 }
 0x158   :  { %7012 = vst [vmem:[#allocation94_spill] sm:$0xff] %v4235_v36  ;;  %v3542_v36 = vld [vmem:[%s6541_s0 + $0xa8] sm:$0xff] }
 0x159   :  { %7013 = vst [vmem:[#allocation95_spill] sm:$0xff] %v4237_v37 }
 0x15d   :  { %v4239_v28 = vpop.f32.mrf.mxu2  ;;  %v4241_v29 = vpop.f32.mrf.mxu3 }
 0x15e   :  { %7014 = vst [vmem:[#allocation96_spill] sm:$0xff] %v4239_v28  ;;  %v4249_v16 = vpop.f32.mrf.mxu0  ;;  %v4251_v12 = vpop.f32.mrf.mxu1 }
 0x15f   :  { %7015 = vst [vmem:[#allocation97_spill] sm:$0xff] %v4241_v29  ;;  %v3613_v29 = vld [vmem:[%s6541_s0 + $0x2ec] sm:$0xff] }
 0x160   :  { %7016 = vst [vmem:[#allocation98_spill] sm:$0xff] %v4249_v16 }
 0x161   :  { %7017 = vst [vmem:[#allocation99_spill] sm:$0xff] %v4251_v12  ;;  %388 = vmatmul.bf16.gmra.mxu0 %v3541_v0  ;;  %719 = vmatmul.bf16.gmra.mxu1 %v3565_v17  ;;  %v3566_v0 = vld [vmem:[%s6541_s0 + $0x16c] sm:$0xff] }
 0x162   :  { %1050 = vmatmul.bf16.gmra.mxu2 %v3589_v1  ;;  %1381 = vmatmul.bf16.gmra.mxu3 %v3613_v29  ;;  %v3590_v1 = vld [vmem:[%s6541_s0 + $0x230] sm:$0xff] }
 0x165   :  { %v4259_v28 = vpop.f32.mrf.mxu2  ;;  %v4261_v13 = vpop.f32.mrf.mxu3 }
 0x166   :  { %7018 = vst [vmem:[#allocation100_spill] sm:$0xff] %v4259_v28  ;;  %v4263_v57 = vpop.f32.mrf.mxu0  ;;  %v4265_v16 = vpop.f32.mrf.mxu1 }
 0x167   :  { %7019 = vst [vmem:[#allocation101_spill] sm:$0xff] %v4261_v13 }
 0x168   :  { %7020 = vst [vmem:[#allocation102_spill] sm:$0xff] %v4263_v57  ;;  %v3543_v57 = vld [vmem:[%s6541_s0 + $0xb0] sm:$0xff] }
 0x169   :  { %7021 = vst [vmem:[#allocation103_spill] sm:$0xff] %v4265_v16 }
 0x16d   :  { %v4267_v12 = vpop.f32.mrf.mxu2  ;;  %v4269_v37 = vpop.f32.mrf.mxu3 }
 0x16e   :  { %7022 = vst [vmem:[#allocation104_spill] sm:$0xff] %v4267_v12  ;;  %v4277_v29 = vpop.f32.mrf.mxu0  ;;  %v4279_v17 = vpop.f32.mrf.mxu1 }
 0x16f   :  { %7023 = vst [vmem:[#allocation105_spill] sm:$0xff] %v4269_v37  ;;  %v3614_v37 = vld [vmem:[%s6541_s0 + $0x2f4] sm:$0xff] }
 0x170   :  { %7024 = vst [vmem:[#allocation106_spill] sm:$0xff] %v4277_v29 }
 0x171   :  { %7025 = vst [vmem:[#allocation107_spill] sm:$0xff] %v4279_v17  ;;  %393 = vmatmul.bf16.gmra.mxu0 %v3542_v36  ;;  %724 = vmatmul.bf16.gmra.mxu1 %v3566_v0  ;;  %v3567_v36 = vld [vmem:[%s6541_s0 + $0x174] sm:$0xff] }
 0x172   :  { %1055 = vmatmul.bf16.gmra.mxu2 %v3590_v1  ;;  %1386 = vmatmul.bf16.gmra.mxu3 %v3614_v37  ;;  %v3591_v1 = vld [vmem:[%s6541_s0 + $0x238] sm:$0xff] }
 0x175   :  { %v4287_v12 = vpop.f32.mrf.mxu2  ;;  %v4289_v13 = vpop.f32.mrf.mxu3 }
 0x176   :  { %7026 = vst [vmem:[#allocation108_spill] sm:$0xff] %v4287_v12  ;;  %v4291_v28 = vpop.f32.mrf.mxu0  ;;  %v4293_v29 = vpop.f32.mrf.mxu1 }
 0x177   :  { %7027 = vst [vmem:[#allocation109_spill] sm:$0xff] %v4289_v13 }
 0x178   :  { %7028 = vst [vmem:[#allocation110_spill] sm:$0xff] %v4291_v28  ;;  %v3544_v28 = vld [vmem:[%s6541_s0 + $0xb8] sm:$0xff] }
 0x179   :  { %7029 = vst [vmem:[#allocation111_spill] sm:$0xff] %v4293_v29 }
 0x17d   :  { %v4295_v17 = vpop.f32.mrf.mxu2  ;;  %v4297_v16 = vpop.f32.mrf.mxu3 }
 0x17e   :  { %7030 = vst [vmem:[#allocation112_spill] sm:$0xff] %v4295_v17  ;;  %v4305_v37 = vpop.f32.mrf.mxu0  ;;  %v4307_v0 = vpop.f32.mrf.mxu1 }
 0x17f   :  { %7031 = vst [vmem:[#allocation113_spill] sm:$0xff] %v4297_v16  ;;  %v3615_v16 = vld [vmem:[%s6541_s0 + $0x2fc] sm:$0xff] }
 0x180   :  { %7032 = vst [vmem:[#allocation114_spill] sm:$0xff] %v4305_v37 }
 0x181   :  { %7033 = vst [vmem:[#allocation115_spill] sm:$0xff] %v4307_v0  ;;  %398 = vmatmul.bf16.gmra.mxu0 %v3543_v57  ;;  %729 = vmatmul.bf16.gmra.mxu1 %v3567_v36  ;;  %v3568_v57 = vld [vmem:[%s6541_s0 + $0x17c] sm:$0xff] }
 0x182   :  { %1060 = vmatmul.bf16.gmra.mxu2 %v3591_v1  ;;  %1391 = vmatmul.bf16.gmra.mxu3 %v3615_v16  ;;  %v3592_v1 = vld [vmem:[%s6541_s0 + $0x240] sm:$0xff] }
 0x185   :  { %v4315_v17 = vpop.f32.mrf.mxu2  ;;  %v4317_v13 = vpop.f32.mrf.mxu3 }
 0x186   :  { %7034 = vst [vmem:[#allocation116_spill] sm:$0xff] %v4315_v17  ;;  %v4319_v12 = vpop.f32.mrf.mxu0  ;;  %v4321_v37 = vpop.f32.mrf.mxu1 }
 0x187   :  { %7035 = vst [vmem:[#allocation117_spill] sm:$0xff] %v4317_v13 }
 0x188   :  { %7036 = vst [vmem:[#allocation118_spill] sm:$0xff] %v4319_v12 }
 0x189   :  { %7037 = vst [vmem:[#allocation119_spill] sm:$0xff] %v4321_v37  ;;  %v3126_v37 = vld [vmem:[%s6541_s0 + $0x184] sm:$0xf] }
 0x18d   :  { %v4323_v0 = vpop.f32.mrf.mxu2  ;;  %v4325_v29 = vpop.f32.mrf.mxu3 }
 0x18e   :  { %7038 = vst [vmem:[#allocation120_spill] sm:$0xff] %v4323_v0  ;;  %v4333_v16 = vpop.f32.mrf.mxu0  ;;  %v4335_v36 = vpop.f32.mrf.mxu1 }
 0x18f   :  { %7039 = vst [vmem:[#allocation121_spill] sm:$0xff] %v4325_v29  ;;  %v3616_v29 = vld [vmem:[%s6541_s0 + $0x304] sm:$0xff] }
 0x190   :  { %7040 = vst [vmem:[#allocation122_spill] sm:$0xff] %v4333_v16 }
 0x191   :  { %7041 = vst [vmem:[#allocation123_spill] sm:$0xff] %v4335_v36  ;;  %403 = vmatmul.bf16.gmra.mxu0 %v3544_v28  ;;  %734 = vmatmul.bf16.gmra.mxu1 %v3568_v57  ;;  %v83_v36 = vld [vmem:[%s6541_s0 + $0xc0] sm:$0xf]  ;;  %v3271_v28 = vld [vmem:[%s6541_s0 + $0x248] sm:$0xf] }
 0x192   :  { %1065 = vmatmul.bf16.gmra.mxu2 %v3592_v1  ;;  %1396 = vmatmul.bf16.gmra.mxu3 %v3616_v29  ;;  %v3416_v29 = vld [vmem:[%s6541_s0 + $0x30c] sm:$0xf]  ;;  %v181_v57 = vunpack.c.l.b16 %v83_v36  ;;  %v560_v1 = vunpack.c.l.b16 %v3126_v37 }
 0x194   :  { %v206_v12 = vpack.c.b16 %v181_v57, %v181_v57  ;;  %v585_v41 = vpack.c.b16 %v560_v1, %v560_v1 }
 0x195   :  { %v4343_v0 = vpop.f32.mrf.mxu2  ;;  %v4345_v13 = vpop.f32.mrf.mxu3 }
 0x196   :  { %7042 = vst [vmem:[#allocation124_spill] sm:$0xff] %v4343_v0  ;;  %v4347_v17 = vpop.f32.mrf.mxu0  ;;  %v4349_v16 = vpop.f32.mrf.mxu1  ;;  %v1222_v0 = vunpack.c.l.b16 %v3416_v29 }
 0x197   :  { %7043 = vst [vmem:[#allocation125_spill] sm:$0xff] %v4345_v13  ;;  %v891_v13 = vunpack.c.l.b16 %v3271_v28 }
 0x198   :  { %7044 = vst [vmem:[#allocation126_spill] sm:$0xff] %v4347_v17  ;;  %v1247_v25 = vpack.c.b16 %v1222_v0, %v1222_v0 }
 0x199   :  { %7045 = vst [vmem:[#allocation127_spill] sm:$0xff] %v4349_v16  ;;  %v916_v45 = vpack.c.b16 %v891_v13, %v891_v13 }
 0x19d   :  { %v4363_v16 = vpop.f32.mrf.mxu2  ;;  %v4365_v17 = vpop.f32.mrf.mxu3 }
 0x19e   :  { %7046 = vst [vmem:[#allocation128_spill] sm:$0xff] %v4363_v16  ;;  %v4367_v40 = vpop.f32.mrf.mxu0  ;;  %v4369_v56 = vpop.f32.mrf.mxu1 }
 0x19f   :  { %7047 = vst [vmem:[#allocation129_spill] sm:$0xff] %v4365_v17 }
 0x1a0   :  { %7048 = vst [vmem:[#allocation130_spill] sm:$0xff] %v4367_v40 }
 0x1a1   :  { %7049 = vst [vmem:[#allocation131_spill] sm:$0xff] %v4369_v56  ;;  %408 = vmatmul.bf16.gmra.mxu0 %v206_v12  ;;  %739 = vmatmul.bf16.gmra.mxu1 %v585_v41 }
 0x1a2   :  { %1070 = vmatmul.bf16.gmra.mxu2 %v916_v45  ;;  %1401 = vmatmul.bf16.gmra.mxu3 %v1247_v25 }
 0x1a5   :  { %v4371_v36 = vpop.f32.mrf.mxu2  ;;  %v4373_v37 = vpop.f32.mrf.mxu3 }
 0x1a6   :  { %7050 = vst [vmem:[#allocation132_spill] sm:$0xff] %v4371_v36  ;;  %v4375_v28 = vpop.f32.mrf.mxu0  ;;  %v4377_v29 = vpop.f32.mrf.mxu1 }
 0x1a7   :  { %7051 = vst [vmem:[#allocation133_spill] sm:$0xff] %v4373_v37 }
 0x1a8   :  { %7052 = vst [vmem:[#allocation134_spill] sm:$0xff] %v4375_v28 }
 0x1a9   :  { %7053 = vst [vmem:[#allocation135_spill] sm:$0xff] %v4377_v29 }
 0x1ad   :  { %v4379_v57 = vpop.f32.mrf.mxu2  ;;  %v4381_v1 = vpop.f32.mrf.mxu3 }
 0x1ae   :  { %7054 = vst [vmem:[#allocation136_spill] sm:$0xff] %v4379_v57  ;;  %v4383_v17 = vpop.f32.mrf.mxu0  ;;  %v4385_v13 = vpop.f32.mrf.mxu1 }
 0x1af   :  { %7055 = vst [vmem:[#allocation137_spill] sm:$0xff] %v4381_v1  ;;  %v1406_v1 = vadd.f32 %v3927_v48, %v3913_v42  ;;  %v1516_v48 = vadd.f32 %v3931_v50, %v3923_v46 }
 0x1b0   :  { %7056 = vst [vmem:[#allocation138_spill] sm:$0xff] %v4383_v17 }
 0x1b1   :  { %7057 = vst [vmem:[#allocation139_spill] sm:$0xff] %v4385_v13 }
 0x1b5   :  { %v4387_v12 = vpop.f32.mrf.mxu2  ;;  %v4389_v45 = vpop.f32.mrf.mxu3 }
 0x1b6   :  { %7058 = vst [vmem:[#allocation140_spill] sm:$0xff] %v4387_v12  ;;  %v4391_v25 = vpop.f32.mrf.mxu0  ;;  %v4393_v41 = vpop.f32.mrf.mxu1  ;;  %v1461_v12 = vadd.f32 %v3929_v49, %v3915_v43 }
 0x1b7   :  { %7059 = vst [vmem:[#allocation141_spill] sm:$0xff] %v4389_v45  ;;  %v1407_v45 = vadd.f32 %v1406_v1, %v3941_v54 }
 0x1b8   :  { %7060 = vst [vmem:[#allocation142_spill] sm:$0xff] %v4391_v25  ;;  %v1462_v25 = vadd.f32 %v1461_v12, %v3943_v55  ;;  %v1571_v12 = vadd.f32 %v3933_v51, %v3925_v47  ;;  %v1517_v55 = vadd.f32 %v1516_v48, %v3951_v58 }
 0x1b9   :  { %7061 = vst [vmem:[#allocation143_spill] sm:$0xff] %v4393_v41 }
 0x1ba   :  { %v1518_v43 = vadd.f32 %v1517_v55, %v3959_v62  ;;  %v7087_v62 = vld [vmem:[#allocation63_spill] sm:$0xff] }
 0x1bc   :  { %v1519_v48 = vadd.f32 %v1518_v43, %v3979_v6 }
 0x1bd   :  { %v4395_v0 = vpop.f32.mrf.mxu2  ;;  %v4397_v37 = vpop.f32.mrf.mxu3 }
 0x1be   :  { %7062 = vst [vmem:[#allocation144_spill] sm:$0xff] %v4395_v0  ;;  %v4399_v36 = vpop.f32.mrf.mxu0  ;;  %v4401_v57 = vpop.f32.mrf.mxu1  ;;  %v1463_v0 = vadd.f32 %v1462_v25, %v3957_v61  ;;  %v1572_v61 = vadd.f32 %v1571_v12, %v3953_v59 }
 0x1bf   :  { %7063 = vst [vmem:[#allocation145_spill] sm:$0xff] %v4397_v37  ;;  %v1408_v37 = vadd.f32 %v1407_v45, %v3955_v60 }
 0x1c0   :  { %7064 = vst [vmem:[#allocation146_spill] sm:$0xff] %v4399_v36  ;;  %v1464_v1 = vadd.f32 %v1463_v0, %v3971_v3  ;;  %v1573_v51 = vadd.f32 %v1572_v61, %v3961_v63 }
 0x1c1   :  { %7065 = vst [vmem:[#allocation147_spill] sm:$0xff] %v4401_v57  ;;  %v1409_v49 = vadd.f32 %v1408_v37, %v3969_v2 }
 0x1c2   :  { %v1465_v25 = vadd.f32 %v1464_v1, %v3985_v9  ;;  %v1574_v55 = vadd.f32 %v1573_v51, %v3981_v7 }
 0x1c3   :  { %v1410_v45 = vadd.f32 %v1409_v49, %v3983_v8 }
 0x1c4   :  { %v1466_v50 = vadd.f32 %v1465_v25, %v3999_v15  ;;  %v1575_v61 = vadd.f32 %v1574_v55, %v3989_v11  ;;  %v7078_v11 = vld [vmem:[#allocation45_spill] sm:$0xff]  ;;  %v7117_v15 = vld [vmem:[#allocation80_spill] sm:$0xff] }
 0x1c5   :  { %v4409_v13 = vpop.f32.mrf.mxu2  ;;  %v4411_v41 = vpop.f32.mrf.mxu3  ;;  %v1411_v60 = vadd.f32 %v1410_v45, %v3997_v14  ;;  %v1520_v45 = vadd.f32 %v1519_v48, %v3987_v10  ;;  %v7080_v10 = vld [vmem:[#allocation58_spill] sm:$0xff] }
 0x1c6   :  { %7066 = vst [vmem:[#allocation148_spill] sm:$0xff] %v4409_v13  ;;  %v4415_v36 = vpop.f32.mrf.mxu0  ;;  %v4417_v57 = vpop.f32.mrf.mxu1  ;;  %v1467_v1 = vadd.f32 %v1466_v50, %v4013_v21  ;;  %v1576_v63 = vadd.f32 %v1575_v61, %v4009_v19  ;;  %v7099_v21 = vld [vmem:[#allocation74_spill] sm:$0xff] }
 0x1c7   :  { %7067 = vst [vmem:[#allocation149_spill] sm:$0xff] %v4411_v41  ;;  %v1412_v49 = vadd.f32 %v1411_v60, %v4011_v20  ;;  %v1521_v43 = vadd.f32 %v1520_v45, %v4007_v18  ;;  %v7156_v20 = vld [vmem:[#allocation122_spill] sm:$0xff] }
 0x1c8   :  { %7068 = vst [vmem:[#allocation150_spill] sm:$0xff] %v4415_v36  ;;  %v1468_v59 = vadd.f32 %v1467_v1, %v4027_v27  ;;  %v1577_v1 = vadd.f32 %v1576_v63, %v4017_v23  ;;  %v7077_v23 = vld [vmem:[#allocation55_spill] sm:$0xff] }
 0x1c9   :  { %7069 = vst [vmem:[#allocation151_spill] sm:$0xff] %v4417_v57  ;;  %v1413_v25 = vadd.f32 %v1412_v49, %v4025_v26  ;;  %v1522_v6 = vadd.f32 %v1521_v43, %v4015_v22  ;;  %v7079_v22 = vld [vmem:[#allocation48_spill] sm:$0xff] }
 0x1ca   :  { %v1469_v50 = vadd.f32 %v1468_v59, %v4041_v33  ;;  %v1578_v43 = vadd.f32 %v1577_v1, %v4037_v31  ;;  %v7081_v31 = vld [vmem:[#allocation59_spill] sm:$0xff]  ;;  %v7098_v33 = vld [vmem:[#allocation64_spill] sm:$0xff] }
 0x1cb   :  { %v1414_v60 = vadd.f32 %v1413_v25, %v4039_v32  ;;  %v1523_v55 = vadd.f32 %v1522_v6, %v4035_v30  ;;  %v7155_v32 = vld [vmem:[#allocation112_spill] sm:$0xff] }
 0x1cc   :  { %v1470_v48 = vadd.f32 %v1469_v50, %v4055_v39  ;;  %v1579_v63 = vadd.f32 %v1578_v43, %v4045_v35  ;;  %v7085_v35 = vld [vmem:[#allocation52_spill] sm:$0xff] }
 0x1cd   :  { %v4432_v37 = vpop.f32.mrf.mxu2  ;;  %v4434_v0 = vpop.f32.mrf.mxu3  ;;  %v1415_v51 = vadd.f32 %v1414_v60, %v4053_v38  ;;  %v1524_v60 = vadd.f32 %v1523_v55, %v4043_v34 }
 0x1ce   :  { %7070 = vst [vmem:[#allocation152_spill] sm:$0xff] %v4432_v37  ;;  %v4440_v47 = vpop.f32.mrf.mxu0  ;;  %v4442_v12 = vpop.f32.mrf.mxu1  ;;  %v1471_v59 = vadd.f32 %v1470_v48, %v4069_v53  ;;  %v1580_v30 = vadd.f32 %v1579_v63, %v7078_v11  ;;  %v7090_v11 = vld [vmem:[#allocation56_spill] sm:$0xff]  ;;  %v7096_v53 = vld [vmem:[#allocation71_spill] sm:$0xff] }
 0x1cf   :  { %7071 = vst [vmem:[#allocation153_spill] sm:$0xff] %v4434_v0  ;;  %v1416_v45 = vadd.f32 %v1415_v51, %v4067_v52  ;;  %v1525_v6 = vadd.f32 %v1524_v60, %v4063_v44  ;;  %v7086_v44 = vld [vmem:[#allocation62_spill] sm:$0xff] }
 0x1d0   :  { %7072 = vst [vmem:[#allocation154_spill] sm:$0xff] %v4440_v47  ;;  %v1472_v19 = vadd.f32 %v1471_v59, %v4083_v5  ;;  %v7084_v59 = vld [vmem:[#allocation49_spill] sm:$0xff]  ;;  %v7093_v5 = vld [vmem:[#allocation60_spill] sm:$0xff]  ;;  %v7137_v52 = vld [vmem:[#allocation106_spill] sm:$0xff] }
 0x1d1   :  { %7073 = vst [vmem:[#allocation155_spill] sm:$0xff] %v4442_v12  ;;  %v1417_v50 = vadd.f32 %v1416_v45, %v4081_v4  ;;  %v1526_v18 = vadd.f32 %v1525_v6, %v7079_v22  ;;  %v1581_v43 = vadd.f32 %v1580_v30, %v7084_v59  ;;  %v7089_v6 = vld [vmem:[#allocation53_spill] sm:$0xff]  ;;  %v7091_v22 = vld [vmem:[#allocation66_spill] sm:$0xff] }
 0x1d2   :  { %v1473_v48 = vadd.f32 %v1472_v19, %v7077_v23  ;;  %v7094_v59 = vld [vmem:[#allocation57_spill] sm:$0xff] }
 0x1d3   :  { %v1418_v51 = vadd.f32 %v1417_v50, %v4095_v24  ;;  %v1527_v60 = vadd.f32 %v1526_v18, %v7085_v35  ;;  %v7095_v35 = vld [vmem:[#allocation70_spill] sm:$0xff]  ;;  %v7136_v24 = vld [vmem:[#allocation96_spill] sm:$0xff] }
 0x1d4   :  { %v1474_v55 = vadd.f32 %v1473_v48, %v7081_v31  ;;  %v7092_v31 = vld [vmem:[#allocation67_spill] sm:$0xff] }
 0x1d5   :  { %v4456_v7 = vpop.f32.mrf.mxu2  ;;  %v4458_v49 = vpop.f32.mrf.mxu3  ;;  %v1419_v1 = vadd.f32 %v1418_v51, %v7080_v10  ;;  %v1582_v51 = vadd.f32 %v1581_v43, %v7089_v6  ;;  %v1528_v48 = vadd.f32 %v1527_v60, %v7090_v11  ;;  %v7100_v6 = vld [vmem:[#allocation75_spill] sm:$0xff]  ;;  %v7118_v10 = vld [vmem:[#allocation90_spill] sm:$0xff] }
 0x1d6   :  { %7074 = vst [vmem:[#allocation156_spill] sm:$0xff] %v4456_v7  ;;  %v4464_v25 = vpop.f32.mrf.mxu0  ;;  %v4466_v61 = vpop.f32.mrf.mxu1  ;;  %v1475_v19 = vadd.f32 %v1474_v55, %v7087_v62  ;;  %v7097_v62 = vld [vmem:[#allocation61_spill] sm:$0xff] }
 0x1d7   :  { %7075 = vst [vmem:[#allocation157_spill] sm:$0xff] %v4458_v49  ;;  %v1420_v50 = vadd.f32 %v1419_v1, %v7086_v44  ;;  %v1529_v30 = vadd.f32 %v1528_v48, %v7093_v5  ;;  %v1583_v18 = vadd.f32 %v1582_v51, %v7094_v59  ;;  %v7104_v5 = vld [vmem:[#allocation65_spill] sm:$0xff]  ;;  %v7105_v59 = vld [vmem:[#allocation78_spill] sm:$0xff] }
 0x1d8   :  { %7076 = vst [vmem:[#allocation158_spill] sm:$0xff] %v4466_v61  ;;  %v1476_v23 = vadd.f32 %v1475_v19, %v7092_v31  ;;  %v7103_v19 = vld [vmem:[#allocation68_spill] sm:$0xff]  ;;  %v7106_v31 = vld [vmem:[#allocation79_spill] sm:$0xff] }
 0x1d9   :  { %v1421_v46 = vadd.f32 %v1420_v50, %v7091_v22  ;;  %v1584_v39 = vadd.f32 %v1583_v18, %v7097_v62  ;;  %v1530_v27 = vadd.f32 %v1529_v30, %v7098_v33  ;;  %v7108_v30 = vld [vmem:[#allocation69_spill] sm:$0xff]  ;;  %v7109_v62 = vld [vmem:[#allocation72_spill] sm:$0xff]  ;;  %v7110_v33 = vld [vmem:[#allocation82_spill] sm:$0xff] }
 0x1da   :  { %v1477_v55 = vadd.f32 %v1476_v23, %v7096_v53  ;;  %v7112_v22 = vld [vmem:[#allocation76_spill] sm:$0xff] }
 0x1db   :  { %v1422_v1 = vadd.f32 %v1421_v46, %v7095_v35  ;;  %v1531_v48 = vadd.f32 %v1530_v27, %v7103_v19  ;;  %v1585_v51 = vadd.f32 %v1584_v39, %v7104_v5  ;;  %v7113_v19 = vld [vmem:[#allocation73_spill] sm:$0xff]  ;;  %v7114_v5 = vld [vmem:[#allocation86_spill] sm:$0xff] }
 0x1dc   :  { %v1478_v60 = vadd.f32 %v1477_v55, %v7100_v6 }
 0x1dd   :  { %v4480_v34 = vpop.f32.mrf.mxu2  ;;  %v4482_v45 = vpop.f32.mrf.mxu3  ;;  %v1423_v43 = vadd.f32 %v1422_v1, %v7099_v21  ;;  %v1586_v1 = vadd.f32 %v1585_v51, %v7108_v30  ;;  %v1532_v55 = vadd.f32 %v1531_v48, %v7109_v62  ;;  %v7111_v21 = vld [vmem:[#allocation83_spill] sm:$0xff] }
 0x1de   :  { %7082 = vst [vmem:[#allocation159_spill] sm:$0xff] %v4480_v34  ;;  %v4488_v58 = vpop.f32.mrf.mxu0  ;;  %v4490_v63 = vpop.f32.mrf.mxu1  ;;  %v1479_v23 = vadd.f32 %v1478_v60, %v7106_v31  ;;  %v7116_v31 = vld [vmem:[#allocation77_spill] sm:$0xff]  ;;  %v7119_v30 = vld [vmem:[#allocation91_spill] sm:$0xff] }
 0x1df   :  { %7083 = vst [vmem:[#allocation160_spill] sm:$0xff] %v4482_v45  ;;  %v1424_v46 = vadd.f32 %v1423_v43, %v7105_v59  ;;  %v1533_v27 = vadd.f32 %v1532_v55, %v7112_v22  ;;  %v1587_v39 = vadd.f32 %v1586_v1, %v7113_v19  ;;  %v7115_v59 = vld [vmem:[#allocation87_spill] sm:$0xff]  ;;  %v7123_v22 = vld [vmem:[#allocation81_spill] sm:$0xff]  ;;  %v7124_v19 = vld [vmem:[#allocation94_spill] sm:$0xff] }
 0x1e0   :  { %7088 = vst [vmem:[#allocation161_spill] sm:$0xff] %v4490_v63  ;;  %v1480_v35 = vadd.f32 %v1479_v23, %v7111_v21  ;;  %v7122_v23 = vld [vmem:[#allocation84_spill] sm:$0xff]  ;;  %v7125_v21 = vld [vmem:[#allocation95_spill] sm:$0xff] }
 0x1e1   :  { %v1425_v6 = vadd.f32 %v1424_v46, %v7110_v33  ;;  %v1588_v44 = vadd.f32 %v1587_v39, %v7116_v31  ;;  %v1534_v9 = vadd.f32 %v1533_v27, %v7117_v15  ;;  %v7127_v27 = vld [vmem:[#allocation85_spill] sm:$0xff]  ;;  %v7128_v31 = vld [vmem:[#allocation88_spill] sm:$0xff]  ;;  %v7129_v15 = vld [vmem:[#allocation98_spill] sm:$0xff] }
 0x1e2   :  { %v1481_v60 = vadd.f32 %v1480_v35, %v7115_v59  ;;  %v7131_v33 = vld [vmem:[#allocation92_spill] sm:$0xff] }
 0x1e3   :  { %v1426_v43 = vadd.f32 %v1425_v6, %v7114_v5  ;;  %v1535_v55 = vadd.f32 %v1534_v9, %v7122_v23  ;;  %v1589_v1 = vadd.f32 %v1588_v44, %v7123_v22  ;;  %v7132_v23 = vld [vmem:[#allocation89_spill] sm:$0xff]  ;;  %v7133_v22 = vld [vmem:[#allocation102_spill] sm:$0xff] }
 0x1e4   :  { %v1482_v48 = vadd.f32 %v1481_v60, %v7119_v30 }
 0x1e5   :  { %v4504_v11 = vpop.f32.mrf.mxu2  ;;  %v4506_v50 = vpop.f32.mrf.mxu3  ;;  %v1427_v51 = vadd.f32 %v1426_v43, %v7118_v10  ;;  %v1590_v43 = vadd.f32 %v1589_v1, %v7127_v27  ;;  %v1536_v60 = vadd.f32 %v1535_v55, %v7128_v31  ;;  %v7130_v10 = vld [vmem:[#allocation99_spill] sm:$0xff] }
 0x1e6   :  { %7101 = vst [vmem:[#allocation162_spill] sm:$0xff] %v4504_v11  ;;  %v4512_v53 = vpop.f32.mrf.mxu0  ;;  %v4514_v18 = vpop.f32.mrf.mxu1  ;;  %v1483_v35 = vadd.f32 %v1482_v48, %v7125_v21  ;;  %v7135_v21 = vld [vmem:[#allocation93_spill] sm:$0xff]  ;;  %v7138_v27 = vld [vmem:[#allocation107_spill] sm:$0xff] }
 0x1e7   :  { %7102 = vst [vmem:[#allocation163_spill] sm:$0xff] %v4506_v50  ;;  %v1428_v6 = vadd.f32 %v1427_v51, %v7124_v19  ;;  %v1537_v9 = vadd.f32 %v1536_v60, %v7131_v33  ;;  %v1591_v44 = vadd.f32 %v1590_v43, %v7132_v23  ;;  %v7134_v19 = vld [vmem:[#allocation103_spill] sm:$0xff]  ;;  %v7142_v33 = vld [vmem:[#allocation97_spill] sm:$0xff]  ;;  %v7143_v23 = vld [vmem:[#allocation110_spill] sm:$0xff] }
 0x1e8   :  { %7107 = vst [vmem:[#allocation164_spill] sm:$0xff] %v4514_v18  ;;  %v1484_v5 = vadd.f32 %v1483_v35, %v7130_v10  ;;  %v7141_v35 = vld [vmem:[#allocation100_spill] sm:$0xff] }
 0x1e9   :  { %v1429_v30 = vadd.f32 %v1428_v6, %v7129_v15  ;;  %v1592_v3 = vadd.f32 %v1591_v44, %v7135_v21  ;;  %v1538_v4 = vadd.f32 %v1537_v9, %v7136_v24  ;;  %v7146_v9 = vld [vmem:[#allocation101_spill] sm:$0xff]  ;;  %v7147_v21 = vld [vmem:[#allocation104_spill] sm:$0xff]  ;;  %v7148_v24 = vld [vmem:[#allocation114_spill] sm:$0xff] }
 0x1ea   :  { %v1485_v48 = vadd.f32 %v1484_v5, %v7134_v19  ;;  %v7150_v15 = vld [vmem:[#allocation108_spill] sm:$0xff] }
 0x1eb   :  { %v1430_v51 = vadd.f32 %v1429_v30, %v7133_v22  ;;  %v1539_v60 = vadd.f32 %v1538_v4, %v7141_v35  ;;  %v1593_v43 = vadd.f32 %v1592_v3, %v7142_v33  ;;  %v7144_v22 = vld [vmem:[#allocation111_spill] sm:$0xff]  ;;  %v7151_v35 = vld [vmem:[#allocation105_spill] sm:$0xff]  ;;  %v7152_v33 = vld [vmem:[#allocation118_spill] sm:$0xff] }
 0x1ec   :  { %v1486_v55 = vadd.f32 %v1485_v48, %v7138_v27 }
 0x1ed   :  { %v4528_v62 = vpop.f32.mrf.mxu2  ;;  %v4530_v46 = vpop.f32.mrf.mxu3  ;;  %v1431_v1 = vadd.f32 %v1430_v51, %v7137_v52  ;;  %v1594_v51 = vadd.f32 %v1593_v43, %v7146_v9  ;;  %v1540_v48 = vadd.f32 %v1539_v60, %v7147_v21  ;;  %v7149_v52 = vld [vmem:[#allocation115_spill] sm:$0xff] }
 0x1ee   :  { %7120 = vst [vmem:[#allocation165_spill] sm:$0xff] %v4528_v62  ;;  %v4536_v59 = vpop.f32.mrf.mxu0  ;;  %v4538_v39 = vpop.f32.mrf.mxu1  ;;  %v1487_v5 = vadd.f32 %v1486_v55, %v7144_v22  ;;  %v7154_v22 = vld [vmem:[#allocation109_spill] sm:$0xff]  ;;  %v7157_v9 = vld [vmem:[#allocation123_spill] sm:$0xff] }
 0x1ef   :  { %7121 = vst [vmem:[#allocation166_spill] sm:$0xff] %v4530_v46  ;;  %v1432_v30 = vadd.f32 %v1431_v1, %v7143_v23  ;;  %v1541_v4 = vadd.f32 %v1540_v48, %v7150_v15  ;;  %v1595_v3 = vadd.f32 %v1594_v51, %v7151_v35  ;;  %v7153_v23 = vld [vmem:[#allocation119_spill] sm:$0xff]  ;;  %v7161_v15 = vld [vmem:[#allocation116_spill] sm:$0xff]  ;;  %v7162_v35 = vld [vmem:[#allocation126_spill] sm:$0xff] }
 0x1f0   :  { %7126 = vst [vmem:[#allocation167_spill] sm:$0xff] %v4538_v39  ;;  %v1488_v10 = vadd.f32 %v1487_v5, %v7149_v52  ;;  %v7160_v5 = vld [vmem:[#allocation113_spill] sm:$0xff]  ;;  %v7163_v52 = vld [vmem:[#allocation127_spill] sm:$0xff] }
 0x1f1   :  { %v1433_v27 = vadd.f32 %v1432_v30, %v7148_v24  ;;  %v1596_v38 = vadd.f32 %v1595_v3, %v7154_v22  ;;  %v1542_v26 = vadd.f32 %v1541_v4, %v7155_v32  ;;  %v7165_v4 = vld [vmem:[#allocation117_spill] sm:$0xff]  ;;  %v7166_v22 = vld [vmem:[#allocation120_spill] sm:$0xff] }
 0x1f2   :  { %v1489_v55 = vadd.f32 %v1488_v10, %v7153_v23 }
 0x1f3   :  { %v1434_v1 = vadd.f32 %v1433_v27, %v7152_v33  ;;  %v1597_v48 = vadd.f32 %v1596_v38, %v7160_v5  ;;  %v1543_v51 = vadd.f32 %v1542_v26, %v7161_v15  ;;  %v7168_v5 = vld [vmem:[#allocation124_spill] sm:$0xff]  ;;  %v7169_v15 = vld [vmem:[#allocation125_spill] sm:$0xff] }
 0x1f4   :  { %v1490_v60 = vadd.f32 %v1489_v55, %v7157_v9 }
 0x1f5   :  { %v4552_v31 = vpop.f32.mrf.mxu2  ;;  %v4554_v6 = vpop.f32.mrf.mxu3  ;;  %v1435_v43 = vadd.f32 %v1434_v1, %v7156_v20  ;;  %v1598_v1 = vadd.f32 %v1597_v48, %v7165_v4  ;;  %v1544_v55 = vadd.f32 %v1543_v51, %v7166_v22  ;;  %v7167_v20 = vld [vmem:[#allocation121_spill] sm:$0xff]  ;;  %v7170_v4 = vld [vmem:[#allocation139_spill] sm:$0xff] }
 0x1f6   :  { %7139 = vst [vmem:[#allocation168_spill] sm:$0xff] %v4552_v31  ;;  %v4560_v19 = vpop.f32.mrf.mxu0  ;;  %v4562_v44 = vpop.f32.mrf.mxu1  ;;  %v1491_v10 = vadd.f32 %v1490_v60, %v7163_v52 }
 0x1f7   :  { %7140 = vst [vmem:[#allocation169_spill] sm:$0xff] %v4554_v6  ;;  %v1436_v27 = vadd.f32 %v1435_v43, %v7162_v35  ;;  %v1599_v38 = vadd.f32 %v1598_v1, %v7167_v20  ;;  %v1545_v26 = vadd.f32 %v1544_v55, %v7168_v5  ;;  %v7174_v20 = vld [vmem:[#allocation132_spill] sm:$0xff]  ;;  %v7175_v5 = vld [vmem:[#allocation142_spill] sm:$0xff] }
 0x1f8   :  { %7145 = vst [vmem:[#allocation170_spill] sm:$0xff] %v4562_v44  ;;  %v1492_v9 = vadd.f32 %v1491_v10, %v4369_v56  ;;  %v7173_v10 = vld [vmem:[#allocation129_spill] sm:$0xff]  ;;  %v7176_v56 = vld [vmem:[#allocation143_spill] sm:$0xff] }
 0x1f9   :  { %v1437_v32 = vadd.f32 %v1436_v27, %v4367_v40  ;;  %v1600_v52 = vadd.f32 %v1599_v38, %v7169_v15  ;;  %v1546_v35 = vadd.f32 %v1545_v26, %v4363_v16  ;;  %v7179_v26 = vld [vmem:[#allocation133_spill] sm:$0xff]  ;;  %v7180_v15 = vld [vmem:[#allocation136_spill] sm:$0xff]  ;;  %v7181_v16 = vld [vmem:[#allocation146_spill] sm:$0xff] }
 0x1fa   :  { %v1493_v60 = vadd.f32 %v1492_v9, %v4377_v29  ;;  %v7183_v40 = vld [vmem:[#allocation137_spill] sm:$0xff] }
 0x1fb   :  { %v1438_v43 = vadd.f32 %v1437_v32, %v4375_v28  ;;  %v1601_v1 = vadd.f32 %v1600_v52, %v7173_v10  ;;  %v1547_v55 = vadd.f32 %v1546_v35, %v7174_v20  ;;  %v7184_v10 = vld [vmem:[#allocation140_spill] sm:$0xff]  ;;  %v7185_v20 = vld [vmem:[#allocation141_spill] sm:$0xff] }
 0x1fc   :  { %v1494_v51 = vadd.f32 %v1493_v60, %v7170_v4 }
 0x1fd   :  { %v4576_v21 = vpop.f32.mrf.mxu2  ;;  %v4578_v30 = vpop.f32.mrf.mxu3  ;;  %v1439_v48 = vadd.f32 %v1438_v43, %v4383_v17  ;;  %v1602_v43 = vadd.f32 %v1601_v1, %v7179_v26  ;;  %v1548_v60 = vadd.f32 %v1547_v55, %v7180_v15  ;;  %v7182_v17 = vld [vmem:[#allocation147_spill] sm:$0xff] }
 0x1fe   :  { %7158 = vst [vmem:[#allocation171_spill] sm:$0xff] %v4576_v21  ;;  %v4584_v23 = vpop.f32.mrf.mxu0  ;;  %v4586_v3 = vpop.f32.mrf.mxu1  ;;  %v1495_v9 = vadd.f32 %v1494_v51, %v7176_v56 }
 0x1ff   :  { %7159 = vst [vmem:[#allocation172_spill] sm:$0xff] %v4578_v30  ;;  %v1440_v32 = vadd.f32 %v1439_v48, %v7175_v5  ;;  %v1603_v52 = vadd.f32 %v1602_v43, %v7183_v40  ;;  %v1549_v35 = vadd.f32 %v1548_v60, %v7184_v10  ;;  %v7186_v5 = vld [vmem:[#allocation144_spill] sm:$0xff] }
 0x200   :  { %7164 = vst [vmem:[#allocation173_spill] sm:$0xff] %v4586_v3  ;;  %v1496_v28 = vadd.f32 %v1495_v9, %v7182_v17  ;;  %v7189_v9 = vld [vmem:[#allocation145_spill] sm:$0xff] }
 0x201   :  { %v1441_v4 = vadd.f32 %v1440_v32, %v7181_v16  ;;  %v1604_v56 = vadd.f32 %v1603_v52, %v7185_v20  ;;  %v1550_v33 = vadd.f32 %v1549_v35, %v7186_v5 }
 0x202   :  { %v1497_v51 = vadd.f32 %v1496_v28, %v4417_v57 }
 0x203   :  { %v1442_v48 = vadd.f32 %v1441_v4, %v4415_v36  ;;  %v1605_v43 = vadd.f32 %v1604_v56, %v7189_v9  ;;  %v1551_v60 = vadd.f32 %v1550_v33, %v4409_v13 }
 0x204   :  { %v1498_v55 = vadd.f32 %v1497_v51, %v4442_v12 }
 0x205   :  { %v4600_v22 = vpop.f32.mrf.mxu2  ;;  %v4602_v27 = vpop.f32.mrf.mxu3  ;;  %v1443_v1 = vadd.f32 %v1442_v48, %v4440_v47  ;;  %v1606_v35 = vadd.f32 %v1605_v43, %v4411_v41  ;;  %v1552_v48 = vadd.f32 %v1551_v60, %v4432_v37 }
 0x206   :  { %7171 = vst [vmem:[#allocation174_spill] sm:$0xff] %v4600_v22  ;;  %v4608_v29 = vpop.f32.mrf.mxu0  ;;  %v4610_v38 = vpop.f32.mrf.mxu1  ;;  %v1499_v28 = vadd.f32 %v1498_v55, %v4466_v61 }
 0x207   :  { %7172 = vst [vmem:[#allocation175_spill] sm:$0xff] %v4602_v27  ;;  %v1444_v4 = vadd.f32 %v1443_v1, %v4464_v25  ;;  %v1607_v56 = vadd.f32 %v1606_v35, %v4434_v0  ;;  %v1553_v33 = vadd.f32 %v1552_v48, %v4456_v7 }
 0x208   :  { %7177 = vst [vmem:[#allocation176_spill] sm:$0xff] %v4608_v29  ;;  %v1500_v20 = vadd.f32 %v1499_v28, %v4490_v63 }
 0x209   :  { %7178 = vst [vmem:[#allocation177_spill] sm:$0xff] %v4610_v38  ;;  %v1445_v51 = vadd.f32 %v1444_v4, %v4488_v58  ;;  %v1608_v9 = vadd.f32 %v1607_v56, %v4458_v49  ;;  %v1554_v61 = vadd.f32 %v1553_v33, %v4480_v34 }
 0x20a   :  { %v1501_v55 = vadd.f32 %v1500_v20, %v4514_v18 }
 0x20b   :  { %v1446_v1 = vadd.f32 %v1445_v51, %v4512_v53  ;;  %v1609_v28 = vadd.f32 %v1608_v9, %v4482_v45  ;;  %v1555_v35 = vadd.f32 %v1554_v61, %v4504_v11 }
 0x20c   :  { %v1502_v60 = vadd.f32 %v1501_v55, %v4538_v39 }
 0x20d   :  { %v4624_v26 = vpop.f32.mrf.mxu2  ;;  %v4626_v32 = vpop.f32.mrf.mxu3  ;;  %v1447_v43 = vadd.f32 %v1446_v1, %v4536_v59  ;;  %v1610_v33 = vadd.f32 %v1609_v28, %v4506_v50  ;;  %v1556_v1 = vadd.f32 %v1555_v35, %v4528_v62 }
 0x20e   :  { %7187 = vst [vmem:[#allocation178_spill] sm:$0xff] %v4624_v26  ;;  %v4632_v40 = vpop.f32.mrf.mxu0  ;;  %v4634_v52 = vpop.f32.mrf.mxu1  ;;  %v1503_v20 = vadd.f32 %v1502_v60, %v4562_v44 }
 0x20f   :  { %7188 = vst [vmem:[#allocation179_spill] sm:$0xff] %v4626_v32  ;;  %v1448_v48 = vadd.f32 %v1447_v43, %v4560_v19  ;;  %v1611_v9 = vadd.f32 %v1610_v33, %v4530_v46  ;;  %v1557_v61 = vadd.f32 %v1556_v1, %v4552_v31 }
 0x210   :  { %7190 = vst [vmem:[#allocation180_spill] sm:$0xff] %v4632_v40  ;;  %v1504_v49 = vadd.f32 %v1503_v20, %v4586_v3 }
 0x211   :  { %7191 = vst [vmem:[#allocation181_spill] sm:$0xff] %v4634_v52  ;;  %v1449_v55 = vadd.f32 %v1448_v48, %v4584_v23  ;;  %v1612_v45 = vadd.f32 %v1611_v9, %v4554_v6  ;;  %v1558_v0 = vadd.f32 %v1557_v61, %v4576_v21 }
 0x212   :  { %v1505_v60 = vadd.f32 %v1504_v49, %v4610_v38 }
 0x213   :  { %v1450_v43 = vadd.f32 %v1449_v55, %v4608_v29  ;;  %v1613_v20 = vadd.f32 %v1612_v45, %v4578_v30  ;;  %v1559_v33 = vadd.f32 %v1558_v0, %v4600_v22 }
 0x214   :  { %v1506_v35 = vadd.f32 %v1505_v60, %v4634_v52 }
 0x215   :  { %v4648_v41 = vpop.f32.mrf.mxu2  ;;  %v4650_v4 = vpop.f32.mrf.mxu3  ;;  %v1451_v28 = vadd.f32 %v1450_v43, %v4632_v40  ;;  %v1614_v61 = vadd.f32 %v1613_v20, %v4602_v27  ;;  %v1560_v43 = vadd.f32 %v1559_v33, %v4624_v26 }
 0x216   :  { %7192 = vst [vmem:[#allocation182_spill] sm:$0xff] %v4648_v41  ;;  %v4656_v51 = vpop.f32.mrf.mxu0  ;;  %v4658_v56 = vpop.f32.mrf.mxu1 }
 0x217   :  { %7193 = vst [vmem:[#allocation183_spill] sm:$0xff] %v4650_v4  ;;  %v1452_v1 = vadd.f32 %v1451_v28, %v4656_v51  ;;  %v1507_v49 = vadd.f32 %v1506_v35, %v4658_v56  ;;  %v1615_v45 = vadd.f32 %v1614_v61, %v4626_v32  ;;  %v1561_v0 = vadd.f32 %v1560_v43, %v4648_v41 }
 0x218   :  { %7194 = vst [vmem:[#allocation184_spill] sm:$0xff] %v4656_v51 }
 0x219   :  { %7195 = vst [vmem:[#allocation185_spill] sm:$0xff] %v4658_v56  ;;  %v1616_v28 = vadd.f32 %v1615_v45, %v4650_v4 }
 0x21d   :  { %v4672_v50 = vpop.f32.mrf.mxu2  ;;  %v4674_v48 = vpop.f32.mrf.mxu3 }
 0x21e   :  { %7196 = vst [vmem:[#allocation186_spill] sm:$0xff] %v4672_v50  ;;  %v4680_v55 = vpop.f32.mrf.mxu0  ;;  %v4682_v9 = vpop.f32.mrf.mxu1  ;;  %v1562_v35 = vadd.f32 %v1561_v0, %v4672_v50  ;;  %v1617_v20 = vadd.f32 %v1616_v28, %v4674_v48 }
 0x21f   :  { %7197 = vst [vmem:[#allocation187_spill] sm:$0xff] %v4674_v48  ;;  %v1453_v60 = vadd.f32 %v1452_v1, %v4680_v55  ;;  %v1508_v6 = vadd.f32 %v1507_v49, %v4682_v9 }
 0x220   :  { %7198 = vst [vmem:[#allocation188_spill] sm:$0xff] %v4680_v55 }
 0x221   :  { %7199 = vst [vmem:[#allocation189_spill] sm:$0xff] %v4682_v9  ;;  %v1454_v30 = vrot.slane %v1453_v60, 4  ;;  %v1509_v46 = vrot.slane %v1508_v6, 4 }
 0x223   :  { %v1455_v27 = vadd.f32 %v1454_v30, %v1453_v60  ;;  %v1510_v61 = vadd.f32 %v1509_v46, %v1508_v6 }
 0x225   :  { %v4692_v56 = vpop.f32.mrf.mxu2  ;;  %v4694_v51 = vpop.f32.mrf.mxu3  ;;  %v1456_v4 = vrot.slane %v1455_v27, 2  ;;  %v1511_v0 = vrot.slane %v1510_v61, 2 }
 0x226   :  { %7200 = vst [vmem:[#allocation190_spill] sm:$0xff] %v4692_v56  ;;  %v1563_v33 = vadd.f32 %v1562_v35, %v4692_v56  ;;  %v411_v1 = vpop.f32.mrf.mxu0  ;;  %v742_v49 = vpop.f32.mrf.mxu1  ;;  %v1618_v43 = vadd.f32 %v1617_v20, %v4694_v51 }
 0x227   :  { %7201 = vst [vmem:[#allocation191_spill] sm:$0xff] %v4694_v51  ;;  %v1457_v26 = vadd.f32 %v1456_v4, %v1455_v27  ;;  %v1512_v52 = vadd.f32 %v1511_v0, %v1510_v61 }
 0x228   :  { %v1564_v32 = vrot.slane %v1563_v33, 4  ;;  %v1619_v50 = vrot.slane %v1618_v43, 4 }
 0x229   :  { %v1458_v48 = vrot.slane %v1457_v26, 1  ;;  %v1513_v35 = vrot.slane %v1512_v52, 1 }
 0x22a   :  { %v1565_v45 = vadd.f32 %v1564_v32, %v1563_v33  ;;  %v1620_v40 = vadd.f32 %v1619_v50, %v1618_v43 }
 0x22b   :  { %v1459_v30 = vadd.f32 %v1458_v48, %v1457_v26  ;;  %v1514_v46 = vadd.f32 %v1513_v35, %v1512_v52 }
 0x22c   :  { %v1566_v41 = vrot.slane %v1565_v45, 2  ;;  %v1621_v1 = vrot.slane %v1620_v40, 2 }
 0x22d   :  { %v1073_v9 = vpop.f32.mrf.mxu2  ;;  %v1404_v55 = vpop.f32.mrf.mxu3  ;;  %v1515_v20 = vadd.f32 %v1514_v46, %v1459_v30 }
 0x22e   :  { %v1567_v28 = vadd.f32 %v1566_v41, %v1565_v45  ;;  %v1622_v6 = vadd.f32 %v1621_v1, %v1620_v40  ;;  %v7202_v41 = vld [vmem:[#allocation6_spill] sm:$0xff] }
 0x22f   :  { %v7203_v40 = vld [vmem:[#allocation14_spill] sm:$0xff] }
 0x230   :  { %v1568_v49 = vrot.slane %v1567_v28, 1  ;;  %v1623_v32 = vrot.slane %v1622_v6, 1  ;;  %v7204_v1 = vld [vmem:[#allocation30_spill] sm:$0xff] }
 0x232   :  { %v1569_v60 = vadd.f32 %v1568_v49, %v1567_v28  ;;  %v1624_v51 = vadd.f32 %v1623_v32, %v1622_v6  ;;  %v7205_v6 = vld [vmem:[#allocation34_spill] sm:$0xff] }
 0x234   :  { %v1570_v33 = vadd.f32 %v1569_v60, %v1515_v20 }
 0x236   :  { %v1625_v56 = vadd.f32 %v1624_v51, %v1570_v33  ;;  %v7206_v33 = vld [vmem:[#allocation38_spill] sm:$0xff] }
 0x238   :  { %v4699_v9 = vmul.f32 0.0006377551, %v1625_v56 }
 0x23a   :  { %v1627_v27 = vsub.f32 %v3913_v42, %v4699_v9  ;;  %v1628_v50 = vsub.f32 %v7202_v41, %v4699_v9  ;;  %v1629_v4 = vsub.f32 %v3941_v54, %v4699_v9  ;;  %v1630_v48 = vsub.f32 %v7203_v40, %v4699_v9 }
 0x23b   :  { %v1631_v55 = vsub.f32 %v3969_v2, %v4699_v9  ;;  %v1632_v61 = vsub.f32 %v3983_v8, %v4699_v9  ;;  %v1633_v0 = vsub.f32 %v3997_v14, %v4699_v9  ;;  %v1634_v49 = vsub.f32 %v7204_v1, %v4699_v9  ;;  %v7241_v8 = vld [vmem:[#allocation79_spill] sm:$0xff] }
 0x23c   :  { %v1676_v26 = vmul.f32 %v1627_v27, %v1627_v27  ;;  %v1677_v52 = vmul.f32 %v1628_v50, %v1628_v50  ;;  %v1678_v51 = vmul.f32 %v1629_v4, %v1629_v4  ;;  %v1679_v43 = vmul.f32 %v1630_v48, %v1630_v48  ;;  %v7207_v48 = vld [vmem:[#allocation42_spill] sm:$0xff] }
 0x23d   :  { %v1680_v28 = vmul.f32 %v1631_v55, %v1631_v55  ;;  %v1681_v30 = vmul.f32 %v1632_v61, %v1632_v61  ;;  %v1635_v60 = vsub.f32 %v7205_v6, %v4699_v9  ;;  %v1682_v20 = vmul.f32 %v1633_v0, %v1633_v0  ;;  %v7208_v61 = vld [vmem:[#allocation46_spill] sm:$0xff]  ;;  %v7209_v0 = vld [vmem:[#allocation3_spill] sm:$0xff] }
 0x23e   :  { %v1725_v56 = vadd.f32 %v1677_v52, %v1676_v26  ;;  %v1636_v27 = vsub.f32 %v7206_v33, %v4699_v9  ;;  %v1683_v50 = vmul.f32 %v1634_v49, %v1634_v49  ;;  %v1637_v55 = vsub.f32 %v7207_v48, %v4699_v9 }
 0x23f   :  { %v1684_v26 = vmul.f32 %v1635_v60, %v1635_v60  ;;  %v7211_v60 = vld [vmem:[#allocation50_spill] sm:$0xff] }
 0x240   :  { %v1726_v45 = vadd.f32 %v1725_v56, %v1678_v51  ;;  %v1685_v51 = vmul.f32 %v1636_v27, %v1636_v27  ;;  %v7212_v27 = vld [vmem:[#allocation11_spill] sm:$0xff] }
 0x242   :  { %v1727_v35 = vadd.f32 %v1726_v45, %v1679_v43  ;;  %v1638_v45 = vsub.f32 %v7208_v61, %v4699_v9 }
 0x244   :  { %v1728_v46 = vadd.f32 %v1727_v35, %v1680_v28  ;;  %v1686_v28 = vmul.f32 %v1637_v55, %v1637_v55 }
 0x246   :  { %v1729_v32 = vadd.f32 %v1728_v46, %v1681_v30  ;;  %v1780_v30 = vsub.f32 %v7209_v0, %v4699_v9  ;;  %v7210_v46 = vld [vmem:[#allocation7_spill] sm:$0xff] }
 0x247   :  { %v1781_v49 = vsub.f32 %v7210_v46, %v4699_v9  ;;  %v7215_v46 = vld [vmem:[#allocation19_spill] sm:$0xff] }
 0x248   :  { %v1730_v4 = vadd.f32 %v1729_v32, %v1682_v20  ;;  %v1639_v20 = vsub.f32 %v7211_v60, %v4699_v9  ;;  %v1687_v32 = vmul.f32 %v1638_v45, %v1638_v45  ;;  %v1784_v61 = vsub.f32 %v7215_v46, %v4699_v9  ;;  %v7216_v45 = vld [vmem:[#allocation58_spill] sm:$0xff] }
 0x24a   :  { %v1731_v52 = vadd.f32 %v1730_v4, %v1683_v50  ;;  %v1782_v4 = vsub.f32 %v7212_v27, %v4699_v9 }
 0x24c   :  { %v1732_v56 = vadd.f32 %v1731_v52, %v1684_v26  ;;  %v1829_v26 = vmul.f32 %v1780_v30, %v1780_v30  ;;  %v1830_v52 = vmul.f32 %v1781_v49, %v1781_v49  ;;  %v1831_v48 = vmul.f32 %v1782_v4, %v1782_v4  ;;  %v7217_v30 = vld [vmem:[#allocation23_spill] sm:$0xff] }
 0x24d   :  { %v1785_v49 = vsub.f32 %v7217_v30, %v4699_v9  ;;  %v7221_v30 = vld [vmem:[#allocation35_spill] sm:$0xff] }
 0x24e   :  { %v1733_v43 = vadd.f32 %v1732_v56, %v1685_v51  ;;  %v7213_v51 = vld [vmem:[#allocation54_spill] sm:$0xff]  ;;  %v1688_v56 = vmul.f32 %v1639_v20, %v1639_v20  ;;  %v1878_v60 = vadd.f32 %v1830_v52, %v1829_v26  ;;  %v7218_v20 = vld [vmem:[#allocation27_spill] sm:$0xff] }
 0x24f   :  { %v1640_v55 = vsub.f32 %v7213_v51, %v4699_v9  ;;  %v1786_v6 = vsub.f32 %v7218_v20, %v4699_v9  ;;  %v7220_v26 = vld [vmem:[#allocation31_spill] sm:$0xff] }
 0x250   :  { %v1734_v35 = vadd.f32 %v1733_v43, %v1686_v28  ;;  %v7214_v43 = vld [vmem:[#allocation15_spill] sm:$0xff]  ;;  %v1879_v33 = vadd.f32 %v1878_v60, %v1831_v48  ;;  %v1787_v52 = vsub.f32 %v7220_v26, %v4699_v9  ;;  %v7222_v60 = vld [vmem:[#allocation66_spill] sm:$0xff] }
 0x251   :  { %v1783_v28 = vsub.f32 %v7214_v43, %v4699_v9  ;;  %v1833_v43 = vmul.f32 %v1784_v61, %v1784_v61  ;;  %v1835_v48 = vmul.f32 %v1786_v6, %v1786_v6  ;;  %v7224_v26 = vld [vmem:[#allocation43_spill] sm:$0xff] }
 0x252   :  { %v1735_v50 = vadd.f32 %v1734_v35, %v1687_v32  ;;  %v1641_v35 = vsub.f32 %v7216_v45, %v4699_v9  ;;  %v1689_v32 = vmul.f32 %v1640_v55, %v1640_v55  ;;  %v1834_v45 = vmul.f32 %v1785_v49, %v1785_v49 }
 0x253   :  { %v1832_v27 = vmul.f32 %v1783_v28, %v1783_v28  ;;  %v1788_v28 = vsub.f32 %v7221_v30, %v4699_v9  ;;  %v1836_v20 = vmul.f32 %v1787_v52, %v1787_v52  ;;  %v1790_v49 = vsub.f32 %v7224_v26, %v4699_v9 }
 0x254   :  { %v1736_v0 = vadd.f32 %v1735_v50, %v1688_v56  ;;  %v7219_v56 = vld [vmem:[#allocation62_spill] sm:$0xff]  ;;  %v1690_v4 = vmul.f32 %v1641_v35, %v1641_v35 }
 0x255   :  { %v1880_v50 = vadd.f32 %v1879_v33, %v1832_v27  ;;  %v1642_v46 = vsub.f32 %v7219_v56, %v4699_v9  ;;  %v7223_v33 = vld [vmem:[#allocation39_spill] sm:$0xff] }
 0x256   :  { %v1737_v51 = vadd.f32 %v1736_v0, %v1689_v32  ;;  %v1643_v32 = vsub.f32 %v7222_v60, %v4699_v9  ;;  %v1789_v27 = vsub.f32 %v7223_v33, %v4699_v9  ;;  %v7227_v33 = vld [vmem:[#allocation51_spill] sm:$0xff] }
 0x257   :  { %v1881_v55 = vadd.f32 %v1880_v50, %v1833_v43  ;;  %v1691_v61 = vmul.f32 %v1642_v46, %v1642_v46  ;;  %v1837_v43 = vmul.f32 %v1788_v28, %v1788_v28  ;;  %v7225_v50 = vld [vmem:[#allocation70_spill] sm:$0xff]  ;;  %v1792_v52 = vsub.f32 %v7227_v33, %v4699_v9 }
 0x258   :  { %v1738_v1 = vadd.f32 %v1737_v51, %v1690_v4  ;;  %v1644_v4 = vsub.f32 %v7225_v50, %v4699_v9  ;;  %v1692_v6 = vmul.f32 %v1643_v32, %v1643_v32  ;;  %v1838_v30 = vmul.f32 %v1789_v27, %v1789_v27 }
 0x259   :  { %v1882_v0 = vadd.f32 %v1881_v55, %v1834_v45  ;;  %v7226_v45 = vld [vmem:[#allocation47_spill] sm:$0xff] }
 0x25a   :  { %v1739_v56 = vadd.f32 %v1738_v1, %v1691_v61  ;;  %v1791_v55 = vsub.f32 %v7226_v45, %v4699_v9  ;;  %v1693_v28 = vmul.f32 %v1644_v4, %v1644_v4  ;;  %v7230_v45 = vld [vmem:[#allocation59_spill] sm:$0xff] }
 0x25b   :  { %v1883_v35 = vadd.f32 %v1882_v0, %v1835_v48  ;;  %v1839_v48 = vmul.f32 %v1790_v49, %v1790_v49  ;;  %v7228_v0 = vld [vmem:[#allocation74_spill] sm:$0xff]  ;;  %v1794_v27 = vsub.f32 %v7230_v45, %v4699_v9 }
 0x25c   :  { %v1740_v60 = vadd.f32 %v1739_v56, %v1692_v6  ;;  %v1645_v61 = vsub.f32 %v7228_v0, %v4699_v9  ;;  %v1840_v26 = vmul.f32 %v1791_v55, %v1791_v55 }
 0x25d   :  { %v1884_v51 = vadd.f32 %v1883_v35, %v1836_v20  ;;  %v7229_v20 = vld [vmem:[#allocation55_spill] sm:$0xff] }
 0x25e   :  { %v1793_v35 = vsub.f32 %v7229_v20, %v4699_v9  ;;  %v1741_v50 = vadd.f32 %v1740_v60, %v1693_v28  ;;  %v1694_v49 = vmul.f32 %v1645_v61, %v1645_v61  ;;  %v7233_v20 = vld [vmem:[#allocation67_spill] sm:$0xff] }
 0x25f   :  { %v1885_v46 = vadd.f32 %v1884_v51, %v1837_v43  ;;  %v1841_v43 = vmul.f32 %v1792_v52, %v1792_v52  ;;  %v7231_v51 = vld [vmem:[#allocation78_spill] sm:$0xff]  ;;  %v1796_v55 = vsub.f32 %v7233_v20, %v4699_v9 }
 0x260   :  { %v1646_v6 = vsub.f32 %v7231_v51, %v4699_v9  ;;  %v1842_v33 = vmul.f32 %v1793_v35, %v1793_v35  ;;  %v1742_v0 = vadd.f32 %v1741_v50, %v1694_v49  ;;  %v7238_v49 = vld [vmem:[#allocation75_spill] sm:$0xff]  ;;  %v7239_v20 = vld [vmem:[#allocation86_spill] sm:$0xff] }
 0x261   :  { %v1886_v1 = vadd.f32 %v1885_v46, %v1838_v30  ;;  %v7232_v30 = vld [vmem:[#allocation63_spill] sm:$0xff] }
 0x262   :  { %v1795_v46 = vsub.f32 %v7232_v30, %v4699_v9  ;;  %v1695_v45 = vmul.f32 %v1646_v6, %v1646_v6  ;;  %v7237_v30 = vld [vmem:[#allocation71_spill] sm:$0xff] }
 0x263   :  { %v1887_v32 = vadd.f32 %v1886_v1, %v1839_v48  ;;  %v1843_v48 = vmul.f32 %v1794_v27, %v1794_v27  ;;  %v7234_v1 = vld [vmem:[#allocation82_spill] sm:$0xff]  ;;  %v1797_v35 = vsub.f32 %v7237_v30, %v4699_v9  ;;  %v1798_v27 = vsub.f32 %v7238_v49, %v4699_v9 }
 0x264   :  { %v1647_v28 = vsub.f32 %v7234_v1, %v4699_v9  ;;  %v1648_v1 = vsub.f32 %v7239_v20, %v4699_v9  ;;  %v1799_v30 = vsub.f32 %v7241_v8, %v4699_v9  ;;  %v7244_v20 = vld [vmem:[#allocation90_spill] sm:$0xff] }
 0x265   :  { %v1888_v56 = vadd.f32 %v1887_v32, %v1840_v26  ;;  %v7235_v26 = vld [vmem:[#allocation4_spill] sm:$0xff] }
 0x266   :  { %v1933_v52 = vsub.f32 %v7235_v26, %v4699_v9  ;;  %v7236_v32 = vld [vmem:[#allocation8_spill] sm:$0xff]  ;;  %v1696_v6 = vmul.f32 %v1647_v28, %v1647_v28  ;;  %v1697_v8 = vmul.f32 %v1648_v1, %v1648_v1 }
 0x267   :  { %v1889_v4 = vadd.f32 %v1888_v56, %v1841_v43  ;;  %v1934_v61 = vsub.f32 %v7236_v32, %v4699_v9  ;;  %v1844_v43 = vmul.f32 %v1795_v46, %v1795_v46  ;;  %v1743_v56 = vadd.f32 %v1742_v0, %v1695_v45  ;;  %v7240_v26 = vld [vmem:[#allocation12_spill] sm:$0xff] }
 0x268   :  { %v1935_v51 = vsub.f32 %v7240_v26, %v4699_v9  ;;  %v1982_v14 = vmul.f32 %v1933_v52, %v1933_v52  ;;  %v1846_v46 = vmul.f32 %v1797_v35, %v1797_v35  ;;  %v7242_v45 = vld [vmem:[#allocation16_spill] sm:$0xff]  ;;  %v1649_v26 = vsub.f32 %v7244_v20, %v4699_v9  ;;  %v7246_v35 = vld [vmem:[#allocation87_spill] sm:$0xff] }
 0x269   :  { %v1890_v60 = vadd.f32 %v1889_v4, %v1842_v33  ;;  %v1845_v33 = vmul.f32 %v1796_v55, %v1796_v55  ;;  %v1983_v32 = vmul.f32 %v1934_v61, %v1934_v61  ;;  %v1936_v0 = vsub.f32 %v7242_v45, %v4699_v9  ;;  %v7243_v55 = vld [vmem:[#allocation83_spill] sm:$0xff]  ;;  %v7245_v52 = vld [vmem:[#allocation20_spill] sm:$0xff] }
 0x26a   :  { %v1937_v28 = vsub.f32 %v7245_v52, %v4699_v9  ;;  %v1984_v61 = vmul.f32 %v1935_v51, %v1935_v51  ;;  %v7249_v51 = vld [vmem:[#allocation28_spill] sm:$0xff]  ;;  %v7250_v52 = vld [vmem:[#allocation94_spill] sm:$0xff] }
 0x26b   :  { %v1891_v50 = vadd.f32 %v1890_v60, %v1843_v48  ;;  %v1744_v60 = vadd.f32 %v1743_v56, %v1696_v6  ;;  %v2031_v2 = vadd.f32 %v1983_v32, %v1982_v14  ;;  %v7247_v56 = vld [vmem:[#allocation24_spill] sm:$0xff]  ;;  %v1939_v14 = vsub.f32 %v7249_v51, %v4699_v9 }
 0x26c   :  { %v1938_v6 = vsub.f32 %v7247_v56, %v4699_v9  ;;  %v1986_v1 = vmul.f32 %v1937_v28, %v1937_v28  ;;  %v7253_v28 = vld [vmem:[#allocation36_spill] sm:$0xff] }
 0x26d   :  { %v1892_v4 = vadd.f32 %v1891_v50, %v1844_v43  ;;  %v1800_v43 = vsub.f32 %v7243_v55, %v4699_v9  ;;  %v1847_v50 = vmul.f32 %v1798_v27, %v1798_v27  ;;  %v1985_v55 = vmul.f32 %v1936_v0, %v1936_v0  ;;  %v7251_v0 = vld [vmem:[#allocation95_spill] sm:$0xff] }
 0x26e   :  { %v2032_v27 = vadd.f32 %v2031_v2, %v1984_v61  ;;  %v1803_v2 = vsub.f32 %v7251_v0, %v4699_v9  ;;  %v1987_v61 = vmul.f32 %v1938_v6, %v1938_v6  ;;  %v7256_v6 = vld [vmem:[#allocation40_spill] sm:$0xff] }
 0x26f   :  { %v1893_v48 = vadd.f32 %v1892_v4, %v1845_v33  ;;  %v1801_v33 = vsub.f32 %v7246_v35, %v4699_v9  ;;  %v1848_v4 = vmul.f32 %v1799_v30, %v1799_v30  ;;  %v1849_v40 = vmul.f32 %v1800_v43, %v1800_v43 }
 0x270   :  { %v2033_v32 = vadd.f32 %v2032_v27, %v1985_v55  ;;  %v1650_v30 = vsub.f32 %v7250_v52, %v4699_v9  ;;  %v1941_v55 = vsub.f32 %v7253_v28, %v4699_v9  ;;  %v1988_v27 = vmul.f32 %v1939_v14, %v1939_v14 }
 0x271   :  { %v1894_v49 = vadd.f32 %v1893_v48, %v1846_v46  ;;  %v1745_v46 = vadd.f32 %v1744_v60, %v1697_v8  ;;  %v7248_v48 = vld [vmem:[#allocation91_spill] sm:$0xff]  ;;  %v7252_v8 = vld [vmem:[#allocation32_spill] sm:$0xff]  ;;  %v1852_v52 = vmul.f32 %v1803_v2, %v1803_v2 }
 0x272   :  { %v1802_v20 = vsub.f32 %v7248_v48, %v4699_v9  ;;  %v1940_v60 = vsub.f32 %v7252_v8, %v4699_v9  ;;  %v2034_v43 = vadd.f32 %v2033_v32, %v1986_v1  ;;  %v1942_v1 = vsub.f32 %v7256_v6, %v4699_v9  ;;  %v7259_v8 = vld [vmem:[#allocation103_spill] sm:$0xff] }
 0x273   :  { %v1895_v45 = vadd.f32 %v1894_v49, %v1847_v50  ;;  %v1698_v49 = vmul.f32 %v1649_v26, %v1649_v26  ;;  %v1850_v50 = vmul.f32 %v1801_v33, %v1801_v33  ;;  %v7254_v26 = vld [vmem:[#allocation98_spill] sm:$0xff] }
 0x274   :  { %v2035_v51 = vadd.f32 %v2034_v43, %v1987_v61  ;;  %v1651_v33 = vsub.f32 %v7254_v26, %v4699_v9  ;;  %v7258_v43 = vld [vmem:[#allocation102_spill] sm:$0xff]  ;;  %v7277_v26 = vld [vmem:[#allocation115_spill] sm:$0xff] }
 0x275   :  { %v1896_v54 = vadd.f32 %v1895_v45, %v1848_v4  ;;  %v1746_v45 = vadd.f32 %v1745_v46, %v1698_v49  ;;  %v1851_v4 = vmul.f32 %v1802_v20, %v1802_v20  ;;  %v1989_v46 = vmul.f32 %v1940_v60, %v1940_v60  ;;  %v7257_v49 = vld [vmem:[#allocation44_spill] sm:$0xff] }
 0x276   :  { %v2036_v20 = vadd.f32 %v2035_v51, %v1988_v27  ;;  %v1943_v14 = vsub.f32 %v7257_v49, %v4699_v9  ;;  %v1700_v28 = vmul.f32 %v1651_v33, %v1651_v33  ;;  %v1991_v60 = vmul.f32 %v1942_v1, %v1942_v1  ;;  %v7263_v49 = vld [vmem:[#allocation107_spill] sm:$0xff] }
 0x277   :  { %v1897_v35 = vadd.f32 %v1896_v54, %v1849_v40  ;;  %v1699_v54 = vmul.f32 %v1650_v30, %v1650_v30  ;;  %v7255_v40 = vld [vmem:[#allocation99_spill] sm:$0xff]  ;;  %v1652_v30 = vsub.f32 %v7258_v43, %v4699_v9 }
 0x278   :  { %v1804_v0 = vsub.f32 %v7255_v40, %v4699_v9  ;;  %v2037_v61 = vadd.f32 %v2036_v20, %v1989_v46  ;;  %v7262_v46 = vld [vmem:[#allocation106_spill] sm:$0xff]  ;;  %v7264_v40 = vld [vmem:[#allocation56_spill] sm:$0xff] }
 0x279   :  { %v1898_v56 = vadd.f32 %v1897_v35, %v1850_v50  ;;  %v1747_v35 = vadd.f32 %v1746_v45, %v1699_v54  ;;  %v1990_v50 = vmul.f32 %v1941_v55, %v1941_v55  ;;  %v1992_v55 = vmul.f32 %v1943_v14, %v1943_v14 }
 0x27a   :  { %v1853_v2 = vmul.f32 %v1804_v0, %v1804_v0  ;;  %v1653_v20 = vsub.f32 %v7262_v46, %v4699_v9  ;;  %v1701_v33 = vmul.f32 %v1652_v30, %v1652_v30  ;;  %v7274_v46 = vld [vmem:[#allocation68_spill] sm:$0xff] }
 0x27b   :  { %v1899_v48 = vadd.f32 %v1898_v56, %v1851_v4  ;;  %v1805_v56 = vsub.f32 %v7259_v8, %v4699_v9  ;;  %v7260_v4 = vld [vmem:[#allocation48_spill] sm:$0xff]  ;;  %v2038_v51 = vadd.f32 %v2037_v61, %v1990_v50  ;;  %v1748_v45 = vadd.f32 %v1747_v35, %v1700_v28  ;;  %v7265_v28 = vld [vmem:[#allocation110_spill] sm:$0xff] }
 0x27c   :  { %v1944_v6 = vsub.f32 %v7260_v4, %v4699_v9  ;;  %v1806_v8 = vsub.f32 %v7263_v49, %v4699_v9  ;;  %v1946_v4 = vsub.f32 %v7264_v40, %v4699_v9  ;;  %v1654_v35 = vsub.f32 %v7265_v28, %v4699_v9  ;;  %v7268_v40 = vld [vmem:[#allocation122_spill] sm:$0xff] }
 0x27d   :  { %v1900_v32 = vadd.f32 %v1899_v48, %v1852_v52  ;;  %v7261_v48 = vld [vmem:[#allocation52_spill] sm:$0xff]  ;;  %v2039_v54 = vadd.f32 %v2038_v51, %v1991_v60  ;;  %v1854_v0 = vmul.f32 %v1805_v56, %v1805_v56  ;;  %v1749_v14 = vadd.f32 %v1748_v45, %v1701_v33  ;;  %v7267_v56 = vld [vmem:[#allocation118_spill] sm:$0xff] }
 0x27e   :  { %v1945_v27 = vsub.f32 %v7261_v48, %v4699_v9  ;;  %v1993_v1 = vmul.f32 %v1944_v6, %v1944_v6  ;;  %v1656_v48 = vsub.f32 %v7267_v56, %v4699_v9  ;;  %v1657_v6 = vsub.f32 %v7268_v40, %v4699_v9 }
 0x27f   :  { %v1901_v52 = vadd.f32 %v1900_v32, %v1853_v2  ;;  %v2040_v50 = vadd.f32 %v2039_v54, %v1992_v55  ;;  %v1655_v32 = vsub.f32 %v7148_v24, %v4699_v9  ;;  %v7266_v2 = vld [vmem:[#allocation60_spill] sm:$0xff]  ;;  %v1702_v55 = vmul.f32 %v1653_v20, %v1653_v20  ;;  %v7269_v54 = vld [vmem:[#allocation111_spill] sm:$0xff] }
 0x280   :  { %v1947_v30 = vsub.f32 %v7266_v2, %v4699_v9  ;;  %v1994_v60 = vmul.f32 %v1945_v27, %v1945_v27  ;;  %v1807_v49 = vsub.f32 %v7269_v54, %v4699_v9  ;;  %v1855_v28 = vmul.f32 %v1806_v8, %v1806_v8  ;;  %v7270_v24 = vld [vmem:[#allocation64_spill] sm:$0xff]  ;;  %v7273_v2 = vld [vmem:[#allocation134_spill] sm:$0xff] }
 0x281   :  { %v1902_v61 = vadd.f32 %v1901_v52, %v1854_v0  ;;  %v2041_v51 = vadd.f32 %v2040_v50, %v1993_v1  ;;  %v1948_v45 = vsub.f32 %v7270_v24, %v4699_v9  ;;  %v1995_v52 = vmul.f32 %v1946_v4, %v1946_v4  ;;  %v7271_v0 = vld [vmem:[#allocation126_spill] sm:$0xff] }
 0x282   :  { %v1658_v27 = vsub.f32 %v7271_v0, %v4699_v9  ;;  %v7272_v1 = vld [vmem:[#allocation130_spill] sm:$0xff]  ;;  %v1660_v56 = vsub.f32 %v7273_v2, %v4699_v9  ;;  %v1750_v40 = vadd.f32 %v1749_v14, %v1702_v55  ;;  %v1949_v54 = vsub.f32 %v7274_v46, %v4699_v9  ;;  %v7278_v2 = vld [vmem:[#allocation72_spill] sm:$0xff] }
 0x283   :  { %v2042_v33 = vadd.f32 %v2041_v51, %v1994_v60  ;;  %v1659_v50 = vsub.f32 %v7272_v1, %v4699_v9  ;;  %v1903_v20 = vadd.f32 %v1902_v61, %v1855_v28  ;;  %v1996_v8 = vmul.f32 %v1947_v30, %v1947_v30  ;;  %v7275_v24 = vld [vmem:[#allocation138_spill] sm:$0xff] }
 0x284   :  { %v1661_v4 = vsub.f32 %v7275_v24, %v4699_v9  ;;  %v7276_v60 = vld [vmem:[#allocation142_spill] sm:$0xff]  ;;  %v1703_v0 = vmul.f32 %v1654_v35, %v1654_v35  ;;  %v1808_v1 = vsub.f32 %v7277_v26, %v4699_v9  ;;  %v1856_v41 = vmul.f32 %v1807_v49, %v1807_v49 }
 0x285   :  { %v2043_v43 = vadd.f32 %v2042_v33, %v1995_v52  ;;  %v1662_v51 = vsub.f32 %v7276_v60, %v4699_v9  ;;  %v1950_v14 = vsub.f32 %v7278_v2, %v4699_v9  ;;  %v1997_v28 = vmul.f32 %v1948_v45, %v1948_v45  ;;  %v7279_v33 = vld [vmem:[#allocation76_spill] sm:$0xff] }
 0x286   :  { %v1663_v30 = vsub.f32 %v7181_v16, %v4699_v9  ;;  %v4871_v55 = vsub.f32 %v4415_v36, %v4699_v9  ;;  %v1751_v52 = vadd.f32 %v1750_v40, %v1703_v0  ;;  %v1951_v35 = vsub.f32 %v7279_v33, %v4699_v9  ;;  %v7280_v16 = vld [vmem:[#allocation119_spill] sm:$0xff]  ;;  %v7281_v36 = vld [vmem:[#allocation80_spill] sm:$0xff] }
 0x287   :  { %v2044_v61 = vadd.f32 %v2043_v43, %v1996_v8  ;;  %v4877_v46 = vsub.f32 %v4440_v47, %v4699_v9  ;;  %v1904_v49 = vadd.f32 %v1903_v20, %v1856_v41  ;;  %v1998_v26 = vmul.f32 %v1949_v54, %v1949_v54  ;;  %v7282_v47 = vld [vmem:[#allocation84_spill] sm:$0xff] }
 0x288   :  { %v1704_v45 = vmul.f32 %v1655_v32, %v1655_v32  ;;  %v1705_v43 = vmul.f32 %v1656_v48, %v1656_v48  ;;  %v1706_v8 = vmul.f32 %v1657_v6, %v1657_v6  ;;  %v1809_v60 = vsub.f32 %v7280_v16, %v4699_v9  ;;  %v7283_v48 = vld [vmem:[#allocation5_spill] sm:$0xff] }
 0x289   :  { %v2045_v2 = vadd.f32 %v2044_v61, %v1997_v28  ;;  %v1857_v24 = vmul.f32 %v1808_v1, %v1808_v1  ;;  %v1952_v40 = vsub.f32 %v7281_v36, %v4699_v9  ;;  %v1999_v0 = vmul.f32 %v1950_v14, %v1950_v14  ;;  %v7284_v6 = vld [vmem:[#allocation9_spill] sm:$0xff]  ;;  %v7286_v14 = vld [vmem:[#allocation88_spill] sm:$0xff] }
 0x28a   :  { %v1707_v33 = vmul.f32 %v1658_v27, %v1658_v27  ;;  %v1752_v22 = vadd.f32 %v1751_v52, %v1704_v45  ;;  %v1953_v38 = vsub.f32 %v7282_v47, %v4699_v9  ;;  %v2000_v41 = vmul.f32 %v1951_v35, %v1951_v35 }
 0x28b   :  { %v2046_v42 = vadd.f32 %v2045_v2, %v1998_v26  ;;  %v1905_v54 = vadd.f32 %v1904_v49, %v1857_v24  ;;  %v2086_v32 = vsub.f32 %v7283_v48, %v4699_v9  ;;  %v2087_v28 = vsub.f32 %v7284_v6, %v4699_v9  ;;  %v7285_v26 = vld [vmem:[#allocation123_spill] sm:$0xff]  ;;  %v7287_v49 = vld [vmem:[#allocation92_spill] sm:$0xff] }
 0x28c   :  { %v1708_v1 = vmul.f32 %v1659_v50, %v1659_v50  ;;  %v4889_v61 = vmul.f32 %v1660_v56, %v1660_v56  ;;  %v4891_v36 = vmul.f32 %v1661_v4, %v1661_v4  ;;  %v1810_v2 = vsub.f32 %v7285_v26, %v4699_v9  ;;  %v7288_v50 = vld [vmem:[#allocation13_spill] sm:$0xff] }
 0x28d   :  { %v2047_v20 = vadd.f32 %v2046_v42, %v1999_v0  ;;  %v1858_v27 = vmul.f32 %v1809_v60, %v1809_v60  ;;  %v1954_v52 = vsub.f32 %v7286_v14, %v4699_v9  ;;  %v2001_v24 = vmul.f32 %v1952_v40, %v1952_v40  ;;  %v7289_v14 = vld [vmem:[#allocation127_spill] sm:$0xff] }
 0x28e   :  { %v1753_v35 = vadd.f32 %v1752_v22, %v1705_v43  ;;  %v1955_v45 = vsub.f32 %v7287_v49, %v4699_v9  ;;  %v2002_v0 = vmul.f32 %v1953_v38, %v1953_v38  ;;  %v2088_v56 = vsub.f32 %v7288_v50, %v4699_v9  ;;  %v7290_v22 = vld [vmem:[#allocation96_spill] sm:$0xff]  ;;  %v7291_v49 = vld [vmem:[#allocation17_spill] sm:$0xff] }
 0x28f   :  { %v2048_v42 = vadd.f32 %v2047_v20, %v2000_v41  ;;  %v1906_v6 = vadd.f32 %v1905_v54, %v1858_v27  ;;  %v2135_v48 = vmul.f32 %v2086_v32, %v2086_v32  ;;  %v2136_v47 = vmul.f32 %v2087_v28, %v2087_v28  ;;  %v7292_v32 = vld [vmem:[#allocation100_spill] sm:$0xff] }
 0x290   :  { %v4901_v16 = vmul.f32 %v1662_v51, %v1662_v51  ;;  %v4903_v60 = vmul.f32 %v1663_v30, %v1663_v30  ;;  %v1811_v40 = vsub.f32 %v7289_v14, %v4699_v9  ;;  %v1956_v43 = vsub.f32 %v7290_v22, %v4699_v9  ;;  %v7293_v30 = vld [vmem:[#allocation21_spill] sm:$0xff]  ;;  %v7294_v22 = vld [vmem:[#allocation131_spill] sm:$0xff] }
 0x291   :  { %v2049_v4 = vadd.f32 %v2048_v42, %v2001_v24  ;;  %v1859_v41 = vmul.f32 %v1810_v2, %v1810_v2  ;;  %v2003_v20 = vmul.f32 %v1954_v52, %v1954_v52  ;;  %v2089_v50 = vsub.f32 %v7291_v49, %v4699_v9 }
 0x292   :  { %v1754_v54 = vadd.f32 %v1753_v35, %v1706_v8  ;;  %v1957_v28 = vsub.f32 %v7292_v32, %v4699_v9  ;;  %v2004_v51 = vmul.f32 %v1955_v45, %v1955_v45  ;;  %v2090_v27 = vsub.f32 %v7293_v30, %v4699_v9  ;;  %v7296_v35 = vld [vmem:[#allocation25_spill] sm:$0xff] }
 0x293   :  { %v2050_v38 = vadd.f32 %v2049_v4, %v2002_v0  ;;  %v1907_v24 = vadd.f32 %v1906_v6, %v1859_v41  ;;  %v2137_v14 = vmul.f32 %v2088_v56, %v2088_v56  ;;  %v2184_v26 = vadd.f32 %v2136_v47, %v2135_v48  ;;  %v7295_v0 = vld [vmem:[#allocation104_spill] sm:$0xff]  ;;  %v7298_v47 = vld [vmem:[#allocation29_spill] sm:$0xff] }
 0x294   :  { %v1812_v2 = vsub.f32 %v7294_v22, %v4699_v9  ;;  %v1860_v52 = vmul.f32 %v1811_v40, %v1811_v40  ;;  %v1958_v4 = vsub.f32 %v7295_v0, %v4699_v9  ;;  %v2005_v49 = vmul.f32 %v1956_v43, %v1956_v43  ;;  %v7297_v6 = vld [vmem:[#allocation108_spill] sm:$0xff]  ;;  %v7299_v43 = vld [vmem:[#allocation135_spill] sm:$0xff] }
 0x295   :  { %v2051_v42 = vadd.f32 %v2050_v38, %v2003_v20  ;;  %v2091_v32 = vsub.f32 %v7296_v35, %v4699_v9  ;;  %v2138_v45 = vmul.f32 %v2089_v50, %v2089_v50  ;;  %v2185_v29 = vadd.f32 %v2184_v26, %v2137_v14  ;;  %v7300_v35 = vld [vmem:[#allocation112_spill] sm:$0xff]  ;;  %v7301_v14 = vld [vmem:[#allocation33_spill] sm:$0xff] }
 0x296   :  { %v1755_v21 = vadd.f32 %v1754_v54, %v1707_v33  ;;  %v1959_v41 = vsub.f32 %v7297_v6, %v4699_v9  ;;  %v2006_v56 = vmul.f32 %v1957_v28, %v1957_v28  ;;  %v2092_v48 = vsub.f32 %v7298_v47, %v4699_v9 }
 0x297   :  { %v2052_v8 = vadd.f32 %v2051_v42, %v2004_v51  ;;  %v1908_v20 = vadd.f32 %v1907_v24, %v1860_v52  ;;  %v2139_v38 = vmul.f32 %v2090_v27, %v2090_v27  ;;  %v2186_v30 = vadd.f32 %v2185_v29, %v2138_v45  ;;  %v7302_v24 = vld [vmem:[#allocation116_spill] sm:$0xff]  ;;  %v7303_v29 = vld [vmem:[#allocation37_spill] sm:$0xff] }
 0x298   :  { %v1813_v51 = vsub.f32 %v7299_v43, %v4699_v9  ;;  %v1861_v42 = vmul.f32 %v1812_v2, %v1812_v2  ;;  %v1960_v50 = vsub.f32 %v7300_v35, %v4699_v9  ;;  %v2007_v26 = vmul.f32 %v1958_v4, %v1958_v4  ;;  %v7304_v4 = vld [vmem:[#allocation139_spill] sm:$0xff]  ;;  %v7393_v35 = vld [vmem:[#allocation110_spill] sm:$0xff] }
 0x299   :  { %v2053_v40 = vadd.f32 %v2052_v8, %v2005_v49  ;;  %v2093_v54 = vsub.f32 %v7301_v14, %v4699_v9  ;;  %v2140_v28 = vmul.f32 %v2091_v32, %v2091_v32  ;;  %v2187_v6 = vadd.f32 %v2186_v30, %v2139_v38  ;;  %v7305_v14 = vld [vmem:[#allocation120_spill] sm:$0xff] }
 0x29a   :  { %v1756_v0 = vadd.f32 %v1755_v21, %v1708_v1  ;;  %v1961_v49 = vsub.f32 %v7302_v24, %v4699_v9  ;;  %v2008_v27 = vmul.f32 %v1959_v41, %v1959_v41  ;;  %v2094_v52 = vsub.f32 %v7303_v29, %v4699_v9  ;;  %v7306_v1 = vld [vmem:[#allocation41_spill] sm:$0xff] }
 0x29b   :  { %v2054_v33 = vadd.f32 %v2053_v40, %v2006_v56  ;;  %v1909_v8 = vadd.f32 %v1908_v20, %v1861_v42  ;;  %v2141_v45 = vmul.f32 %v2092_v48, %v2092_v48  ;;  %v2188_v47 = vadd.f32 %v2187_v6, %v2140_v28  ;;  %v7307_v20 = vld [vmem:[#allocation124_spill] sm:$0xff]  ;;  %v7308_v42 = vld [vmem:[#allocation45_spill] sm:$0xff] }
 0x29c   :  { %v1814_v56 = vsub.f32 %v7304_v4, %v4699_v9  ;;  %v1862_v40 = vmul.f32 %v1813_v51, %v1813_v51  ;;  %v1962_v32 = vsub.f32 %v7305_v14, %v4699_v9  ;;  %v2009_v30 = vmul.f32 %v1960_v50, %v1960_v50  ;;  %v7309_v50 = vld [vmem:[#allocation143_spill] sm:$0xff] }
 0x29d   :  { %v2055_v2 = vadd.f32 %v2054_v33, %v2007_v26  ;;  %v2095_v38 = vsub.f32 %v7306_v1, %v4699_v9  ;;  %v2142_v41 = vmul.f32 %v2093_v54, %v2093_v54  ;;  %v2189_v24 = vadd.f32 %v2188_v47, %v2141_v45  ;;  %v7310_v54 = vld [vmem:[#allocation128_spill] sm:$0xff] }
 0x29e   :  { %v1757_v29 = vadd.f32 %v1756_v0, %v4889_v61  ;;  %v1963_v48 = vsub.f32 %v7307_v20, %v4699_v9  ;;  %v2010_v6 = vmul.f32 %v1961_v49, %v1961_v49  ;;  %v2096_v26 = vsub.f32 %v7308_v42, %v4699_v9  ;;  %v7311_v0 = vld [vmem:[#allocation49_spill] sm:$0xff] }
 0x29f   :  { %v2056_v21 = vadd.f32 %v2055_v2, %v2008_v27  ;;  %v1910_v51 = vadd.f32 %v1909_v8, %v1862_v40  ;;  %v2143_v28 = vmul.f32 %v2094_v52, %v2094_v52  ;;  %v2190_v14 = vadd.f32 %v2189_v24, %v2142_v41  ;;  %v7312_v8 = vld [vmem:[#allocation132_spill] sm:$0xff]  ;;  %v7313_v40 = vld [vmem:[#allocation53_spill] sm:$0xff] }
 0x2a0   :  { %v1815_v27 = vsub.f32 %v7309_v50, %v4699_v9  ;;  %v1863_v2 = vmul.f32 %v1814_v56, %v1814_v56  ;;  %v1964_v47 = vsub.f32 %v7310_v54, %v4699_v9  ;;  %v2011_v45 = vmul.f32 %v1962_v32, %v1962_v32  ;;  %v7410_v50 = vld [vmem:[#allocation15_spill] sm:$0xff] }
 0x2a1   :  { %v2057_v33 = vadd.f32 %v2056_v21, %v2009_v30  ;;  %v2097_v1 = vsub.f32 %v7311_v0, %v4699_v9  ;;  %v2144_v49 = vmul.f32 %v2095_v38, %v2095_v38  ;;  %v2191_v20 = vadd.f32 %v2190_v14, %v2143_v28  ;;  %v7339_v0 = vld [vmem:[#allocation180_spill] sm:$0xff] }
 0x2a2   :  { %v1758_v42 = vadd.f32 %v1757_v29, %v4891_v36  ;;  %v1965_v52 = vsub.f32 %v7312_v8, %v4699_v9  ;;  %v2012_v24 = vmul.f32 %v1963_v48, %v1963_v48  ;;  %v2098_v30 = vsub.f32 %v7313_v40, %v4699_v9  ;;  %v7314_v29 = vld [vmem:[#allocation57_spill] sm:$0xff]  ;;  %v7392_v8 = vld [vmem:[#allocation106_spill] sm:$0xff] }
 0x2a3   :  { %v2058_v61 = vadd.f32 %v2057_v33, %v2010_v6  ;;  %v1911_v56 = vadd.f32 %v1910_v51, %v1863_v2  ;;  %v2145_v41 = vmul.f32 %v2096_v26, %v2096_v26  ;;  %v2192_v54 = vadd.f32 %v2191_v20, %v2144_v49  ;;  %v7315_v51 = vld [vmem:[#allocation61_spill] sm:$0xff] }
 0x2a4   :  { %v1816_v32 = vsub.f32 %v7182_v17, %v4699_v9  ;;  %v1864_v6 = vmul.f32 %v1815_v27, %v1815_v27  ;;  %v1966_v14 = vsub.f32 %v7180_v15, %v4699_v9  ;;  %v2013_v38 = vmul.f32 %v1964_v47, %v1964_v47  ;;  %v7391_v15 = vld [vmem:[#allocation102_spill] sm:$0xff] }
 0x2a5   :  { %v2059_v21 = vadd.f32 %v2058_v61, %v2011_v45  ;;  %v2099_v33 = vsub.f32 %v7314_v29, %v4699_v9  ;;  %v2146_v48 = vmul.f32 %v2097_v1, %v2097_v1  ;;  %v2193_v28 = vadd.f32 %v2192_v54, %v2145_v41 }
 0x2a6   :  { %v1759_v40 = vadd.f32 %v1758_v42, %v4901_v16  ;;  %v1967_v26 = vsub.f32 %v7184_v10, %v4699_v9  ;;  %v2014_v20 = vmul.f32 %v1965_v52, %v1965_v52  ;;  %v2100_v2 = vsub.f32 %v7315_v51, %v4699_v9  ;;  %v7316_v42 = vld [vmem:[#allocation65_spill] sm:$0xff]  ;;  %v7390_v10 = vld [vmem:[#allocation98_spill] sm:$0xff] }
 0x2a7   :  { %v2060_v36 = vadd.f32 %v2059_v21, %v2012_v24  ;;  %v1912_v27 = vadd.f32 %v1911_v56, %v1864_v6  ;;  %v2147_v61 = vmul.f32 %v2098_v30, %v2098_v30  ;;  %v2194_v49 = vadd.f32 %v2193_v28, %v2146_v48  ;;  %v7317_v6 = vld [vmem:[#allocation69_spill] sm:$0xff] }
 0x2a8   :  { %v1817_v47 = vsub.f32 %v4417_v57, %v4699_v9  ;;  %v1865_v24 = vmul.f32 %v1816_v32, %v1816_v32  ;;  %v1968_v1 = vsub.f32 %v7186_v5, %v4699_v9  ;;  %v2015_v54 = vmul.f32 %v1966_v14, %v1966_v14  ;;  %v7389_v5 = vld [vmem:[#allocation94_spill] sm:$0xff] }
 0x2a9   :  { %v2061_v45 = vadd.f32 %v2060_v36, %v2013_v38  ;;  %v2101_v21 = vsub.f32 %v7316_v42, %v4699_v9  ;;  %v2148_v52 = vmul.f32 %v2099_v33, %v2099_v33  ;;  %v2195_v41 = vadd.f32 %v2194_v49, %v2147_v61 }
 0x2aa   :  { %v1760_v51 = vadd.f32 %v1759_v40, %v4903_v60  ;;  %v1969_v30 = vsub.f32 %v4409_v13, %v4699_v9  ;;  %v2016_v56 = vmul.f32 %v1967_v26, %v1967_v26  ;;  %v2102_v38 = vsub.f32 %v7317_v6, %v4699_v9  ;;  %v7318_v40 = vld [vmem:[#allocation73_spill] sm:$0xff] }
 0x2ab   :  { %v2062_v16 = vadd.f32 %v2061_v45, %v2014_v20  ;;  %v1913_v32 = vadd.f32 %v1912_v27, %v1865_v24  ;;  %v2149_v48 = vmul.f32 %v2100_v2, %v2100_v2  ;;  %v2196_v28 = vadd.f32 %v2195_v41, %v2148_v52  ;;  %v7319_v24 = vld [vmem:[#allocation77_spill] sm:$0xff] }
 0x2ac   :  { %v1713_v14 = vmul.f32 %v4871_v55, %v4871_v55  ;;  %v1818_v33 = vsub.f32 %v4442_v12, %v4699_v9  ;;  %v1866_v20 = vmul.f32 %v1817_v47, %v1817_v47  ;;  %v2017_v45 = vmul.f32 %v1968_v1, %v1968_v1  ;;  %v7404_v12 = vld [vmem:[#allocation154_spill] sm:$0xff] }
 0x2ad   :  { %v2063_v36 = vadd.f32 %v2062_v16, %v2015_v54  ;;  %v2103_v61 = vsub.f32 %v7318_v40, %v4699_v9  ;;  %v2150_v26 = vmul.f32 %v2101_v21, %v2101_v21  ;;  %v2197_v49 = vadd.f32 %v2196_v28, %v2149_v48  ;;  %v7320_v21 = vld [vmem:[#allocation158_spill] sm:$0xff]  ;;  %v7334_v40 = vld [vmem:[#allocation176_spill] sm:$0xff] }
 0x2ae   :  { %v1761_v42 = vadd.f32 %v1760_v51, %v1713_v14  ;;  %v1970_v27 = vsub.f32 %v4432_v37, %v4699_v9  ;;  %v2018_v2 = vmul.f32 %v1969_v30, %v1969_v30  ;;  %v2104_v54 = vsub.f32 %v7319_v24, %v4699_v9  ;;  %v7321_v30 = vld [vmem:[#allocation81_spill] sm:$0xff] }
 0x2af   :  { %v2064_v60 = vadd.f32 %v2063_v36, %v2016_v56  ;;  %v1914_v55 = vadd.f32 %v1913_v32, %v1866_v20  ;;  %v2151_v52 = vmul.f32 %v2102_v38, %v2102_v38  ;;  %v2198_v41 = vadd.f32 %v2197_v49, %v2150_v26  ;;  %v7322_v20 = vld [vmem:[#allocation85_spill] sm:$0xff] }
 0x2b0   :  { %v1666_v47 = vsub.f32 %v4464_v25, %v4699_v9  ;;  %v1714_v1 = vmul.f32 %v4877_v46, %v4877_v46  ;;  %v1819_v51 = vsub.f32 %v7320_v21, %v4699_v9  ;;  %v1867_v56 = vmul.f32 %v1818_v33, %v1818_v33  ;;  %v7403_v21 = vld [vmem:[#allocation150_spill] sm:$0xff] }
 0x2b1   :  { %v2065_v16 = vadd.f32 %v2064_v60, %v2017_v45  ;;  %v2105_v48 = vsub.f32 %v7321_v30, %v4699_v9  ;;  %v2152_v28 = vmul.f32 %v2103_v61, %v2103_v61  ;;  %v2199_v14 = vadd.f32 %v2198_v41, %v2151_v52  ;;  %v7323_v41 = vld [vmem:[#allocation89_spill] sm:$0xff] }
 0x2b2   :  { %v1971_v38 = vsub.f32 %v4456_v7, %v4699_v9  ;;  %v2019_v32 = vmul.f32 %v1970_v27, %v1970_v27  ;;  %v2106_v45 = vsub.f32 %v7322_v20, %v4699_v9  ;;  %v1762_v60 = vadd.f32 %v1761_v42, %v1714_v1 }
 0x2b3   :  { %v2066_v36 = vadd.f32 %v2065_v16, %v2018_v2  ;;  %v1915_v26 = vadd.f32 %v1914_v55, %v1867_v56  ;;  %v2153_v46 = vmul.f32 %v2104_v54, %v2104_v54  ;;  %v2200_v49 = vadd.f32 %v2199_v14, %v2152_v28  ;;  %v7324_v54 = vld [vmem:[#allocation93_spill] sm:$0xff] }
 0x2b4   :  { %v1667_v33 = vsub.f32 %v4488_v58, %v4699_v9  ;;  %v1715_v2 = vmul.f32 %v1666_v47, %v1666_v47  ;;  %v1820_v16 = vsub.f32 %v4490_v63, %v4699_v9  ;;  %v1868_v61 = vmul.f32 %v1819_v51, %v1819_v51  ;;  %v7402_v63 = vld [vmem:[#allocation146_spill] sm:$0xff] }
 0x2b5   :  { %v2067_v52 = vadd.f32 %v2066_v36, %v2019_v32  ;;  %v2107_v30 = vsub.f32 %v7323_v41, %v4699_v9  ;;  %v2154_v27 = vmul.f32 %v2105_v48, %v2105_v48  ;;  %v2201_v24 = vadd.f32 %v2200_v49, %v2153_v46  ;;  %v7325_v49 = vld [vmem:[#allocation97_spill] sm:$0xff] }
 0x2b6   :  { %v1972_v42 = vsub.f32 %v4480_v34, %v4699_v9  ;;  %v2020_v55 = vmul.f32 %v1971_v38, %v1971_v38  ;;  %v2108_v1 = vsub.f32 %v7324_v54, %v4699_v9  ;;  %v1763_v56 = vadd.f32 %v1762_v60, %v1715_v2 }
 0x2b7   :  { %v1916_v28 = vadd.f32 %v1915_v26, %v1868_v61  ;;  %v2155_v47 = vmul.f32 %v2106_v45, %v2106_v45  ;;  %v2202_v14 = vadd.f32 %v2201_v24, %v2154_v27  ;;  %v1668_v51 = vsub.f32 %v4512_v53, %v4699_v9  ;;  %v7326_v24 = vld [vmem:[#allocation101_spill] sm:$0xff] }
 0x2b8   :  { %v1716_v36 = vmul.f32 %v1667_v33, %v1667_v33  ;;  %v1821_v32 = vsub.f32 %v4514_v18, %v4699_v9  ;;  %v1869_v48 = vmul.f32 %v1820_v16, %v1820_v16  ;;  %v2068_v46 = vadd.f32 %v2067_v52, %v2020_v55  ;;  %v7401_v18 = vld [vmem:[#allocation142_spill] sm:$0xff] }
 0x2b9   :  { %v2109_v41 = vsub.f32 %v7325_v49, %v4699_v9  ;;  %v2156_v38 = vmul.f32 %v2107_v30, %v2107_v30  ;;  %v2203_v20 = vadd.f32 %v2202_v14, %v2155_v47  ;;  %v1973_v60 = vsub.f32 %v4504_v11, %v4699_v9  ;;  %v7327_v14 = vld [vmem:[#allocation105_spill] sm:$0xff]  ;;  %v7349_v11 = vld [vmem:[#allocation188_spill] sm:$0xff] }
 0x2ba   :  { %v2021_v26 = vmul.f32 %v1972_v42, %v1972_v42  ;;  %v2110_v45 = vsub.f32 %v7326_v24, %v4699_v9  ;;  %v1764_v2 = vadd.f32 %v1763_v56, %v1716_v36  ;;  %v1917_v61 = vadd.f32 %v1916_v28, %v1869_v48 }
 0x2bb   :  { %v2157_v33 = vmul.f32 %v2108_v1, %v2108_v1  ;;  %v2204_v27 = vadd.f32 %v2203_v20, %v2156_v38  ;;  %v1669_v16 = vsub.f32 %v4536_v59, %v4699_v9  ;;  %v1717_v52 = vmul.f32 %v1668_v51, %v1668_v51  ;;  %v7328_v20 = vld [vmem:[#allocation109_spill] sm:$0xff] }
 0x2bc   :  { %v1822_v55 = vsub.f32 %v4538_v39, %v4699_v9  ;;  %v1870_v30 = vmul.f32 %v1821_v32, %v1821_v32  ;;  %v2069_v47 = vadd.f32 %v2068_v46, %v2021_v26  ;;  %v2111_v49 = vsub.f32 %v7327_v14, %v4699_v9  ;;  %v7400_v39 = vld [vmem:[#allocation138_spill] sm:$0xff] }
 0x2bd   :  { %v2158_v42 = vmul.f32 %v2109_v41, %v2109_v41  ;;  %v2205_v54 = vadd.f32 %v2204_v27, %v2157_v33  ;;  %v1974_v56 = vsub.f32 %v4528_v62, %v4699_v9  ;;  %v2022_v28 = vmul.f32 %v1973_v60, %v1973_v60  ;;  %v7329_v27 = vld [vmem:[#allocation113_spill] sm:$0xff] }
 0x2be   :  { %v2112_v1 = vsub.f32 %v7328_v20, %v4699_v9  ;;  %v1765_v36 = vadd.f32 %v1764_v2, %v1717_v52  ;;  %v1918_v48 = vadd.f32 %v1917_v61, %v1870_v30  ;;  %v2159_v51 = vmul.f32 %v2110_v45, %v2110_v45 }
 0x2bf   :  { %v2206_v38 = vadd.f32 %v2205_v54, %v2158_v42  ;;  %v1670_v32 = vsub.f32 %v4560_v19, %v4699_v9  ;;  %v1718_v46 = vmul.f32 %v1669_v16, %v1669_v16  ;;  %v1823_v26 = vsub.f32 %v4562_v44, %v4699_v9  ;;  %v7330_v54 = vld [vmem:[#allocation117_spill] sm:$0xff]  ;;  %v7399_v44 = vld [vmem:[#allocation134_spill] sm:$0xff] }
 0x2c0   :  { %v1871_v41 = vmul.f32 %v1822_v55, %v1822_v55  ;;  %v2070_v33 = vadd.f32 %v2069_v47, %v2022_v28  ;;  %v2113_v14 = vsub.f32 %v7329_v27, %v4699_v9  ;;  %v2160_v60 = vmul.f32 %v2111_v49, %v2111_v49 }
 0x2c1   :  { %v2207_v24 = vadd.f32 %v2206_v38, %v2159_v51  ;;  %v1975_v2 = vsub.f32 %v4552_v31, %v4699_v9  ;;  %v2023_v61 = vmul.f32 %v1974_v56, %v1974_v56  ;;  %v2114_v45 = vsub.f32 %v7330_v54, %v4699_v9  ;;  %v7331_v38 = vld [vmem:[#allocation121_spill] sm:$0xff]  ;;  %v7332_v54 = vld [vmem:[#allocation171_spill] sm:$0xff]  ;;  %v7344_v31 = vld [vmem:[#allocation184_spill] sm:$0xff] }
 0x2c2   :  { %v1766_v52 = vadd.f32 %v1765_v36, %v1718_v46  ;;  %v1919_v30 = vadd.f32 %v1918_v48, %v1871_v41  ;;  %v2161_v16 = vmul.f32 %v2112_v1, %v2112_v1  ;;  %v1671_v55 = vsub.f32 %v4584_v23, %v4699_v9 }
 0x2c3   :  { %v2208_v42 = vadd.f32 %v2207_v24, %v2160_v60  ;;  %v1719_v47 = vmul.f32 %v1670_v32, %v1670_v32  ;;  %v1824_v28 = vsub.f32 %v4586_v3, %v4699_v9  ;;  %v1872_v49 = vmul.f32 %v1823_v26, %v1823_v26  ;;  %v7333_v24 = vld [vmem:[#allocation125_spill] sm:$0xff]  ;;  %v7398_v3 = vld [vmem:[#allocation130_spill] sm:$0xff] }
 0x2c4   :  { %v2071_v51 = vadd.f32 %v2070_v33, %v2023_v61  ;;  %v2115_v27 = vsub.f32 %v7331_v38, %v4699_v9  ;;  %v2162_v56 = vmul.f32 %v2113_v14, %v2113_v14  ;;  %v1976_v36 = vsub.f32 %v7332_v54, %v4699_v9  ;;  %v7335_v61 = vld [vmem:[#allocation177_spill] sm:$0xff] }
 0x2c5   :  { %v2209_v20 = vadd.f32 %v2208_v42, %v2161_v16  ;;  %v2024_v48 = vmul.f32 %v1975_v2, %v1975_v2  ;;  %v2116_v1 = vsub.f32 %v7333_v24, %v4699_v9  ;;  %v1767_v46 = vadd.f32 %v1766_v52, %v1719_v47  ;;  %v7336_v42 = vld [vmem:[#allocation129_spill] sm:$0xff]  ;;  %v7337_v24 = vld [vmem:[#allocation174_spill] sm:$0xff] }
 0x2c6   :  { %v1920_v41 = vadd.f32 %v1919_v30, %v1872_v49  ;;  %v2163_v32 = vmul.f32 %v2114_v45, %v2114_v45  ;;  %v1672_v26 = vsub.f32 %v7334_v40, %v4699_v9  ;;  %v1720_v33 = vmul.f32 %v1671_v55, %v1671_v55 }
 0x2c7   :  { %v2210_v60 = vadd.f32 %v2209_v20, %v2162_v56  ;;  %v1825_v38 = vsub.f32 %v7335_v61, %v4699_v9  ;;  %v1873_v14 = vmul.f32 %v1824_v28, %v1824_v28  ;;  %v2072_v16 = vadd.f32 %v2071_v51, %v2024_v48  ;;  %v7338_v20 = vld [vmem:[#allocation133_spill] sm:$0xff]  ;;  %v7397_v61 = vld [vmem:[#allocation126_spill] sm:$0xff] }
 0x2c8   :  { %v2117_v6 = vsub.f32 %v7336_v42, %v4699_v9  ;;  %v2164_v2 = vmul.f32 %v2115_v27, %v2115_v27  ;;  %v1977_v52 = vsub.f32 %v7337_v24, %v4699_v9  ;;  %v2025_v30 = vmul.f32 %v1976_v36, %v1976_v36  ;;  %v7340_v48 = vld [vmem:[#allocation181_spill] sm:$0xff] }
 0x2c9   :  { %v2211_v29 = vadd.f32 %v2210_v60, %v2163_v32  ;;  %v2118_v45 = vsub.f32 %v7338_v20, %v4699_v9  ;;  %v1768_v47 = vadd.f32 %v1767_v46, %v1720_v33  ;;  %v1921_v49 = vadd.f32 %v1920_v41, %v1873_v14  ;;  %v7341_v60 = vld [vmem:[#allocation137_spill] sm:$0xff]  ;;  %v7342_v20 = vld [vmem:[#allocation178_spill] sm:$0xff] }
 0x2ca   :  { %v2165_v55 = vmul.f32 %v2116_v1, %v2116_v1  ;;  %v1673_v28 = vsub.f32 %v7339_v0, %v4699_v9  ;;  %v1721_v51 = vmul.f32 %v1672_v26, %v1672_v26  ;;  %v1826_v42 = vsub.f32 %v7340_v48, %v4699_v9  ;;  %v7396_v48 = vld [vmem:[#allocation122_spill] sm:$0xff] }
 0x2cb   :  { %v2212_v56 = vadd.f32 %v2211_v29, %v2164_v2  ;;  %v1874_v27 = vmul.f32 %v1825_v38, %v1825_v38  ;;  %v2073_v32 = vadd.f32 %v2072_v16, %v2025_v30  ;;  %v2119_v24 = vsub.f32 %v7341_v60, %v4699_v9  ;;  %v7343_v29 = vld [vmem:[#allocation141_spill] sm:$0xff] }
 0x2cc   :  { %v2166_v36 = vmul.f32 %v2117_v6, %v2117_v6  ;;  %v1978_v46 = vsub.f32 %v7342_v20, %v4699_v9  ;;  %v2026_v41 = vmul.f32 %v1977_v52, %v1977_v52  ;;  %v2120_v1 = vsub.f32 %v7343_v29, %v4699_v9  ;;  %v7345_v30 = vld [vmem:[#allocation185_spill] sm:$0xff]  ;;  %v7347_v29 = vld [vmem:[#allocation182_spill] sm:$0xff] }
 0x2cd   :  { %v2213_v54 = vadd.f32 %v2212_v56, %v2165_v55  ;;  %v1769_v33 = vadd.f32 %v1768_v47, %v1721_v51  ;;  %v1922_v14 = vadd.f32 %v1921_v49, %v1874_v27  ;;  %v2167_v26 = vmul.f32 %v2118_v45, %v2118_v45  ;;  %v7346_v56 = vld [vmem:[#allocation145_spill] sm:$0xff] }
 0x2ce   :  { %v1674_v38 = vsub.f32 %v7344_v31, %v4699_v9  ;;  %v1722_v16 = vmul.f32 %v1673_v28, %v1673_v28  ;;  %v1827_v60 = vsub.f32 %v7345_v30, %v4699_v9  ;;  %v1875_v6 = vmul.f32 %v1826_v42, %v1826_v42  ;;  %v7395_v30 = vld [vmem:[#allocation118_spill] sm:$0xff] }
 0x2cf   :  { %v2214_v2 = vadd.f32 %v2213_v54, %v2166_v36  ;;  %v2074_v55 = vadd.f32 %v2073_v32, %v2026_v41  ;;  %v2121_v20 = vsub.f32 %v7346_v56, %v4699_v9  ;;  %v2168_v52 = vmul.f32 %v2119_v24, %v2119_v24  ;;  %v7348_v54 = vld [vmem:[#allocation149_spill] sm:$0xff] }
 0x2d0   :  { %v1979_v47 = vsub.f32 %v7347_v29, %v4699_v9  ;;  %v2027_v49 = vmul.f32 %v1978_v46, %v1978_v46  ;;  %v2122_v45 = vsub.f32 %v7348_v54, %v4699_v9  ;;  %v1770_v51 = vadd.f32 %v1769_v33, %v1722_v16  ;;  %v7350_v41 = vld [vmem:[#allocation189_spill] sm:$0xff]  ;;  %v7352_v54 = vld [vmem:[#allocation186_spill] sm:$0xff] }
 0x2d1   :  { %v2215_v62 = vadd.f32 %v2214_v2, %v2167_v26  ;;  %v1923_v27 = vadd.f32 %v1922_v14, %v1875_v6  ;;  %v2169_v28 = vmul.f32 %v2120_v1, %v2120_v1  ;;  %v1675_v42 = vsub.f32 %v7349_v11, %v4699_v9  ;;  %v7351_v2 = vld [vmem:[#allocation153_spill] sm:$0xff] }
 0x2d2   :  { %v1723_v32 = vmul.f32 %v1674_v38, %v1674_v38  ;;  %v1828_v56 = vsub.f32 %v7350_v41, %v4699_v9  ;;  %v1876_v24 = vmul.f32 %v1827_v60, %v1827_v60  ;;  %v2075_v26 = vadd.f32 %v2074_v55, %v2027_v49  ;;  %v7354_v55 = vld [vmem:[#allocation160_spill] sm:$0xff]  ;;  %v7394_v41 = vld [vmem:[#allocation114_spill] sm:$0xff] }
 0x2d3   :  { %v2216_v36 = vadd.f32 %v2215_v62, %v2168_v52  ;;  %v2123_v29 = vsub.f32 %v7351_v2, %v4699_v9  ;;  %v2170_v46 = vmul.f32 %v2121_v20, %v2121_v20  ;;  %v1980_v33 = vsub.f32 %v7352_v54, %v4699_v9  ;;  %v7353_v62 = vld [vmem:[#allocation157_spill] sm:$0xff] }
 0x2d4   :  { %v2028_v14 = vmul.f32 %v1979_v47, %v1979_v47  ;;  %v2124_v1 = vsub.f32 %v7353_v62, %v4699_v9  ;;  %v1771_v16 = vadd.f32 %v1770_v51, %v1723_v32  ;;  %v1924_v6 = vadd.f32 %v1923_v27, %v1876_v24  ;;  %v7356_v47 = vld [vmem:[#allocation163_spill] sm:$0xff] }
 0x2d5   :  { %v2217_v34 = vadd.f32 %v2216_v36, %v2169_v28  ;;  %v2171_v38 = vmul.f32 %v2122_v45, %v2122_v45  ;;  %v1724_v7 = vmul.f32 %v1675_v42, %v1675_v42  ;;  %v1877_v37 = vmul.f32 %v1828_v56, %v1828_v56  ;;  %v7355_v28 = vld [vmem:[#allocation190_spill] sm:$0xff] }
 0x2d6   :  { %v2076_v60 = vadd.f32 %v2075_v26, %v2028_v14  ;;  %v2125_v49 = vsub.f32 %v7354_v55, %v4699_v9  ;;  %v2172_v2 = vmul.f32 %v2123_v29, %v2123_v29  ;;  %v1981_v36 = vsub.f32 %v7355_v28, %v4699_v9  ;;  %v7357_v56 = vld [vmem:[#allocation166_spill] sm:$0xff]  ;;  %v7358_v29 = vld [vmem:[#allocation169_spill] sm:$0xff] }
 0x2d7   :  { %v2218_v52 = vadd.f32 %v2217_v34, %v2170_v46  ;;  %v2029_v54 = vmul.f32 %v1980_v33, %v1980_v33  ;;  %v2126_v13 = vsub.f32 %v7356_v47, %v4699_v9  ;;  %v1772_v62 = vadd.f32 %v1771_v16, %v1724_v7  ;;  %v7359_v7 = vld [vmem:[#allocation172_spill] sm:$0xff]  ;;  %v7388_v28 = vld [vmem:[#allocation90_spill] sm:$0xff] }
 0x2d8   :  { %v1925_v51 = vadd.f32 %v1924_v6, %v1877_v37  ;;  %v2173_v27 = vmul.f32 %v2124_v1, %v2124_v1  ;;  %v2127_v42 = vsub.f32 %v7357_v56, %v4699_v9  ;;  %v2174_v32 = vmul.f32 %v2125_v49, %v2125_v49 }
 0x2d9   :  { %v2219_v20 = vadd.f32 %v2218_v52, %v2171_v38  ;;  %v2077_v34 = vadd.f32 %v2076_v60, %v2029_v54  ;;  %v2030_v26 = vmul.f32 %v1981_v36, %v1981_v36  ;;  %v2128_v46 = vsub.f32 %v7358_v29, %v4699_v9  ;;  %v7360_v54 = vld [vmem:[#allocation175_spill] sm:$0xff] }
 0x2da   :  { %v1773_v14 = vrot.slane %v1772_v62, 4  ;;  %v1926_v38 = vrot.slane %v1925_v51, 4  ;;  %v2175_v33 = vmul.f32 %v2126_v13, %v2126_v13  ;;  %v2129_v37 = vsub.f32 %v7359_v7, %v4699_v9 }
 0x2db   :  { %v2220_v45 = vadd.f32 %v2219_v20, %v2172_v2  ;;  %v2078_v55 = vadd.f32 %v2077_v34, %v2030_v26  ;;  %v2176_v1 = vmul.f32 %v2127_v42, %v2127_v42  ;;  %v2130_v16 = vsub.f32 %v7360_v54, %v4699_v9  ;;  %v7362_v34 = vld [vmem:[#allocation183_spill] sm:$0xff] }
 0x2dc   :  { %v1774_v6 = vadd.f32 %v1773_v14, %v1772_v62  ;;  %v1927_v60 = vadd.f32 %v1926_v38, %v1925_v51  ;;  %v2177_v49 = vmul.f32 %v2128_v46, %v2128_v46  ;;  %v2178_v29 = vmul.f32 %v2129_v37, %v2129_v37  ;;  %v7363_v54 = vld [vmem:[#allocation187_spill] sm:$0xff] }
 0x2dd   :  { %v2221_v24 = vadd.f32 %v2220_v45, %v2173_v27  ;;  %v2079_v36 = vrot.slane %v2078_v55, 4  ;;  %v7361_v27 = vld [vmem:[#allocation179_spill] sm:$0xff]  ;;  %v2179_v42 = vmul.f32 %v2130_v16, %v2130_v16  ;;  %v2133_v62 = vsub.f32 %v7363_v54, %v4699_v9 }
 0x2de   :  { %v2131_v45 = vsub.f32 %v7361_v27, %v4699_v9  ;;  %v1928_v26 = vrot.slane %v1927_v60, 2  ;;  %v7364_v14 = vld [vmem:[#allocation191_spill] sm:$0xff] }
 0x2df   :  { %v2222_v52 = vadd.f32 %v2221_v24, %v2174_v32  ;;  %v2132_v32 = vsub.f32 %v7362_v34, %v4699_v9  ;;  %v1775_v24 = vrot.slane %v1774_v6, 2  ;;  %v2134_v38 = vsub.f32 %v7364_v14, %v4699_v9 }
 0x2e0   :  { %v2180_v51 = vmul.f32 %v2131_v45, %v2131_v45  ;;  %v2182_v27 = vmul.f32 %v2133_v62, %v2133_v62 }
 0x2e1   :  { %v2223_v2 = vadd.f32 %v2222_v52, %v2175_v33  ;;  %v2080_v52 = vadd.f32 %v2079_v36, %v2078_v55  ;;  %v2181_v37 = vmul.f32 %v2132_v32, %v2132_v32  ;;  %v2183_v16 = vmul.f32 %v2134_v38, %v2134_v38 }
 0x2e3   :  { %v2224_v20 = vadd.f32 %v2223_v2, %v2176_v1  ;;  %v1776_v1 = vadd.f32 %v1775_v24, %v1774_v6  ;;  %v1929_v2 = vadd.f32 %v1928_v26, %v1927_v60 }
 0x2e5   :  { %v2225_v13 = vadd.f32 %v2224_v20, %v2177_v49  ;;  %v2081_v20 = vrot.slane %v2080_v52, 2  ;;  %v1777_v7 = vrot.slane %v1776_v1, 1  ;;  %v1930_v56 = vrot.slane %v1929_v2, 1 }
 0x2e7   :  { %v2226_v33 = vadd.f32 %v2225_v13, %v2178_v29  ;;  %v2082_v55 = vadd.f32 %v2081_v20, %v2080_v52  ;;  %v1778_v13 = vadd.f32 %v1777_v7, %v1776_v1  ;;  %v1931_v54 = vadd.f32 %v1930_v56, %v1929_v2  ;;  %v7366_v20 = vld [vmem:[#allocation2_spill] sm:$0xff] }
 0x2e9   :  { %v2227_v46 = vadd.f32 %v2226_v33, %v2179_v42  ;;  %v2083_v42 = vrot.slane %v2082_v55, 1  ;;  %v1932_v47 = vadd.f32 %v1931_v54, %v1778_v13  ;;  %v33_v54 = vld [vmem:[%s6542_s2] sm:$0x1] }
 0x2eb   :  { %v2228_v49 = vadd.f32 %v2227_v46, %v2180_v51  ;;  %v2084_v6 = vadd.f32 %v2083_v42, %v2082_v55 }
 0x2ed   :  { %v2229_v34 = vadd.f32 %v2228_v49, %v2181_v37  ;;  %v2085_v32 = vadd.f32 %v2084_v6, %v1932_v47  ;;  %v34_v37 = vld [vmem:[%s6543_s3] sm:$0x1] }
 0x2ee   :  { %v7371_v6 = vld [vmem:[#allocation22_spill] sm:$0xff] }
 0x2ef   :  { %v2230_v29 = vadd.f32 %v2229_v34, %v2182_v27 }
 0x2f1   :  { %v2231_v36 = vadd.f32 %v2230_v29, %v2183_v16  ;;  %v7367_v29 = vld [vmem:[#allocation6_spill] sm:$0xff] }
 0x2f3   :  { %v2232_v45 = vrot.slane %v2231_v36, 4 }
 0x2f5   :  { %v2233_v33 = vadd.f32 %v2232_v45, %v2231_v36  ;;  %v7368_v36 = vld [vmem:[#allocation10_spill] sm:$0xff] }
 0x2f6   :  { %v7369_v45 = vld [vmem:[#allocation14_spill] sm:$0xff] }
 0x2f7   :  { %v2234_v14 = vrot.slane %v2233_v33, 2 }
 0x2f9   :  { %v2235_v60 = vadd.f32 %v2234_v14, %v2233_v33 }
 0x2fb   :  { %v2236_v24 = vrot.slane %v2235_v60, 1 }
 0x2fd   :  { %v2237_v26 = vadd.f32 %v2236_v24, %v2235_v60 }
 0x2ff   :  { %v2238_v62 = vadd.f32 %v2237_v26, %v2085_v32  ;;  %v7372_v32 = vld [vmem:[#allocation26_spill] sm:$0xff] }
 0x300   :  { %v7373_v26 = vld [vmem:[#allocation30_spill] sm:$0xff] }
 0x301   :  { %v2239_v51 = vmul.f32 0.0006377551, %v2238_v62 }
 0x303   :  { %v2240_v46 = vadd.f32 1e-05, %v2239_v51  ;;  %v7374_v51 = vld [vmem:[#allocation34_spill] sm:$0xff] }
 0x305   :  { %3760 = vrsqrt.f32 %v2240_v46  ;;  %vm2247_vm1 = vweird.f32 %v2240_v46 }
 0x30b   :  { %v3761_v38 = vpop.eup %3760 }
 0x30c   :  { %v2242_v27 = vmul.f32 %v3761_v38, %v2240_v46  ;;  %vm2248_vm0 = vweird.f32 %v3761_v38 }
 0x30d   :  { %vm2249_vm2 = vmor %vm2247_vm1, %vm2248_vm0 }
 0x30e   :  { %v2243_v34 = vmul.f32 %v3761_v38, %v2242_v27 }
 0x310   :  { %v2244_v52 = vmul.f32 0.5, %v2243_v34  ;;  %v7376_v34 = vld [vmem:[#allocation42_spill] sm:$0xff] }
 0x312   :  { %v2245_v7 = vsub.f32 1.5, %v2244_v52 }
 0x314   :  { %v2246_v56 = vmul.f32 %v3761_v38, %v2245_v7  ;;  %v7377_v7 = vld [vmem:[#allocation46_spill] sm:$0xff] }
 0x316   :  { %v2250_v47 = vsel %vm2249_vm2, %v3761_v38, %v2246_v56  ;;  %v7375_v38 = vld [vmem:[#allocation38_spill] sm:$0xff] }
 0x317   :  { %v2251_v14 = vmul.f32 %v2250_v47, %v33_v54  ;;  %v7378_v54 = vld [vmem:[#allocation50_spill] sm:$0xff] }
 0x319   :  { %v2252_v1 = vmul.f32 %v2251_v14, %v4699_v9  ;;  %v5117_v2 = vperm.slane %v2251_v14, 0  ;;  %v7370_v9 = vld [vmem:[#allocation18_spill] sm:$0xff] }
 0x31a   :  { %v7379_v14 = vld [vmem:[#allocation54_spill] sm:$0xff] }
 0x31b   :  { %7365 = vst [vmem:[#allocation131_spill] sm:$0xff] %v5117_v2  ;;  %v2253_v49 = vsub.f32 %v34_v37, %v2252_v1  ;;  %v2257_v16 = vmul.f32 %v5117_v2, %v7366_v20  ;;  %v2258_v55 = vmul.f32 %v5117_v2, %v7367_v29  ;;  %v2259_v13 = vmul.f32 %v5117_v2, %v7368_v36  ;;  %v7380_v37 = vld [vmem:[#allocation58_spill] sm:$0xff] }
 0x31c   :  { %v2260_v42 = vmul.f32 %v5117_v2, %v7369_v45  ;;  %v2261_v33 = vmul.f32 %v5117_v2, %v7370_v9  ;;  %v2262_v60 = vmul.f32 %v5117_v2, %v7371_v6  ;;  %v2263_v24 = vmul.f32 %v5117_v2, %v7372_v32  ;;  %v7381_v29 = vld [vmem:[#allocation62_spill] sm:$0xff] }
 0x31d   :  { %v2264_v62 = vmul.f32 %v5117_v2, %v7373_v26  ;;  %v2265_v46 = vmul.f32 %v5117_v2, %v7374_v51  ;;  %v2266_v27 = vmul.f32 %v5117_v2, %v7375_v38  ;;  %v2267_v52 = vmul.f32 %v5117_v2, %v7376_v34  ;;  %v7382_v45 = vld [vmem:[#allocation66_spill] sm:$0xff] }
 0x31e   :  { %v2268_v56 = vmul.f32 %v5117_v2, %v7377_v7  ;;  %v2269_v47 = vmul.f32 %v5117_v2, %v7378_v54  ;;  %v2270_v1 = vmul.f32 %v5117_v2, %v7379_v14  ;;  %v2271_v20 = vmul.f32 %v5117_v2, %v7380_v37  ;;  %v7383_v6 = vld [vmem:[#allocation70_spill] sm:$0xff] }
 0x31f   :  { %v2272_v36 = vmul.f32 %v5117_v2, %v7381_v29  ;;  %v2273_v9 = vmul.f32 %v5117_v2, %v7382_v45  ;;  %v2274_v32 = vmul.f32 %v5117_v2, %v7383_v6  ;;  %v7384_v26 = vld [vmem:[#allocation74_spill] sm:$0xff]  ;;  %v2279_v29 = vmul.f32 %v5117_v2, %v7388_v28 }
 0x320   :  { %v2275_v51 = vmul.f32 %v5117_v2, %v7384_v26  ;;  %v7385_v38 = vld [vmem:[#allocation78_spill] sm:$0xff]  ;;  %v2280_v45 = vmul.f32 %v5117_v2, %v7389_v5  ;;  %v2281_v6 = vmul.f32 %v5117_v2, %v7390_v10  ;;  %v2282_v26 = vmul.f32 %v5117_v2, %v7391_v15 }
 0x321   :  { %v2276_v34 = vmul.f32 %v5117_v2, %v7385_v38  ;;  %v7386_v7 = vld [vmem:[#allocation82_spill] sm:$0xff]  ;;  %v2283_v38 = vmul.f32 %v5117_v2, %v7392_v8  ;;  %v2286_v28 = vmul.f32 %v5117_v2, %v7395_v30  ;;  %v2287_v5 = vmul.f32 %v5117_v2, %v7396_v48 }
 0x322   :  { %v2277_v54 = vmul.f32 %v5117_v2, %v7386_v7  ;;  %v7387_v14 = vld [vmem:[#allocation86_spill] sm:$0xff]  ;;  %v2284_v7 = vmul.f32 %v5117_v2, %v7393_v35  ;;  %v2288_v10 = vmul.f32 %v5117_v2, %v7397_v61  ;;  %v2289_v15 = vmul.f32 %v5117_v2, %v7398_v3 }
 0x323   :  { %v2278_v37 = vmul.f32 %v5117_v2, %v7387_v14  ;;  %v2285_v14 = vmul.f32 %v5117_v2, %v7394_v41  ;;  %v2290_v8 = vmul.f32 %v5117_v2, %v7399_v44  ;;  %v2291_v35 = vmul.f32 %v5117_v2, %v7400_v39 }
 0x324   :  { %v2292_v41 = vmul.f32 %v5117_v2, %v7401_v18  ;;  %v2293_v30 = vmul.f32 %v5117_v2, %v7402_v63  ;;  %v2294_v48 = vmul.f32 %v5117_v2, %v7403_v21  ;;  %v2295_v61 = vmul.f32 %v5117_v2, %v7404_v12 }
 0x325   :  { %v2296_v3 = vmul.f32 %v5117_v2, %v4464_v25  ;;  %v2297_v44 = vmul.f32 %v5117_v2, %v4488_v58  ;;  %v2298_v39 = vmul.f32 %v5117_v2, %v4512_v53  ;;  %v5206_v57 = vperm.slane %v2253_v49, 0  ;;  %v7406_v49 = vld [vmem:[#allocation3_spill] sm:$0xff] }
 0x326   :  { %v2299_v63 = vmul.f32 %v5117_v2, %v4536_v59  ;;  %v2300_v18 = vmul.f32 %v5117_v2, %v4560_v19  ;;  %v2301_v12 = vmul.f32 %v5117_v2, %v4584_v23  ;;  %v2302_v25 = vmul.f32 %v5117_v2, %v7334_v40  ;;  %v7407_v19 = vld [vmem:[#allocation7_spill] sm:$0xff] }
 0x327   :  { %7405 = vst [vmem:[#allocation135_spill] sm:$0xff] %v5206_v57  ;;  %v2303_v58 = vmul.f32 %v5117_v2, %v7339_v0  ;;  %v2304_v53 = vmul.f32 %v5117_v2, %v7344_v31  ;;  %v2305_v21 = vmul.f32 %v5117_v2, %v7349_v11  ;;  %v5224_v59 = vmul.f32 %v5117_v2, %v7406_v49  ;;  %v7408_v23 = vld [vmem:[#allocation11_spill] sm:$0xff] }
 0x328   :  { %v5228_v17 = vmul.f32 %v5117_v2, %v7407_v19  ;;  %v5232_v40 = vmul.f32 %v5117_v2, %v7408_v23  ;;  %v5236_v0 = vmul.f32 %v5117_v2, %v7410_v50  ;;  %v7411_v31 = vld [vmem:[#allocation19_spill] sm:$0xff]  ;;  %v5243_v11 = vadd.f32 %v5206_v57, %v2257_v16 }
 0x329   :  { %v5240_v4 = vmul.f32 %v5117_v2, %v7411_v31  ;;  %v5246_v49 = vadd.f32 %v5206_v57, %v2258_v55  ;;  %v5249_v19 = vadd.f32 %v5206_v57, %v2259_v13  ;;  %v5252_v23 = vadd.f32 %v5206_v57, %v2260_v42 }
 0x32a   :  { %7409 = vst [vmem:[#allocation176_spill] sm:$0xff] %v5232_v40  ;;  %v5255_v40 = vadd.f32 %v5206_v57, %v2261_v33  ;;  %v5258_v50 = vadd.f32 %v5206_v57, %v2262_v60  ;;  %v5261_v31 = vadd.f32 %v5206_v57, %v2263_v24  ;;  %v5264_v16 = vadd.f32 %v5206_v57, %v2264_v62 }
 0x32b   :  { %7412 = vst [vmem:[#allocation180_spill] sm:$0xff] %v5249_v19  ;;  %v5267_v55 = vadd.f32 %v5206_v57, %v2265_v46  ;;  %v5270_v13 = vadd.f32 %v5206_v57, %v2266_v27  ;;  %v5273_v42 = vadd.f32 %v5206_v57, %v2267_v52  ;;  %v5276_v33 = vadd.f32 %v5206_v57, %v2268_v56 }
 0x32c   :  { %7413 = vst [vmem:[#allocation184_spill] sm:$0xff] %v5252_v23  ;;  %v5279_v60 = vadd.f32 %v5206_v57, %v2269_v47  ;;  %v5282_v24 = vadd.f32 %v5206_v57, %v2270_v1  ;;  %v5285_v62 = vadd.f32 %v5206_v57, %v2271_v20  ;;  %v5288_v46 = vadd.f32 %v5206_v57, %v2272_v36 }
 0x32d   :  { %7414 = vst [vmem:[#allocation188_spill] sm:$0xff] %v5255_v40  ;;  %v5291_v27 = vadd.f32 %v5206_v57, %v2273_v9  ;;  %v5294_v52 = vadd.f32 %v5206_v57, %v2274_v32  ;;  %v5297_v56 = vadd.f32 %v5206_v57, %v2275_v51  ;;  %v5300_v47 = vadd.f32 %v5206_v57, %v2276_v34 }
 0x32e   :  { %7415 = vst [vmem:[#allocation2_spill] sm:$0xff] %v5258_v50  ;;  %v5303_v1 = vadd.f32 %v5206_v57, %v2277_v54  ;;  %v5306_v20 = vadd.f32 %v5206_v57, %v2278_v37  ;;  %v5309_v36 = vadd.f32 %v5206_v57, %v2279_v29  ;;  %v5312_v9 = vadd.f32 %v5206_v57, %v2280_v45 }
 0x32f   :  { %7416 = vst [vmem:[#allocation6_spill] sm:$0xff] %v5261_v31  ;;  %v5315_v32 = vadd.f32 %v5206_v57, %v2281_v6  ;;  %v5318_v51 = vadd.f32 %v5206_v57, %v2282_v26  ;;  %v5321_v34 = vadd.f32 %v5206_v57, %v2283_v38  ;;  %v5324_v54 = vadd.f32 %v5206_v57, %v2284_v7  ;;  %v7642_v31 = vld [vmem:[#allocation190_spill] sm:$0xff] }
 0x330   :  { %7417 = vst [vmem:[#allocation10_spill] sm:$0xff] %v5264_v16  ;;  %v5327_v37 = vadd.f32 %v5206_v57, %v2285_v14  ;;  %v5330_v29 = vadd.f32 %v5206_v57, %v2286_v28  ;;  %v5333_v45 = vadd.f32 %v5206_v57, %v2287_v5  ;;  %v5336_v6 = vadd.f32 %v5206_v57, %v2288_v10  ;;  %v7500_v16 = vld [vmem:[#allocation189_spill] sm:$0xff] }
 0x331   :  { %7418 = vst [vmem:[#allocation14_spill] sm:$0xff] %v5267_v55  ;;  %v5339_v26 = vadd.f32 %v5206_v57, %v2289_v15  ;;  %v5342_v38 = vadd.f32 %v5206_v57, %v2290_v8  ;;  %v5345_v7 = vadd.f32 %v5206_v57, %v2291_v35  ;;  %v5348_v14 = vadd.f32 %v5206_v57, %v2292_v41  ;;  %v7499_v55 = vld [vmem:[#allocation185_spill] sm:$0xff] }
 0x332   :  { %7419 = vst [vmem:[#allocation18_spill] sm:$0xff] %v5270_v13  ;;  %v5351_v28 = vadd.f32 %v5206_v57, %v2293_v30  ;;  %v5354_v5 = vadd.f32 %v5206_v57, %v2294_v48  ;;  %v5357_v10 = vadd.f32 %v5206_v57, %v2295_v61  ;;  %v5360_v15 = vadd.f32 %v5206_v57, %v2296_v3  ;;  %v7498_v13 = vld [vmem:[#allocation181_spill] sm:$0xff] }
 0x333   :  { %7420 = vst [vmem:[#allocation22_spill] sm:$0xff] %v5273_v42  ;;  %v5363_v8 = vadd.f32 %v5206_v57, %v2297_v44  ;;  %v5366_v35 = vadd.f32 %v5206_v57, %v2298_v39  ;;  %v5369_v41 = vadd.f32 %v5206_v57, %v2299_v63  ;;  %v5372_v30 = vadd.f32 %v5206_v57, %v2300_v18  ;;  %v7459_v63 = vld [vmem:[#allocation23_spill] sm:$0xff]  ;;  %v7497_v42 = vld [vmem:[#allocation177_spill] sm:$0xff] }
 0x334   :  { %7421 = vst [vmem:[#allocation26_spill] sm:$0xff] %v5276_v33  ;;  %v5375_v48 = vadd.f32 %v5206_v57, %v2301_v12  ;;  %v5378_v61 = vadd.f32 %v5206_v57, %v2302_v25  ;;  %v5381_v3 = vadd.f32 %v5206_v57, %v2303_v58  ;;  %v5384_v44 = vadd.f32 %v5206_v57, %v2304_v53  ;;  %v7460_v18 = vld [vmem:[#allocation27_spill] sm:$0xff]  ;;  %v7496_v33 = vld [vmem:[#allocation173_spill] sm:$0xff] }
 0x335   :  { %7422 = vst [vmem:[#allocation30_spill] sm:$0xff] %v5279_v60  ;;  %v5387_v39 = vadd.f32 %v5206_v57, %v2305_v21  ;;  %v7461_v12 = vld [vmem:[#allocation31_spill] sm:$0xff]  ;;  %v7495_v60 = vld [vmem:[#allocation170_spill] sm:$0xff] }
 0x336   :  { %7423 = vst [vmem:[#allocation34_spill] sm:$0xff] %v5282_v24  ;;  %v7462_v25 = vld [vmem:[#allocation35_spill] sm:$0xff] }
 0x337   :  { %7424 = vst [vmem:[#allocation38_spill] sm:$0xff] %v5285_v62  ;;  %v7463_v58 = vld [vmem:[#allocation39_spill] sm:$0xff]  ;;  %v7493_v62 = vld [vmem:[#allocation164_spill] sm:$0xff] }
 0x338   :  { %7425 = vst [vmem:[#allocation42_spill] sm:$0xff] %v5288_v46  ;;  %v7464_v53 = vld [vmem:[#allocation43_spill] sm:$0xff]  ;;  %v7492_v46 = vld [vmem:[#allocation161_spill] sm:$0xff] }
 0x339   :  { %7426 = vst [vmem:[#allocation46_spill] sm:$0xff] %v5291_v27  ;;  %v7465_v21 = vld [vmem:[#allocation47_spill] sm:$0xff]  ;;  %v7491_v27 = vld [vmem:[#allocation158_spill] sm:$0xff] }
 0x33a   :  { %7427 = vst [vmem:[#allocation50_spill] sm:$0xff] %v5294_v52  ;;  %v7490_v52 = vld [vmem:[#allocation155_spill] sm:$0xff] }
 0x33b   :  { %7428 = vst [vmem:[#allocation54_spill] sm:$0xff] %v5297_v56  ;;  %v7489_v56 = vld [vmem:[#allocation151_spill] sm:$0xff] }
 0x33c   :  { %7429 = vst [vmem:[#allocation58_spill] sm:$0xff] %v5300_v47  ;;  %v7488_v47 = vld [vmem:[#allocation147_spill] sm:$0xff] }
 0x33d   :  { %7430 = vst [vmem:[#allocation62_spill] sm:$0xff] %v5303_v1  ;;  %v7487_v1 = vld [vmem:[#allocation143_spill] sm:$0xff] }
 0x33e   :  { %7431 = vst [vmem:[#allocation66_spill] sm:$0xff] %v5306_v20  ;;  %v7486_v20 = vld [vmem:[#allocation139_spill] sm:$0xff] }
 0x33f   :  { %7432 = vst [vmem:[#allocation70_spill] sm:$0xff] %v5309_v36  ;;  %v7485_v36 = vld [vmem:[#allocation127_spill] sm:$0xff] }
 0x340   :  { %7433 = vst [vmem:[#allocation74_spill] sm:$0xff] %v5312_v9  ;;  %v7484_v9 = vld [vmem:[#allocation123_spill] sm:$0xff] }
 0x341   :  { %7434 = vst [vmem:[#allocation78_spill] sm:$0xff] %v5315_v32  ;;  %v7483_v32 = vld [vmem:[#allocation119_spill] sm:$0xff] }
 0x342   :  { %7435 = vst [vmem:[#allocation82_spill] sm:$0xff] %v5318_v51  ;;  %v7482_v51 = vld [vmem:[#allocation115_spill] sm:$0xff] }
 0x343   :  { %7436 = vst [vmem:[#allocation86_spill] sm:$0xff] %v5321_v34  ;;  %v7481_v34 = vld [vmem:[#allocation111_spill] sm:$0xff] }
 0x344   :  { %7437 = vst [vmem:[#allocation90_spill] sm:$0xff] %v5324_v54  ;;  %v7480_v54 = vld [vmem:[#allocation107_spill] sm:$0xff] }
 0x345   :  { %7438 = vst [vmem:[#allocation94_spill] sm:$0xff] %v5327_v37  ;;  %v7479_v37 = vld [vmem:[#allocation103_spill] sm:$0xff] }
 0x346   :  { %7439 = vst [vmem:[#allocation98_spill] sm:$0xff] %v5330_v29  ;;  %v7478_v29 = vld [vmem:[#allocation99_spill] sm:$0xff] }
 0x347   :  { %7440 = vst [vmem:[#allocation102_spill] sm:$0xff] %v5333_v45  ;;  %v7477_v45 = vld [vmem:[#allocation95_spill] sm:$0xff] }
 0x348   :  { %7441 = vst [vmem:[#allocation106_spill] sm:$0xff] %v5336_v6  ;;  %v7476_v6 = vld [vmem:[#allocation91_spill] sm:$0xff] }
 0x349   :  { %7442 = vst [vmem:[#allocation110_spill] sm:$0xff] %v5339_v26  ;;  %v7475_v26 = vld [vmem:[#allocation87_spill] sm:$0xff] }
 0x34a   :  { %7443 = vst [vmem:[#allocation114_spill] sm:$0xff] %v5342_v38  ;;  %v7474_v38 = vld [vmem:[#allocation83_spill] sm:$0xff] }
 0x34b   :  { %7444 = vst [vmem:[#allocation118_spill] sm:$0xff] %v5345_v7  ;;  %v7473_v7 = vld [vmem:[#allocation79_spill] sm:$0xff] }
 0x34c   :  { %7445 = vst [vmem:[#allocation122_spill] sm:$0xff] %v5348_v14  ;;  %v7472_v14 = vld [vmem:[#allocation75_spill] sm:$0xff] }
 0x34d   :  { %7446 = vst [vmem:[#allocation126_spill] sm:$0xff] %v5351_v28  ;;  %v7471_v28 = vld [vmem:[#allocation71_spill] sm:$0xff] }
 0x34e   :  { %7447 = vst [vmem:[#allocation130_spill] sm:$0xff] %v5354_v5  ;;  %v7470_v5 = vld [vmem:[#allocation67_spill] sm:$0xff] }
 0x34f   :  { %7448 = vst [vmem:[#allocation134_spill] sm:$0xff] %v5357_v10  ;;  %v7469_v10 = vld [vmem:[#allocation63_spill] sm:$0xff] }
 0x350   :  { %7449 = vst [vmem:[#allocation138_spill] sm:$0xff] %v5360_v15  ;;  %v7468_v15 = vld [vmem:[#allocation59_spill] sm:$0xff] }
 0x351   :  { %7450 = vst [vmem:[#allocation142_spill] sm:$0xff] %v5363_v8  ;;  %v7467_v8 = vld [vmem:[#allocation55_spill] sm:$0xff] }
 0x352   :  { %7451 = vst [vmem:[#allocation146_spill] sm:$0xff] %v5366_v35  ;;  %v7466_v35 = vld [vmem:[#allocation51_spill] sm:$0xff] }
 0x353   :  { %7452 = vst [vmem:[#allocation150_spill] sm:$0xff] %v5369_v41  ;;  %v2363_v41 = vmul.f32 %v5117_v2, %v7459_v63  ;;  %v2370_v63 = vmul.f32 %v5117_v2, %v7466_v35  ;;  %v2377_v35 = vmul.f32 %v5117_v2, %v7473_v7  ;;  %v2384_v7 = vmul.f32 %v5117_v2, %v7480_v54  ;;  %v7494_v24 = vld [vmem:[#allocation167_spill] sm:$0xff] }
 0x354   :  { %7453 = vst [vmem:[#allocation154_spill] sm:$0xff] %v5372_v30  ;;  %v2364_v30 = vmul.f32 %v5117_v2, %v7460_v18  ;;  %v2371_v18 = vmul.f32 %v5117_v2, %v7467_v8  ;;  %v2378_v8 = vmul.f32 %v5117_v2, %v7474_v38  ;;  %v2385_v38 = vmul.f32 %v5117_v2, %v7481_v34 }
 0x355   :  { %7454 = vst [vmem:[#allocation3_spill] sm:$0xff] %v5375_v48  ;;  %v2365_v48 = vmul.f32 %v5117_v2, %v7461_v12  ;;  %v2372_v12 = vmul.f32 %v5117_v2, %v7468_v15  ;;  %v2379_v15 = vmul.f32 %v5117_v2, %v7475_v26  ;;  %v2386_v26 = vmul.f32 %v5117_v2, %v7482_v51 }
 0x356   :  { %7455 = vst [vmem:[#allocation7_spill] sm:$0xff] %v5378_v61  ;;  %v2366_v61 = vmul.f32 %v5117_v2, %v7462_v25  ;;  %v2373_v25 = vmul.f32 %v5117_v2, %v7469_v10  ;;  %v2380_v10 = vmul.f32 %v5117_v2, %v7476_v6  ;;  %v2387_v6 = vmul.f32 %v5117_v2, %v7483_v32 }
 0x357   :  { %7456 = vst [vmem:[#allocation11_spill] sm:$0xff] %v5381_v3  ;;  %v2367_v3 = vmul.f32 %v5117_v2, %v7463_v58  ;;  %v2374_v58 = vmul.f32 %v5117_v2, %v7470_v5  ;;  %v2381_v5 = vmul.f32 %v5117_v2, %v7477_v45  ;;  %v2388_v45 = vmul.f32 %v5117_v2, %v7484_v9 }
 0x358   :  { %7457 = vst [vmem:[#allocation15_spill] sm:$0xff] %v5384_v44  ;;  %v2368_v44 = vmul.f32 %v5117_v2, %v7464_v53  ;;  %v2375_v53 = vmul.f32 %v5117_v2, %v7471_v28  ;;  %v2382_v28 = vmul.f32 %v5117_v2, %v7478_v29  ;;  %v2389_v29 = vmul.f32 %v5117_v2, %v7485_v36 }
 0x359   :  { %7458 = vst [vmem:[#allocation19_spill] sm:$0xff] %v5387_v39  ;;  %v2369_v39 = vmul.f32 %v5117_v2, %v7465_v21  ;;  %v2376_v21 = vmul.f32 %v5117_v2, %v7472_v14  ;;  %v2383_v14 = vmul.f32 %v5117_v2, %v7479_v37  ;;  %v2390_v37 = vmul.f32 %v5117_v2, %v7294_v22 }
 0x35a   :  { %v2391_v54 = vmul.f32 %v5117_v2, %v7299_v43  ;;  %v2392_v34 = vmul.f32 %v5117_v2, %v7486_v20  ;;  %v2393_v51 = vmul.f32 %v5117_v2, %v7487_v1  ;;  %v2394_v32 = vmul.f32 %v5117_v2, %v7488_v47 }
 0x35b   :  { %v2395_v9 = vmul.f32 %v5117_v2, %v7489_v56  ;;  %v2396_v36 = vmul.f32 %v5117_v2, %v7490_v52  ;;  %v2397_v22 = vmul.f32 %v5117_v2, %v7491_v27  ;;  %v2398_v43 = vmul.f32 %v5117_v2, %v7492_v46 }
 0x35c   :  { %v2399_v20 = vmul.f32 %v5117_v2, %v7493_v62  ;;  %v2400_v1 = vmul.f32 %v5117_v2, %v7494_v24  ;;  %v2401_v47 = vmul.f32 %v5117_v2, %v7495_v60  ;;  %v2402_v56 = vmul.f32 %v5117_v2, %v7496_v33  ;;  %v7503_v33 = vld [vmem:[#allocation176_spill] sm:$0xff] }
 0x35d   :  { %v2403_v52 = vmul.f32 %v5117_v2, %v7497_v42  ;;  %v2404_v27 = vmul.f32 %v5117_v2, %v7498_v13  ;;  %v2405_v46 = vmul.f32 %v5117_v2, %v7499_v55  ;;  %v2406_v62 = vmul.f32 %v5117_v2, %v7500_v16 }
 0x35e   :  { %v5479_v24 = vadd.f32 %v5224_v59, %v5206_v57  ;;  %v5483_v60 = vadd.f32 %v5228_v17, %v5206_v57  ;;  %v5487_v42 = vadd.f32 %v7503_v33, %v5206_v57  ;;  %v5491_v13 = vadd.f32 %v5236_v0, %v5206_v57 }
 0x35f   :  { %v5495_v55 = vadd.f32 %v5240_v4, %v5206_v57  ;;  %v5498_v16 = vadd.f32 %v2363_v41, %v5206_v57  ;;  %v5501_v59 = vadd.f32 %v2364_v30, %v5206_v57  ;;  %v5504_v17 = vadd.f32 %v2365_v48, %v5206_v57 }
 0x360   :  { %7501 = vst [vmem:[#allocation23_spill] sm:$0xff] %v5479_v24  ;;  %v5507_v33 = vadd.f32 %v2366_v61, %v5206_v57  ;;  %v5510_v2 = vadd.f32 %v2367_v3, %v5206_v57  ;;  %v5513_v0 = vadd.f32 %v2368_v44, %v5206_v57  ;;  %v5516_v4 = vadd.f32 %v2369_v39, %v5206_v57  ;;  %v7634_v24 = vld [vmem:[#allocation162_spill] sm:$0xff] }
 0x361   :  { %7502 = vst [vmem:[#allocation27_spill] sm:$0xff] %v5483_v60  ;;  %v5519_v41 = vadd.f32 %v2370_v63, %v5206_v57  ;;  %v5522_v30 = vadd.f32 %v2371_v18, %v5206_v57  ;;  %v5525_v48 = vadd.f32 %v2372_v12, %v5206_v57  ;;  %v5528_v61 = vadd.f32 %v2373_v25, %v5206_v57  ;;  %v7633_v60 = vld [vmem:[#allocation159_spill] sm:$0xff] }
 0x362   :  { %7504 = vst [vmem:[#allocation31_spill] sm:$0xff] %v5487_v42  ;;  %v5531_v3 = vadd.f32 %v2374_v58, %v5206_v57  ;;  %v5534_v44 = vadd.f32 %v2375_v53, %v5206_v57  ;;  %v5537_v39 = vadd.f32 %v2376_v21, %v5206_v57  ;;  %v5540_v63 = vadd.f32 %v2377_v35, %v5206_v57  ;;  %v7632_v42 = vld [vmem:[#allocation156_spill] sm:$0xff] }
 0x363   :  { %7505 = vst [vmem:[#allocation35_spill] sm:$0xff] %v5491_v13  ;;  %v5543_v18 = vadd.f32 %v2378_v8, %v5206_v57  ;;  %v5546_v12 = vadd.f32 %v2379_v15, %v5206_v57  ;;  %v5549_v25 = vadd.f32 %v2380_v10, %v5206_v57  ;;  %v5552_v58 = vadd.f32 %v2381_v5, %v5206_v57  ;;  %v7631_v13 = vld [vmem:[#allocation152_spill] sm:$0xff] }
 0x364   :  { %7506 = vst [vmem:[#allocation39_spill] sm:$0xff] %v5495_v55  ;;  %v5555_v53 = vadd.f32 %v2382_v28, %v5206_v57  ;;  %v5558_v21 = vadd.f32 %v2383_v14, %v5206_v57  ;;  %v5561_v35 = vadd.f32 %v2384_v7, %v5206_v57  ;;  %v5564_v8 = vadd.f32 %v2385_v38, %v5206_v57  ;;  %v7630_v55 = vld [vmem:[#allocation148_spill] sm:$0xff] }
 0x365   :  { %7507 = vst [vmem:[#allocation43_spill] sm:$0xff] %v5498_v16  ;;  %v5567_v15 = vadd.f32 %v2386_v26, %v5206_v57  ;;  %v5570_v10 = vadd.f32 %v2387_v6, %v5206_v57  ;;  %v5573_v5 = vadd.f32 %v2388_v45, %v5206_v57  ;;  %v5576_v28 = vadd.f32 %v2389_v29, %v5206_v57  ;;  %v7629_v16 = vld [vmem:[#allocation144_spill] sm:$0xff] }
 0x366   :  { %7508 = vst [vmem:[#allocation47_spill] sm:$0xff] %v5501_v59  ;;  %v5579_v14 = vadd.f32 %v2390_v37, %v5206_v57  ;;  %v5582_v7 = vadd.f32 %v2391_v54, %v5206_v57  ;;  %v5585_v38 = vadd.f32 %v2392_v34, %v5206_v57  ;;  %v5588_v26 = vadd.f32 %v2393_v51, %v5206_v57  ;;  %v7628_v59 = vld [vmem:[#allocation140_spill] sm:$0xff] }
 0x367   :  { %7509 = vst [vmem:[#allocation51_spill] sm:$0xff] %v5504_v17  ;;  %v5591_v6 = vadd.f32 %v2394_v32, %v5206_v57  ;;  %v5594_v45 = vadd.f32 %v2395_v9, %v5206_v57  ;;  %v5597_v29 = vadd.f32 %v2396_v36, %v5206_v57  ;;  %v5600_v37 = vadd.f32 %v2397_v22, %v5206_v57  ;;  %v7627_v17 = vld [vmem:[#allocation136_spill] sm:$0xff] }
 0x368   :  { %7510 = vst [vmem:[#allocation55_spill] sm:$0xff] %v5507_v33  ;;  %v5603_v54 = vadd.f32 %v2398_v43, %v5206_v57  ;;  %v5606_v34 = vadd.f32 %v2399_v20, %v5206_v57  ;;  %v5609_v51 = vadd.f32 %v2400_v1, %v5206_v57  ;;  %v5612_v32 = vadd.f32 %v2401_v47, %v5206_v57  ;;  %v7626_v33 = vld [vmem:[#allocation132_spill] sm:$0xff]  ;;  %v7640_v47 = vld [vmem:[#allocation182_spill] sm:$0xff] }
 0x369   :  { %7511 = vst [vmem:[#allocation59_spill] sm:$0xff] %v5510_v2  ;;  %v5615_v9 = vadd.f32 %v2402_v56, %v5206_v57  ;;  %v5618_v36 = vadd.f32 %v2403_v52, %v5206_v57  ;;  %v5621_v22 = vadd.f32 %v2404_v27, %v5206_v57  ;;  %v5624_v43 = vadd.f32 %v2405_v46, %v5206_v57  ;;  %v7625_v2 = vld [vmem:[#allocation128_spill] sm:$0xff]  ;;  %v7637_v27 = vld [vmem:[#allocation171_spill] sm:$0xff]  ;;  %v7638_v52 = vld [vmem:[#allocation174_spill] sm:$0xff] }
 0x36a   :  { %7512 = vst [vmem:[#allocation63_spill] sm:$0xff] %v5513_v0  ;;  %v5627_v20 = vadd.f32 %v2406_v62, %v5206_v57  ;;  %v7624_v0 = vld [vmem:[#allocation124_spill] sm:$0xff]  ;;  %v7635_v62 = vld [vmem:[#allocation165_spill] sm:$0xff]  ;;  %v7639_v56 = vld [vmem:[#allocation178_spill] sm:$0xff] }
 0x36b   :  { %7513 = vst [vmem:[#allocation67_spill] sm:$0xff] %v5516_v4  ;;  %v7623_v4 = vld [vmem:[#allocation120_spill] sm:$0xff]  ;;  %v7641_v1 = vld [vmem:[#allocation186_spill] sm:$0xff] }
 0x36c   :  { %7514 = vst [vmem:[#allocation71_spill] sm:$0xff] %v5519_v41  ;;  %v7622_v41 = vld [vmem:[#allocation116_spill] sm:$0xff] }
 0x36d   :  { %7515 = vst [vmem:[#allocation75_spill] sm:$0xff] %v5522_v30  ;;  %v7621_v30 = vld [vmem:[#allocation112_spill] sm:$0xff] }
 0x36e   :  { %7516 = vst [vmem:[#allocation79_spill] sm:$0xff] %v5525_v48  ;;  %v7620_v48 = vld [vmem:[#allocation108_spill] sm:$0xff] }
 0x36f   :  { %7517 = vst [vmem:[#allocation83_spill] sm:$0xff] %v5528_v61  ;;  %v7619_v61 = vld [vmem:[#allocation104_spill] sm:$0xff] }
 0x370   :  { %7518 = vst [vmem:[#allocation87_spill] sm:$0xff] %v5531_v3  ;;  %v7618_v3 = vld [vmem:[#allocation100_spill] sm:$0xff] }
 0x371   :  { %7519 = vst [vmem:[#allocation91_spill] sm:$0xff] %v5534_v44  ;;  %v7617_v44 = vld [vmem:[#allocation96_spill] sm:$0xff] }
 0x372   :  { %7520 = vst [vmem:[#allocation95_spill] sm:$0xff] %v5537_v39  ;;  %v7616_v39 = vld [vmem:[#allocation92_spill] sm:$0xff] }
 0x373   :  { %7521 = vst [vmem:[#allocation99_spill] sm:$0xff] %v5540_v63  ;;  %v7615_v63 = vld [vmem:[#allocation88_spill] sm:$0xff] }
 0x374   :  { %7522 = vst [vmem:[#allocation103_spill] sm:$0xff] %v5543_v18  ;;  %v7614_v18 = vld [vmem:[#allocation84_spill] sm:$0xff] }
 0x375   :  { %7523 = vst [vmem:[#allocation107_spill] sm:$0xff] %v5546_v12  ;;  %v7613_v12 = vld [vmem:[#allocation80_spill] sm:$0xff] }
 0x376   :  { %7524 = vst [vmem:[#allocation111_spill] sm:$0xff] %v5549_v25  ;;  %v7612_v25 = vld [vmem:[#allocation76_spill] sm:$0xff] }
 0x377   :  { %7525 = vst [vmem:[#allocation115_spill] sm:$0xff] %v5552_v58  ;;  %v7611_v58 = vld [vmem:[#allocation72_spill] sm:$0xff] }
 0x378   :  { %7526 = vst [vmem:[#allocation119_spill] sm:$0xff] %v5555_v53  ;;  %v7610_v53 = vld [vmem:[#allocation68_spill] sm:$0xff] }
 0x379   :  { %7527 = vst [vmem:[#allocation123_spill] sm:$0xff] %v5558_v21  ;;  %v7609_v21 = vld [vmem:[#allocation64_spill] sm:$0xff] }
 0x37a   :  { %7528 = vst [vmem:[#allocation127_spill] sm:$0xff] %v5561_v35  ;;  %v7608_v35 = vld [vmem:[#allocation60_spill] sm:$0xff] }
 0x37b   :  { %7529 = vst [vmem:[#allocation139_spill] sm:$0xff] %v5564_v8  ;;  %v7593_v8 = vld [vmem:[#allocation4_spill] sm:$0xff] }
 0x37c   :  { %7530 = vst [vmem:[#allocation143_spill] sm:$0xff] %v5567_v15  ;;  %v7595_v15 = vld [vmem:[#allocation8_spill] sm:$0xff] }
 0x37d   :  { %7531 = vst [vmem:[#allocation147_spill] sm:$0xff] %v5570_v10  ;;  %v7607_v10 = vld [vmem:[#allocation56_spill] sm:$0xff] }
 0x37e   :  { %7532 = vst [vmem:[#allocation151_spill] sm:$0xff] %v5573_v5  ;;  %v7606_v5 = vld [vmem:[#allocation52_spill] sm:$0xff] }
 0x37f   :  { %7533 = vst [vmem:[#allocation155_spill] sm:$0xff] %v5576_v28  ;;  %v7605_v28 = vld [vmem:[#allocation48_spill] sm:$0xff] }
 0x380   :  { %7534 = vst [vmem:[#allocation158_spill] sm:$0xff] %v5579_v14  ;;  %v7604_v14 = vld [vmem:[#allocation44_spill] sm:$0xff] }
 0x381   :  { %7535 = vst [vmem:[#allocation161_spill] sm:$0xff] %v5582_v7  ;;  %v7603_v7 = vld [vmem:[#allocation40_spill] sm:$0xff] }
 0x382   :  { %7536 = vst [vmem:[#allocation164_spill] sm:$0xff] %v5585_v38  ;;  %v7602_v38 = vld [vmem:[#allocation36_spill] sm:$0xff] }
 0x383   :  { %7537 = vst [vmem:[#allocation167_spill] sm:$0xff] %v5588_v26  ;;  %v7594_v26 = vld [vmem:[#allocation131_spill] sm:$0xff]  ;;  %v7636_v46 = vld [vmem:[#allocation168_spill] sm:$0xff] }
 0x384   :  { %7538 = vst [vmem:[#allocation170_spill] sm:$0xff] %v5591_v6  ;;  %v2506_v6 = vmul.f32 %v7594_v26, %v7595_v15  ;;  %v2513_v15 = vmul.f32 %v7594_v26, %v7602_v38  ;;  %v2520_v38 = vmul.f32 %v7594_v26, %v7609_v21  ;;  %v2527_v21 = vmul.f32 %v7594_v26, %v7616_v39 }
 0x385   :  { %7539 = vst [vmem:[#allocation173_spill] sm:$0xff] %v5594_v45  ;;  %v2534_v39 = vmul.f32 %v7594_v26, %v7623_v4  ;;  %v2541_v4 = vmul.f32 %v7594_v26, %v7630_v55  ;;  %v2548_v55 = vmul.f32 %v7594_v26, %v7637_v27 }
 0x386   :  { %7540 = vst [vmem:[#allocation177_spill] sm:$0xff] %v5597_v29  ;;  %v2555_v50 = vadd.f32 %v2506_v6, %v5206_v57 }
 0x387   :  { %7541 = vst [vmem:[#allocation181_spill] sm:$0xff] %v5600_v37 }
 0x388   :  { %7542 = vst [vmem:[#allocation185_spill] sm:$0xff] %v5603_v54 }
 0x389   :  { %7543 = vst [vmem:[#allocation189_spill] sm:$0xff] %v5606_v34 }
 0x38a   :  { %7544 = vst [vmem:[#allocation176_spill] sm:$0xff] %v5609_v51  ;;  %v2505_v51 = vmul.f32 %v7594_v26, %v7593_v8 }
 0x38b   :  { %7545 = vst [vmem:[#allocation192_spill] sm:$0xff] %v5612_v32  ;;  %v7596_v32 = vld [vmem:[#allocation12_spill] sm:$0xff] }
 0x38c   :  { %7546 = vst [vmem:[#allocation193_spill] sm:$0xff] %v5615_v9  ;;  %v2507_v45 = vmul.f32 %v7594_v26, %v7596_v32  ;;  %v7597_v9 = vld [vmem:[#allocation16_spill] sm:$0xff]  ;;  %v2514_v32 = vmul.f32 %v7594_v26, %v7603_v7  ;;  %v2521_v7 = vmul.f32 %v7594_v26, %v7610_v53  ;;  %v2528_v53 = vmul.f32 %v7594_v26, %v7617_v44 }
 0x38d   :  { %7547 = vst [vmem:[#allocation194_spill] sm:$0xff] %v5618_v36  ;;  %v2508_v29 = vmul.f32 %v7594_v26, %v7597_v9  ;;  %v7598_v36 = vld [vmem:[#allocation20_spill] sm:$0xff]  ;;  %v2515_v9 = vmul.f32 %v7594_v26, %v7604_v14  ;;  %v2522_v14 = vmul.f32 %v7594_v26, %v7611_v58  ;;  %v2529_v58 = vmul.f32 %v7594_v26, %v7618_v3 }
 0x38e   :  { %7548 = vst [vmem:[#allocation195_spill] sm:$0xff] %v5621_v22  ;;  %v2509_v37 = vmul.f32 %v7594_v26, %v7598_v36  ;;  %v7599_v22 = vld [vmem:[#allocation24_spill] sm:$0xff]  ;;  %v2516_v36 = vmul.f32 %v7594_v26, %v7605_v28  ;;  %v2523_v28 = vmul.f32 %v7594_v26, %v7612_v25  ;;  %v2530_v25 = vmul.f32 %v7594_v26, %v7619_v61 }
 0x38f   :  { %7549 = vst [vmem:[#allocation196_spill] sm:$0xff] %v5624_v43  ;;  %v2510_v54 = vmul.f32 %v7594_v26, %v7599_v22  ;;  %v7600_v43 = vld [vmem:[#allocation28_spill] sm:$0xff]  ;;  %v2517_v22 = vmul.f32 %v7594_v26, %v7606_v5  ;;  %v2524_v5 = vmul.f32 %v7594_v26, %v7613_v12  ;;  %v2531_v12 = vmul.f32 %v7594_v26, %v7620_v48 }
 0x390   :  { %7550 = vst [vmem:[#allocation197_spill] sm:$0xff] %v5627_v20  ;;  %v2511_v34 = vmul.f32 %v7594_v26, %v7600_v43  ;;  %v7601_v20 = vld [vmem:[#allocation32_spill] sm:$0xff]  ;;  %v2518_v43 = vmul.f32 %v7594_v26, %v7607_v10  ;;  %v2525_v10 = vmul.f32 %v7594_v26, %v7614_v18  ;;  %v2532_v18 = vmul.f32 %v7594_v26, %v7621_v30 }
 0x391   :  { %v2512_v8 = vmul.f32 %v7594_v26, %v7601_v20  ;;  %v2519_v20 = vmul.f32 %v7594_v26, %v7608_v35  ;;  %v2526_v35 = vmul.f32 %v7594_v26, %v7615_v63  ;;  %v2533_v63 = vmul.f32 %v7594_v26, %v7622_v41 }
 0x392   :  { %v2535_v44 = vmul.f32 %v7594_v26, %v7624_v0  ;;  %v2536_v3 = vmul.f32 %v7594_v26, %v7625_v2  ;;  %v2537_v61 = vmul.f32 %v7594_v26, %v7626_v33  ;;  %v2538_v48 = vmul.f32 %v7594_v26, %v7627_v17 }
 0x393   :  { %v2539_v30 = vmul.f32 %v7594_v26, %v7628_v59  ;;  %v2540_v41 = vmul.f32 %v7594_v26, %v7629_v16  ;;  %v2542_v0 = vmul.f32 %v7594_v26, %v7631_v13  ;;  %v2543_v2 = vmul.f32 %v7594_v26, %v7632_v42 }
 0x394   :  { %v2544_v33 = vmul.f32 %v7594_v26, %v7633_v60  ;;  %v2545_v17 = vmul.f32 %v7594_v26, %v7634_v24  ;;  %v2546_v59 = vmul.f32 %v7594_v26, %v7635_v62  ;;  %v2547_v16 = vmul.f32 %v7594_v26, %v7636_v46 }
 0x395   :  { %v2549_v13 = vmul.f32 %v7594_v26, %v7638_v52  ;;  %v2550_v42 = vmul.f32 %v7594_v26, %v7639_v56  ;;  %v2551_v60 = vmul.f32 %v7594_v26, %v7640_v47  ;;  %v2552_v24 = vmul.f32 %v7594_v26, %v7641_v1 }
 0x396   :  { %v2553_v62 = vmul.f32 %v7594_v26, %v7642_v31  ;;  %v2554_v46 = vadd.f32 %v2505_v51, %v5206_v57  ;;  %v2556_v27 = vadd.f32 %v2507_v45, %v5206_v57  ;;  %v2557_v52 = vadd.f32 %v2508_v29, %v5206_v57 }
 0x397   :  { %v2558_v40 = vadd.f32 %v2509_v37, %v5206_v57  ;;  %v2559_v56 = vadd.f32 %v2510_v54, %v5206_v57  ;;  %v2560_v47 = vadd.f32 %v2511_v34, %v5206_v57  ;;  %v2561_v23 = vadd.f32 %v2512_v8, %v5206_v57 }
 0x398   :  { %v2562_v1 = vadd.f32 %v2513_v15, %v5206_v57  ;;  %v2563_v31 = vadd.f32 %v2514_v32, %v5206_v57  ;;  %v2564_v51 = vadd.f32 %v2515_v9, %v5206_v57  ;;  %v2565_v6 = vadd.f32 %v2516_v36, %v5206_v57 }
 0x399   :  { %v2566_v45 = vadd.f32 %v2517_v22, %v5206_v57  ;;  %v2567_v29 = vadd.f32 %v2518_v43, %v5206_v57  ;;  %v2568_v37 = vadd.f32 %v2519_v20, %v5206_v57  ;;  %v2569_v54 = vadd.f32 %v2520_v38, %v5206_v57 }
 0x39a   :  { %v2570_v34 = vadd.f32 %v2521_v7, %v5206_v57  ;;  %v2571_v8 = vadd.f32 %v2522_v14, %v5206_v57  ;;  %v2572_v15 = vadd.f32 %v2523_v28, %v5206_v57  ;;  %v2573_v32 = vadd.f32 %v2524_v5, %v5206_v57 }
 0x39b   :  { %v2574_v9 = vadd.f32 %v2525_v10, %v5206_v57  ;;  %v2575_v36 = vadd.f32 %v2526_v35, %v5206_v57  ;;  %v2576_v22 = vadd.f32 %v2527_v21, %v5206_v57  ;;  %v2577_v43 = vadd.f32 %v2528_v53, %v5206_v57 }
 0x39c   :  { %v2578_v20 = vadd.f32 %v2529_v58, %v5206_v57  ;;  %v2579_v38 = vadd.f32 %v2530_v25, %v5206_v57  ;;  %v2580_v7 = vadd.f32 %v2531_v12, %v5206_v57  ;;  %v2581_v14 = vadd.f32 %v2532_v18, %v5206_v57 }
 0x39d   :  { %v2582_v28 = vadd.f32 %v2533_v63, %v5206_v57  ;;  %v2583_v5 = vadd.f32 %v2534_v39, %v5206_v57  ;;  %v2584_v10 = vadd.f32 %v2535_v44, %v5206_v57  ;;  %v2585_v35 = vadd.f32 %v2536_v3, %v5206_v57 }
 0x39e   :  { %v2586_v21 = vadd.f32 %v2537_v61, %v5206_v57  ;;  %v2587_v53 = vadd.f32 %v2538_v48, %v5206_v57  ;;  %v2588_v58 = vadd.f32 %v2539_v30, %v5206_v57  ;;  %v2589_v25 = vadd.f32 %v2540_v41, %v5206_v57 }
 0x39f   :  { %v2590_v12 = vadd.f32 %v2541_v4, %v5206_v57  ;;  %v2591_v18 = vadd.f32 %v2542_v0, %v5206_v57  ;;  %v2592_v63 = vadd.f32 %v2543_v2, %v5206_v57  ;;  %v2593_v39 = vadd.f32 %v2544_v33, %v5206_v57  ;;  %v7643_v33 = vld [vmem:[#allocation23_spill] sm:$0xff] }
 0x3a0   :  { %v2594_v44 = vadd.f32 %v2545_v17, %v5206_v57  ;;  %v2595_v3 = vadd.f32 %v2546_v59, %v5206_v57  ;;  %v2596_v61 = vadd.f32 %v2547_v16, %v5206_v57  ;;  %v2597_v48 = vadd.f32 %v2548_v55, %v5206_v57  ;;  %v7646_v59 = vld [vmem:[#allocation27_spill] sm:$0xff]  ;;  %v7649_v55 = vld [vmem:[#allocation180_spill] sm:$0xff] }
 0x3a1   :  { %v2598_v30 = vadd.f32 %v2549_v13, %v5206_v57  ;;  %v2599_v41 = vadd.f32 %v2550_v42, %v5206_v57  ;;  %v2600_v4 = vadd.f32 %v2551_v60, %v5206_v57  ;;  %v2601_v0 = vadd.f32 %v2552_v24, %v5206_v57  ;;  %v7650_v13 = vld [vmem:[#allocation31_spill] sm:$0xff]  ;;  %v7653_v24 = vld [vmem:[#allocation184_spill] sm:$0xff] }
 0x3a2   :  { %v2602_v2 = vadd.f32 %v2553_v62, %v5206_v57  ;;  %v7644_v26 = vmax.f32 %v5243_v11, %v7643_v33  ;;  %v7647_v16 = vmax.f32 %v5246_v49, %v7646_v59  ;;  %v7651_v42 = vmax.f32 %v7649_v55, %v7650_v13  ;;  %v7654_v57 = vld [vmem:[#allocation35_spill] sm:$0xff]  ;;  %v7656_v33 = vld [vmem:[#allocation188_spill] sm:$0xff]  ;;  %v7659_v49 = vld [vmem:[#allocation2_spill] sm:$0xff] }
 0x3a3   :  { %v7655_v62 = vmax.f32 %v7653_v24, %v7654_v57  ;;  %v7660_v59 = vld [vmem:[#allocation43_spill] sm:$0xff]  ;;  %v7668_v24 = vld [vmem:[#allocation14_spill] sm:$0xff] }
 0x3a4   :  { %v5877_v17 = vmax.f32 %v7644_v26, %v2554_v46  ;;  %v5882_v19 = vmax.f32 %v7647_v16, %v2555_v50  ;;  %v5887_v60 = vmax.f32 %v7651_v42, %v2556_v27  ;;  %v7657_v26 = vld [vmem:[#allocation39_spill] sm:$0xff]  ;;  %v7661_v16 = vmax.f32 %v7659_v49, %v7660_v59  ;;  %v7665_v42 = vld [vmem:[#allocation10_spill] sm:$0xff] }
 0x3a5   :  { %v5892_v11 = vmax.f32 %v7655_v62, %v2557_v52  ;;  %v7658_v46 = vmax.f32 %v7656_v33, %v7657_v26  ;;  %v7663_v13 = vld [vmem:[#allocation47_spill] sm:$0xff]  ;;  %v7671_v26 = vld [vmem:[#allocation18_spill] sm:$0xff] }
 0x3a6   :  { %7645 = vst [vmem:[#allocation4_spill] sm:$0xff] %v5877_v17  ;;  %v5902_v50 = vmax.f32 %v7661_v16, %v2559_v56  ;;  %v7669_v62 = vld [vmem:[#allocation55_spill] sm:$0xff]  ;;  %v7675_v59 = vld [vmem:[#allocation22_spill] sm:$0xff] }
 0x3a7   :  { %7648 = vst [vmem:[#allocation8_spill] sm:$0xff] %v5882_v19  ;;  %v5897_v17 = vmax.f32 %v7658_v46, %v2558_v40  ;;  %v7662_v19 = vld [vmem:[#allocation6_spill] sm:$0xff]  ;;  %v7670_v33 = vmax.f32 %v7668_v24, %v7669_v62  ;;  %v7672_v46 = vld [vmem:[#allocation59_spill] sm:$0xff] }
 0x3a8   :  { %7652 = vst [vmem:[#allocation12_spill] sm:$0xff] %v5887_v60  ;;  %v7664_v55 = vmax.f32 %v7662_v19, %v7663_v13  ;;  %v7666_v60 = vld [vmem:[#allocation51_spill] sm:$0xff]  ;;  %v7673_v49 = vmax.f32 %v7671_v26, %v7672_v46  ;;  %v7679_v13 = vld [vmem:[#allocation26_spill] sm:$0xff] }
 0x3a9   :  { %v7667_v57 = vmax.f32 %v7665_v42, %v7666_v60  ;;  %v5917_v40 = vmax.f32 %v7670_v33, %v2562_v1  ;;  %v7676_v16 = vld [vmem:[#allocation63_spill] sm:$0xff]  ;;  %v7683_v42 = vld [vmem:[#allocation30_spill] sm:$0xff] }
 0x3aa   :  { %v5907_v27 = vmax.f32 %v7664_v55, %v2560_v47  ;;  %v5922_v56 = vmax.f32 %v7673_v49, %v2563_v31  ;;  %v7677_v19 = vmax.f32 %v7675_v59, %v7676_v16  ;;  %v7680_v55 = vld [vmem:[#allocation67_spill] sm:$0xff]  ;;  %v7687_v62 = vld [vmem:[#allocation34_spill] sm:$0xff] }
 0x3ab   :  { %v5912_v52 = vmax.f32 %v7667_v57, %v2561_v23  ;;  %v7681_v60 = vmax.f32 %v7679_v13, %v7680_v55  ;;  %v7684_v57 = vld [vmem:[#allocation71_spill] sm:$0xff]  ;;  %v7691_v46 = vld [vmem:[#allocation38_spill] sm:$0xff] }
 0x3ac   :  { %7674 = vst [vmem:[#allocation16_spill] sm:$0xff] %v5922_v56  ;;  %v5927_v47 = vmax.f32 %v7677_v19, %v2564_v51  ;;  %v7685_v24 = vmax.f32 %v7683_v42, %v7684_v57  ;;  %v7688_v33 = vld [vmem:[#allocation75_spill] sm:$0xff]  ;;  %v7695_v16 = vld [vmem:[#allocation42_spill] sm:$0xff] }
 0x3ad   :  { %v5932_v23 = vmax.f32 %v7681_v60, %v2565_v6  ;;  %v7689_v26 = vmax.f32 %v7687_v62, %v7688_v33  ;;  %v7692_v49 = vld [vmem:[#allocation79_spill] sm:$0xff]  ;;  %v7699_v55 = vld [vmem:[#allocation46_spill] sm:$0xff] }
 0x3ae   :  { %7678 = vst [vmem:[#allocation20_spill] sm:$0xff] %v5927_v47  ;;  %v5937_v1 = vmax.f32 %v7685_v24, %v2566_v45  ;;  %v7693_v59 = vmax.f32 %v7691_v46, %v7692_v49  ;;  %v7696_v19 = vld [vmem:[#allocation83_spill] sm:$0xff]  ;;  %v7703_v57 = vld [vmem:[#allocation50_spill] sm:$0xff] }
 0x3af   :  { %7682 = vst [vmem:[#allocation24_spill] sm:$0xff] %v5932_v23  ;;  %v5942_v31 = vmax.f32 %v7689_v26, %v2567_v29  ;;  %v7697_v13 = vmax.f32 %v7695_v16, %v7696_v19  ;;  %v7700_v60 = vld [vmem:[#allocation87_spill] sm:$0xff]  ;;  %v7707_v33 = vld [vmem:[#allocation54_spill] sm:$0xff] }
 0x3b0   :  { %7686 = vst [vmem:[#allocation28_spill] sm:$0xff] %v5937_v1  ;;  %v5947_v51 = vmax.f32 %v7693_v59, %v2568_v37  ;;  %v7701_v42 = vmax.f32 %v7699_v55, %v7700_v60  ;;  %v7704_v24 = vld [vmem:[#allocation91_spill] sm:$0xff]  ;;  %v7711_v49 = vld [vmem:[#allocation58_spill] sm:$0xff] }
 0x3b1   :  { %7690 = vst [vmem:[#allocation32_spill] sm:$0xff] %v5942_v31  ;;  %v5952_v6 = vmax.f32 %v7697_v13, %v2569_v54  ;;  %v7705_v62 = vmax.f32 %v7703_v57, %v7704_v24  ;;  %v7708_v26 = vld [vmem:[#allocation95_spill] sm:$0xff]  ;;  %v7715_v19 = vld [vmem:[#allocation62_spill] sm:$0xff] }
 0x3b2   :  { %7694 = vst [vmem:[#allocation36_spill] sm:$0xff] %v5947_v51  ;;  %v5957_v45 = vmax.f32 %v7701_v42, %v2570_v34  ;;  %v7709_v46 = vmax.f32 %v7707_v33, %v7708_v26  ;;  %v7712_v59 = vld [vmem:[#allocation99_spill] sm:$0xff]  ;;  %v7719_v60 = vld [vmem:[#allocation66_spill] sm:$0xff] }
 0x3b3   :  { %7698 = vst [vmem:[#allocation40_spill] sm:$0xff] %v5952_v6  ;;  %v5962_v29 = vmax.f32 %v7705_v62, %v2571_v8  ;;  %v7713_v16 = vmax.f32 %v7711_v49, %v7712_v59  ;;  %v7716_v13 = vld [vmem:[#allocation103_spill] sm:$0xff]  ;;  %v7723_v24 = vld [vmem:[#allocation70_spill] sm:$0xff]  ;;  %v7875_v6 = vld [vmem:[#allocation172_spill] sm:$0xff] }
 0x3b4   :  { %7702 = vst [vmem:[#allocation44_spill] sm:$0xff] %v5957_v45  ;;  %v5967_v37 = vmax.f32 %v7709_v46, %v2572_v15  ;;  %v7717_v55 = vmax.f32 %v7715_v19, %v7716_v13  ;;  %v7720_v42 = vld [vmem:[#allocation107_spill] sm:$0xff]  ;;  %v7727_v26 = vld [vmem:[#allocation74_spill] sm:$0xff]  ;;  %v7874_v45 = vld [vmem:[#allocation169_spill] sm:$0xff] }
 0x3b5   :  { %7706 = vst [vmem:[#allocation48_spill] sm:$0xff] %v5962_v29  ;;  %v5972_v54 = vmax.f32 %v7713_v16, %v2573_v32  ;;  %v7721_v57 = vmax.f32 %v7719_v60, %v7720_v42  ;;  %v7724_v62 = vld [vmem:[#allocation111_spill] sm:$0xff]  ;;  %v7731_v59 = vld [vmem:[#allocation78_spill] sm:$0xff] }
 0x3b6   :  { %7710 = vst [vmem:[#allocation52_spill] sm:$0xff] %v5967_v37  ;;  %v5977_v34 = vmax.f32 %v7717_v55, %v2574_v9  ;;  %v7725_v33 = vmax.f32 %v7723_v24, %v7724_v62  ;;  %v7728_v46 = vld [vmem:[#allocation115_spill] sm:$0xff]  ;;  %v7735_v13 = vld [vmem:[#allocation82_spill] sm:$0xff] }
 0x3b7   :  { %7714 = vst [vmem:[#allocation56_spill] sm:$0xff] %v5972_v54  ;;  %v5982_v8 = vmax.f32 %v7721_v57, %v2575_v36  ;;  %v7729_v49 = vmax.f32 %v7727_v26, %v7728_v46  ;;  %v7732_v16 = vld [vmem:[#allocation119_spill] sm:$0xff]  ;;  %v7739_v42 = vld [vmem:[#allocation86_spill] sm:$0xff]  ;;  %v7871_v54 = vld [vmem:[#allocation160_spill] sm:$0xff] }
 0x3b8   :  { %7718 = vst [vmem:[#allocation60_spill] sm:$0xff] %v5977_v34  ;;  %v5987_v15 = vmax.f32 %v7725_v33, %v2576_v22  ;;  %v7733_v19 = vmax.f32 %v7731_v59, %v7732_v16  ;;  %v7736_v55 = vld [vmem:[#allocation123_spill] sm:$0xff]  ;;  %v7743_v62 = vld [vmem:[#allocation90_spill] sm:$0xff]  ;;  %v7870_v34 = vld [vmem:[#allocation157_spill] sm:$0xff] }
 0x3b9   :  { %7722 = vst [vmem:[#allocation64_spill] sm:$0xff] %v5982_v8  ;;  %v5992_v32 = vmax.f32 %v7729_v49, %v2577_v43  ;;  %v7737_v60 = vmax.f32 %v7735_v13, %v7736_v55  ;;  %v7740_v57 = vld [vmem:[#allocation127_spill] sm:$0xff]  ;;  %v7747_v46 = vld [vmem:[#allocation94_spill] sm:$0xff]  ;;  %v7869_v8 = vld [vmem:[#allocation153_spill] sm:$0xff] }
 0x3ba   :  { %7726 = vst [vmem:[#allocation68_spill] sm:$0xff] %v5987_v15  ;;  %v5997_v9 = vmax.f32 %v7733_v19, %v2578_v20  ;;  %v7741_v24 = vmax.f32 %v7739_v42, %v7740_v57  ;;  %v7744_v33 = vld [vmem:[#allocation139_spill] sm:$0xff]  ;;  %v7751_v16 = vld [vmem:[#allocation98_spill] sm:$0xff]  ;;  %v7868_v15 = vld [vmem:[#allocation149_spill] sm:$0xff] }
 0x3bb   :  { %7730 = vst [vmem:[#allocation72_spill] sm:$0xff] %v5992_v32  ;;  %v6002_v36 = vmax.f32 %v7737_v60, %v2579_v38  ;;  %v7745_v26 = vmax.f32 %v7743_v62, %v7744_v33  ;;  %v7748_v49 = vld [vmem:[#allocation143_spill] sm:$0xff]  ;;  %v7755_v55 = vld [vmem:[#allocation102_spill] sm:$0xff]  ;;  %v7867_v32 = vld [vmem:[#allocation145_spill] sm:$0xff] }
 0x3bc   :  { %7734 = vst [vmem:[#allocation76_spill] sm:$0xff] %v5997_v9  ;;  %v6007_v22 = vmax.f32 %v7741_v24, %v2580_v7  ;;  %v7749_v59 = vmax.f32 %v7747_v46, %v7748_v49  ;;  %v7752_v19 = vld [vmem:[#allocation147_spill] sm:$0xff]  ;;  %v7759_v57 = vld [vmem:[#allocation106_spill] sm:$0xff]  ;;  %v7866_v9 = vld [vmem:[#allocation141_spill] sm:$0xff] }
 0x3bd   :  { %7738 = vst [vmem:[#allocation80_spill] sm:$0xff] %v6002_v36  ;;  %v6012_v43 = vmax.f32 %v7745_v26, %v2581_v14  ;;  %v7753_v13 = vmax.f32 %v7751_v16, %v7752_v19  ;;  %v7756_v60 = vld [vmem:[#allocation151_spill] sm:$0xff]  ;;  %v7763_v33 = vld [vmem:[#allocation110_spill] sm:$0xff]  ;;  %v7865_v36 = vld [vmem:[#allocation137_spill] sm:$0xff] }
 0x3be   :  { %7742 = vst [vmem:[#allocation84_spill] sm:$0xff] %v6007_v22  ;;  %v6017_v20 = vmax.f32 %v7749_v59, %v2582_v28  ;;  %v7757_v42 = vmax.f32 %v7755_v55, %v7756_v60  ;;  %v7760_v24 = vld [vmem:[#allocation155_spill] sm:$0xff]  ;;  %v7764_v26 = vld [vmem:[#allocation158_spill] sm:$0xff]  ;;  %v7768_v59 = vld [vmem:[#allocation161_spill] sm:$0xff] }
 0x3bf   :  { %7746 = vst [vmem:[#allocation88_spill] sm:$0xff] %v6012_v43  ;;  %v6022_v38 = vmax.f32 %v7753_v13, %v2583_v5  ;;  %v7761_v62 = vmax.f32 %v7759_v57, %v7760_v24  ;;  %v7765_v46 = vmax.f32 %v7763_v33, %v7764_v26  ;;  %v7767_v49 = vld [vmem:[#allocation114_spill] sm:$0xff]  ;;  %v7772_v13 = vld [vmem:[#allocation164_spill] sm:$0xff]  ;;  %v7863_v43 = vld [vmem:[#allocation129_spill] sm:$0xff] }
 0x3c0   :  { %7750 = vst [vmem:[#allocation92_spill] sm:$0xff] %v6017_v20  ;;  %v6027_v7 = vmax.f32 %v7757_v42, %v2584_v10  ;;  %v7769_v16 = vmax.f32 %v7767_v49, %v7768_v59  ;;  %v7771_v19 = vld [vmem:[#allocation118_spill] sm:$0xff]  ;;  %v7776_v42 = vld [vmem:[#allocation167_spill] sm:$0xff]  ;;  %v7862_v20 = vld [vmem:[#allocation125_spill] sm:$0xff] }
 0x3c1   :  { %7754 = vst [vmem:[#allocation96_spill] sm:$0xff] %v6022_v38  ;;  %v6032_v14 = vmax.f32 %v7761_v62, %v2585_v35  ;;  %v6037_v28 = vmax.f32 %v7765_v46, %v2586_v21  ;;  %v7773_v55 = vmax.f32 %v7771_v19, %v7772_v13  ;;  %v7775_v60 = vld [vmem:[#allocation122_spill] sm:$0xff]  ;;  %v7784_v46 = vld [vmem:[#allocation173_spill] sm:$0xff]  ;;  %v7872_v37 = vld [vmem:[#allocation163_spill] sm:$0xff] }
 0x3c2   :  { %7758 = vst [vmem:[#allocation100_spill] sm:$0xff] %v6027_v7  ;;  %v6042_v5 = vmax.f32 %v7769_v16, %v2587_v53  ;;  %v7777_v57 = vmax.f32 %v7775_v60, %v7776_v42  ;;  %v7779_v24 = vld [vmem:[#allocation126_spill] sm:$0xff]  ;;  %v7788_v16 = vld [vmem:[#allocation177_spill] sm:$0xff]  ;;  %v7876_v51 = vld [vmem:[#allocation175_spill] sm:$0xff] }
 0x3c3   :  { %7762 = vst [vmem:[#allocation104_spill] sm:$0xff] %v6032_v14  ;;  %v6047_v10 = vmax.f32 %v7773_v55, %v2588_v58  ;;  %v7780_v62 = vld [vmem:[#allocation170_spill] sm:$0xff]  ;;  %v7792_v55 = vld [vmem:[#allocation181_spill] sm:$0xff]  ;;  %v7877_v31 = vld [vmem:[#allocation179_spill] sm:$0xff] }
 0x3c4   :  { %7766 = vst [vmem:[#allocation108_spill] sm:$0xff] %v6037_v28  ;;  %v6052_v35 = vmax.f32 %v7777_v57, %v2589_v25  ;;  %v7781_v33 = vmax.f32 %v7779_v24, %v7780_v62  ;;  %v7783_v26 = vld [vmem:[#allocation130_spill] sm:$0xff]  ;;  %v7796_v57 = vld [vmem:[#allocation185_spill] sm:$0xff]  ;;  %v7878_v1 = vld [vmem:[#allocation183_spill] sm:$0xff] }
 0x3c5   :  { %7770 = vst [vmem:[#allocation112_spill] sm:$0xff] %v6042_v5  ;;  %v7785_v49 = vmax.f32 %v7783_v26, %v7784_v46  ;;  %v7787_v59 = vld [vmem:[#allocation134_spill] sm:$0xff]  ;;  %v7857_v5 = vld [vmem:[#allocation105_spill] sm:$0xff]  ;;  %v7879_v23 = vld [vmem:[#allocation187_spill] sm:$0xff] }
 0x3c6   :  { %7774 = vst [vmem:[#allocation116_spill] sm:$0xff] %v6047_v10  ;;  %v6057_v21 = vmax.f32 %v7781_v33, %v2590_v12  ;;  %v7789_v19 = vmax.f32 %v7787_v59, %v7788_v16  ;;  %v7791_v13 = vld [vmem:[#allocation138_spill] sm:$0xff]  ;;  %v7800_v33 = vld [vmem:[#allocation189_spill] sm:$0xff]  ;;  %v7880_v47 = vld [vmem:[#allocation191_spill] sm:$0xff] }
 0x3c7   :  { %7778 = vst [vmem:[#allocation120_spill] sm:$0xff] %v6052_v35  ;;  %v6062_v53 = vmax.f32 %v7785_v49, %v2591_v18  ;;  %v7793_v60 = vmax.f32 %v7791_v13, %v7792_v55  ;;  %v7795_v42 = vld [vmem:[#allocation142_spill] sm:$0xff]  ;;  %v7804_v49 = vld [vmem:[#allocation176_spill] sm:$0xff]  ;;  %v7811_v55 = vld [vmem:[#allocation3_spill] sm:$0xff] }
 0x3c8   :  { %7782 = vst [vmem:[#allocation124_spill] sm:$0xff] %v6057_v21  ;;  %v6067_v58 = vmax.f32 %v7789_v19, %v2592_v63  ;;  %v7797_v24 = vmax.f32 %v7795_v42, %v7796_v57  ;;  %v7799_v62 = vld [vmem:[#allocation146_spill] sm:$0xff]  ;;  %v7808_v19 = vld [vmem:[#allocation192_spill] sm:$0xff]  ;;  %v7815_v57 = vld [vmem:[#allocation7_spill] sm:$0xff] }
 0x3c9   :  { %7786 = vst [vmem:[#allocation128_spill] sm:$0xff] %v6062_v53  ;;  %v6072_v25 = vmax.f32 %v7793_v60, %v2593_v39  ;;  %v7801_v26 = vmax.f32 %v7799_v62, %v7800_v33  ;;  %v7803_v46 = vld [vmem:[#allocation150_spill] sm:$0xff]  ;;  %v7812_v60 = vld [vmem:[#allocation193_spill] sm:$0xff]  ;;  %v7819_v33 = vld [vmem:[#allocation11_spill] sm:$0xff] }
 0x3ca   :  { %7790 = vst [vmem:[#allocation132_spill] sm:$0xff] %v6067_v58  ;;  %v6077_v12 = vmax.f32 %v7797_v24, %v2594_v44  ;;  %v7805_v59 = vmax.f32 %v7803_v46, %v7804_v49  ;;  %v7807_v16 = vld [vmem:[#allocation154_spill] sm:$0xff]  ;;  %v7813_v42 = vmax.f32 %v7811_v55, %v7812_v60  ;;  %v7823_v49 = vld [vmem:[#allocation15_spill] sm:$0xff]  ;;  %v7831_v60 = vld [vmem:[#allocation5_spill] sm:$0xff] }
 0x3cb   :  { %7794 = vst [vmem:[#allocation136_spill] sm:$0xff] %v6072_v25  ;;  %v6082_v18 = vmax.f32 %v7801_v26, %v2595_v3  ;;  %v7809_v13 = vmax.f32 %v7807_v16, %v7808_v19  ;;  %v7816_v24 = vld [vmem:[#allocation194_spill] sm:$0xff]  ;;  %v7820_v26 = vld [vmem:[#allocation195_spill] sm:$0xff]  ;;  %v7851_v25 = vld [vmem:[#allocation81_spill] sm:$0xff] }
 0x3cc   :  { %7798 = vst [vmem:[#allocation140_spill] sm:$0xff] %v6077_v12  ;;  %v6087_v63 = vmax.f32 %v7805_v59, %v2596_v61  ;;  %v6097_v44 = vmax.f32 %v7813_v42, %v2598_v30  ;;  %v7817_v62 = vmax.f32 %v7815_v57, %v7816_v24  ;;  %v7821_v46 = vmax.f32 %v7819_v33, %v7820_v26  ;;  %v7824_v59 = vld [vmem:[#allocation196_spill] sm:$0xff]  ;;  %v7827_v19 = vld [vmem:[#allocation19_spill] sm:$0xff]  ;;  %v7835_v33 = vld [vmem:[#allocation17_spill] sm:$0xff] }
 0x3cd   :  { %7802 = vst [vmem:[#allocation144_spill] sm:$0xff] %v6082_v18  ;;  %v6092_v39 = vmax.f32 %v7809_v13, %v2597_v48  ;;  %v7825_v16 = vmax.f32 %v7823_v49, %v7824_v59  ;;  %v7828_v13 = vld [vmem:[#allocation197_spill] sm:$0xff]  ;;  %v7832_v42 = vld [vmem:[#allocation131_spill] sm:$0xff]  ;;  %v7873_v29 = vld [vmem:[#allocation166_spill] sm:$0xff] }
 0x3ce   :  { %7806 = vst [vmem:[#allocation148_spill] sm:$0xff] %v6087_v63  ;;  %v6102_v3 = vmax.f32 %v7817_v62, %v2599_v41  ;;  %v6107_v61 = vmax.f32 %v7821_v46, %v2600_v4  ;;  %v7829_v55 = vmax.f32 %v7827_v19, %v7828_v13  ;;  %v2652_v57 = vmul.f32 %v7832_v42, %v7831_v60  ;;  %v7833_v41 = vld [vmem:[#allocation9_spill] sm:$0xff]  ;;  %v7881_v56 = vld [vmem:[#allocation135_spill] sm:$0xff] }
 0x3cf   :  { %7810 = vst [vmem:[#allocation152_spill] sm:$0xff] %v6092_v39  ;;  %v6112_v48 = vmax.f32 %v7825_v16, %v2601_v0  ;;  %v2653_v24 = vmul.f32 %v7832_v42, %v7833_v41  ;;  %v7834_v62 = vld [vmem:[#allocation13_spill] sm:$0xff]  ;;  %v2655_v26 = vmul.f32 %v7832_v42, %v7835_v33 }
 0x3d0   :  { %7814 = vst [vmem:[#allocation156_spill] sm:$0xff] %v6097_v44  ;;  %v6117_v30 = vmax.f32 %v7829_v55, %v2602_v2  ;;  %v2654_v4 = vmul.f32 %v7832_v42, %v7834_v62  ;;  %v7836_v46 = vld [vmem:[#allocation21_spill] sm:$0xff] }
 0x3d1   :  { %7818 = vst [vmem:[#allocation159_spill] sm:$0xff] %v6102_v3  ;;  %v2656_v0 = vmul.f32 %v7832_v42, %v7836_v46  ;;  %v7837_v49 = vld [vmem:[#allocation25_spill] sm:$0xff] }
 0x3d2   :  { %7822 = vst [vmem:[#allocation162_spill] sm:$0xff] %v6107_v61  ;;  %v2657_v59 = vmul.f32 %v7832_v42, %v7837_v49  ;;  %v7838_v2 = vld [vmem:[#allocation29_spill] sm:$0xff] }
 0x3d3   :  { %7826 = vst [vmem:[#allocation165_spill] sm:$0xff] %v6112_v48  ;;  %v2658_v16 = vmul.f32 %v7832_v42, %v7838_v2  ;;  %v7839_v19 = vld [vmem:[#allocation33_spill] sm:$0xff] }
 0x3d4   :  { %7830 = vst [vmem:[#allocation168_spill] sm:$0xff] %v6117_v30  ;;  %v2659_v13 = vmul.f32 %v7832_v42, %v7839_v19  ;;  %v7840_v55 = vld [vmem:[#allocation37_spill] sm:$0xff] }
 0x3d5   :  { %v2660_v60 = vmul.f32 %v7832_v42, %v7840_v55  ;;  %v7841_v41 = vld [vmem:[#allocation41_spill] sm:$0xff] }
 0x3d6   :  { %v2661_v62 = vmul.f32 %v7832_v42, %v7841_v41  ;;  %v7842_v30 = vld [vmem:[#allocation45_spill] sm:$0xff] }
 0x3d7   :  { %v2662_v33 = vmul.f32 %v7832_v42, %v7842_v30  ;;  %v7843_v48 = vld [vmem:[#allocation49_spill] sm:$0xff] }
 0x3d8   :  { %v2663_v46 = vmul.f32 %v7832_v42, %v7843_v48  ;;  %v7844_v61 = vld [vmem:[#allocation53_spill] sm:$0xff] }
 0x3d9   :  { %v2664_v49 = vmul.f32 %v7832_v42, %v7844_v61  ;;  %v7845_v3 = vld [vmem:[#allocation57_spill] sm:$0xff]  ;;  %v2671_v61 = vmul.f32 %v7832_v42, %v7851_v25 }
 0x3da   :  { %v2665_v2 = vmul.f32 %v7832_v42, %v7845_v3  ;;  %v7846_v44 = vld [vmem:[#allocation61_spill] sm:$0xff] }
 0x3db   :  { %v2666_v19 = vmul.f32 %v7832_v42, %v7846_v44  ;;  %v7847_v39 = vld [vmem:[#allocation65_spill] sm:$0xff] }
 0x3dc   :  { %v2667_v55 = vmul.f32 %v7832_v42, %v7847_v39  ;;  %v7848_v63 = vld [vmem:[#allocation69_spill] sm:$0xff] }
 0x3dd   :  { %v2668_v41 = vmul.f32 %v7832_v42, %v7848_v63  ;;  %v7849_v18 = vld [vmem:[#allocation73_spill] sm:$0xff] }
 0x3de   :  { %v2669_v30 = vmul.f32 %v7832_v42, %v7849_v18  ;;  %v7850_v12 = vld [vmem:[#allocation77_spill] sm:$0xff] }
 0x3df   :  { %v2670_v48 = vmul.f32 %v7832_v42, %v7850_v12  ;;  %v7852_v58 = vld [vmem:[#allocation85_spill] sm:$0xff]  ;;  %v2677_v12 = vmul.f32 %v7832_v42, %v7857_v5 }
 0x3e0   :  { %v2672_v3 = vmul.f32 %v7832_v42, %v7852_v58  ;;  %v7853_v53 = vld [vmem:[#allocation89_spill] sm:$0xff] }
 0x3e1   :  { %v2673_v44 = vmul.f32 %v7832_v42, %v7853_v53  ;;  %v7854_v21 = vld [vmem:[#allocation93_spill] sm:$0xff] }
 0x3e2   :  { %v2674_v39 = vmul.f32 %v7832_v42, %v7854_v21  ;;  %v7855_v35 = vld [vmem:[#allocation97_spill] sm:$0xff] }
 0x3e3   :  { %v2675_v63 = vmul.f32 %v7832_v42, %v7855_v35  ;;  %v7856_v10 = vld [vmem:[#allocation101_spill] sm:$0xff]  ;;  %v2682_v35 = vmul.f32 %v7832_v42, %v7862_v20  ;;  %v2689_v20 = vmul.f32 %v7832_v42, %v7869_v8  ;;  %v2696_v8 = vmul.f32 %v7832_v42, %v7876_v51 }
 0x3e4   :  { %v2676_v18 = vmul.f32 %v7832_v42, %v7856_v10  ;;  %v7858_v28 = vld [vmem:[#allocation109_spill] sm:$0xff]  ;;  %v2683_v10 = vmul.f32 %v7832_v42, %v7863_v43  ;;  %v2690_v43 = vmul.f32 %v7832_v42, %v7870_v34  ;;  %v2697_v34 = vmul.f32 %v7832_v42, %v7877_v31 }
 0x3e5   :  { %v2678_v25 = vmul.f32 %v7832_v42, %v7858_v28  ;;  %v7859_v14 = vld [vmem:[#allocation113_spill] sm:$0xff]  ;;  %v2685_v28 = vmul.f32 %v7832_v42, %v7865_v36  ;;  %v2692_v36 = vmul.f32 %v7832_v42, %v7872_v37  ;;  %v2699_v37 = vmul.f32 %v7832_v42, %v7879_v23 }
 0x3e6   :  { %v2679_v58 = vmul.f32 %v7832_v42, %v7859_v14  ;;  %v7860_v7 = vld [vmem:[#allocation117_spill] sm:$0xff]  ;;  %v2686_v14 = vmul.f32 %v7832_v42, %v7866_v9  ;;  %v2693_v9 = vmul.f32 %v7832_v42, %v7873_v29  ;;  %v2700_v29 = vmul.f32 %v7832_v42, %v7880_v47 }
 0x3e7   :  { %v2680_v53 = vmul.f32 %v7832_v42, %v7860_v7  ;;  %v7861_v38 = vld [vmem:[#allocation121_spill] sm:$0xff]  ;;  %v2687_v7 = vmul.f32 %v7832_v42, %v7867_v32  ;;  %v2694_v32 = vmul.f32 %v7832_v42, %v7874_v45  ;;  %v6218_v45 = vadd.f32 %v2652_v57, %v7881_v56 }
 0x3e8   :  { %v2681_v21 = vmul.f32 %v7832_v42, %v7861_v38  ;;  %v7864_v22 = vld [vmem:[#allocation133_spill] sm:$0xff]  ;;  %v2688_v38 = vmul.f32 %v7832_v42, %v7868_v15  ;;  %v2695_v15 = vmul.f32 %v7832_v42, %v7875_v6  ;;  %v6221_v6 = vadd.f32 %v2653_v24, %v7881_v56 }
 0x3e9   :  { %v2684_v5 = vmul.f32 %v7832_v42, %v7864_v22  ;;  %v2691_v22 = vmul.f32 %v7832_v42, %v7871_v54  ;;  %v2698_v54 = vmul.f32 %v7832_v42, %v7878_v1  ;;  %v6224_v51 = vadd.f32 %v2654_v4, %v7881_v56 }
 0x3ea   :  { %v6227_v31 = vadd.f32 %v2655_v26, %v7881_v56  ;;  %v6230_v1 = vadd.f32 %v2656_v0, %v7881_v56  ;;  %v6233_v23 = vadd.f32 %v2657_v59, %v7881_v56  ;;  %v6236_v47 = vadd.f32 %v2658_v16, %v7881_v56 }
 0x3eb   :  { %v6239_v42 = vadd.f32 %v2659_v13, %v7881_v56  ;;  %v6242_v57 = vadd.f32 %v2660_v60, %v7881_v56  ;;  %v6245_v24 = vadd.f32 %v2661_v62, %v7881_v56  ;;  %v6248_v4 = vadd.f32 %v2662_v33, %v7881_v56 }
 0x3ec   :  { %v6251_v26 = vadd.f32 %v2663_v46, %v7881_v56  ;;  %v6254_v0 = vadd.f32 %v2664_v49, %v7881_v56  ;;  %v6257_v59 = vadd.f32 %v2665_v2, %v7881_v56  ;;  %v6260_v16 = vadd.f32 %v2666_v19, %v7881_v56 }
 0x3ed   :  { %v6263_v13 = vadd.f32 %v2667_v55, %v7881_v56  ;;  %v6266_v60 = vadd.f32 %v2668_v41, %v7881_v56  ;;  %v6269_v62 = vadd.f32 %v2669_v30, %v7881_v56  ;;  %v6272_v33 = vadd.f32 %v2670_v48, %v7881_v56 }
 0x3ee   :  { %v6275_v46 = vadd.f32 %v2671_v61, %v7881_v56  ;;  %v6278_v49 = vadd.f32 %v2672_v3, %v7881_v56  ;;  %v6281_v2 = vadd.f32 %v2673_v44, %v7881_v56  ;;  %v6284_v19 = vadd.f32 %v2674_v39, %v7881_v56 }
 0x3ef   :  { %v6287_v55 = vadd.f32 %v2675_v63, %v7881_v56  ;;  %v6290_v41 = vadd.f32 %v2676_v18, %v7881_v56  ;;  %v6293_v30 = vadd.f32 %v2677_v12, %v7881_v56  ;;  %v6296_v48 = vadd.f32 %v2678_v25, %v7881_v56 }
 0x3f0   :  { %v6299_v61 = vadd.f32 %v2679_v58, %v7881_v56  ;;  %v6302_v3 = vadd.f32 %v2680_v53, %v7881_v56  ;;  %v6305_v44 = vadd.f32 %v2681_v21, %v7881_v56  ;;  %v6308_v39 = vadd.f32 %v2682_v35, %v7881_v56 }
 0x3f1   :  { %v6311_v63 = vadd.f32 %v2683_v10, %v7881_v56  ;;  %v6314_v18 = vadd.f32 %v2684_v5, %v7881_v56  ;;  %v6317_v12 = vadd.f32 %v2685_v28, %v7881_v56  ;;  %v6320_v25 = vadd.f32 %v2686_v14, %v7881_v56 }
 0x3f2   :  { %v6323_v58 = vadd.f32 %v2687_v7, %v7881_v56  ;;  %v6326_v53 = vadd.f32 %v2688_v38, %v7881_v56  ;;  %v6329_v21 = vadd.f32 %v2689_v20, %v7881_v56  ;;  %v6332_v35 = vadd.f32 %v2690_v43, %v7881_v56 }
 0x3f3   :  { %v6335_v10 = vadd.f32 %v2691_v22, %v7881_v56  ;;  %v6338_v5 = vadd.f32 %v2692_v36, %v7881_v56  ;;  %v6341_v28 = vadd.f32 %v2693_v9, %v7881_v56  ;;  %v6344_v14 = vadd.f32 %v2694_v32, %v7881_v56  ;;  %v7886_v9 = vld [vmem:[#allocation4_spill] sm:$0xff] }
 0x3f4   :  { %v6347_v7 = vadd.f32 %v2695_v15, %v7881_v56  ;;  %v6350_v38 = vadd.f32 %v2696_v8, %v7881_v56  ;;  %v6353_v20 = vadd.f32 %v2697_v34, %v7881_v56  ;;  %v6356_v43 = vadd.f32 %v2698_v54, %v7881_v56  ;;  %v7887_v15 = vld [vmem:[#allocation8_spill] sm:$0xff] }
 0x3f5   :  { %v6359_v22 = vadd.f32 %v2699_v37, %v7881_v56  ;;  %v6362_v36 = vadd.f32 %v2700_v29, %v7881_v56  ;;  %v2750_v32 = vmax.f32 %v7886_v9, %v6218_v45  ;;  %v7888_v8 = vld [vmem:[#allocation12_spill] sm:$0xff]  ;;  %v2753_v34 = vmax.f32 %v5892_v11, %v6227_v31 }
 0x3f6   :  { %7882 = vst [vmem:[#allocation171_spill] sm:$0xff] %v6347_v7  ;;  %v2751_v7 = vmax.f32 %v7887_v15, %v6221_v6  ;;  %v2754_v54 = vmax.f32 %v5897_v17, %v6230_v1  ;;  %v2755_v37 = vmax.f32 %v5902_v50, %v6233_v23  ;;  %v2756_v56 = vmax.f32 %v5907_v27, %v6236_v47  ;;  %v7889_v6 = vld [vmem:[#allocation16_spill] sm:$0xff] }
 0x3f7   :  { %7883 = vst [vmem:[#allocation174_spill] sm:$0xff] %v6350_v38  ;;  %v2752_v38 = vmax.f32 %v7888_v8, %v6224_v51  ;;  %v2757_v29 = vmax.f32 %v5912_v52, %v6239_v42  ;;  %v2758_v45 = vmax.f32 %v5917_v40, %v6242_v57  ;;  %v2759_v51 = vmax.f32 %v7889_v6, %v6245_v24  ;;  %v7890_v11 = vld [vmem:[#allocation20_spill] sm:$0xff] }
 0x3f8   :  { %7884 = vst [vmem:[#allocation178_spill] sm:$0xff] %v6359_v22  ;;  %v2760_v31 = vmax.f32 %v7890_v11, %v6248_v4  ;;  %v7891_v17 = vld [vmem:[#allocation24_spill] sm:$0xff] }
 0x3f9   :  { %7885 = vst [vmem:[#allocation182_spill] sm:$0xff] %v6362_v36  ;;  %v2761_v1 = vmax.f32 %v7891_v17, %v6251_v26  ;;  %v7892_v50 = vld [vmem:[#allocation28_spill] sm:$0xff]  ;;  %v2808_v36 = vmax.f32 %v2759_v51, 0.0 }
 0x3fa   :  { %v2762_v23 = vmax.f32 %v7892_v50, %v6254_v0  ;;  %v7893_v27 = vld [vmem:[#allocation32_spill] sm:$0xff] }
 0x3fb   :  { %v2763_v47 = vmax.f32 %v7893_v27, %v6257_v59  ;;  %v7894_v52 = vld [vmem:[#allocation36_spill] sm:$0xff] }
 0x3fc   :  { %v2764_v42 = vmax.f32 %v7894_v52, %v6260_v16  ;;  %v7895_v40 = vld [vmem:[#allocation40_spill] sm:$0xff] }
 0x3fd   :  { %v2765_v57 = vmax.f32 %v7895_v40, %v6263_v13  ;;  %v7896_v24 = vld [vmem:[#allocation44_spill] sm:$0xff] }
 0x3fe   :  { %v2766_v9 = vmax.f32 %v7896_v24, %v6266_v60  ;;  %v7897_v4 = vld [vmem:[#allocation48_spill] sm:$0xff] }
 0x3ff   :  { %v2767_v15 = vmax.f32 %v7897_v4, %v6269_v62  ;;  %v7898_v26 = vld [vmem:[#allocation52_spill] sm:$0xff] }
 0x400   :  { %v2768_v8 = vmax.f32 %v7898_v26, %v6272_v33  ;;  %v7899_v0 = vld [vmem:[#allocation56_spill] sm:$0xff]  ;;  %v2815_v51 = vmax.f32 %v2766_v9, 0.0 }
 0x401   :  { %v2769_v6 = vmax.f32 %v7899_v0, %v6275_v46  ;;  %v7900_v59 = vld [vmem:[#allocation60_spill] sm:$0xff] }
 0x402   :  { %v2770_v11 = vmax.f32 %v7900_v59, %v6278_v49  ;;  %v7901_v16 = vld [vmem:[#allocation64_spill] sm:$0xff] }
 0x403   :  { %v2771_v17 = vmax.f32 %v7901_v16, %v6281_v2  ;;  %v7902_v13 = vld [vmem:[#allocation68_spill] sm:$0xff] }
 0x404   :  { %v2772_v50 = vmax.f32 %v7902_v13, %v6284_v19  ;;  %v7903_v60 = vld [vmem:[#allocation72_spill] sm:$0xff]  ;;  %v2799_v13 = vmax.f32 %v2750_v32, 0.0  ;;  %v2810_v32 = vmax.f32 %v2761_v1, 0.0  ;;  %v2817_v1 = vmax.f32 %v2768_v8, 0.0 }
 0x405   :  { %v2773_v27 = vmax.f32 %v7903_v60, %v6287_v55  ;;  %v7904_v62 = vld [vmem:[#allocation76_spill] sm:$0xff]  ;;  %v2801_v60 = vmax.f32 %v2752_v38, 0.0  ;;  %v2809_v38 = vmax.f32 %v2760_v31, 0.0  ;;  %v2820_v9 = vmax.f32 %v2771_v17, 0.0 }
 0x406   :  { %v2774_v52 = vmax.f32 %v7904_v62, %v6290_v41  ;;  %v7905_v33 = vld [vmem:[#allocation80_spill] sm:$0xff]  ;;  %v2802_v62 = vmax.f32 %v2753_v34, 0.0  ;;  %v2811_v34 = vmax.f32 %v2762_v23, 0.0  ;;  %v2818_v23 = vmax.f32 %v2769_v6, 0.0 }
 0x407   :  { %v2775_v40 = vmax.f32 %v7905_v33, %v6293_v30  ;;  %v7906_v46 = vld [vmem:[#allocation84_spill] sm:$0xff]  ;;  %v2800_v30 = vmax.f32 %v2751_v7, 0.0  ;;  %v2804_v33 = vmax.f32 %v2755_v37, 0.0  ;;  %v2821_v8 = vmax.f32 %v2772_v50, 0.0 }
 0x408   :  { %v2776_v24 = vmax.f32 %v7906_v46, %v6296_v48  ;;  %v7907_v49 = vld [vmem:[#allocation88_spill] sm:$0xff]  ;;  %v2803_v48 = vmax.f32 %v2754_v54, 0.0  ;;  %v2805_v46 = vmax.f32 %v2756_v56, 0.0  ;;  %v2812_v54 = vmax.f32 %v2763_v47, 0.0 }
 0x409   :  { %v2777_v4 = vmax.f32 %v7907_v49, %v6299_v61  ;;  %v7908_v2 = vld [vmem:[#allocation92_spill] sm:$0xff]  ;;  %v2806_v61 = vmax.f32 %v2757_v29, 0.0  ;;  %v3620_v37 = vpack.c.bf16 %v2800_v30, %v2799_v13  ;;  %v3625_v56 = vpack.c.bf16 %v2802_v62, %v2801_v60 }
 0x40a   :  { %v2778_v26 = vmax.f32 %v7908_v2, %v6302_v3  ;;  %v7909_v19 = vld [vmem:[#allocation96_spill] sm:$0xff]  ;;  %v2813_v29 = vmax.f32 %v2764_v42, 0.0  ;;  %v3645_v47 = vpack.c.bf16 %v2810_v32, %v2809_v38  ;;  %v2822_v6 = vmax.f32 %v2773_v27, 0.0 }
 0x40b   :  { %v2779_v0 = vmax.f32 %v7909_v19, %v6305_v44  ;;  %v7910_v55 = vld [vmem:[#allocation100_spill] sm:$0xff]  ;;  %v2807_v19 = vmax.f32 %v2758_v45, 0.0  ;;  %3621 = vst [vmem:[%s6544_s4] sm:$0xff] %v3620_v37   ;;  %v2824_v17 = vmax.f32 %v2775_v40, 0.0  ;;  %v2825_v50 = vmax.f32 %v2776_v24, 0.0 }
 0x40c   :  { %v7911_v41 = vld [vmem:[#allocation104_spill] sm:$0xff]  ;;  %3737 = vst [vmem:[%s6544_s4 + $0x8] sm:$0xff] %v3625_v56   ;;  %v2826_v27 = vmax.f32 %v2777_v4, 0.0  ;;  %v3665_v62 = vpack.c.bf16 %v2818_v23, %v2817_v1  ;;  %v7925_v24 = vmax.f32 %v7910_v55, %v6308_v39  ;;  %v7929_v56 = vld [vmem:[#allocation162_spill] sm:$0xff] }
 0x40d   :  { %v2781_v16 = vmax.f32 %v7911_v41, %v6311_v63  ;;  %v7912_v49 = vld [vmem:[#allocation108_spill] sm:$0xff]  ;;  %v2814_v41 = vmax.f32 %v2765_v57, 0.0  ;;  %v2819_v57 = vmax.f32 %v2770_v11, 0.0  ;;  %v2823_v11 = vmax.f32 %v2774_v52, 0.0  ;;  %3741 = vst [vmem:[%s6544_s4 + $0x28] sm:$0xff] %v3645_v47  }
 0x40e   :  { %v2782_v3 = vmax.f32 %v7912_v49, %v6314_v18  ;;  %v7913_v2 = vld [vmem:[#allocation112_spill] sm:$0xff]  ;;  %v3630_v18 = vpack.c.bf16 %v2804_v33, %v2803_v48  ;;  %v3635_v49 = vpack.c.bf16 %v2806_v61, %v2805_v46  ;;  %v2827_v52 = vmax.f32 %v2778_v26, 0.0  ;;  %v7923_v46 = vld [vmem:[#allocation171_spill] sm:$0xff]  ;;  %v7926_v26 = vld [vmem:[#allocation174_spill] sm:$0xff]  ;;  %3745 = vst [vmem:[%s6544_s4 + $0x48] sm:$0xff] %v3665_v62  }
 0x40f   :  { %v2783_v44 = vmax.f32 %v7913_v2, %v6317_v12  ;;  %v7914_v59 = vld [vmem:[#allocation116_spill] sm:$0xff]  ;;  %v2816_v2 = vmax.f32 %v2767_v15, 0.0  ;;  %v2828_v40 = vmax.f32 %v2779_v0, 0.0  ;;  %v3670_v33 = vpack.c.bf16 %v2820_v9, %v2819_v57 }
 0x410   :  { %v2784_v22 = vmax.f32 %v7914_v59, %v6320_v25  ;;  %v7915_v63 = vld [vmem:[#allocation120_spill] sm:$0xff]  ;;  %v3640_v25 = vpack.c.bf16 %v2808_v36, %v2807_v19  ;;  %3738 = vst [vmem:[%s6544_s4 + $0x10] sm:$0xff] %v3630_v18   ;;  %v3650_v36 = vpack.c.bf16 %v2812_v54, %v2811_v34  ;;  %v3655_v59 = vpack.c.bf16 %v2814_v41, %v2813_v29  ;;  %v7928_v54 = vld [vmem:[#allocation159_spill] sm:$0xff]  ;;  %v7930_v18 = vld [vmem:[#allocation178_spill] sm:$0xff] }
 0x411   :  { %v2785_v7 = vmax.f32 %v7915_v63, %v6323_v58  ;;  %v7916_v12 = vld [vmem:[#allocation124_spill] sm:$0xff]  ;;  %3739 = vst [vmem:[%s6544_s4 + $0x18] sm:$0xff] %v3635_v49   ;;  %v3660_v30 = vpack.c.bf16 %v2816_v2, %v2815_v51  ;;  %v2829_v4 = vmax.f32 %v7925_v24, 0.0  ;;  %v2830_v19 = vmax.f32 %v2781_v16, 0.0  ;;  %v7931_v49 = vld [vmem:[#allocation165_spill] sm:$0xff]  ;;  %v7932_v51 = vld [vmem:[#allocation182_spill] sm:$0xff] }
 0x412   :  { %v2786_v45 = vmax.f32 %v7916_v12, %v6326_v53  ;;  %v7917_v58 = vld [vmem:[#allocation128_spill] sm:$0xff]  ;;  %3740 = vst [vmem:[%s6544_s4 + $0x20] sm:$0xff] %v3640_v25   ;;  %v2831_v38 = vmax.f32 %v2782_v3, 0.0  ;;  %v2832_v32 = vmax.f32 %v2783_v44, 0.0  ;;  %v3680_v34 = vpack.c.bf16 %v2824_v17, %v2823_v11 }
 0x413   :  { %v2787_v31 = vmax.f32 %v7917_v58, %v6329_v21  ;;  %v7918_v42 = vld [vmem:[#allocation132_spill] sm:$0xff]  ;;  %3742 = vst [vmem:[%s6544_s4 + $0x30] sm:$0xff] %v3650_v36   ;;  %v2795_v39 = vmax.f32 %v7928_v54, %v6353_v20  ;;  %v2833_v55 = vmax.f32 %v2784_v22, 0.0  ;;  %v2834_v16 = vmax.f32 %v2785_v7, 0.0 }
 0x414   :  { %v2788_v53 = vmax.f32 %v7918_v42, %v6332_v35  ;;  %v7919_v15 = vld [vmem:[#allocation136_spill] sm:$0xff]  ;;  %3743 = vst [vmem:[%s6544_s4 + $0x38] sm:$0xff] %v3655_v59   ;;  %v3685_v37 = vpack.c.bf16 %v2826_v27, %v2825_v50  ;;  %v2796_v29 = vmax.f32 %v7929_v56, %v6356_v43  ;;  %v2835_v3 = vmax.f32 %v2786_v45, 0.0 }
 0x415   :  { %v2789_v21 = vmax.f32 %v7919_v15, %v6335_v10  ;;  %v7920_v13 = vld [vmem:[#allocation140_spill] sm:$0xff]  ;;  %3744 = vst [vmem:[%s6544_s4 + $0x40] sm:$0xff] %v3660_v30   ;;  %v2836_v44 = vmax.f32 %v2787_v31, 0.0  ;;  %v3690_v41 = vpack.c.bf16 %v2828_v40, %v2827_v52  ;;  %v2797_v20 = vmax.f32 %v7931_v49, %v7930_v18 }
 0x416   :  { %v2790_v35 = vmax.f32 %v7920_v13, %v6338_v5  ;;  %v7921_v60 = vld [vmem:[#allocation144_spill] sm:$0xff]  ;;  %3746 = vst [vmem:[%s6544_s4 + $0x50] sm:$0xff] %v3670_v33   ;;  %v2837_v22 = vmax.f32 %v2788_v53, 0.0  ;;  %v3695_v12 = vpack.c.bf16 %v2830_v19, %v2829_v4  ;;  %v3700_v58 = vpack.c.bf16 %v2832_v32, %v2831_v38 }
 0x417   :  { %v2791_v10 = vmax.f32 %v7921_v60, %v6341_v28  ;;  %v7922_v48 = vld [vmem:[#allocation148_spill] sm:$0xff]  ;;  %v2838_v7 = vmax.f32 %v2789_v21, 0.0  ;;  %3748 = vst [vmem:[%s6544_s4 + $0x60] sm:$0xff] %v3680_v34   ;;  %v3705_v23 = vpack.c.bf16 %v2834_v16, %v2833_v55  ;;  %v2844_v42 = vmax.f32 %v2795_v39, 0.0 }
 0x418   :  { %v2792_v5 = vmax.f32 %v7922_v48, %v6344_v14  ;;  %v7924_v61 = vld [vmem:[#allocation152_spill] sm:$0xff]  ;;  %v3675_v14 = vpack.c.bf16 %v2822_v6, %v2821_v8  ;;  %v2839_v45 = vmax.f32 %v2790_v35, 0.0  ;;  %3749 = vst [vmem:[%s6544_s4 + $0x68] sm:$0xff] %v3685_v37   ;;  %v3710_v53 = vpack.c.bf16 %v2836_v44, %v2835_v3 }
 0x419   :  { %v2793_v28 = vmax.f32 %v7924_v61, %v7923_v46  ;;  %v7927_v0 = vld [vmem:[#allocation156_spill] sm:$0xff]  ;;  %v2840_v25 = vmax.f32 %v2791_v10, 0.0  ;;  %3750 = vst [vmem:[%s6544_s4 + $0x70] sm:$0xff] %v3690_v41   ;;  %v2845_v57 = vmax.f32 %v2796_v29, 0.0  ;;  %v2846_v9 = vmax.f32 %v2797_v20, 0.0 }
 0x41a   :  { %v2794_v63 = vmax.f32 %v7927_v0, %v7926_v26  ;;  %3747 = vst [vmem:[%s6544_s4 + $0x58] sm:$0xff] %v3675_v14   ;;  %v7933_v2 = vld [vmem:[#allocation168_spill] sm:$0xff]  ;;  %v2841_v31 = vmax.f32 %v2792_v5, 0.0  ;;  %v3715_v36 = vpack.c.bf16 %v2838_v7, %v2837_v22 }
 0x41b   :  { %v2798_v43 = vmax.f32 %v7933_v2, %v7932_v51  ;;  %v2842_v1 = vmax.f32 %v2793_v28, 0.0  ;;  %3751 = vst [vmem:[%s6544_s4 + $0x78] sm:$0xff] %v3695_v12   ;;  %v3720_v21 = vpack.c.bf16 %v2840_v25, %v2839_v45  ;;  %v3735_v59 = vpack.c.bf16 %v2846_v9, %v2845_v57 }
 0x41c   :  { %v2843_v47 = vmax.f32 %v2794_v63, 0.0  ;;  %3752 = vst [vmem:[%s6544_s4 + $0x80] sm:$0xff] %v3700_v58  }
 0x41d   :  { %v2847_v15 = vmax.f32 %v2798_v43, 0.0  ;;  %3753 = vst [vmem:[%s6544_s4 + $0x88] sm:$0xff] %v3705_v23   ;;  %v3725_v8 = vpack.c.bf16 %v2842_v1, %v2841_v31 }
 0x41e   :  { %3754 = vst [vmem:[%s6544_s4 + $0x90] sm:$0xff] %v3710_v53   ;;  %v3730_v6 = vpack.c.bf16 %v2844_v42, %v2843_v47 }
 0x41f   :  { %3755 = vst [vmem:[%s6544_s4 + $0x98] sm:$0xff] %v3715_v36   ;;  %v2896_v13 = vpack.c.bf16 %v2847_v15, %v2847_v15 }
 0x420   :  { %3756 = vst [vmem:[%s6544_s4 + $0xa0] sm:$0xff] %v3720_v21  }
 0x421   :  { %3757 = vst [vmem:[%s6544_s4 + $0xa8] sm:$0xff] %v3725_v8  }
 0x422   :  { %3758 = vst [vmem:[%s6544_s4 + $0xb0] sm:$0xff] %v3730_v6  }
 0x423   :  { %3759 = vst [vmem:[%s6544_s4 + $0xb8] sm:$0xff] %v3735_v59  }
 0x424   :  { %2945 = vst [vmem:[%s6544_s4 + $0xc0] sm:$0xf] %v2896_v13 }

// kernel: lenet5_bn_forward.3
= control target key start
LH: loop header
LB: loop body
LE: loop exit
PB: predicated region body
PF: predicated region fallthrough
CT: control target
= control target key end

     0   :  { %s6159_s0 = inlined_call_operand.vmem [shape: bf16[4,50,256], index: 0, kind: input, shape index: {}]   ;;  %s6160_s1 = inlined_call_operand.vmem [shape: bf16[256,128], index: 1, kind: input, shape index: {}]   ;;  %s6161_s2 = inlined_call_operand.vmem [shape: f32[1,128], index: 2, kind: input, shape index: {}]   ;;  %s6162_s3 = inlined_call_operand.vmem [shape: f32[1,128], index: 3, kind: input, shape index: {}]   ;;  %s6163_s4 = inlined_call_operand.vmem [shape: bf16[25,128,128], index: 4, kind: input, shape index: {}]   ;;  %s6164_s5 = inlined_call_operand.vmem [shape: f32[1,128], index: 5, kind: input, shape index: {}]   ;;  %s6165_s6 = inlined_call_operand.vmem [shape: f32[1,128], index: 6, kind: input, shape index: {}]   ;;  %s6166_s7 = inlined_call_operand.vmem [shape: bf16[128,128], index: 7, kind: input, shape index: {}]   ;;  %s6167_s8 = inlined_call_operand.vmem [shape: f32[1,128], index: 8, kind: input, shape index: {}]   ;;  %s6168_s9 = inlined_call_operand.vmem [shape: f32[1,128], index: 9, kind: input, shape index: {}]   ;;  %s6169_s10 = inlined_call_operand.vmem [shape: bf16[128,128], index: 10, kind: input, shape index: {}]   ;;  %s6170_s11 = inlined_call_operand.vmem [shape: f32[1,128], index: 11, kind: input, shape index: {}]   ;;  %s6171_s12 = inlined_call_operand.hbm [shape: f32[2,128], index: 12, kind: output, shape index: {}]  }
   0x1   :  { %v4941_v0 = vld [vmem:[%s6160_s1 + $0x38] sm:$0xff]  ;;  %v4953_v2 = vld [vmem:[%s6160_s1 + $0x30] sm:$0xff]  ;;  %v4967_v4 = vld [vmem:[%s6160_s1 + $0x28] sm:$0xff] }
   0x2   :  { %v4946_v1 = vld [vmem:[%s6160_s1 + $0x78] sm:$0xff]  ;;  %216 = vmatpush.bf16.msra.mxu0 %v4941_v0  ;;  %v4958_v3 = vld [vmem:[%s6160_s1 + $0x70] sm:$0xff]  ;;  %317 = vmatpush.bf16.msra.mxu2 %v4941_v0  ;;  %v4972_v5 = vld [vmem:[%s6160_s1 + $0x68] sm:$0xff] }
   0x3   :  { %244 = vmatpush.bf16.msra.mxu1 %v4946_v1  ;;  %345 = vmatpush.bf16.msra.mxu3 %v4946_v1 }
   0x6   :  { %217 = vmatpush.bf16.msra.mxu0 %v4953_v2  ;;  %318 = vmatpush.bf16.msra.mxu2 %v4953_v2 }
   0x7   :  { %245 = vmatpush.bf16.msra.mxu1 %v4958_v3  ;;  %346 = vmatpush.bf16.msra.mxu3 %v4958_v3 }
   0x8   :  { %17 = vsyncpa [#allocation4], 0  ;;  %v4981_v6 = vld [vmem:[%s6160_s1 + $0x20] sm:$0xff]  ;;  %v4995_v8 = vld [vmem:[%s6160_s1 + $0x18] sm:$0xff]  ;;  %vm580_vm0 = vcmask 1041408   ;;  %s4872_s16 = smov [#allocation3]  }
   0x9   :  { %v4986_v7 = vld [vmem:[%s6160_s1 + $0x60] sm:$0xff]  ;;  %v5000_v9 = vld [vmem:[%s6160_s1 + $0x58] sm:$0xff]  ;;  %v5009_v10 = vld [vmem:[%s6160_s1 + $0x10] sm:$0xff]  ;;  %s3140_s19 = sshll.u32 %s6171_s12, 4  ;;  %s3141_s19 = int_to_ptr.hbm [resolvable:$true] %s3140_s19 }
   0xa   :  { %218 = vmatpush.bf16.msra.mxu0 %v4967_v4  ;;  %319 = vmatpush.bf16.msra.mxu2 %v4967_v4  ;;  %v5014_v11 = vld [vmem:[%s6160_s1 + $0x50] sm:$0xff]  ;;  %v5023_v12 = vld [vmem:[%s6160_s1 + $0x8] sm:$0xff]  ;;  %v5035_v14 = vld [vmem:[%s6160_s1] sm:$0xff] }
   0xb   :  { %246 = vmatpush.bf16.msra.mxu1 %v4972_v5  ;;  %347 = vmatpush.bf16.msra.mxu3 %v4972_v5  ;;  %v5028_v13 = vld [vmem:[%s6160_s1 + $0x48] sm:$0xff]  ;;  %v5040_v15 = vld [vmem:[%s6160_s1 + $0x40] sm:$0xff]  ;;  %v3246_v20 = vld [vmem:[%s6159_s0 + $0x38] sm:$0xf] }
   0xc   :  { %v3151_v16 = vld [vmem:[%s6159_s0] sm:$0xf]  ;;  %v4595_v17 = vld [vmem:[%s6159_s0 + $0x4] sm:$0xf0]  ;;  %v4594_v18 = vld [vmem:[%s6159_s0 + $0x4] sm:$0xf] }
   0xd   :  { %v3153_v19 = vld [vmem:[%s6159_s0 + $0x8] sm:$0xf0]  ;;  %v4601_v21 = vld [vmem:[%s6159_s0 + $0x3c] sm:$0xf0]  ;;  %v4600_v22 = vld [vmem:[%s6159_s0 + $0x3c] sm:$0xf]  ;;  %v3152_v24 = vor.u32 %v4595_v17, %v3151_v16 }
   0xe   :  { %219 = vmatpush.bf16.msra.mxu0 %v4981_v6  ;;  %320 = vmatpush.bf16.msra.mxu2 %v4981_v6  ;;  %v3248_v23 = vld [vmem:[%s6159_s0 + $0x40] sm:$0xf0]  ;;  %v3156_v25 = vor.u32 %v4594_v18, %v3153_v19  ;;  %v3247_v26 = vor.u32 %v4601_v21, %v3246_v20  ;;  %v3159_v28 = vld [vmem:[%s6159_s0 + $0x10] sm:$0xf]  ;;  %v4597_v29 = vld [vmem:[%s6159_s0 + $0x14] sm:$0xf0] }
   0xf   :  { %247 = vmatpush.bf16.msra.mxu1 %v4986_v7  ;;  %348 = vmatpush.bf16.msra.mxu3 %v4986_v7  ;;  %v3251_v27 = vor.u32 %v4600_v22, %v3248_v23  ;;  %v4596_v30 = vld [vmem:[%s6159_s0 + $0x14] sm:$0xf]  ;;  %v3161_v31 = vld [vmem:[%s6159_s0 + $0x18] sm:$0xf0]  ;;  %v3254_v32 = vld [vmem:[%s6159_s0 + $0x48] sm:$0xf]  ;;  %v3160_v36 = vor.u32 %v4597_v29, %v3159_v28 }
  0x10   :  { %v4603_v33 = vld [vmem:[%s6159_s0 + $0x4c] sm:$0xf0]  ;;  %v4602_v34 = vld [vmem:[%s6159_s0 + $0x4c] sm:$0xf]  ;;  %v3256_v35 = vld [vmem:[%s6159_s0 + $0x50] sm:$0xf0]  ;;  %v3164_v37 = vor.u32 %v4596_v30, %v3161_v31 }
  0x11   :  { %v3255_v38 = vor.u32 %v4603_v33, %v3254_v32  ;;  %v3259_v39 = vor.u32 %v4602_v34, %v3256_v35  ;;  %v3167_v40 = vld [vmem:[%s6159_s0 + $0x20] sm:$0xf]  ;;  %v4599_v41 = vld [vmem:[%s6159_s0 + $0x24] sm:$0xf0]  ;;  %v4598_v42 = vld [vmem:[%s6159_s0 + $0x24] sm:$0xf] }
  0x12   :  { %220 = vmatpush.bf16.msra.mxu0 %v4995_v8  ;;  %321 = vmatpush.bf16.msra.mxu2 %v4995_v8  ;;  %v3169_v43 = vld [vmem:[%s6159_s0 + $0x28] sm:$0xf0]  ;;  %v3262_v44 = vld [vmem:[%s6159_s0 + $0x58] sm:$0xf]  ;;  %v4605_v45 = vld [vmem:[%s6159_s0 + $0x5c] sm:$0xf0]  ;;  %v3168_v48 = vor.u32 %v4599_v41, %v3167_v40 }
  0x13   :  { %248 = vmatpush.bf16.msra.mxu1 %v5000_v9  ;;  %349 = vmatpush.bf16.msra.mxu3 %v5000_v9  ;;  %v4604_v46 = vld [vmem:[%s6159_s0 + $0x5c] sm:$0xf]  ;;  %v3264_v47 = vld [vmem:[%s6159_s0 + $0x60] sm:$0xf0]  ;;  %v3172_v49 = vor.u32 %v4598_v42, %v3169_v43  ;;  %v3263_v50 = vor.u32 %v4605_v45, %v3262_v44  ;;  %v82_v52 = vld [vmem:[%s6159_s0 + $0x30] sm:$0x11] }
  0x14   :  { %v3267_v51 = vor.u32 %v4604_v46, %v3264_v47  ;;  %v3243_v53 = vld [vmem:[%s6159_s0 + $0x68] sm:$0x11]  ;;  %v102_v54 = vunpack.c.l.b16 %v82_v52  ;;  %v103_v55 = vunpack.c.h.b16 %v82_v52  ;;  %v3277_v62 = vld [vmem:[%s6159_s0 + $0x70] sm:$0xf]  ;;  %v4607_v63 = vld [vmem:[%s6159_s0 + $0x74] sm:$0xf0] }
  0x15   :  { %v299_v56 = vunpack.c.l.b16 %v3243_v53  ;;  %v300_v57 = vunpack.c.h.b16 %v3243_v53  ;;  %v4614_v16 = vld [vmem:[%s6159_s0 + $0xbc] sm:$0xf]  ;;  %v3318_v17 = vld [vmem:[%s6159_s0 + $0xc0] sm:$0xf0]  ;;  %v3293_v22 = vld [vmem:[%s6159_s0 + $0x90] sm:$0xf] }
  0x16   :  { %221 = vmatpush.bf16.msra.mxu0 %v5009_v10  ;;  %322 = vmatpush.bf16.msra.mxu2 %v5009_v10  ;;  %v110_v58 = vpack.c.b16 %v102_v54, %v102_v54  ;;  %v111_v59 = vpack.c.b16 %v103_v55, %v103_v55  ;;  %v3321_v21 = vor.u32 %v4614_v16, %v3318_v17  ;;  %v4611_v23 = vld [vmem:[%s6159_s0 + $0x94] sm:$0xf0]  ;;  %v4616_v28 = vld [vmem:[%s6159_s0 + $0xcc] sm:$0xf]  ;;  %v3326_v29 = vld [vmem:[%s6159_s0 + $0xd0] sm:$0xf0] }
  0x17   :  { %249 = vmatpush.bf16.msra.mxu1 %v5014_v11  ;;  %350 = vmatpush.bf16.msra.mxu3 %v5014_v11  ;;  %v307_v60 = vpack.c.b16 %v299_v56, %v299_v56  ;;  %v308_v61 = vpack.c.b16 %v300_v57, %v300_v57  ;;  %v3294_v30 = vor.u32 %v4611_v23, %v3293_v22  ;;  %v3274_v34 = vld [vmem:[%s6159_s0 + $0xa0] sm:$0x11]  ;;  %v3305_v35 = vld [vmem:[%s6159_s0 + $0xd8] sm:$0x11] }
  0x18   :  { %v3329_v33 = vor.u32 %v4616_v28, %v3326_v29 }
  0x1a   :  { %222 = vmatpush.bf16.msra.mxu0 %v5023_v12  ;;  %323 = vmatpush.bf16.msra.mxu2 %v5023_v12 }
  0x1b   :  { %250 = vmatpush.bf16.msra.mxu1 %v5028_v13  ;;  %351 = vmatpush.bf16.msra.mxu3 %v5028_v13 }
  0x1e   :  { %223 = vmatpush.bf16.msra.mxu0 %v5035_v14  ;;  %324 = vmatpush.bf16.msra.mxu2 %v5035_v14 }
  0x1f   :  { %251 = vmatpush.bf16.msra.mxu1 %v5040_v15  ;;  %352 = vmatpush.bf16.msra.mxu3 %v5040_v15 }
  0x21   :  { %224 = vmatmul.bf16.vlgmr.msra.gmra.mxu0 %v3152_v24  ;;  %325 = vmatmul.bf16.vlgmr.msra.gmra.mxu2 %v3247_v26  ;;  %v4610_v24 = vld [vmem:[%s6159_s0 + $0x94] sm:$0xf]  ;;  %v3324_v26 = vld [vmem:[%s6159_s0 + $0xc8] sm:$0xf] }
  0x22   :  { %418 = vmatpush.bf16.msrb.mxu0 %v4941_v0  ;;  %252 = vmatmul.bf16.vlgmr.msra.gmra.mxu1 %v3156_v25  ;;  %v3295_v25 = vld [vmem:[%s6159_s0 + $0x98] sm:$0xf0] }
  0x23   :  { %446 = vmatpush.bf16.msrb.mxu1 %v4946_v1  ;;  %353 = vmatmul.bf16.vlgmr.msra.gmra.mxu3 %v3251_v27  ;;  %v4617_v27 = vld [vmem:[%s6159_s0 + $0xcc] sm:$0xf0]  ;;  %v3298_v31 = vor.u32 %v4610_v24, %v3295_v25 }
  0x24   :  { %519 = vmatpush.bf16.msrb.mxu2 %v4941_v0  ;;  %547 = vmatpush.bf16.msrb.mxu3 %v4946_v1  ;;  %v4606_v0 = vld [vmem:[%s6159_s0 + $0x74] sm:$0xf]  ;;  %v3279_v1 = vld [vmem:[%s6159_s0 + $0x78] sm:$0xf0]  ;;  %v3325_v32 = vor.u32 %v4617_v27, %v3324_v26 }
  0x26   :  { %419 = vmatpush.bf16.msrb.mxu0 %v4953_v2 }
  0x27   :  { %447 = vmatpush.bf16.msrb.mxu1 %v4958_v3 }
  0x28   :  { %520 = vmatpush.bf16.msrb.mxu2 %v4953_v2  ;;  %548 = vmatpush.bf16.msrb.mxu3 %v4958_v3  ;;  %v3308_v2 = vld [vmem:[%s6159_s0 + $0xa8] sm:$0xf]  ;;  %v4613_v3 = vld [vmem:[%s6159_s0 + $0xac] sm:$0xf0] }
  0x2a   :  { %420 = vmatpush.bf16.msrb.mxu0 %v4967_v4 }
  0x2b   :  { %448 = vmatpush.bf16.msrb.mxu1 %v4972_v5 }
  0x2c   :  { %521 = vmatpush.bf16.msrb.mxu2 %v4967_v4  ;;  %549 = vmatpush.bf16.msrb.mxu3 %v4972_v5  ;;  %v4612_v4 = vld [vmem:[%s6159_s0 + $0xac] sm:$0xf]  ;;  %v3310_v5 = vld [vmem:[%s6159_s0 + $0xb0] sm:$0xf0] }
  0x2e   :  { %421 = vmatpush.bf16.msrb.mxu0 %v4981_v6 }
  0x2f   :  { %449 = vmatpush.bf16.msrb.mxu1 %v4986_v7 }
  0x30   :  { %522 = vmatpush.bf16.msrb.mxu2 %v4981_v6  ;;  %550 = vmatpush.bf16.msrb.mxu3 %v4986_v7  ;;  %v3278_v6 = vor.u32 %v4607_v63, %v3277_v62  ;;  %v3282_v7 = vor.u32 %v4606_v0, %v3279_v1 }
  0x31   :  { %229 = vmatmul.bf16.gmra.mxu0 %v3160_v36  ;;  %330 = vmatmul.bf16.gmra.mxu2 %v3255_v38  ;;  %v400_v36 = vunpack.c.l.b16 %v3274_v34  ;;  %v501_v38 = vunpack.c.l.b16 %v3305_v35 }
  0x32   :  { %422 = vmatpush.bf16.msrb.mxu0 %v4995_v8  ;;  %257 = vmatmul.bf16.gmra.mxu1 %v3164_v37  ;;  %v401_v37 = vunpack.c.h.b16 %v3274_v34 }
  0x33   :  { %450 = vmatpush.bf16.msrb.mxu1 %v5000_v9  ;;  %358 = vmatmul.bf16.gmra.mxu3 %v3259_v39  ;;  %v502_v39 = vunpack.c.h.b16 %v3305_v35  ;;  %v408_v40 = vpack.c.b16 %v400_v36, %v400_v36  ;;  %v509_v42 = vpack.c.b16 %v501_v38, %v501_v38 }
  0x34   :  { %523 = vmatpush.bf16.msrb.mxu2 %v4995_v8  ;;  %551 = vmatpush.bf16.msrb.mxu3 %v5000_v9  ;;  %v3309_v8 = vor.u32 %v4613_v3, %v3308_v2  ;;  %v3313_v9 = vor.u32 %v4612_v4, %v3310_v5  ;;  %v409_v41 = vpack.c.b16 %v401_v37, %v401_v37 }
  0x35   :  { %v510_v43 = vpack.c.b16 %v502_v39, %v502_v39 }
  0x36   :  { %423 = vmatpush.bf16.msrb.mxu0 %v5009_v10 }
  0x37   :  { %451 = vmatpush.bf16.msrb.mxu1 %v5014_v11 }
  0x38   :  { %524 = vmatpush.bf16.msrb.mxu2 %v5009_v10  ;;  %552 = vmatpush.bf16.msrb.mxu3 %v5014_v11  ;;  %v3285_v10 = vld [vmem:[%s6159_s0 + $0x80] sm:$0xf]  ;;  %v4609_v11 = vld [vmem:[%s6159_s0 + $0x84] sm:$0xf0] }
  0x39   :  { %v3286_v18 = vor.u32 %v4609_v11, %v3285_v10 }
  0x3a   :  { %424 = vmatpush.bf16.msrb.mxu0 %v5023_v12 }
  0x3b   :  { %452 = vmatpush.bf16.msrb.mxu1 %v5028_v13 }
  0x3c   :  { %525 = vmatpush.bf16.msrb.mxu2 %v5023_v12  ;;  %553 = vmatpush.bf16.msrb.mxu3 %v5028_v13  ;;  %v4608_v12 = vld [vmem:[%s6159_s0 + $0x84] sm:$0xf]  ;;  %v3287_v13 = vld [vmem:[%s6159_s0 + $0x88] sm:$0xf0] }
  0x3d   :  { %v3290_v19 = vor.u32 %v4608_v12, %v3287_v13 }
  0x3e   :  { %425 = vmatpush.bf16.msrb.mxu0 %v5035_v14 }
  0x3f   :  { %453 = vmatpush.bf16.msrb.mxu1 %v5040_v15 }
  0x40   :  { %526 = vmatpush.bf16.msrb.mxu2 %v5035_v14  ;;  %554 = vmatpush.bf16.msrb.mxu3 %v5040_v15  ;;  %v3316_v14 = vld [vmem:[%s6159_s0 + $0xb8] sm:$0xf]  ;;  %v4615_v15 = vld [vmem:[%s6159_s0 + $0xbc] sm:$0xf0] }
  0x41   :  { %234 = vmatmul.bf16.gmra.mxu0 %v3168_v48  ;;  %335 = vmatmul.bf16.gmra.mxu2 %v3263_v50  ;;  %v3317_v20 = vor.u32 %v4615_v15, %v3316_v14 }
  0x42   :  { %262 = vmatmul.bf16.gmra.mxu1 %v3172_v49 }
  0x43   :  { %363 = vmatmul.bf16.gmra.mxu3 %v3267_v51 }
  0x51   :  { %239 = vmatmul.bf16.gmra.mxu0 %v110_v58  ;;  %340 = vmatmul.bf16.gmra.mxu2 %v307_v60 }
  0x52   :  { %267 = vmatmul.bf16.gmra.mxu1 %v111_v59 }
  0x53   :  { %368 = vmatmul.bf16.gmra.mxu3 %v308_v61 }
  0x61   :  { %426 = vmatmul.bf16.vlgmr.msrb.gmra.mxu0 %v3278_v6  ;;  %527 = vmatmul.bf16.vlgmr.msrb.gmra.mxu2 %v3309_v8 }
  0x62   :  { %454 = vmatmul.bf16.vlgmr.msrb.gmra.mxu1 %v3282_v7 }
  0x63   :  { %555 = vmatmul.bf16.vlgmr.msrb.gmra.mxu3 %v3313_v9 }
  0x71   :  { %431 = vmatmul.bf16.gmra.mxu0 %v3286_v18  ;;  %532 = vmatmul.bf16.gmra.mxu2 %v3317_v20 }
  0x72   :  { %459 = vmatmul.bf16.gmra.mxu1 %v3290_v19 }
  0x73   :  { %560 = vmatmul.bf16.gmra.mxu3 %v3321_v21 }
  0x81   :  { %436 = vmatmul.bf16.gmra.mxu0 %v3294_v30  ;;  %537 = vmatmul.bf16.gmra.mxu2 %v3325_v32 }
  0x82   :  { %464 = vmatmul.bf16.gmra.mxu1 %v3298_v31 }
  0x83   :  { %565 = vmatmul.bf16.gmra.mxu3 %v3329_v33 }
  0x91   :  { %441 = vmatmul.bf16.gmra.mxu0 %v408_v40  ;;  %542 = vmatmul.bf16.gmra.mxu2 %v509_v42 }
  0x92   :  { %469 = vmatmul.bf16.gmra.mxu1 %v409_v41 }
  0x93   :  { %570 = vmatmul.bf16.gmra.mxu3 %v510_v43 }
  0x9e   :  { %v225_v44 = vpop.f32.mrf.mxu0 }
  0x9f   :  { %v253_v45 = vpop.f32.mrf.mxu1 }
  0xa0   :  { %v5238_v46 = vadd.f32 %v253_v45, %v225_v44 }
  0xa4   :  { %v326_v47 = vpop.f32.mrf.mxu2 }
  0xa6   :  { %v354_v48 = vpop.f32.mrf.mxu3  ;;  %v227_v50 = vpop.f32.mrf.mxu0 }
  0xa7   :  { %v5240_v49 = vadd.f32 %v354_v48, %v326_v47  ;;  %v255_v51 = vpop.f32.mrf.mxu1 }
  0xa8   :  { %v5256_v35 = vadd.f32 %v255_v51, %v227_v50 }
  0xaa   :  { %v575_v42 = vadd.f32 %v5256_v35, %v5238_v46 }
  0xac   :  { %v328_v52 = vpop.f32.mrf.mxu2 }
  0xae   :  { %v356_v53 = vpop.f32.mrf.mxu3  ;;  %v230_v54 = vpop.f32.mrf.mxu0 }
  0xaf   :  { %v258_v55 = vpop.f32.mrf.mxu1  ;;  %v5254_v34 = vadd.f32 %v356_v53, %v328_v52 }
  0xb0   :  { %v5242_v56 = vadd.f32 %v258_v55, %v230_v54 }
  0xb1   :  { %v590_v36 = vadd.f32 %v5254_v34, %v5240_v49 }
  0xb2   :  { %v576_v45 = vadd.f32 %v575_v42, %v5242_v56 }
  0xb4   :  { %v331_v57 = vpop.f32.mrf.mxu2 }
  0xb6   :  { %v359_v58 = vpop.f32.mrf.mxu3  ;;  %v232_v60 = vpop.f32.mrf.mxu0 }
  0xb7   :  { %v5244_v59 = vadd.f32 %v359_v58, %v331_v57  ;;  %v260_v61 = vpop.f32.mrf.mxu1 }
  0xb8   :  { %v5265_v44 = vadd.f32 %v260_v61, %v232_v60 }
  0xb9   :  { %v591_v43 = vadd.f32 %v590_v36, %v5244_v59 }
  0xba   :  { %v577_v50 = vadd.f32 %v576_v45, %v5265_v44 }
  0xbc   :  { %v333_v62 = vpop.f32.mrf.mxu2 }
  0xbe   :  { %v361_v63 = vpop.f32.mrf.mxu3  ;;  %v235_v0 = vpop.f32.mrf.mxu0 }
  0xbf   :  { %v263_v1 = vpop.f32.mrf.mxu1  ;;  %v5260_v37 = vadd.f32 %v361_v63, %v333_v62 }
  0xc0   :  { %v5246_v2 = vadd.f32 %v263_v1, %v235_v0 }
  0xc1   :  { %v592_v47 = vadd.f32 %v591_v43, %v5260_v37 }
  0xc2   :  { %v578_v55 = vadd.f32 %v577_v50, %v5246_v2 }
  0xc4   :  { %v336_v3 = vpop.f32.mrf.mxu2 }
  0xc6   :  { %v364_v4 = vpop.f32.mrf.mxu3  ;;  %v237_v6 = vpop.f32.mrf.mxu0 }
  0xc7   :  { %v5248_v5 = vadd.f32 %v364_v4, %v336_v3  ;;  %v265_v7 = vpop.f32.mrf.mxu1 }
  0xc8   :  { %v5273_v52 = vadd.f32 %v265_v7, %v237_v6 }
  0xc9   :  { %v593_v51 = vadd.f32 %v592_v47, %v5248_v5 }
  0xca   :  { %v579_v3 = vadd.f32 %v578_v55, %v5273_v52 }
  0xcc   :  { %v338_v8 = vpop.f32.mrf.mxu2 }
  0xce   :  { %v366_v9 = vpop.f32.mrf.mxu3  ;;  %v240_v10 = vpop.f32.mrf.mxu0 }
  0xcf   :  { %v268_v11 = vpop.f32.mrf.mxu1  ;;  %v5269_v48 = vadd.f32 %v366_v9, %v338_v8 }
  0xd0   :  { %v5250_v12 = vadd.f32 %v268_v11, %v240_v10 }
  0xd1   :  { %v594_v57 = vadd.f32 %v593_v51, %v5269_v48 }
  0xd2   :  { %v581_v61 = vsel %vm580_vm0, %v5250_v12, 0.0 }
  0xd3   :  { %v582_v8 = vadd.f32 %v581_v61, %v579_v3 }
  0xd4   :  { %v341_v13 = vpop.f32.mrf.mxu2 }
  0xd6   :  { %v369_v14 = vpop.f32.mrf.mxu3  ;;  %v242_v16 = vpop.f32.mrf.mxu0 }
  0xd7   :  { %v5252_v15 = vadd.f32 %v369_v14, %v341_v13  ;;  %v270_v17 = vpop.f32.mrf.mxu1 }
  0xd8   :  { %v583_v17 = vrot.slane %v582_v8, 4 }
  0xd9   :  { %v595_v53 = vsel %vm580_vm0, %v5252_v15, 0.0 }
  0xda   :  { %v596_v4 = vadd.f32 %v595_v53, %v594_v57 }
  0xdc   :  { %v343_v18 = vpop.f32.mrf.mxu2  ;;  %v597_v11 = vrot.slane %v596_v4, 4 }
  0xde   :  { %v371_v19 = vpop.f32.mrf.mxu3  ;;  %v427_v20 = vpop.f32.mrf.mxu0 }
  0xdf   :  { %v455_v21 = vpop.f32.mrf.mxu1 }
  0xe0   :  { %v5283_v62 = vadd.f32 %v455_v21, %v427_v20 }
  0xe4   :  { %v528_v22 = vpop.f32.mrf.mxu2 }
  0xe6   :  { %v556_v23 = vpop.f32.mrf.mxu3  ;;  %v429_v24 = vpop.f32.mrf.mxu0 }
  0xe7   :  { %v457_v25 = vpop.f32.mrf.mxu1  ;;  %v5300_v18 = vadd.f32 %v556_v23, %v528_v22  ;;  %v584_v22 = vadd.f32 %v583_v17, %v582_v8 }
  0xe8   :  { %v5277_v54 = vadd.f32 %v457_v25, %v429_v24 }
  0xea   :  { %v604_v6 = vadd.f32 %v5277_v54, %v5283_v62 }
  0xec   :  { %v530_v26 = vpop.f32.mrf.mxu2 }
  0xee   :  { %v558_v27 = vpop.f32.mrf.mxu3  ;;  %v432_v28 = vpop.f32.mrf.mxu0 }
  0xef   :  { %v460_v29 = vpop.f32.mrf.mxu1  ;;  %v5295_v13 = vadd.f32 %v558_v27, %v530_v26 }
  0xf0   :  { %v5285_v63 = vadd.f32 %v460_v29, %v432_v28  ;;  %v598_v29 = vadd.f32 %v597_v11, %v596_v4 }
  0xf1   :  { %v618_v26 = vadd.f32 %v5295_v13, %v5300_v18 }
  0xf2   :  { %v605_v9 = vadd.f32 %v604_v6, %v5285_v63 }
  0xf4   :  { %v533_v30 = vpop.f32.mrf.mxu2 }
  0xf6   :  { %v561_v31 = vpop.f32.mrf.mxu3  ;;  %v434_v32 = vpop.f32.mrf.mxu0 }
  0xf7   :  { %v462_v33 = vpop.f32.mrf.mxu1  ;;  %v5302_v19 = vadd.f32 %v561_v31, %v533_v30 }
  0xf8   :  { %v5290_v7 = vadd.f32 %v462_v33, %v434_v32 }
  0xf9   :  { %v619_v23 = vadd.f32 %v618_v26, %v5302_v19 }
  0xfa   :  { %v606_v14 = vadd.f32 %v605_v9, %v5290_v7 }
  0xfc   :  { %v535_v38 = vpop.f32.mrf.mxu2 }
  0xfe   :  { %v563_v39 = vpop.f32.mrf.mxu3  ;;  %v437_v40 = vpop.f32.mrf.mxu0 }
  0xff   :  { %v465_v41 = vpop.f32.mrf.mxu1  ;;  %v5307_v27 = vadd.f32 %v563_v39, %v535_v38  ;;  %v585_v39 = vrot.slane %v584_v22, 2 }
 0x100   :  { %v5293_v10 = vadd.f32 %v465_v41, %v437_v40  ;;  %v599_v40 = vrot.slane %v598_v29, 2 }
 0x101   :  { %v620_v41 = vadd.f32 %v619_v23, %v5307_v27 }
 0x102   :  { %v607_v24 = vadd.f32 %v606_v14, %v5293_v10  ;;  %v600_v57 = vadd.f32 %v599_v40, %v598_v29 }
 0x104   :  { %v538_v58 = vpop.f32.mrf.mxu2  ;;  %v601_v4 = vrot.slane %v600_v57, 1 }
 0x106   :  { %v566_v60 = vpop.f32.mrf.mxu3  ;;  %v439_v0 = vpop.f32.mrf.mxu0 }
 0x107   :  { %v467_v1 = vpop.f32.mrf.mxu1  ;;  %v5313_v30 = vadd.f32 %v566_v60, %v538_v58 }
 0x108   :  { %v5298_v16 = vadd.f32 %v467_v1, %v439_v0  ;;  %v586_v0 = vadd.f32 %v585_v39, %v584_v22 }
 0x109   :  { %v621_v43 = vadd.f32 %v620_v41, %v5313_v30 }
 0x10a   :  { %v608_v33 = vadd.f32 %v607_v24, %v5298_v16  ;;  %v587_v8 = vrot.slane %v586_v0, 1 }
 0x10c   :  { %v540_v20 = vpop.f32.mrf.mxu2  ;;  %v588_v24 = vadd.f32 %v587_v8, %v586_v0 }
 0x10e   :  { %v568_v21 = vpop.f32.mrf.mxu3  ;;  %v442_v25 = vpop.f32.mrf.mxu0 }
 0x10f   :  { %v470_v28 = vpop.f32.mrf.mxu1  ;;  %v5318_v42 = vadd.f32 %v568_v21, %v540_v20  ;;  %v602_v20 = vadd.f32 %v601_v4, %v600_v57 }
 0x110   :  { %v5309_v32 = vadd.f32 %v470_v28, %v442_v25 }
 0x111   :  { %v622_v58 = vadd.f32 %v621_v43, %v5318_v42  ;;  %v603_v29 = vadd.f32 %v602_v20, %v588_v24 }
 0x112   :  { %v609_v31 = vsel %vm580_vm0, %v5309_v32, 0.0 }
 0x113   :  { %v610_v36 = vadd.f32 %v609_v31, %v608_v33 }
 0x114   :  { %v543_v45 = vpop.f32.mrf.mxu2 }
 0x115   :  { %v611_v38 = vrot.slane %v610_v36, 4 }
 0x116   :  { %v571_v47 = vpop.f32.mrf.mxu3  ;;  %v444_v53 = vpop.f32.mrf.mxu0 }
 0x117   :  { %v612_v50 = vadd.f32 %v611_v38, %v610_v36  ;;  %v5321_v51 = vadd.f32 %v571_v47, %v543_v45  ;;  %v472_v55 = vpop.f32.mrf.mxu1 }
 0x119   :  { %v613_v60 = vrot.slane %v612_v50, 2  ;;  %v623_v61 = vsel %vm580_vm0, %v5321_v51, 0.0 }
 0x11a   :  { %v624_v1 = vadd.f32 %v623_v61, %v622_v58 }
 0x11b   :  { %v614_v3 = vadd.f32 %v613_v60, %v612_v50 }
 0x11c   :  { %v625_v6 = vrot.slane %v624_v1, 4  ;;  %v545_v14 = vpop.f32.mrf.mxu2 }
 0x11d   :  { %v615_v9 = vrot.slane %v614_v3, 1 }
 0x11e   :  { %v626_v11 = vadd.f32 %v625_v6, %v624_v1  ;;  %v573_v17 = vpop.f32.mrf.mxu3 }
 0x11f   :  { %v616_v25 = vadd.f32 %v615_v9, %v614_v3 }
 0x120   :  { %v627_v21 = vrot.slane %v626_v11, 2 }
 0x121   :  { %v617_v33 = vadd.f32 %v616_v25, %v603_v29  ;;  %v4625_v29 = vld [vmem:[%s6163_s4 + $0x38] sm:$0xff] }
 0x122   :  { %v628_v28 = vadd.f32 %v627_v21, %v626_v11  ;;  %1003 = vmatpush.bf16.msra.mxu1 %v4625_v29 }
 0x124   :  { %v629_v26 = vrot.slane %v628_v28, 1 }
 0x126   :  { %v630_v23 = vadd.f32 %v629_v26, %v628_v28  ;;  %v4633_v28 = vld [vmem:[%s6163_s4 + $0x78] sm:$0xff] }
 0x127   :  { %v4641_v26 = vld [vmem:[%s6163_s4 + $0xb8] sm:$0xff]  ;;  %942 = vmatpush.bf16.msra.mxu0 %v4633_v28 }
 0x128   :  { %v631_v31 = vadd.f32 %v630_v23, %v617_v33  ;;  %1083 = vmatpush.bf16.msra.mxu2 %v4641_v26 }
 0x12a   :  { %v5326_v22 = vmul.f32 0.005, %v631_v31 }
 0x12c   :  { %v633_v36 = vsub.f32 %v5238_v46, %v5326_v22  ;;  %v634_v40 = vsub.f32 %v5256_v35, %v5326_v22  ;;  %v635_v41 = vsub.f32 %v5242_v56, %v5326_v22  ;;  %v636_v38 = vsub.f32 %v5265_v44, %v5326_v22 }
 0x12d   :  { %v639_v39 = vsub.f32 %v5250_v12, %v5326_v22  ;;  %v661_v43 = vsub.f32 %v5240_v49, %v5326_v22  ;;  %v637_v45 = vsub.f32 %v5246_v2, %v5326_v22  ;;  %v662_v53 = vsub.f32 %v5254_v34, %v5326_v22 }
 0x12e   :  { %v640_v47 = vmul.f32 %v633_v36, %v633_v36  ;;  %v641_v50 = vmul.f32 %v634_v40, %v634_v40  ;;  %v642_v55 = vmul.f32 %v635_v41, %v635_v41  ;;  %v663_v58 = vsub.f32 %v5244_v59, %v5326_v22  ;;  %v4649_v36 = vld [vmem:[%s6163_s4 + $0xf8] sm:$0xff] }
 0x12f   :  { %v638_v60 = vsub.f32 %v5273_v52, %v5326_v22  ;;  %v643_v61 = vmul.f32 %v636_v38, %v636_v38  ;;  %v646_v0 = vmul.f32 %v639_v39, %v639_v39  ;;  %v668_v1 = vmul.f32 %v661_v43, %v661_v43  ;;  %1164 = vmatpush.bf16.msra.mxu3 %v4649_v36 }
 0x130   :  { %v647_v57 = vadd.f32 %v641_v50, %v640_v47  ;;  %v644_v3 = vmul.f32 %v637_v45, %v637_v45  ;;  %v664_v6 = vsub.f32 %v5260_v37, %v5326_v22  ;;  %v669_v8 = vmul.f32 %v662_v53, %v662_v53 }
 0x131   :  { %v665_v9 = vsub.f32 %v5248_v5, %v5326_v22  ;;  %v666_v11 = vsub.f32 %v5269_v48, %v5326_v22  ;;  %v667_v14 = vsub.f32 %v5252_v15, %v5326_v22  ;;  %v689_v17 = vsub.f32 %v5283_v62, %v5326_v22 }
 0x132   :  { %v648_v4 = vadd.f32 %v647_v57, %v642_v55  ;;  %v670_v21 = vmul.f32 %v663_v58, %v663_v58  ;;  %v675_v24 = vadd.f32 %v669_v8, %v668_v1  ;;  %v690_v25 = vsub.f32 %v5277_v54, %v5326_v22  ;;  %v4648_v8 = vld [vmem:[%s6163_s4 + $0xf0] sm:$0xff] }
 0x133   :  { %v645_v33 = vmul.f32 %v638_v60, %v638_v60  ;;  %v652_v23 = vsel %vm580_vm0, %v646_v0, 0.0  ;;  %v691_v31 = vsub.f32 %v5285_v63, %v5326_v22  ;;  %v671_v41 = vmul.f32 %v664_v6, %v664_v6  ;;  %v4632_v60 = vld [vmem:[%s6163_s4 + $0x70] sm:$0xff]  ;;  %1165 = vmatpush.bf16.msra.mxu3 %v4648_v8 }
 0x134   :  { %v649_v20 = vadd.f32 %v648_v4, %v643_v61  ;;  %v676_v38 = vadd.f32 %v675_v24, %v670_v21  ;;  %v696_v39 = vmul.f32 %v689_v17, %v689_v17  ;;  %v672_v43 = vmul.f32 %v665_v9, %v665_v9  ;;  %v4624_v61 = vld [vmem:[%s6163_s4 + $0x30] sm:$0xff]  ;;  %943 = vmatpush.bf16.msra.mxu0 %v4632_v60 }
 0x135   :  { %v673_v45 = vmul.f32 %v666_v11, %v666_v11  ;;  %v692_v47 = vsub.f32 %v5290_v7, %v5326_v22  ;;  %v697_v50 = vmul.f32 %v690_v25, %v690_v25  ;;  %v674_v55 = vmul.f32 %v667_v14, %v667_v14  ;;  %v4640_v0 = vld [vmem:[%s6163_s4 + $0xb0] sm:$0xff]  ;;  %1004 = vmatpush.bf16.msra.mxu1 %v4624_v61 }
 0x136   :  { %v650_v40 = vadd.f32 %v649_v20, %v644_v3  ;;  %v677_v57 = vadd.f32 %v676_v38, %v671_v41  ;;  %v693_v58 = vsub.f32 %v5293_v10, %v5326_v22  ;;  %v698_v1 = vmul.f32 %v691_v31, %v691_v31  ;;  %1084 = vmatpush.bf16.msra.mxu2 %v4640_v0  ;;  %v4639_v31 = vld [vmem:[%s6163_s4 + $0xa8] sm:$0xff] }
 0x137   :  { %v703_v3 = vadd.f32 %v697_v50, %v696_v39  ;;  %v717_v4 = vsub.f32 %v5300_v18, %v5326_v22  ;;  %v718_v6 = vsub.f32 %v5295_v13, %v5326_v22  ;;  %v694_v14 = vsub.f32 %v5298_v16, %v5326_v22  ;;  %v4647_v39 = vld [vmem:[%s6163_s4 + $0xe8] sm:$0xff] }
 0x138   :  { %v651_v53 = vadd.f32 %v650_v40, %v645_v33  ;;  %v678_v11 = vadd.f32 %v677_v57, %v672_v43  ;;  %v695_v17 = vsub.f32 %v5309_v32, %v5326_v22  ;;  %v699_v20 = vmul.f32 %v692_v47, %v692_v47  ;;  %v4631_v33 = vld [vmem:[%s6163_s4 + $0x68] sm:$0xff]  ;;  %1166 = vmatpush.bf16.msra.mxu3 %v4647_v39 }
 0x139   :  { %v704_v21 = vadd.f32 %v703_v3, %v698_v1  ;;  %v719_v24 = vsub.f32 %v5302_v19, %v5326_v22  ;;  %v724_v29 = vmul.f32 %v717_v4, %v717_v4  ;;  %v725_v26 = vmul.f32 %v718_v6, %v718_v6  ;;  %944 = vmatpush.bf16.msra.mxu0 %v4631_v33  ;;  %v4630_v1 = vld [vmem:[%s6163_s4 + $0x60] sm:$0xff]  ;;  %v4629_v33 = vld [vmem:[%s6163_s4 + $0x58] sm:$0xff] }
 0x13a   :  { %v653_v9 = vadd.f32 %v652_v23, %v651_v53  ;;  %v679_v28 = vadd.f32 %v678_v11, %v673_v45  ;;  %v4623_v23 = vld [vmem:[%s6163_s4 + $0x28] sm:$0xff]  ;;  %v680_v36 = vsel %vm580_vm0, %v674_v55, 0.0  ;;  %v700_v40 = vmul.f32 %v693_v58, %v693_v58  ;;  %1085 = vmatpush.bf16.msra.mxu2 %v4639_v31  ;;  %v4622_v3 = vld [vmem:[%s6163_s4 + $0x20] sm:$0xff]  ;;  %v4637_v31 = vld [vmem:[%s6163_s4 + $0x98] sm:$0xff] }
 0x13b   :  { %v705_v41 = vadd.f32 %v704_v21, %v699_v20  ;;  %v720_v38 = vsub.f32 %v5307_v27, %v5326_v22  ;;  %v701_v47 = vmul.f32 %v694_v14, %v694_v14  ;;  %v702_v50 = vmul.f32 %v695_v17, %v695_v17  ;;  %1005 = vmatpush.bf16.msra.mxu1 %v4623_v23  ;;  %v4638_v4 = vld [vmem:[%s6163_s4 + $0xa0] sm:$0xff]  ;;  %v4621_v23 = vld [vmem:[%s6163_s4 + $0x18] sm:$0xff] }
 0x13c   :  { %v654_v25 = vrot.slane %v653_v9, 4  ;;  %v681_v45 = vadd.f32 %v680_v36, %v679_v28  ;;  %v721_v57 = vsub.f32 %v5313_v30, %v5326_v22  ;;  %v726_v55 = vmul.f32 %v719_v24, %v719_v24  ;;  %v4646_v14 = vld [vmem:[%s6163_s4 + $0xe0] sm:$0xff] }
 0x13d   :  { %v706_v53 = vadd.f32 %v705_v41, %v700_v40  ;;  %v731_v58 = vadd.f32 %v725_v26, %v724_v29  ;;  %v723_v0 = vsub.f32 %v5321_v51, %v5326_v22  ;;  %v722_v8 = vsub.f32 %v5318_v42, %v5326_v22  ;;  %945 = vmatpush.bf16.msra.mxu0 %v4630_v1 }
 0x13e   :  { %v655_v43 = vadd.f32 %v654_v25, %v653_v9  ;;  %v682_v61 = vrot.slane %v681_v45, 4  ;;  %v727_v9 = vmul.f32 %v720_v38, %v720_v38  ;;  %v708_v20 = vsel %vm580_vm0, %v702_v50, 0.0  ;;  %1086 = vmatpush.bf16.msra.mxu2 %v4638_v4  ;;  %1167 = vmatpush.bf16.msra.mxu3 %v4646_v14  ;;  %v4645_v38 = vld [vmem:[%s6163_s4 + $0xd8] sm:$0xff] }
 0x13f   :  { %v707_v6 = vadd.f32 %v706_v53, %v701_v47  ;;  %v732_v11 = vadd.f32 %v731_v58, %v726_v55  ;;  %v728_v25 = vmul.f32 %v721_v57, %v721_v57  ;;  %1006 = vmatpush.bf16.msra.mxu1 %v4622_v3  ;;  %v730_v26 = vmul.f32 %v723_v0, %v723_v0  ;;  %v4628_v57 = vld [vmem:[%s6163_s4 + $0x50] sm:$0xff] }
 0x140   :  { %v656_v60 = vrot.slane %v655_v43, 2  ;;  %v683_v17 = vadd.f32 %v682_v61, %v681_v45  ;;  %v729_v40 = vmul.f32 %v722_v8, %v722_v8  ;;  %v4620_v55 = vld [vmem:[%s6163_s4 + $0x10] sm:$0xff]  ;;  %v4627_v8 = vld [vmem:[%s6163_s4 + $0x48] sm:$0xff] }
 0x141   :  { %v709_v24 = vadd.f32 %v708_v20, %v707_v6  ;;  %v733_v28 = vadd.f32 %v732_v11, %v727_v9  ;;  %946 = vmatpush.bf16.msra.mxu0 %v4629_v33  ;;  %v736_v53 = vsel %vm580_vm0, %v730_v26, 0.0  ;;  %v4636_v58 = vld [vmem:[%s6163_s4 + $0x90] sm:$0xff]  ;;  %v4619_v9 = vld [vmem:[%s6163_s4 + $0x8] sm:$0xff] }
 0x142   :  { %v657_v21 = vadd.f32 %v656_v60, %v655_v43  ;;  %v684_v29 = vrot.slane %v683_v17, 2  ;;  %1087 = vmatpush.bf16.msra.mxu2 %v4637_v31  ;;  %1168 = vmatpush.bf16.msra.mxu3 %v4645_v38  ;;  %v4644_v0 = vld [vmem:[%s6163_s4 + $0xd0] sm:$0xff]  ;;  %v4635_v11 = vld [vmem:[%s6163_s4 + $0x88] sm:$0xff]  ;;  %v4657_v31 = vld [vmem:[%s6163_s4 + $0x138] sm:$0xff] }
 0x143   :  { %v710_v36 = vrot.slane %v709_v24, 4  ;;  %v734_v41 = vadd.f32 %v733_v28, %v728_v25  ;;  %1007 = vmatpush.bf16.msra.mxu1 %v4621_v23  ;;  %v4643_v20 = vld [vmem:[%s6163_s4 + $0xc8] sm:$0xff]  ;;  %v4626_v25 = vld [vmem:[%s6163_s4 + $0x40] sm:$0xff] }
 0x144   :  { %v685_v39 = vadd.f32 %v684_v29, %v683_v17  ;;  %v658_v43 = vrot.slane %v657_v21, 1  ;;  %v4618_v28 = vld [vmem:[%s6163_s4] sm:$0xff] }
 0x145   :  { %v711_v45 = vadd.f32 %v710_v36, %v709_v24  ;;  %v735_v47 = vadd.f32 %v734_v41, %v729_v40  ;;  %947 = vmatpush.bf16.msra.mxu0 %v4628_v57  ;;  %v4634_v29 = vld [vmem:[%s6163_s4 + $0x80] sm:$0xff]  ;;  %v4665_v36 = vld [vmem:[%s6163_s4 + $0x178] sm:$0xff] }
 0x146   :  { %v686_v50 = vrot.slane %v685_v39, 1  ;;  %v659_v1 = vadd.f32 %v658_v43, %v657_v21  ;;  %1088 = vmatpush.bf16.msra.mxu2 %v4636_v58  ;;  %1169 = vmatpush.bf16.msra.mxu3 %v4644_v0  ;;  %v4642_v23 = vld [vmem:[%s6163_s4 + $0xc0] sm:$0xff]  ;;  %v4673_v40 = vld [vmem:[%s6163_s4 + $0x1b8] sm:$0xff]  ;;  %v4655_v58 = vld [vmem:[%s6163_s4 + $0x128] sm:$0xff] }
 0x147   :  { %v712_v60 = vrot.slane %v711_v45, 2  ;;  %v737_v61 = vadd.f32 %v736_v53, %v735_v47  ;;  %1008 = vmatpush.bf16.msra.mxu1 %v4620_v55  ;;  %v4681_v41 = vld [vmem:[%s6163_s4 + $0x1f8] sm:$0xff]  ;;  %v4664_v47 = vld [vmem:[%s6163_s4 + $0x170] sm:$0xff]  ;;  %v4679_v0 = vld [vmem:[%s6163_s4 + $0x1e8] sm:$0xff] }
 0x148   :  { %v687_v3 = vadd.f32 %v686_v50, %v685_v39  ;;  %v4672_v50 = vld [vmem:[%s6163_s4 + $0x1b0] sm:$0xff] }
 0x149   :  { %v713_v4 = vadd.f32 %v712_v60, %v711_v45  ;;  %v738_v6 = vrot.slane %v737_v61, 4  ;;  %948 = vmatpush.bf16.msra.mxu0 %v4627_v8  ;;  %v4656_v45 = vld [vmem:[%s6163_s4 + $0x130] sm:$0xff]  ;;  %v4663_v60 = vld [vmem:[%s6163_s4 + $0x168] sm:$0xff]  ;;  %v4678_v8 = vld [vmem:[%s6163_s4 + $0x1e0] sm:$0xff] }
 0x14a   :  { %v688_v21 = vadd.f32 %v687_v3, %v659_v1  ;;  %1089 = vmatpush.bf16.msra.mxu2 %v4635_v11  ;;  %1170 = vmatpush.bf16.msra.mxu3 %v4643_v20  ;;  %v4680_v53 = vld [vmem:[%s6163_s4 + $0x1f0] sm:$0xff]  ;;  %v4654_v3 = vld [vmem:[%s6163_s4 + $0x120] sm:$0xff]  ;;  %v4661_v11 = vld [vmem:[%s6163_s4 + $0x158] sm:$0xff] }
 0x14b   :  { %v714_v14 = vrot.slane %v713_v4, 1  ;;  %v739_v17 = vadd.f32 %v738_v6, %v737_v61  ;;  %1009 = vmatpush.bf16.msra.mxu1 %v4619_v9  ;;  %v4671_v61 = vld [vmem:[%s6163_s4 + $0x1a8] sm:$0xff]  ;;  %v4670_v6 = vld [vmem:[%s6163_s4 + $0x1a0] sm:$0xff]  ;;  %v4653_v9 = vld [vmem:[%s6163_s4 + $0x118] sm:$0xff] }
 0x14d   :  { %v740_v24 = vrot.slane %v739_v17, 2  ;;  %v715_v26 = vadd.f32 %v714_v14, %v713_v4  ;;  %949 = vmatpush.bf16.msra.mxu0 %v4626_v25  ;;  %v4662_v4 = vld [vmem:[%s6163_s4 + $0x160] sm:$0xff]  ;;  %v4669_v14 = vld [vmem:[%s6163_s4 + $0x198] sm:$0xff]  ;;  %v4660_v25 = vld [vmem:[%s6163_s4 + $0x150] sm:$0xff] }
 0x14e   :  { %1090 = vmatpush.bf16.msra.mxu2 %v4634_v29  ;;  %1171 = vmatpush.bf16.msra.mxu3 %v4642_v23 }
 0x14f   :  { %v741_v33 = vadd.f32 %v740_v24, %v739_v17  ;;  %v716_v38 = vadd.f32 %v715_v26, %v688_v21  ;;  %1010 = vmatpush.bf16.msra.mxu1 %v4618_v28  ;;  %v4677_v17 = vld [vmem:[%s6163_s4 + $0x1d8] sm:$0xff]  ;;  %v4652_v21 = vld [vmem:[%s6163_s4 + $0x110] sm:$0xff] }
 0x150   :  { %v4668_v28 = vld [vmem:[%s6163_s4 + $0x190] sm:$0xff] }
 0x151   :  { %v742_v39 = vrot.slane %v741_v33, 1  ;;  %1245 = vmatpush.bf16.msrb.mxu0 %v4657_v31  ;;  %v4676_v26 = vld [vmem:[%s6163_s4 + $0x1d0] sm:$0xff]  ;;  %v4659_v31 = vld [vmem:[%s6163_s4 + $0x148] sm:$0xff] }
 0x152   :  { %1407 = vmatpush.bf16.msrb.mxu2 %v4673_v40  ;;  %1488 = vmatpush.bf16.msrb.mxu3 %v4681_v41  ;;  %v4675_v41 = vld [vmem:[%s6163_s4 + $0x1c8] sm:$0xff] }
 0x153   :  { %1326 = vmatpush.bf16.msrb.mxu1 %v4665_v36  ;;  %v743_v43 = vadd.f32 %v742_v39, %v741_v33  ;;  %v4651_v33 = vld [vmem:[%s6163_s4 + $0x108] sm:$0xff]  ;;  %v74_v39 = vld [vmem:[%s6161_s2] sm:$0x1] }
 0x154   :  { %v4667_v36 = vld [vmem:[%s6163_s4 + $0x188] sm:$0xff] }
 0x155   :  { %v744_v57 = vadd.f32 %v743_v43, %v716_v38  ;;  %1246 = vmatpush.bf16.msrb.mxu0 %v4656_v45  ;;  %v4650_v38 = vld [vmem:[%s6163_s4 + $0x100] sm:$0xff] }
 0x156   :  { %1408 = vmatpush.bf16.msrb.mxu2 %v4672_v50  ;;  %1489 = vmatpush.bf16.msrb.mxu3 %v4680_v53  ;;  %v4658_v45 = vld [vmem:[%s6163_s4 + $0x140] sm:$0xff] }
 0x157   :  { %1327 = vmatpush.bf16.msrb.mxu1 %v4664_v47  ;;  %v745_v55 = vmul.f32 0.005, %v744_v57  ;;  %v4666_v47 = vld [vmem:[%s6163_s4 + $0x180] sm:$0xff] }
 0x158   :  { %v4674_v53 = vld [vmem:[%s6163_s4 + $0x1c0] sm:$0xff] }
 0x159   :  { %v746_v1 = vadd.f32 1e-05, %v745_v55  ;;  %1247 = vmatpush.bf16.msrb.mxu0 %v4655_v58  ;;  %v75_v55 = vld [vmem:[%s6162_s3] sm:$0x1]  ;;  %s3138_s3 = sshll.u32 %s4872_s16, 4  ;;  %s3139_s3 = int_to_ptr.vmem [resolvable:$true] %s3138_s3 }
 0x15a   :  { %1409 = vmatpush.bf16.msrb.mxu2 %v4671_v61  ;;  %1490 = vmatpush.bf16.msrb.mxu3 %v4679_v0 }
 0x15b   :  { %1328 = vmatpush.bf16.msrb.mxu1 %v4663_v60  ;;  %4837 = vrsqrt.f32 %v746_v1  ;;  %vm753_vm2 = vweird.f32 %v746_v1 }
 0x15d   :  { %1248 = vmatpush.bf16.msrb.mxu0 %v4654_v3 }
 0x15e   :  { %1410 = vmatpush.bf16.msrb.mxu2 %v4670_v6  ;;  %1491 = vmatpush.bf16.msrb.mxu3 %v4678_v8 }
 0x15f   :  { %1329 = vmatpush.bf16.msrb.mxu1 %v4662_v4 }
 0x161   :  { %v4838_v20 = vpop.eup %4837  ;;  %1249 = vmatpush.bf16.msrb.mxu0 %v4653_v9 }
 0x162   :  { %v748_v24 = vmul.f32 %v4838_v20, %v746_v1  ;;  %1411 = vmatpush.bf16.msrb.mxu2 %v4669_v14  ;;  %1492 = vmatpush.bf16.msrb.mxu3 %v4677_v17  ;;  %vm754_vm1 = vweird.f32 %v4838_v20 }
 0x163   :  { %1330 = vmatpush.bf16.msrb.mxu1 %v4661_v11  ;;  %vm755_vm3 = vmor %vm753_vm2, %vm754_vm1 }
 0x164   :  { %v749_v29 = vmul.f32 %v4838_v20, %v748_v24 }
 0x165   :  { %1250 = vmatpush.bf16.msrb.mxu0 %v4652_v21 }
 0x166   :  { %v750_v23 = vmul.f32 0.5, %v749_v29  ;;  %1412 = vmatpush.bf16.msrb.mxu2 %v4668_v28  ;;  %1493 = vmatpush.bf16.msrb.mxu3 %v4676_v26 }
 0x167   :  { %1331 = vmatpush.bf16.msrb.mxu1 %v4660_v25 }
 0x168   :  { %v751_v40 = vsub.f32 1.5, %v750_v23 }
 0x169   :  { %1251 = vmatpush.bf16.msrb.mxu0 %v4651_v33 }
 0x16a   :  { %v752_v43 = vmul.f32 %v4838_v20, %v751_v40  ;;  %1413 = vmatpush.bf16.msrb.mxu2 %v4667_v36  ;;  %1494 = vmatpush.bf16.msrb.mxu3 %v4675_v41 }
 0x16b   :  { %1332 = vmatpush.bf16.msrb.mxu1 %v4659_v31 }
 0x16c   :  { %v756_v50 = vsel %vm755_vm3, %v4838_v20, %v752_v43 }
 0x16d   :  { %v757_v57 = vmul.f32 %v756_v50, %v74_v39  ;;  %1252 = vmatpush.bf16.msrb.mxu0 %v4650_v38 }
 0x16e   :  { %1414 = vmatpush.bf16.msrb.mxu2 %v4666_v47  ;;  %1495 = vmatpush.bf16.msrb.mxu3 %v4674_v53 }
 0x16f   :  { %1333 = vmatpush.bf16.msrb.mxu1 %v4658_v45  ;;  %v758_v58 = vmul.f32 %v757_v57, %v5326_v22  ;;  %v5587_v60 = vperm.slane %v757_v57, 0 }
 0x171   :  { %v759_v61 = vsub.f32 %v75_v55, %v758_v58  ;;  %v769_v0 = vmul.f32 %v5587_v60, %v5250_v12  ;;  %v786_v1 = vmul.f32 %v5587_v60, %v5252_v15  ;;  %v807_v3 = vmul.f32 %v5587_v60, %v5309_v32 }
 0x172   :  { %v828_v4 = vmul.f32 %v5587_v60, %v5321_v51  ;;  %v763_v22 = vmul.f32 %v5587_v60, %v5238_v46  ;;  %v780_v6 = vmul.f32 %v5587_v60, %v5240_v49  ;;  %v801_v8 = vmul.f32 %v5587_v60, %v5283_v62 }
 0x173   :  { %v5603_v9 = vperm.slane %v759_v61, 0  ;;  %v822_v12 = vmul.f32 %v5587_v60, %v5300_v18  ;;  %v764_v15 = vmul.f32 %v5587_v60, %v5256_v35  ;;  %v781_v32 = vmul.f32 %v5587_v60, %v5254_v34 }
 0x174   :  { %v802_v46 = vmul.f32 %v5587_v60, %v5277_v54  ;;  %v823_v49 = vmul.f32 %v5587_v60, %v5295_v13  ;;  %v765_v62 = vmul.f32 %v5587_v60, %v5242_v56  ;;  %v782_v51 = vmul.f32 %v5587_v60, %v5244_v59 }
 0x175   :  { %v779_v18 = vadd.f32 %v5603_v9, %v769_v0  ;;  %v793_v11 = vadd.f32 %v786_v1, %v5603_v9  ;;  %v814_v35 = vadd.f32 %v807_v3, %v5603_v9  ;;  %v835_v34 = vadd.f32 %v828_v4, %v5603_v9 }
 0x176   :  { %v773_v14 = vadd.f32 %v5603_v9, %v763_v22  ;;  %v787_v54 = vadd.f32 %v780_v6, %v5603_v9  ;;  %v808_v13 = vadd.f32 %v801_v8, %v5603_v9  ;;  %v829_v17 = vadd.f32 %v822_v12, %v5603_v9 }
 0x177   :  { %v800_v56 = vmax.f32 %v779_v18, %v793_v11  ;;  %v774_v20 = vadd.f32 %v5603_v9, %v764_v15  ;;  %v788_v59 = vadd.f32 %v781_v32, %v5603_v9  ;;  %v809_v21 = vadd.f32 %v802_v46, %v5603_v9 }
 0x178   :  { %v794_v24 = vmax.f32 %v773_v14, %v787_v54  ;;  %v830_v25 = vadd.f32 %v823_v49, %v5603_v9  ;;  %v775_v28 = vadd.f32 %v5603_v9, %v765_v62  ;;  %v789_v29 = vadd.f32 %v782_v51, %v5603_v9 }
 0x179   :  { %v821_v26 = vmax.f32 %v800_v56, %v814_v35  ;;  %v795_v33 = vmax.f32 %v774_v20, %v788_v59  ;;  %v803_v23 = vmul.f32 %v5587_v60, %v5285_v63  ;;  %v824_v31 = vmul.f32 %v5587_v60, %v5302_v19 }
 0x17a   :  { %v815_v36 = vmax.f32 %v794_v24, %v808_v13  ;;  %v796_v40 = vmax.f32 %v775_v28, %v789_v29  ;;  %v766_v41 = vmul.f32 %v5587_v60, %v5265_v44  ;;  %v783_v38 = vmul.f32 %v5587_v60, %v5260_v37  ;;  %v4689_v24 = vld [vmem:[%s6163_s4 + $0x238] sm:$0xff] }
 0x17b   :  { %v842_v39 = vmax.f32 %v821_v26, %v835_v34  ;;  %v816_v43 = vmax.f32 %v795_v33, %v809_v21  ;;  %v810_v45 = vadd.f32 %v803_v23, %v5603_v9  ;;  %v831_v47 = vadd.f32 %v824_v31, %v5603_v9  ;;  %v4713_v29 = vld [vmem:[%s6163_s4 + $0x2f8] sm:$0xff]  ;;  %v4696_v23 = vld [vmem:[%s6163_s4 + $0x270] sm:$0xff] }
 0x17c   :  { %v836_v50 = vmax.f32 %v815_v36, %v829_v17  ;;  %v776_v63 = vadd.f32 %v5603_v9, %v766_v41  ;;  %v790_v53 = vadd.f32 %v783_v38, %v5603_v9  ;;  %v804_v19 = vmul.f32 %v5587_v60, %v5290_v7  ;;  %v4704_v31 = vld [vmem:[%s6163_s4 + $0x2b0] sm:$0xff]  ;;  %v4687_v41 = vld [vmem:[%s6163_s4 + $0x228] sm:$0xff] }
 0x17d   :  { %v849_v57 = vmax.f32 %v842_v39, 0.0  ;;  %v837_v55 = vmax.f32 %v816_v43, %v830_v25  ;;  %v817_v44 = vmax.f32 %v796_v40, %v810_v45  ;;  %v825_v37 = vmul.f32 %v5587_v60, %v5307_v27  ;;  %v4697_v25 = vld [vmem:[%s6163_s4 + $0x278] sm:$0xff]  ;;  %v4712_v36 = vld [vmem:[%s6163_s4 + $0x2f0] sm:$0xff]  ;;  %v4695_v38 = vld [vmem:[%s6163_s4 + $0x268] sm:$0xff] }
 0x17e   :  { %v843_v58 = vmax.f32 %v836_v50, 0.0  ;;  %v797_v61 = vmax.f32 %v776_v63, %v790_v53  ;;  %v811_v0 = vadd.f32 %v804_v19, %v5603_v9  ;;  %v767_v1 = vmul.f32 %v5587_v60, %v5246_v2  ;;  %v4703_v39 = vld [vmem:[%s6163_s4 + $0x2a8] sm:$0xff]  ;;  %v4686_v45 = vld [vmem:[%s6163_s4 + $0x220] sm:$0xff] }
 0x17f   :  { %856 = vst [vmem:[#allocation2 + $0x30] sm:$0x3] %v849_v57  ;;  %v844_v3 = vmax.f32 %v837_v55, 0.0  ;;  %v838_v4 = vmax.f32 %v817_v44, %v831_v47  ;;  %v784_v22 = vmul.f32 %v5587_v60, %v5248_v5  ;;  %v832_v6 = vadd.f32 %v825_v37, %v5603_v9  ;;  %v4711_v43 = vld [vmem:[%s6163_s4 + $0x2e8] sm:$0xff]  ;;  %v4694_v47 = vld [vmem:[%s6163_s4 + $0x260] sm:$0xff] }
 0x180   :  { %850 = vst [vmem:[#allocation2] sm:$0xff] %v843_v58  ;;  %v818_v7 = vmax.f32 %v797_v61, %v811_v0  ;;  %v777_v8 = vadd.f32 %v5603_v9, %v767_v1  ;;  %v805_v27 = vmul.f32 %v5587_v60, %v5293_v10  ;;  %v768_v2 = vmul.f32 %v5587_v60, %v5273_v52  ;;  %v4702_v50 = vld [vmem:[%s6163_s4 + $0x2a0] sm:$0xff]  ;;  %v4685_v58 = vld [vmem:[%s6163_s4 + $0x218] sm:$0xff] }
 0x181   :  { %851 = vst [vmem:[#allocation2 + $0x8] sm:$0xff] %v844_v3  ;;  %v845_v12 = vmax.f32 %v838_v4, 0.0  ;;  %v791_v15 = vadd.f32 %v784_v22, %v5603_v9  ;;  %v785_v32 = vmul.f32 %v5587_v60, %v5269_v48  ;;  %v826_v49 = vmul.f32 %v5587_v60, %v5313_v30  ;;  %v4710_v63 = vld [vmem:[%s6163_s4 + $0x2e0] sm:$0xff]  ;;  %v4693_v61 = vld [vmem:[%s6163_s4 + $0x258] sm:$0xff]  ;;  %v4684_v22 = vld [vmem:[%s6163_s4 + $0x210] sm:$0xff] }
 0x182   :  { %v839_v5 = vmax.f32 %v818_v7, %v832_v6  ;;  %v812_v46 = vadd.f32 %v805_v27, %v5603_v9  ;;  %v778_v10 = vadd.f32 %v5603_v9, %v768_v2  ;;  %v806_v18 = vmul.f32 %v5587_v60, %v5298_v16  ;;  %v4701_v3 = vld [vmem:[%s6163_s4 + $0x298] sm:$0xff]  ;;  %v4692_v7 = vld [vmem:[%s6163_s4 + $0x250] sm:$0xff]  ;;  %v4683_v27 = vld [vmem:[%s6163_s4 + $0x208] sm:$0xff] }
 0x183   :  { %852 = vst [vmem:[#allocation2 + $0x10] sm:$0xff] %v845_v12  ;;  %v798_v62 = vmax.f32 %v777_v8, %v791_v15  ;;  %v792_v51 = vadd.f32 %v785_v32, %v5603_v9  ;;  %v833_v35 = vadd.f32 %v826_v49, %v5603_v9  ;;  %v827_v30 = vmul.f32 %v5587_v60, %v5318_v42  ;;  %v4705_v60 = vld [vmem:[%s6163_s4 + $0x2b8] sm:$0xff]  ;;  %v4700_v6 = vld [vmem:[%s6163_s4 + $0x290] sm:$0xff]  ;;  %v4691_v12 = vld [vmem:[%s6163_s4 + $0x248] sm:$0xff] }
 0x184   :  { %v846_v11 = vmax.f32 %v839_v5, 0.0  ;;  %v813_v34 = vadd.f32 %v806_v18, %v5603_v9  ;;  %v4709_v4 = vld [vmem:[%s6163_s4 + $0x2d8] sm:$0xff]  ;;  %v4708_v8 = vld [vmem:[%s6163_s4 + $0x2d0] sm:$0xff]  ;;  %v4699_v15 = vld [vmem:[%s6163_s4 + $0x288] sm:$0xff] }
 0x185   :  { %v819_v52 = vmax.f32 %v798_v62, %v812_v46  ;;  %v799_v48 = vmax.f32 %v778_v10, %v792_v51  ;;  %v834_v28 = vadd.f32 %v827_v30, %v5603_v9  ;;  %v4688_v9 = vld [vmem:[%s6163_s4 + $0x230] sm:$0xff]  ;;  %v4707_v2 = vld [vmem:[%s6163_s4 + $0x2c8] sm:$0xff]  ;;  %v4682_v32 = vld [vmem:[%s6163_s4 + $0x200] sm:$0xff] }
 0x186   :  { %853 = vst [vmem:[#allocation2 + $0x18] sm:$0xff] %v846_v11  ;;  %v4690_v5 = vld [vmem:[%s6163_s4 + $0x240] sm:$0xff]  ;;  %v4721_v62 = vld [vmem:[%s6163_s4 + $0x338] sm:$0xff] }
 0x187   :  { %v875_v14 = vld [vmem:[#allocation2 + $0x2] sm:$0x3]  ;;  %v857_v54 = vld [vmem:[#allocation2] sm:$0x3]  ;;  %v1016_v13 = vld [vmem:[#allocation2 + $0x4] sm:$0x3]  ;;  %v840_v17 = vmax.f32 %v819_v52, %v833_v35  ;;  %v820_v56 = vmax.f32 %v799_v48, %v813_v34 }
 0x188   :  { %v876_v20 = vpack.c.bf16 %v875_v14, %v875_v14  ;;  %v858_v59 = vpack.c.bf16 %v857_v54, %v857_v54  ;;  %v1017_v21 = vpack.c.bf16 %v1016_v13, %v1016_v13  ;;  %v1097_v16 = vld [vmem:[#allocation2 + $0x6] sm:$0x3]  ;;  %v1178_v53 = vld [vmem:[#allocation2 + $0x8] sm:$0x3]  ;;  %v1259_v19 = vld [vmem:[#allocation2 + $0xa] sm:$0x3] }
 0x189   :  { %v1098_v42 = vpack.c.bf16 %v1097_v16, %v1097_v16  ;;  %v847_v26 = vmax.f32 %v840_v17, 0.0  ;;  %v841_v33 = vmax.f32 %v820_v56, %v834_v28  ;;  %v1340_v57 = vld [vmem:[#allocation2 + $0xc] sm:$0x3]  ;;  %v1421_v55 = vld [vmem:[#allocation2 + $0xe] sm:$0x3]  ;;  %v1179_v44 = vpack.c.bf16 %v1178_v53, %v1178_v53  ;;  %v4698_v46 = vld [vmem:[%s6163_s4 + $0x280] sm:$0xff] }
 0x18a   :  { %950 = vmatmul.bf16.vlgmr.msra.gmra.mxu0 %v876_v20  ;;  %1011 = vmatmul.bf16.vlgmr.msra.gmra.mxu1 %v858_v59  ;;  %v1260_v37 = vpack.c.bf16 %v1259_v19, %v1259_v19  ;;  %v1341_v0 = vpack.c.bf16 %v1340_v57, %v1340_v57  ;;  %v1422_v1 = vpack.c.bf16 %v1421_v55, %v1421_v55  ;;  %v4706_v49 = vld [vmem:[%s6163_s4 + $0x2c0] sm:$0xff]  ;;  %v4729_v10 = vld [vmem:[%s6163_s4 + $0x378] sm:$0xff]  ;;  %v1502_v11 = vld [vmem:[#allocation2 + $0x10] sm:$0x3] }
 0x18b   :  { %1091 = vmatmul.bf16.vlgmr.msra.gmra.mxu2 %v1017_v21  ;;  %1172 = vmatmul.bf16.vlgmr.msra.gmra.mxu3 %v1098_v42  ;;  %854 = vst [vmem:[#allocation2 + $0x20] sm:$0xff] %v847_v26  ;;  %v848_v40 = vmax.f32 %v841_v33, 0.0  ;;  %v4737_v51 = vld [vmem:[%s6163_s4 + $0x3b8] sm:$0xff]  ;;  %v1583_v52 = vld [vmem:[#allocation2 + $0x12] sm:$0x3]  ;;  %v1503_v34 = vpack.c.bf16 %v1502_v11, %v1502_v11  ;;  %v4719_v59 = vld [vmem:[%s6163_s4 + $0x328] sm:$0xff] }
 0x18c   :  { %1569 = vmatpush.bf16.msra.mxu0 %v4689_v24  ;;  %1650 = vmatpush.bf16.msra.mxu1 %v4697_v25  ;;  %v4745_v18 = vld [vmem:[%s6163_s4 + $0x3f8] sm:$0xff]  ;;  %v1664_v35 = vld [vmem:[#allocation2 + $0x14] sm:$0x3]  ;;  %v1745_v48 = vld [vmem:[#allocation2 + $0x16] sm:$0x3]  ;;  %v1584_v30 = vpack.c.bf16 %v1583_v52, %v1583_v52 }
 0x18d   :  { %1731 = vmatpush.bf16.msra.mxu2 %v4705_v60  ;;  %1812 = vmatpush.bf16.msra.mxu3 %v4713_v29  ;;  %855 = vst [vmem:[#allocation2 + $0x28] sm:$0xff] %v848_v40  ;;  %v4720_v14 = vld [vmem:[%s6163_s4 + $0x330] sm:$0xff]  ;;  %v1665_v13 = vpack.c.bf16 %v1664_v35, %v1664_v35  ;;  %v1746_v17 = vpack.c.bf16 %v1745_v48, %v1745_v48  ;;  %v4727_v21 = vld [vmem:[%s6163_s4 + $0x368] sm:$0xff]  ;;  %v4718_v25 = vld [vmem:[%s6163_s4 + $0x320] sm:$0xff] }
 0x18e   :  { %v4728_v54 = vld [vmem:[%s6163_s4 + $0x370] sm:$0xff]  ;;  %v4735_v16 = vld [vmem:[%s6163_s4 + $0x3a8] sm:$0xff]  ;;  %v4726_v28 = vld [vmem:[%s6163_s4 + $0x360] sm:$0xff] }
 0x18f   :  { %v4736_v56 = vld [vmem:[%s6163_s4 + $0x3b0] sm:$0xff]  ;;  %v4743_v24 = vld [vmem:[%s6163_s4 + $0x3e8] sm:$0xff]  ;;  %v4734_v42 = vld [vmem:[%s6163_s4 + $0x3a0] sm:$0xff] }
 0x190   :  { %1570 = vmatpush.bf16.msra.mxu0 %v4688_v9  ;;  %1651 = vmatpush.bf16.msra.mxu1 %v4696_v23  ;;  %v4744_v20 = vld [vmem:[%s6163_s4 + $0x3f0] sm:$0xff]  ;;  %v4742_v60 = vld [vmem:[%s6163_s4 + $0x3e0] sm:$0xff]  ;;  %v4717_v29 = vld [vmem:[%s6163_s4 + $0x318] sm:$0xff] }
 0x191   :  { %1732 = vmatpush.bf16.msra.mxu2 %v4704_v31  ;;  %1813 = vmatpush.bf16.msra.mxu3 %v4712_v36  ;;  %v4725_v26 = vld [vmem:[%s6163_s4 + $0x358] sm:$0xff]  ;;  %v4716_v23 = vld [vmem:[%s6163_s4 + $0x310] sm:$0xff] }
 0x192   :  { %v4733_v33 = vld [vmem:[%s6163_s4 + $0x398] sm:$0xff]  ;;  %v4724_v31 = vld [vmem:[%s6163_s4 + $0x350] sm:$0xff] }
 0x193   :  { %v4741_v9 = vld [vmem:[%s6163_s4 + $0x3d8] sm:$0xff]  ;;  %v4732_v36 = vld [vmem:[%s6163_s4 + $0x390] sm:$0xff] }
 0x194   :  { %1571 = vmatpush.bf16.msra.mxu0 %v4687_v41  ;;  %1652 = vmatpush.bf16.msra.mxu1 %v4695_v38  ;;  %v4740_v40 = vld [vmem:[%s6163_s4 + $0x3d0] sm:$0xff]  ;;  %v4715_v41 = vld [vmem:[%s6163_s4 + $0x308] sm:$0xff]  ;;  %v4753_v53 = vld [vmem:[%s6163_s4 + $0x438] sm:$0xff] }
 0x195   :  { %1733 = vmatpush.bf16.msra.mxu2 %v4703_v39  ;;  %1814 = vmatpush.bf16.msra.mxu3 %v4711_v43  ;;  %v4723_v38 = vld [vmem:[%s6163_s4 + $0x348] sm:$0xff]  ;;  %v4761_v19 = vld [vmem:[%s6163_s4 + $0x478] sm:$0xff]  ;;  %v4748_v11 = vld [vmem:[%s6163_s4 + $0x410] sm:$0xff] }
 0x196   :  { %v4731_v39 = vld [vmem:[%s6163_s4 + $0x388] sm:$0xff]  ;;  %v1826_v57 = vld [vmem:[#allocation2 + $0x18] sm:$0x3]  ;;  %v4756_v52 = vld [vmem:[%s6163_s4 + $0x450] sm:$0xff] }
 0x197   :  { %v4739_v43 = vld [vmem:[%s6163_s4 + $0x3c8] sm:$0xff]  ;;  %v4769_v55 = vld [vmem:[%s6163_s4 + $0x4b8] sm:$0xff]  ;;  %v4764_v35 = vld [vmem:[%s6163_s4 + $0x490] sm:$0xff] }
 0x198   :  { %1572 = vmatpush.bf16.msra.mxu0 %v4686_v45  ;;  %1653 = vmatpush.bf16.msra.mxu1 %v4694_v47  ;;  %v4714_v45 = vld [vmem:[%s6163_s4 + $0x300] sm:$0xff]  ;;  %v4772_v48 = vld [vmem:[%s6163_s4 + $0x4d0] sm:$0xff] }
 0x199   :  { %1734 = vmatpush.bf16.msra.mxu2 %v4702_v50  ;;  %1815 = vmatpush.bf16.msra.mxu3 %v4710_v63  ;;  %v4722_v47 = vld [vmem:[%s6163_s4 + $0x340] sm:$0xff] }
 0x19a   :  { %1253 = vmatmul.bf16.vlgmr.msrb.gmra.mxu0 %v1179_v44  ;;  %1334 = vmatmul.bf16.vlgmr.msrb.gmra.mxu1 %v1260_v37  ;;  %v4730_v50 = vld [vmem:[%s6163_s4 + $0x380] sm:$0xff]  ;;  %v4777_v44 = vld [vmem:[%s6163_s4 + $0x4f8] sm:$0xff] }
 0x19b   :  { %1415 = vmatmul.bf16.vlgmr.msrb.gmra.mxu2 %v1341_v0  ;;  %1496 = vmatmul.bf16.vlgmr.msrb.gmra.mxu3 %v1422_v1  ;;  %v4738_v63 = vld [vmem:[%s6163_s4 + $0x3c0] sm:$0xff]  ;;  %v1907_v37 = vld [vmem:[#allocation2 + $0x1a] sm:$0x3]  ;;  %v1827_v0 = vpack.c.bf16 %v1826_v57, %v1826_v57 }
 0x19c   :  { %1573 = vmatpush.bf16.msra.mxu0 %v4685_v58  ;;  %1654 = vmatpush.bf16.msra.mxu1 %v4693_v61  ;;  %v1988_v58 = vld [vmem:[#allocation2 + $0x1c] sm:$0x3]  ;;  %v2069_v61 = vld [vmem:[#allocation2 + $0x1e] sm:$0x3]  ;;  %v1908_v1 = vpack.c.bf16 %v1907_v37, %v1907_v37  ;;  %v4788_v37 = vld [vmem:[%s6163_s4 + $0x550] sm:$0xff] }
 0x19d   :  { %1735 = vmatpush.bf16.msra.mxu2 %v4701_v3  ;;  %1816 = vmatpush.bf16.msra.mxu3 %v4709_v4  ;;  %v4752_v3 = vld [vmem:[%s6163_s4 + $0x430] sm:$0xff]  ;;  %v4797_v57 = vld [vmem:[%s6163_s4 + $0x598] sm:$0xff] }
 0x19e   :  { %v4760_v4 = vld [vmem:[%s6163_s4 + $0x470] sm:$0xff] }
 0x1a0   :  { %1574 = vmatpush.bf16.msra.mxu0 %v4684_v22  ;;  %1655 = vmatpush.bf16.msra.mxu1 %v4692_v7  ;;  %v1989_v22 = vpack.c.bf16 %v1988_v58, %v1988_v58  ;;  %v2070_v7 = vpack.c.bf16 %v2069_v61, %v2069_v61  ;;  %v4796_v58 = vld [vmem:[%s6163_s4 + $0x590] sm:$0xff] }
 0x1a1   :  { %1736 = vmatpush.bf16.msra.mxu2 %v4700_v6  ;;  %1817 = vmatpush.bf16.msra.mxu3 %v4708_v8  ;;  %v4768_v6 = vld [vmem:[%s6163_s4 + $0x4b0] sm:$0xff] }
 0x1a2   :  { %v4776_v8 = vld [vmem:[%s6163_s4 + $0x4f0] sm:$0xff] }
 0x1a3   :  { %v4804_v61 = vld [vmem:[%s6163_s4 + $0x5d0] sm:$0xff] }
 0x1a4   :  { %1575 = vmatpush.bf16.msra.mxu0 %v4683_v27  ;;  %1656 = vmatpush.bf16.msra.mxu1 %v4691_v12  ;;  %v4751_v27 = vld [vmem:[%s6163_s4 + $0x428] sm:$0xff] }
 0x1a5   :  { %1737 = vmatpush.bf16.msra.mxu2 %v4699_v15  ;;  %1818 = vmatpush.bf16.msra.mxu3 %v4707_v2  ;;  %v4759_v12 = vld [vmem:[%s6163_s4 + $0x468] sm:$0xff] }
 0x1a6   :  { %v4767_v15 = vld [vmem:[%s6163_s4 + $0x4a8] sm:$0xff] }
 0x1a7   :  { %v4775_v2 = vld [vmem:[%s6163_s4 + $0x4e8] sm:$0xff] }
 0x1a8   :  { %1576 = vmatpush.bf16.msra.mxu0 %v4682_v32  ;;  %1657 = vmatpush.bf16.msra.mxu1 %v4690_v5  ;;  %v4750_v32 = vld [vmem:[%s6163_s4 + $0x420] sm:$0xff] }
 0x1a9   :  { %1738 = vmatpush.bf16.msra.mxu2 %v4698_v46  ;;  %1819 = vmatpush.bf16.msra.mxu3 %v4706_v49  ;;  %v4758_v5 = vld [vmem:[%s6163_s4 + $0x460] sm:$0xff] }
 0x1aa   :  { %v4766_v46 = vld [vmem:[%s6163_s4 + $0x4a0] sm:$0xff] }
 0x1ab   :  { %1577 = vmatmul.bf16.vlgmr.msra.gmra.mxu0 %v1503_v34  ;;  %1658 = vmatmul.bf16.vlgmr.msra.gmra.mxu1 %v1584_v30  ;;  %v4774_v49 = vld [vmem:[%s6163_s4 + $0x4e0] sm:$0xff]  ;;  %v4747_v34 = vld [vmem:[%s6163_s4 + $0x408] sm:$0xff] }
 0x1ac   :  { %1893 = vmatpush.bf16.msrb.mxu0 %v4721_v62  ;;  %1974 = vmatpush.bf16.msrb.mxu1 %v4729_v10  ;;  %v4749_v62 = vld [vmem:[%s6163_s4 + $0x418] sm:$0xff]  ;;  %v4755_v30 = vld [vmem:[%s6163_s4 + $0x448] sm:$0xff] }
 0x1ad   :  { %2055 = vmatpush.bf16.msrb.mxu2 %v4737_v51  ;;  %2136 = vmatpush.bf16.msrb.mxu3 %v4745_v18  ;;  %v4757_v10 = vld [vmem:[%s6163_s4 + $0x458] sm:$0xff] }
 0x1ae   :  { %1739 = vmatmul.bf16.vlgmr.msra.gmra.mxu2 %v1665_v13  ;;  %1820 = vmatmul.bf16.vlgmr.msra.gmra.mxu3 %v1746_v17  ;;  %v4765_v51 = vld [vmem:[%s6163_s4 + $0x498] sm:$0xff]  ;;  %v4746_v13 = vld [vmem:[%s6163_s4 + $0x400] sm:$0xff] }
 0x1af   :  { %v4773_v18 = vld [vmem:[%s6163_s4 + $0x4d8] sm:$0xff]  ;;  %v4754_v17 = vld [vmem:[%s6163_s4 + $0x440] sm:$0xff] }
 0x1b0   :  { %1894 = vmatpush.bf16.msrb.mxu0 %v4720_v14  ;;  %1975 = vmatpush.bf16.msrb.mxu1 %v4728_v54  ;;  %v4763_v14 = vld [vmem:[%s6163_s4 + $0x488] sm:$0xff] }
 0x1b1   :  { %2056 = vmatpush.bf16.msrb.mxu2 %v4736_v56  ;;  %2137 = vmatpush.bf16.msrb.mxu3 %v4744_v20  ;;  %v4771_v54 = vld [vmem:[%s6163_s4 + $0x4c8] sm:$0xff]  ;;  %v4762_v56 = vld [vmem:[%s6163_s4 + $0x480] sm:$0xff] }
 0x1b2   :  { %v4770_v20 = vld [vmem:[%s6163_s4 + $0x4c0] sm:$0xff] }
 0x1b4   :  { %1895 = vmatpush.bf16.msrb.mxu0 %v4719_v59  ;;  %1976 = vmatpush.bf16.msrb.mxu1 %v4727_v21  ;;  %v4785_v59 = vld [vmem:[%s6163_s4 + $0x538] sm:$0xff] }
 0x1b5   :  { %2057 = vmatpush.bf16.msrb.mxu2 %v4735_v16  ;;  %2138 = vmatpush.bf16.msrb.mxu3 %v4743_v24  ;;  %v4793_v21 = vld [vmem:[%s6163_s4 + $0x578] sm:$0xff]  ;;  %v2150_v16 = vld [vmem:[#allocation2 + $0x20] sm:$0x3] }
 0x1b6   :  { %v4801_v24 = vld [vmem:[%s6163_s4 + $0x5b8] sm:$0xff] }
 0x1b8   :  { %1896 = vmatpush.bf16.msrb.mxu0 %v4718_v25  ;;  %1977 = vmatpush.bf16.msrb.mxu1 %v4726_v28  ;;  %v4809_v25 = vld [vmem:[%s6163_s4 + $0x5f8] sm:$0xff]  ;;  %v2231_v28 = vld [vmem:[#allocation2 + $0x22] sm:$0x3] }
 0x1b9   :  { %2058 = vmatpush.bf16.msrb.mxu2 %v4734_v42  ;;  %2139 = vmatpush.bf16.msrb.mxu3 %v4742_v60  ;;  %v2312_v42 = vld [vmem:[#allocation2 + $0x24] sm:$0x3]  ;;  %v2393_v60 = vld [vmem:[#allocation2 + $0x26] sm:$0x3] }
 0x1bc   :  { %1897 = vmatpush.bf16.msrb.mxu0 %v4717_v29  ;;  %1978 = vmatpush.bf16.msrb.mxu1 %v4725_v26  ;;  %v2151_v29 = vpack.c.bf16 %v2150_v16, %v2150_v16  ;;  %v2232_v26 = vpack.c.bf16 %v2231_v28, %v2231_v28 }
 0x1bd   :  { %2059 = vmatpush.bf16.msrb.mxu2 %v4733_v33  ;;  %2140 = vmatpush.bf16.msrb.mxu3 %v4741_v9  ;;  %v4784_v33 = vld [vmem:[%s6163_s4 + $0x530] sm:$0xff] }
 0x1be   :  { %v4792_v9 = vld [vmem:[%s6163_s4 + $0x570] sm:$0xff] }
 0x1c0   :  { %1898 = vmatpush.bf16.msrb.mxu0 %v4716_v23  ;;  %1979 = vmatpush.bf16.msrb.mxu1 %v4724_v31  ;;  %v2313_v23 = vpack.c.bf16 %v2312_v42, %v2312_v42  ;;  %v2394_v31 = vpack.c.bf16 %v2393_v60, %v2393_v60  ;;  %v4810_v42 = vld [vmem:[%s6163_s4 + $0x600] sm:$0xff] }
 0x1c1   :  { %2060 = vmatpush.bf16.msrb.mxu2 %v4732_v36  ;;  %2141 = vmatpush.bf16.msrb.mxu3 %v4740_v40  ;;  %v4800_v36 = vld [vmem:[%s6163_s4 + $0x5b0] sm:$0xff] }
 0x1c2   :  { %v4808_v40 = vld [vmem:[%s6163_s4 + $0x5f0] sm:$0xff] }
 0x1c4   :  { %1899 = vmatpush.bf16.msrb.mxu0 %v4715_v41  ;;  %1980 = vmatpush.bf16.msrb.mxu1 %v4723_v38  ;;  %v4783_v41 = vld [vmem:[%s6163_s4 + $0x528] sm:$0xff] }
 0x1c5   :  { %2061 = vmatpush.bf16.msrb.mxu2 %v4731_v39  ;;  %2142 = vmatpush.bf16.msrb.mxu3 %v4739_v43  ;;  %v4791_v38 = vld [vmem:[%s6163_s4 + $0x568] sm:$0xff] }
 0x1c6   :  { %v4799_v39 = vld [vmem:[%s6163_s4 + $0x5a8] sm:$0xff] }
 0x1c7   :  { %v4807_v43 = vld [vmem:[%s6163_s4 + $0x5e8] sm:$0xff] }
 0x1c8   :  { %1900 = vmatpush.bf16.msrb.mxu0 %v4714_v45  ;;  %1981 = vmatpush.bf16.msrb.mxu1 %v4722_v47  ;;  %v4782_v45 = vld [vmem:[%s6163_s4 + $0x520] sm:$0xff] }
 0x1c9   :  { %2062 = vmatpush.bf16.msrb.mxu2 %v4730_v50  ;;  %2143 = vmatpush.bf16.msrb.mxu3 %v4738_v63  ;;  %v4790_v47 = vld [vmem:[%s6163_s4 + $0x560] sm:$0xff] }
 0x1ca   :  { %v4798_v50 = vld [vmem:[%s6163_s4 + $0x5a0] sm:$0xff] }
 0x1cb   :  { %1901 = vmatmul.bf16.vlgmr.msrb.gmra.mxu0 %v1827_v0  ;;  %1982 = vmatmul.bf16.vlgmr.msrb.gmra.mxu1 %v1908_v1  ;;  %v4806_v63 = vld [vmem:[%s6163_s4 + $0x5e0] sm:$0xff]  ;;  %v4779_v0 = vld [vmem:[%s6163_s4 + $0x508] sm:$0xff] }
 0x1cc   :  { %2217 = vmatpush.bf16.msra.mxu0 %v4753_v53  ;;  %2298 = vmatpush.bf16.msra.mxu1 %v4761_v19  ;;  %v4781_v53 = vld [vmem:[%s6163_s4 + $0x518] sm:$0xff]  ;;  %v4787_v1 = vld [vmem:[%s6163_s4 + $0x548] sm:$0xff] }
 0x1cd   :  { %2379 = vmatpush.bf16.msra.mxu2 %v4769_v55  ;;  %2460 = vmatpush.bf16.msra.mxu3 %v4777_v44  ;;  %v4789_v19 = vld [vmem:[%s6163_s4 + $0x558] sm:$0xff]  ;;  %v4780_v44 = vld [vmem:[%s6163_s4 + $0x510] sm:$0xff] }
 0x1ce   :  { %2063 = vmatmul.bf16.vlgmr.msrb.gmra.mxu2 %v1989_v22  ;;  %2144 = vmatmul.bf16.vlgmr.msrb.gmra.mxu3 %v2070_v7  ;;  %v4805_v55 = vld [vmem:[%s6163_s4 + $0x5d8] sm:$0xff]  ;;  %v4778_v22 = vld [vmem:[%s6163_s4 + $0x500] sm:$0xff] }
 0x1cf   :  { %v4786_v7 = vld [vmem:[%s6163_s4 + $0x540] sm:$0xff] }
 0x1d0   :  { %2218 = vmatpush.bf16.msra.mxu0 %v4752_v3  ;;  %2299 = vmatpush.bf16.msra.mxu1 %v4760_v4  ;;  %v4795_v3 = vld [vmem:[%s6163_s4 + $0x588] sm:$0xff] }
 0x1d1   :  { %2380 = vmatpush.bf16.msra.mxu2 %v4768_v6  ;;  %2461 = vmatpush.bf16.msra.mxu3 %v4776_v8  ;;  %v4803_v4 = vld [vmem:[%s6163_s4 + $0x5c8] sm:$0xff]  ;;  %v4794_v6 = vld [vmem:[%s6163_s4 + $0x580] sm:$0xff] }
 0x1d2   :  { %v4802_v8 = vld [vmem:[%s6163_s4 + $0x5c0] sm:$0xff] }
 0x1d4   :  { %2219 = vmatpush.bf16.msra.mxu0 %v4751_v27  ;;  %2300 = vmatpush.bf16.msra.mxu1 %v4759_v12  ;;  %v4817_v27 = vld [vmem:[%s6163_s4 + $0x638] sm:$0xff]  ;;  %v2474_v12 = vld [vmem:[#allocation2 + $0x28] sm:$0x3] }
 0x1d5   :  { %2381 = vmatpush.bf16.msra.mxu2 %v4767_v15  ;;  %2462 = vmatpush.bf16.msra.mxu3 %v4775_v2  ;;  %v2555_v15 = vld [vmem:[#allocation2 + $0x2a] sm:$0x3]  ;;  %v2636_v2 = vld [vmem:[#allocation2 + $0x2c] sm:$0x3] }
 0x1d8   :  { %2220 = vmatpush.bf16.msra.mxu0 %v4750_v32  ;;  %2301 = vmatpush.bf16.msra.mxu1 %v4758_v5  ;;  %v2717_v32 = vld [vmem:[#allocation2 + $0x2e] sm:$0x3]  ;;  %v2475_v5 = vpack.c.bf16 %v2474_v12, %v2474_v12 }
 0x1d9   :  { %2382 = vmatpush.bf16.msra.mxu2 %v4766_v46  ;;  %2463 = vmatpush.bf16.msra.mxu3 %v4774_v49  ;;  %v2556_v46 = vpack.c.bf16 %v2555_v15, %v2555_v15  ;;  %v2637_v49 = vpack.c.bf16 %v2636_v2, %v2636_v2 }
 0x1dc   :  { %2221 = vmatpush.bf16.msra.mxu0 %v4749_v62  ;;  %2302 = vmatpush.bf16.msra.mxu1 %v4757_v10  ;;  %v2718_v62 = vpack.c.bf16 %v2717_v32, %v2717_v32  ;;  %v4816_v10 = vld [vmem:[%s6163_s4 + $0x630] sm:$0xff] }
 0x1dd   :  { %2383 = vmatpush.bf16.msra.mxu2 %v4765_v51  ;;  %2464 = vmatpush.bf16.msra.mxu3 %v4773_v18 }
 0x1e0   :  { %2222 = vmatpush.bf16.msra.mxu0 %v4748_v11  ;;  %2303 = vmatpush.bf16.msra.mxu1 %v4756_v52  ;;  %v4815_v11 = vld [vmem:[%s6163_s4 + $0x628] sm:$0xff] }
 0x1e1   :  { %2384 = vmatpush.bf16.msra.mxu2 %v4764_v35  ;;  %2465 = vmatpush.bf16.msra.mxu3 %v4772_v48  ;;  %v4814_v35 = vld [vmem:[%s6163_s4 + $0x620] sm:$0xff] }
 0x1e4   :  { %2223 = vmatpush.bf16.msra.mxu0 %v4747_v34  ;;  %2304 = vmatpush.bf16.msra.mxu1 %v4755_v30 }
 0x1e5   :  { %2385 = vmatpush.bf16.msra.mxu2 %v4763_v14  ;;  %2466 = vmatpush.bf16.msra.mxu3 %v4771_v54 }
 0x1e8   :  { %2224 = vmatpush.bf16.msra.mxu0 %v4746_v13  ;;  %2305 = vmatpush.bf16.msra.mxu1 %v4754_v17  ;;  %v4813_v13 = vld [vmem:[%s6163_s4 + $0x618] sm:$0xff] }
 0x1e9   :  { %2386 = vmatpush.bf16.msra.mxu2 %v4762_v56  ;;  %2467 = vmatpush.bf16.msra.mxu3 %v4770_v20  ;;  %v4812_v56 = vld [vmem:[%s6163_s4 + $0x610] sm:$0xff] }
 0x1eb   :  { %2225 = vmatmul.bf16.vlgmr.msra.gmra.mxu0 %v2151_v29  ;;  %2306 = vmatmul.bf16.vlgmr.msra.gmra.mxu1 %v2232_v26  ;;  %v2798_v26 = vld [vmem:[#allocation2 + $0x30] sm:$0x3] }
 0x1ec   :  { %2541 = vmatpush.bf16.msrb.mxu0 %v4785_v59  ;;  %2622 = vmatpush.bf16.msrb.mxu1 %v4793_v21 }
 0x1ed   :  { %2703 = vmatpush.bf16.msrb.mxu2 %v4801_v24  ;;  %2784 = vmatpush.bf16.msrb.mxu3 %v4809_v25  ;;  %v4811_v24 = vld [vmem:[%s6163_s4 + $0x608] sm:$0xff] }
 0x1ee   :  { %2387 = vmatmul.bf16.vlgmr.msra.gmra.mxu2 %v2313_v23  ;;  %2468 = vmatmul.bf16.vlgmr.msra.gmra.mxu3 %v2394_v31 }
 0x1f0   :  { %2542 = vmatpush.bf16.msrb.mxu0 %v4784_v33  ;;  %2623 = vmatpush.bf16.msrb.mxu1 %v4792_v9 }
 0x1f1   :  { %2704 = vmatpush.bf16.msrb.mxu2 %v4800_v36  ;;  %2785 = vmatpush.bf16.msrb.mxu3 %v4808_v40  ;;  %v2799_v36 = vpack.c.bf16 %v2798_v26, %v2798_v26 }
 0x1f4   :  { %2543 = vmatpush.bf16.msrb.mxu0 %v4783_v41  ;;  %2624 = vmatpush.bf16.msrb.mxu1 %v4791_v38 }
 0x1f5   :  { %2705 = vmatpush.bf16.msrb.mxu2 %v4799_v39  ;;  %2786 = vmatpush.bf16.msrb.mxu3 %v4807_v43 }
 0x1f8   :  { %2544 = vmatpush.bf16.msrb.mxu0 %v4782_v45  ;;  %2625 = vmatpush.bf16.msrb.mxu1 %v4790_v47 }
 0x1f9   :  { %2706 = vmatpush.bf16.msrb.mxu2 %v4798_v50  ;;  %2787 = vmatpush.bf16.msrb.mxu3 %v4806_v63 }
 0x1fc   :  { %2545 = vmatpush.bf16.msrb.mxu0 %v4781_v53  ;;  %2626 = vmatpush.bf16.msrb.mxu1 %v4789_v19 }
 0x1fd   :  { %2707 = vmatpush.bf16.msrb.mxu2 %v4797_v57  ;;  %2788 = vmatpush.bf16.msrb.mxu3 %v4805_v55 }
 0x200   :  { %2546 = vmatpush.bf16.msrb.mxu0 %v4780_v44  ;;  %2627 = vmatpush.bf16.msrb.mxu1 %v4788_v37 }
 0x201   :  { %2708 = vmatpush.bf16.msrb.mxu2 %v4796_v58  ;;  %2789 = vmatpush.bf16.msrb.mxu3 %v4804_v61 }
 0x204   :  { %2547 = vmatpush.bf16.msrb.mxu0 %v4779_v0  ;;  %2628 = vmatpush.bf16.msrb.mxu1 %v4787_v1 }
 0x205   :  { %2709 = vmatpush.bf16.msrb.mxu2 %v4795_v3  ;;  %2790 = vmatpush.bf16.msrb.mxu3 %v4803_v4 }
 0x207   :  { %v951_v51 = vpop.f32.mrf.mxu0  ;;  %v1012_v18 = vpop.f32.mrf.mxu1 }
 0x208   :  { %2548 = vmatpush.bf16.msrb.mxu0 %v4778_v22  ;;  %2629 = vmatpush.bf16.msrb.mxu1 %v4786_v7  ;;  %v1013_v52 = vadd.f32 %v1012_v18, %v951_v51 }
 0x209   :  { %2710 = vmatpush.bf16.msrb.mxu2 %v4794_v6  ;;  %2791 = vmatpush.bf16.msrb.mxu3 %v4802_v8 }
 0x20b   :  { %2549 = vmatmul.bf16.vlgmr.msrb.gmra.mxu0 %v2475_v5  ;;  %2630 = vmatmul.bf16.vlgmr.msrb.gmra.mxu1 %v2556_v46 }
 0x20c   :  { %2865 = vmatpush.bf16.msra.mxu0 %v4817_v27  ;;  %2711 = vmatmul.bf16.vlgmr.msrb.gmra.mxu2 %v2637_v49 }
 0x20d   :  { %2792 = vmatmul.bf16.vlgmr.msrb.gmra.mxu3 %v2718_v62 }
 0x20e   :  { %v1092_v48 = vpop.f32.mrf.mxu2  ;;  %v1173_v34 = vpop.f32.mrf.mxu3 }
 0x20f   :  { %v1096_v30 = vadd.f32 %v1092_v48, %v1013_v52  ;;  %v953_v14 = vpop.f32.mrf.mxu0  ;;  %v1014_v54 = vpop.f32.mrf.mxu1 }
 0x210   :  { %2866 = vmatpush.bf16.msra.mxu0 %v4816_v10 }
 0x211   :  { %v1177_v17 = vadd.f32 %v1173_v34, %v1096_v30 }
 0x214   :  { %2867 = vmatpush.bf16.msra.mxu0 %v4815_v11 }
 0x216   :  { %v1094_v20 = vpop.f32.mrf.mxu2  ;;  %v1175_v59 = vpop.f32.mrf.mxu3 }
 0x217   :  { %v1254_v21 = vpop.f32.mrf.mxu0  ;;  %v1335_v16 = vpop.f32.mrf.mxu1 }
 0x218   :  { %2868 = vmatpush.bf16.msra.mxu0 %v4814_v35  ;;  %v1258_v25 = vadd.f32 %v1254_v21, %v1177_v17  ;;  %v4871_v17 = vmov 2.0  }
 0x219   :  { %4839 = vrcp.f32 %v4871_v17 }
 0x21a   :  { %v1339_v28 = vadd.f32 %v1335_v16, %v1258_v25 }
 0x21c   :  { %2869 = vmatpush.bf16.msra.mxu0 %v4813_v13 }
 0x21e   :  { %v1416_v60 = vpop.f32.mrf.mxu2  ;;  %v1497_v29 = vpop.f32.mrf.mxu3 }
 0x21f   :  { %v1420_v33 = vadd.f32 %v1416_v60, %v1339_v28  ;;  %v1256_v9 = vpop.f32.mrf.mxu0  ;;  %v1337_v23 = vpop.f32.mrf.mxu1 }
 0x220   :  { %2870 = vmatpush.bf16.msra.mxu0 %v4812_v56  ;;  %v4840_v59 = vpop.eup %4839 }
 0x221   :  { %v1501_v31 = vadd.f32 %v1497_v29, %v1420_v33  ;;  %v2889_v16 = vmul.f32 2.0, %v4840_v59  ;;  %vm2893_vm4 = vweird.f32 %v4840_v59 }
 0x224   :  { %2871 = vmatpush.bf16.msra.mxu0 %v4811_v24 }
 0x226   :  { %v1418_v40 = vpop.f32.mrf.mxu2  ;;  %v1499_v41 = vpop.f32.mrf.mxu3 }
 0x228   :  { %2872 = vmatpush.bf16.msra.mxu0 %v4810_v42  ;;  %v1578_v38 = vpop.f32.mrf.mxu0  ;;  %v1659_v39 = vpop.f32.mrf.mxu1  ;;  %v2890_v42 = vsub.f32 1.0, %v2889_v16  ;;  %v4833_v16 = vld [vmem:[%s6169_s10 + $0x38] sm:$0xff] }
 0x229   :  { %v1582_v43 = vadd.f32 %v1578_v38, %v1501_v31  ;;  %3119 = vmatpush.bf16.msra.mxu2 %v4833_v16 }
 0x22a   :  { %v2891_v26 = vmul.f32 %v4840_v59, %v2890_v42 }
 0x22b   :  { %2873 = vmatmul.bf16.vlgmr.msra.gmra.mxu0 %v2799_v36  ;;  %v1663_v45 = vadd.f32 %v1659_v39, %v1582_v43  ;;  %v4825_v43 = vld [vmem:[%s6166_s7 + $0x38] sm:$0xff] }
 0x22c   :  { %v2892_v31 = vadd.f32 %v4840_v59, %v2891_v26  ;;  %2994 = vmatpush.bf16.msra.mxu1 %v4825_v43  ;;  %v4831_v26 = vld [vmem:[%s6169_s10 + $0x28] sm:$0xff]  ;;  %v4828_v43 = vld [vmem:[%s6169_s10 + $0x10] sm:$0xff] }
 0x22e   :  { %v6084_v41 = vsel %vm2893_vm4, %v4840_v59, %v2892_v31 }
 0x230   :  { %v1580_v53 = vpop.f32.mrf.mxu0  ;;  %v1661_v19 = vpop.f32.mrf.mxu1 }
 0x231   :  { %v1740_v47 = vpop.f32.mrf.mxu2  ;;  %v1821_v50 = vpop.f32.mrf.mxu3 }
 0x232   :  { %v1744_v63 = vadd.f32 %v1740_v47, %v1663_v45 }
 0x234   :  { %v1825_v57 = vadd.f32 %v1821_v50, %v1744_v63  ;;  %v4824_v50 = vld [vmem:[%s6166_s7 + $0x30] sm:$0xff] }
 0x235   :  { %2995 = vmatpush.bf16.msra.mxu1 %v4824_v50 }
 0x239   :  { %v1742_v55 = vpop.f32.mrf.mxu2  ;;  %v1823_v44 = vpop.f32.mrf.mxu3 }
 0x248   :  { %v1902_v37 = vpop.f32.mrf.mxu0  ;;  %v1983_v58 = vpop.f32.mrf.mxu1 }
 0x249   :  { %v1906_v61 = vadd.f32 %v1902_v37, %v1825_v57  ;;  %v4823_v57 = vld [vmem:[%s6166_s7 + $0x28] sm:$0xff]  ;;  %v4822_v37 = vld [vmem:[%s6166_s7 + $0x20] sm:$0xff] }
 0x24a   :  { %2996 = vmatpush.bf16.msra.mxu1 %v4823_v57  ;;  %v3007_v57 = vld [vmem:[%s6167_s8] sm:$0x1] }
 0x24b   :  { %v1987_v0 = vadd.f32 %v1983_v58, %v1906_v61 }
 0x24e   :  { %2997 = vmatpush.bf16.msra.mxu1 %v4822_v37 }
 0x250   :  { %v1904_v22 = vpop.f32.mrf.mxu0  ;;  %v1985_v7 = vpop.f32.mrf.mxu1 }
 0x251   :  { %v2064_v1 = vpop.f32.mrf.mxu2  ;;  %v2145_v3 = vpop.f32.mrf.mxu3  ;;  %v4819_v22 = vld [vmem:[%s6166_s7 + $0x8] sm:$0xff]  ;;  %v4818_v7 = vld [vmem:[%s6166_s7] sm:$0xff] }
 0x252   :  { %v2068_v4 = vadd.f32 %v2064_v1, %v1987_v0  ;;  %v4821_v0 = vld [vmem:[%s6166_s7 + $0x18] sm:$0xff] }
 0x253   :  { %2998 = vmatpush.bf16.msra.mxu1 %v4821_v0 }
 0x254   :  { %v2149_v6 = vadd.f32 %v2145_v3, %v2068_v4  ;;  %v4820_v4 = vld [vmem:[%s6166_s7 + $0x10] sm:$0xff] }
 0x257   :  { %2999 = vmatpush.bf16.msra.mxu1 %v4820_v4 }
 0x259   :  { %v2066_v8 = vpop.f32.mrf.mxu2  ;;  %v2147_v27 = vpop.f32.mrf.mxu3 }
 0x25b   :  { %3000 = vmatpush.bf16.msra.mxu1 %v4819_v22 }
 0x25f   :  { %3001 = vmatpush.bf16.msra.mxu1 %v4818_v7 }
 0x268   :  { %v2226_v12 = vpop.f32.mrf.mxu0  ;;  %v2307_v15 = vpop.f32.mrf.mxu1 }
 0x269   :  { %v2230_v18 = vadd.f32 %v2226_v12, %v2149_v6 }
 0x26b   :  { %v2311_v34 = vadd.f32 %v2307_v15, %v2230_v18 }
 0x270   :  { %v2228_v5 = vpop.f32.mrf.mxu0  ;;  %v2309_v46 = vpop.f32.mrf.mxu1 }
 0x271   :  { %v2388_v2 = vpop.f32.mrf.mxu2  ;;  %v2469_v32 = vpop.f32.mrf.mxu3 }
 0x272   :  { %v2392_v30 = vadd.f32 %v2388_v2, %v2311_v34  ;;  %v2879_v2 = vld [vmem:[%s6164_s5] sm:$0x1] }
 0x274   :  { %v2473_v13 = vadd.f32 %v2469_v32, %v2392_v30 }
 0x279   :  { %v2390_v49 = vpop.f32.mrf.mxu2  ;;  %v2471_v62 = vpop.f32.mrf.mxu3 }
 0x27a   :  { %v2880_v49 = vld [vmem:[%s6165_s6] sm:$0x1] }
 0x288   :  { %v2550_v10 = vpop.f32.mrf.mxu0  ;;  %v2631_v51 = vpop.f32.mrf.mxu1 }
 0x289   :  { %v2554_v56 = vadd.f32 %v2550_v10, %v2473_v13 }
 0x28b   :  { %v2635_v20 = vadd.f32 %v2631_v51, %v2554_v56 }
 0x28f   :  { %v2712_v11 = vpop.f32.mrf.mxu2 }
 0x290   :  { %v2793_v52 = vpop.f32.mrf.mxu3  ;;  %v2552_v35 = vpop.f32.mrf.mxu0  ;;  %v2716_v21 = vadd.f32 %v2712_v11, %v2635_v20 }
 0x291   :  { %v2633_v48 = vpop.f32.mrf.mxu1 }
 0x292   :  { %v2797_v24 = vadd.f32 %v2793_v52, %v2716_v21 }
 0x297   :  { %v2714_v14 = vpop.f32.mrf.mxu2 }
 0x298   :  { %v2795_v54 = vpop.f32.mrf.mxu3 }
 0x2a8   :  { %v2874_v25 = vpop.f32.mrf.mxu0 }
 0x2a9   :  { %v2878_v28 = vadd.f32 %v2874_v25, %v2797_v24 }
 0x2ab   :  { %v2881_v60 = vsel %vm580_vm0, %v2878_v28, 0.0 }
 0x2ac   :  { %v2882_v29 = vrot.slane %v2881_v60, 4 }
 0x2ae   :  { %v2883_v33 = vadd.f32 %v2882_v29, %v2881_v60 }
 0x2b0   :  { %v2884_v9 = vrot.slane %v2883_v33, 2  ;;  %v2876_v23 = vpop.f32.mrf.mxu0 }
 0x2b1   :  { %v4830_v23 = vld [vmem:[%s6169_s10 + $0x20] sm:$0xff] }
 0x2b2   :  { %v2885_v36 = vadd.f32 %v2884_v9, %v2883_v33 }
 0x2b4   :  { %v2886_v40 = vrot.slane %v2885_v36, 1 }
 0x2b6   :  { %v2887_v38 = vadd.f32 %v2886_v40, %v2885_v36  ;;  %v4829_v40 = vld [vmem:[%s6169_s10 + $0x18] sm:$0xff] }
 0x2b8   :  { %v2895_v39 = vmul.f32 %v6084_v41, %v2887_v38 }
 0x2ba   :  { %v2896_v45 = vsub.f32 %v2878_v28, %v2895_v39 }
 0x2bc   :  { %v2897_v47 = vmul.f32 %v2896_v45, %v2896_v45  ;;  %v4827_v45 = vld [vmem:[%s6169_s10 + $0x8] sm:$0xff] }
 0x2be   :  { %v2898_v63 = vsel %vm580_vm0, %v2897_v47, 0.0  ;;  %v4826_v47 = vld [vmem:[%s6169_s10] sm:$0xff] }
 0x2bf   :  { %v2899_v53 = vrot.slane %v2898_v63, 4 }
 0x2c1   :  { %v2900_v19 = vadd.f32 %v2899_v53, %v2898_v63 }
 0x2c3   :  { %v2901_v55 = vrot.slane %v2900_v19, 2 }
 0x2c5   :  { %v2902_v44 = vadd.f32 %v2901_v55, %v2900_v19 }
 0x2c7   :  { %v2903_v58 = vrot.slane %v2902_v44, 1 }
 0x2c9   :  { %v2904_v61 = vadd.f32 %v2903_v58, %v2902_v44  ;;  %v3008_v58 = vld [vmem:[%s6168_s9] sm:$0x1] }
 0x2cb   :  { %v2905_v1 = vmul.f32 %v2904_v61, %v6084_v41 }
 0x2cd   :  { %v2906_v3 = vadd.f32 1e-05, %v2905_v1 }
 0x2cf   :  { %4841 = vrsqrt.f32 %v2906_v3  ;;  %vm2913_vm6 = vweird.f32 %v2906_v3 }
 0x2d5   :  { %v4842_v6 = vpop.eup %4841 }
 0x2d6   :  { %v2908_v8 = vmul.f32 %v4842_v6, %v2906_v3  ;;  %vm2914_vm5 = vweird.f32 %v4842_v6 }
 0x2d7   :  { %vm2915_vm7 = vmor %vm2913_vm6, %vm2914_vm5 }
 0x2d8   :  { %v2909_v27 = vmul.f32 %v4842_v6, %v2908_v8  ;;  %v4836_v8 = vld [vmem:[%s6170_s11] ss:$0 sm:$0xff] }
 0x2da   :  { %v2910_v12 = vmul.f32 0.5, %v2909_v27 }
 0x2dc   :  { %v2911_v15 = vsub.f32 1.5, %v2910_v12 }
 0x2de   :  { %v2912_v32 = vmul.f32 %v4842_v6, %v2911_v15 }
 0x2e0   :  { %v2916_v5 = vsel %vm2915_vm7, %v4842_v6, %v2912_v32 }
 0x2e1   :  { %v2917_v46 = vmul.f32 %v2916_v5, %v2879_v2 }
 0x2e3   :  { %v2919_v62 = vperm.slane %v2917_v46, 0  ;;  %v2922_v10 = vmul.f32 %v2917_v46, %v2895_v39 }
 0x2e5   :  { %v2923_v51 = vsub.f32 %v2880_v49, %v2922_v10  ;;  %v2921_v18 = vmul.f32 %v2919_v62, %v2878_v28  ;;  %v4832_v28 = vld [vmem:[%s6169_s10 + $0x30] sm:$0xff] }
 0x2e6   :  { %3120 = vmatpush.bf16.msra.mxu2 %v4832_v28 }
 0x2e7   :  { %v2925_v11 = vperm.slane %v2923_v51, 0 }
 0x2e9   :  { %v2927_v52 = vadd.f32 %v2925_v11, %v2921_v18 }
 0x2ea   :  { %3121 = vmatpush.bf16.msra.mxu2 %v4831_v26 }
 0x2eb   :  { %v2928_v35 = vmax.f32 %v2927_v52, 0.0 }
 0x2ed   :  { %v2929_v48 = vpack.c.bf16 %v2928_v35, %v2928_v35 }
 0x2ee   :  { %3122 = vmatpush.bf16.msra.mxu2 %v4830_v23 }
 0x2ef   :  { %3002 = vmatmul.bf16.vlgmr.msra.gmra.mxu1 %v2929_v48 }
 0x2f2   :  { %3123 = vmatpush.bf16.msra.mxu2 %v4829_v40 }
 0x2f6   :  { %3124 = vmatpush.bf16.msra.mxu2 %v4828_v43 }
 0x2fa   :  { %3125 = vmatpush.bf16.msra.mxu2 %v4827_v45 }
 0x2fe   :  { %3126 = vmatpush.bf16.msra.mxu2 %v4826_v47 }
 0x36c   :  { %v3003_v34 = vpop.f32.mrf.mxu1 }
 0x36d   :  { %v3009_v30 = vsel %vm580_vm0, %v3003_v34, 0.0 }
 0x36e   :  { %v3010_v14 = vrot.slane %v3009_v30, 4 }
 0x370   :  { %v3011_v54 = vadd.f32 %v3010_v14, %v3009_v30 }
 0x372   :  { %v3012_v13 = vrot.slane %v3011_v54, 2 }
 0x374   :  { %v3013_v17 = vadd.f32 %v3012_v13, %v3011_v54  ;;  %v3005_v56 = vpop.f32.mrf.mxu1 }
 0x376   :  { %v3014_v20 = vrot.slane %v3013_v17, 1 }
 0x378   :  { %v3015_v59 = vadd.f32 %v3014_v20, %v3013_v17 }
 0x37a   :  { %v3016_v21 = vmul.f32 %v3015_v59, %v6084_v41 }
 0x37c   :  { %v3017_v24 = vsub.f32 %v3003_v34, %v3016_v21 }
 0x37e   :  { %v3018_v25 = vmul.f32 %v3017_v24, %v3017_v24 }
 0x380   :  { %v3019_v42 = vsel %vm580_vm0, %v3018_v25, 0.0 }
 0x381   :  { %v3020_v60 = vrot.slane %v3019_v42, 4 }
 0x383   :  { %v3021_v29 = vadd.f32 %v3020_v60, %v3019_v42 }
 0x385   :  { %v3022_v33 = vrot.slane %v3021_v29, 2 }
 0x387   :  { %v3023_v9 = vadd.f32 %v3022_v33, %v3021_v29 }
 0x389   :  { %v3024_v31 = vrot.slane %v3023_v9, 1 }
 0x38b   :  { %v3025_v36 = vadd.f32 %v3024_v31, %v3023_v9 }
 0x38d   :  { %v3026_v38 = vmul.f32 %v3025_v36, %v6084_v41 }
 0x38f   :  { %v3027_v39 = vadd.f32 1e-05, %v3026_v38 }
 0x391   :  { %4843 = vrsqrt.f32 %v3027_v39  ;;  %vm3034_vm9 = vweird.f32 %v3027_v39 }
 0x397   :  { %v4844_v50 = vpop.eup %4843 }
 0x398   :  { %v3029_v63 = vmul.f32 %v4844_v50, %v3027_v39  ;;  %vm3035_vm8 = vweird.f32 %v4844_v50 }
 0x399   :  { %vm3036_vm10 = vmor %vm3034_vm9, %vm3035_vm8 }
 0x39a   :  { %v3030_v41 = vmul.f32 %v4844_v50, %v3029_v63 }
 0x39c   :  { %v3031_v53 = vmul.f32 0.5, %v3030_v41 }
 0x39e   :  { %v3032_v19 = vsub.f32 1.5, %v3031_v53 }
 0x3a0   :  { %v3033_v55 = vmul.f32 %v4844_v50, %v3032_v19 }
 0x3a2   :  { %v3037_v44 = vsel %vm3036_vm10, %v4844_v50, %v3033_v55 }
 0x3a3   :  { %v3038_v37 = vmul.f32 %v3037_v44, %v3007_v57 }
 0x3a5   :  { %v3040_v61 = vperm.slane %v3038_v37, 0  ;;  %v3043_v0 = vmul.f32 %v3038_v37, %v3016_v21 }
 0x3a7   :  { %v3044_v1 = vsub.f32 %v3008_v58, %v3043_v0  ;;  %v3042_v3 = vmul.f32 %v3040_v61, %v3003_v34 }
 0x3a9   :  { %v3046_v4 = vperm.slane %v3044_v1, 0 }
 0x3ab   :  { %v3048_v22 = vadd.f32 %v3046_v4, %v3042_v3 }
 0x3ad   :  { %v3049_v7 = vmax.f32 %v3048_v22, 0.0 }
 0x3af   :  { %v3050_v6 = vpack.c.bf16 %v3049_v7, %v3049_v7 }
 0x3b1   :  { %3127 = vmatmul.bf16.vlgmr.msra.gmra.mxu2 %v3050_v6 }
 0x434   :  { %v3128_v27 = vpop.f32.mrf.mxu2 }
 0x435   :  { %v3129_v12 = vadd.f32 %v4836_v8, %v3128_v27 }
 0x437   :  { %3132 = vst [vmem:[#allocation3] sm:$0x3] %v3129_v12 }
 0x438   :  { %3143 = dma.vmem_to_hbm [thread:$0]  %s3139_s3, 32, %s3141_s19, [#allocation4]  }
 0x43c   :  { %v3130_v15 = vpop.f32.mrf.mxu2 }
 0x43d   :  { %4869 = dma.done.wait [#allocation4], 32  }
 0x43e   :  { %4870 = vsyncadd [#allocation4], 4294967264 }
 0x43f   :  { %3148 = vsyncpa [#allocation4], 1 }

</bundles_post_ra>
